<compile_context>
chip_gen: v7x
topology: tpu7x:2x2x1
jax: 0.10.0
libtpu: 0.0.40
codegen_flags: <defaults>
</compile_context>

<pallas_src>
import jax
import jax.numpy as jnp
from jax import lax
from jax.experimental import pallas as pl
from jax.experimental.pallas import tpu as pltpu

_LANE = 128
_HALO = 6          # largest pool kernel is 13 -> radius 6


def _round_up(n, m):
    return (n + m - 1) // m * m


def _pick_row_block(h, target=32):
    if h <= target:
        return h
    best = 1
    for d in range(1, target + 1):
        if h % d == 0:
            best = d
    return best


def _silu(v):
    # x * sigmoid(x); exp and the approximate reciprocal both issue on the EUP slot.
    return v * pl.reciprocal(1.0 + jnp.exp(-v), approx=True)


def _roll_rows(u, shift):
    # static roll along the flat (rows*W) sublane axis; normalize to a positive shift
    n = u.shape[0]
    return pltpu.roll(u, shift % n, axis=0)


# ------------------------------- Pallas wrapper ------------------------------ #
def spp_bottleneck(x_nchw, w1, b1, w2, b2, *, row_block=None):
    """x_nchw: (B, Cin, H, W) f32.  w1:(Cin,Ch) b1:(1,Ch) w2:(4Ch,Cout) b2:(1,Cout)
    (BN already folded, eval mode).  Returns (B, Cout, H, W) f32."""
    B, Cin, H, W = x_nchw.shape
    Ch = w1.shape[1]
    Cout = w2.shape[1]
    assert w2.shape[0] == 4 * Ch

    tile_h = row_block if row_block is not None else _pick_row_block(H)
    assert H % tile_h == 0, "row_block must divide H"
    nrb = H // tile_h
    slab = tile_h + 2 * _HALO

    cin_p = _round_up(Cin, _LANE)
    ch_p = _round_up(Ch, _LANE)
    cout_p = _round_up(Cout, _LANE)
    w_pad = _round_up(W, 8)
    n_slab = slab * w_pad
    n_out = tile_h * w_pad

    # ---- pad folded weights (zero rows/cols keep the math exact) ----
    w1_p = jnp.zeros((cin_p, ch_p), jnp.float32).at[:Cin, :Ch].set(w1)
    w1_p = w1_p.astype(jnp.bfloat16)
    b1_p = jnp.zeros((1, ch_p), jnp.float32).at[:, :Ch].set(b1)
    w2_p = jnp.zeros((4 * ch_p, cout_p), jnp.float32)
    for i in range(4):
        w2_p = w2_p.at[i * ch_p:i * ch_p + Ch, :Cout].set(w2[i * Ch:(i + 1) * Ch])
    w2_p = w2_p.astype(jnp.bfloat16)
    b2_p = jnp.zeros((1, cout_p), jnp.float32).at[:, :Cout].set(b2)

    # ---- NCHW -> NHWC, pad channels/width, add halo rows, build overlapped slabs ----
    x = jnp.transpose(x_nchw, (0, 2, 3, 1))
    x = jnp.pad(x, ((0, 0), (_HALO, _HALO), (0, w_pad - W), (0, cin_p - Cin)))
    slabs = jnp.stack([x[:, r * tile_h:r * tile_h + slab] for r in range(nrb)], axis=1)
    slabs = slabs.reshape(B, nrb, n_slab, cin_p).astype(jnp.bfloat16)

    # flat (row, col) indices of a slab; same for every grid step -> VMEM resident.
    row_idx = jnp.repeat(jnp.arange(slab, dtype=jnp.int32), w_pad)[:, None]
    col_idx = jnp.tile(jnp.arange(w_pad, dtype=jnp.int32), slab)[:, None]

    # ------------------------------- kernel body ------------------------------ #
    def kernel(x_ref, w1_ref, b1_ref, w2_ref, b2_ref, row_ref, col_ref, o_ref):
        r = pl.program_id(1)
        neg = jnp.float32(-jnp.inf)
        zero = jnp.float32(0.0)

        # conv1: 1x1 conv == channel matmul (bf16 MXU) + folded BN bias + SiLU (f32)
        h = jnp.dot(x_ref[0, 0], w1_ref[...], preferred_element_type=jnp.float32)
        h = _silu(h + b1_ref[...])

        row = row_ref[...]                      # (n_slab, 1) local slab row
        col = col_ref[...]                      # (n_slab, 1) column index
        grow = row + (r * tile_h - _HALO)       # global image row

        def pen(mask):                          # additive {0, -inf} mask, (n_slab, 1)
            return jnp.where(mask, zero, neg)

        # positions outside the real image behave as -inf (MaxPool2d zero... pad -> -inf)
        hp = h + pen((grow >= 0) & (grow < H) & (col < W))

        col_shifts, row_shifts = [], []
        for d in (1, 2):
            col_shifts.append((d, pen(col >= d)))                  # value from col-d
            col_shifts.append((-d, pen(col < (w_pad - d))))        # value from col+d
            row_shifts.append((d * w_pad, pen(row >= d)))          # value from row-d
            row_shifts.append((-d * w_pad, pen(row < (slab - d)))) # value from row+d

        def pool5(u):
            # separable 5x5 sliding max, stride 1, -inf padding, on the flat layout.
            # pltpu.roll uses the XLU slot; only the max/add hit the VALU.
            cmax = u
            for s, m in col_shifts:
                cmax = jnp.maximum(cmax, _roll_rows(u, s) + m)
            rmax = cmax
            for s, m in row_shifts:
                rmax = jnp.maximum(rmax, _roll_rows(cmax, s) + m)
            return rmax

        p1 = pool5(hp)      # MaxPool2d(k=5,  s=1, p=2)
        p2 = pool5(p1)      # MaxPool2d(k=9,  s=1, p=4)
        p3 = pool5(p2)      # MaxPool2d(k=13, s=1, p=6)

        c0 = _HALO * w_pad  # drop the halo rows (vreg-aligned static slice)

        def center(u):
            return u[c0:c0 + n_out]

        def dot_bf16(a, w_block):
            return jnp.dot(a.astype(jnp.bfloat16), w_block,
                           preferred_element_type=jnp.float32)

        # conv2 on concat([h, p1, p2, p3]) as a split-sum of four MXU matmuls
        acc = dot_bf16(center(h), w2_ref[0:ch_p, :])
        acc += dot_bf16(center(p1), w2_ref[ch_p:2 * ch_p, :])
        acc += dot_bf16(center(p2), w2_ref[2 * ch_p:3 * ch_p, :])
        acc += dot_bf16(center(p3), w2_ref[3 * ch_p:4 * ch_p, :])
        o_ref[0, 0] = _silu(acc + b2_ref[...]).astype(o_ref.dtype)

    out = pl.pallas_call(
        kernel,
        out_shape=jax.ShapeDtypeStruct((B, nrb, n_out, cout_p), jnp.float32),
        grid_spec=pltpu.PrefetchScalarGridSpec(
            num_scalar_prefetch=0,
            grid=(B, nrb),
            in_specs=[
                pl.BlockSpec((1, 1, n_slab, cin_p), lambda b, r: (b, r, 0, 0)),
                pl.BlockSpec((cin_p, ch_p), lambda b, r: (0, 0)),
                pl.BlockSpec((1, ch_p), lambda b, r: (0, 0)),
                pl.BlockSpec((4 * ch_p, cout_p), lambda b, r: (0, 0)),
                pl.BlockSpec((1, cout_p), lambda b, r: (0, 0)),
                pl.BlockSpec((n_slab, 1), lambda b, r: (0, 0)),
                pl.BlockSpec((n_slab, 1), lambda b, r: (0, 0)),
            ],
            out_specs=pl.BlockSpec((1, 1, n_out, cout_p), lambda b, r: (b, r, 0, 0)),
        ),
        compiler_params=pltpu.CompilerParams(
            dimension_semantics=("parallel", "parallel"),
            vmem_limit_bytes=32 * 1024 * 1024),
    )(slabs, w1_p, b1_p, w2_p, b2_p, row_idx, col_idx)

    out = out.reshape(B, H, w_pad, cout_p)[:, :, :W, :Cout]
    return jnp.transpose(out, (0, 3, 1, 2))   # NHWC -> NCHW


# ------------------------- Parameter construction --------------------------- #
def init_params(key, in_channels, out_channels):
    """Deterministic synthetic params; BN (eval mode) folded into the 1x1 convs."""
    hidden = in_channels // 2
    c2_in = hidden * 4
    eps = 1e-5
    ks = jax.random.split(key, 10)

    conv1_w = 0.1 * jax.random.normal(ks[0], (hidden, in_channels), jnp.float32)
    g1 = 1.0 + 0.1 * jax.random.normal(ks[1], (hidden,), jnp.float32)
    bta1 = 0.1 * jax.random.normal(ks[2], (hidden,), jnp.float32)
    mu1 = 0.1 * jax.random.normal(ks[3], (hidden,), jnp.float32)
    var1 = 0.5 + jnp.abs(jax.random.normal(ks[4], (hidden,), jnp.float32))

    conv2_w = 0.1 * jax.random.normal(ks[5], (out_channels, c2_in), jnp.float32)
    g2 = 1.0 + 0.1 * jax.random.normal(ks[6], (out_channels,), jnp.float32)
    bta2 = 0.1 * jax.random.normal(ks[7], (out_channels,), jnp.float32)
    mu2 = 0.1 * jax.random.normal(ks[8], (out_channels,), jnp.float32)
    var2 = 0.5 + jnp.abs(jax.random.normal(ks[9], (out_channels,), jnp.float32))

    s1 = g1 / jnp.sqrt(var1 + eps)
    w1 = (conv1_w * s1[:, None]).T               # (Cin, hidden)
    b1 = (bta1 - mu1 * s1)[None, :]              # (1, hidden)

    s2 = g2 / jnp.sqrt(var2 + eps)
    w2 = (conv2_w * s2[:, None]).T               # (4*hidden, Cout)
    b2 = (bta2 - mu2 * s2)[None, :]              # (1, Cout)
    return w1, b1, w2, b2


# ---------------------------- Pure-JAX reference ----------------------------- #
def reference(x_nchw, w1, b1, w2, b2):
    x = jnp.transpose(x_nchw, (0, 2, 3, 1))
    h = jnp.einsum('bhwc,cd->bhwd', x, w1) + b1[0]
    h = h * jax.nn.sigmoid(h)

    def mp(t, k):
        p = k // 2
        return lax.reduce_window(t, -jnp.inf, lax.max,
                                 (1, k, k, 1), (1, 1, 1, 1),
                                 ((0, 0), (p, p), (p, p), (0, 0)))

    cat = jnp.concatenate([h, mp(h, 5), mp(h, 9), mp(h, 13)], axis=-1)
    y = jnp.einsum('bhwc,cd->bhwd', cat, w2) + b2[0]
    y = y * jax.nn.sigmoid(y)
    return jnp.transpose(y, (0, 3, 1, 2))


# --------------------------------- Main -------------------------------------- #
if __name__ == "__main__":
    B, Cin, H, W = 2, 8, 16, 16
    Cout = 8

    key = jax.random.PRNGKey(0)
    kx, kp = jax.random.split(key)
    x = jax.random.normal(kx, (B, Cin, H, W), jnp.float32)
    w1, b1, w2, b2 = init_params(kp, Cin, Cout)

    # row_block=8 -> 2 row blocks per image, so the halo / masking path is exercised.
    out = spp_bottleneck(x, w1, b1, w2, b2, row_block=8)
    out = jax.block_until_ready(out)

    ref = jax.block_until_ready(reference(x, w1, b1, w2, b2))
    assert out.shape == (B, Cout, H, W), out.shape
    max_err = float(jnp.max(jnp.abs(out - ref)))
    # bf16 MXU operands + approximate EUP reciprocal -> loosen tolerance vs f32 ref.
    assert jnp.allclose(out, ref, atol=3e-2, rtol=3e-2), max_err
    print("KERNEL_OK")
</pallas_src>

<mosaic_0001>
module attributes {stable_mosaic.version = 11 : i64} {
  func.func @kernel(%arg0: i32, %arg1: i32, %arg2: memref<1x1x320x128xbf16, #tpu.memory_space<vmem>>, %arg3: memref<128x128xbf16, #tpu.memory_space<vmem>>, %arg4: memref<1x128xf32, #tpu.memory_space<vmem>>, %arg5: memref<512x128xbf16, #tpu.memory_space<vmem>>, %arg6: memref<1x128xf32, #tpu.memory_space<vmem>>, %arg7: memref<320x1xi32, #tpu.memory_space<vmem>>, %arg8: memref<320x1xi32, #tpu.memory_space<vmem>>, %arg9: memref<1x1x128x128xf32, #tpu.memory_space<vmem>>) attributes {dimension_semantics = [#tpu.dimension_semantics<parallel>, #tpu.dimension_semantics<parallel>], iteration_bounds = array<i64: 2, 2>, scalar_prefetch = 0 : i64, scratch_operands = 0 : i64, tpu.core_type = #tpu.core_type<tc>, window_params = [{transform_indices = @transform_0, window_bounds = array<i64: 1, 1, 320, 128>}, {pipeline_mode = #tpu.pipeline_mode<synchronous>, transform_indices = @transform_1, window_bounds = array<i64: 128, 128>}, {pipeline_mode = #tpu.pipeline_mode<synchronous>, transform_indices = @transform_2, window_bounds = array<i64: 1, 128>}, {pipeline_mode = #tpu.pipeline_mode<synchronous>, transform_indices = @transform_3, window_bounds = array<i64: 512, 128>}, {pipeline_mode = #tpu.pipeline_mode<synchronous>, transform_indices = @transform_4, window_bounds = array<i64: 1, 128>}, {pipeline_mode = #tpu.pipeline_mode<synchronous>, transform_indices = @transform_5, window_bounds = array<i64: 320, 1>}, {pipeline_mode = #tpu.pipeline_mode<synchronous>, transform_indices = @transform_6, window_bounds = array<i64: 320, 1>}, {transform_indices = @transform_7, window_bounds = array<i64: 1, 1, 128, 128>}]} {
    %c0 = arith.constant 0 : index
    %c0_0 = arith.constant 0 : index
    %c0_1 = arith.constant 0 : index
    %c0_2 = arith.constant 0 : index
    %0 = vector.load %arg2[%c0, %c0_0, %c0_1, %c0_2] : memref<1x1x320x128xbf16, #tpu.memory_space<vmem>>, vector<1x1x320x128xbf16>
    %1 = vector.shape_cast %0 : vector<1x1x320x128xbf16> to vector<320x128xbf16>
    %c0_3 = arith.constant 0 : index
    %c0_4 = arith.constant 0 : index
    %2 = vector.load %arg3[%c0_3, %c0_4] : memref<128x128xbf16, #tpu.memory_space<vmem>>, vector<128x128xbf16>
    %cst = arith.constant dense<0.000000e+00> : vector<320x128xf32>
    %3 = tpu.matmul %1, %2, %cst {dimension_numbers = #tpu.dot_dimension_numbers<[1], [0], [0], [1], [0, 0, 1, 1], [], []>} : vector<320x128xbf16>, vector<128x128xbf16>, vector<320x128xf32> -> vector<320x128xf32>
    %c0_5 = arith.constant 0 : index
    %c0_6 = arith.constant 0 : index
    %4 = vector.load %arg4[%c0_5, %c0_6] : memref<1x128xf32, #tpu.memory_space<vmem>>, vector<1x128xf32>
    %5 = vector.broadcast %4 : vector<1x128xf32> to vector<320x128xf32>
    %6 = arith.addf %3, %5 : vector<320x128xf32>
    %cst_7 = arith.constant 0.000000e+00 : f32
    %7 = vector.broadcast %cst_7 : f32 to vector<320x128xf32>
    %8 = arith.subf %7, %6 : vector<320x128xf32>
    %9 = math.exp %8 : vector<320x128xf32>
    %cst_8 = arith.constant 1.000000e+00 : f32
    %10 = vector.broadcast %cst_8 : f32 to vector<320x128xf32>
    %11 = arith.addf %10, %9 : vector<320x128xf32>
    %12 = tpu.reciprocal %11 {approx = true} : vector<320x128xf32> -> vector<320x128xf32>
    %13 = arith.mulf %6, %12 : vector<320x128xf32>
    %c0_9 = arith.constant 0 : index
    %c0_10 = arith.constant 0 : index
    %14 = vector.load %arg7[%c0_9, %c0_10] : memref<320x1xi32, #tpu.memory_space<vmem>>, vector<320x1xi32>
    %c0_11 = arith.constant 0 : index
    %c0_12 = arith.constant 0 : index
    %15 = vector.load %arg8[%c0_11, %c0_12] : memref<320x1xi32, #tpu.memory_space<vmem>>, vector<320x1xi32>
    %c8_i32 = arith.constant 8 : i32
    %16 = arith.muli %arg1, %c8_i32 : i32
    %c6_i32 = arith.constant 6 : i32
    %17 = arith.subi %16, %c6_i32 : i32
    %18 = vector.broadcast %17 : i32 to vector<320x1xi32>
    %19 = arith.addi %14, %18 : vector<320x1xi32>
    %c0_i32 = arith.constant 0 : i32
    %20 = vector.broadcast %c0_i32 : i32 to vector<320x1xi32>
    %21 = arith.cmpi sge, %19, %20 : vector<320x1xi32>
    %c16_i32 = arith.constant 16 : i32
    %22 = vector.broadcast %c16_i32 : i32 to vector<320x1xi32>
    %23 = arith.cmpi slt, %19, %22 : vector<320x1xi32>
    %24 = arith.andi %21, %23 : vector<320x1xi1>
    %c16_i32_13 = arith.constant 16 : i32
    %25 = vector.broadcast %c16_i32_13 : i32 to vector<320x1xi32>
    %26 = arith.cmpi slt, %15, %25 : vector<320x1xi32>
    %27 = arith.andi %24, %26 : vector<320x1xi1>
    %cst_14 = arith.constant 0.000000e+00 : f32
    %cst_15 = arith.constant 0xFF800000 : f32
    %28 = vector.broadcast %cst_14 : f32 to vector<320x1xf32>
    %29 = vector.broadcast %cst_15 : f32 to vector<320x1xf32>
    %30 = arith.select %27, %28, %29 : vector<320x1xi1>, vector<320x1xf32>
    %31 = vector.broadcast %30 : vector<320x1xf32> to vector<320x128xf32>
    %32 = arith.addf %13, %31 : vector<320x128xf32>
    %c1_i32 = arith.constant 1 : i32
    %33 = vector.broadcast %c1_i32 : i32 to vector<320x1xi32>
    %34 = arith.cmpi sge, %15, %33 : vector<320x1xi32>
    %cst_16 = arith.constant 0.000000e+00 : f32
    %cst_17 = arith.constant 0xFF800000 : f32
    %35 = vector.broadcast %cst_16 : f32 to vector<320x1xf32>
    %36 = vector.broadcast %cst_17 : f32 to vector<320x1xf32>
    %37 = arith.select %34, %35, %36 : vector<320x1xi1>, vector<320x1xf32>
    %c15_i32 = arith.constant 15 : i32
    %38 = vector.broadcast %c15_i32 : i32 to vector<320x1xi32>
    %39 = arith.cmpi slt, %15, %38 : vector<320x1xi32>
    %cst_18 = arith.constant 0.000000e+00 : f32
    %cst_19 = arith.constant 0xFF800000 : f32
    %40 = vector.broadcast %cst_18 : f32 to vector<320x1xf32>
    %41 = vector.broadcast %cst_19 : f32 to vector<320x1xf32>
    %42 = arith.select %39, %40, %41 : vector<320x1xi1>, vector<320x1xf32>
    %c1_i32_20 = arith.constant 1 : i32
    %43 = vector.broadcast %c1_i32_20 : i32 to vector<320x1xi32>
    %44 = arith.cmpi sge, %14, %43 : vector<320x1xi32>
    %cst_21 = arith.constant 0.000000e+00 : f32
    %cst_22 = arith.constant 0xFF800000 : f32
    %45 = vector.broadcast %cst_21 : f32 to vector<320x1xf32>
    %46 = vector.broadcast %cst_22 : f32 to vector<320x1xf32>
    %47 = arith.select %44, %45, %46 : vector<320x1xi1>, vector<320x1xf32>
    %c19_i32 = arith.constant 19 : i32
    %48 = vector.broadcast %c19_i32 : i32 to vector<320x1xi32>
    %49 = arith.cmpi slt, %14, %48 : vector<320x1xi32>
    %cst_23 = arith.constant 0.000000e+00 : f32
    %cst_24 = arith.constant 0xFF800000 : f32
    %50 = vector.broadcast %cst_23 : f32 to vector<320x1xf32>
    %51 = vector.broadcast %cst_24 : f32 to vector<320x1xf32>
    %52 = arith.select %49, %50, %51 : vector<320x1xi1>, vector<320x1xf32>
    %c2_i32 = arith.constant 2 : i32
    %53 = vector.broadcast %c2_i32 : i32 to vector<320x1xi32>
    %54 = arith.cmpi sge, %15, %53 : vector<320x1xi32>
    %cst_25 = arith.constant 0.000000e+00 : f32
    %cst_26 = arith.constant 0xFF800000 : f32
    %55 = vector.broadcast %cst_25 : f32 to vector<320x1xf32>
    %56 = vector.broadcast %cst_26 : f32 to vector<320x1xf32>
    %57 = arith.select %54, %55, %56 : vector<320x1xi1>, vector<320x1xf32>
    %c14_i32 = arith.constant 14 : i32
    %58 = vector.broadcast %c14_i32 : i32 to vector<320x1xi32>
    %59 = arith.cmpi slt, %15, %58 : vector<320x1xi32>
    %cst_27 = arith.constant 0.000000e+00 : f32
    %cst_28 = arith.constant 0xFF800000 : f32
    %60 = vector.broadcast %cst_27 : f32 to vector<320x1xf32>
    %61 = vector.broadcast %cst_28 : f32 to vector<320x1xf32>
    %62 = arith.select %59, %60, %61 : vector<320x1xi1>, vector<320x1xf32>
    %c2_i32_29 = arith.constant 2 : i32
    %63 = vector.broadcast %c2_i32_29 : i32 to vector<320x1xi32>
    %64 = arith.cmpi sge, %14, %63 : vector<320x1xi32>
    %cst_30 = arith.constant 0.000000e+00 : f32
    %cst_31 = arith.constant 0xFF800000 : f32
    %65 = vector.broadcast %cst_30 : f32 to vector<320x1xf32>
    %66 = vector.broadcast %cst_31 : f32 to vector<320x1xf32>
    %67 = arith.select %64, %65, %66 : vector<320x1xi1>, vector<320x1xf32>
    %c18_i32 = arith.constant 18 : i32
    %68 = vector.broadcast %c18_i32 : i32 to vector<320x1xi32>
    %69 = arith.cmpi slt, %14, %68 : vector<320x1xi32>
    %cst_32 = arith.constant 0.000000e+00 : f32
    %cst_33 = arith.constant 0xFF800000 : f32
    %70 = vector.broadcast %cst_32 : f32 to vector<320x1xf32>
    %71 = vector.broadcast %cst_33 : f32 to vector<320x1xf32>
    %72 = arith.select %69, %70, %71 : vector<320x1xi1>, vector<320x1xf32>
    %c1_i32_34 = arith.constant 1 : i32
    %73 = tpu.dynamic_rotate %32 by %c1_i32_34 dim 0 : vector<320x128xf32>, i32 -> vector<320x128xf32>
    %74 = vector.broadcast %37 : vector<320x1xf32> to vector<320x128xf32>
    %75 = arith.addf %73, %74 : vector<320x128xf32>
    %76 = arith.maximumf %32, %75 : vector<320x128xf32>
    %c319_i32 = arith.constant 319 : i32
    %77 = tpu.dynamic_rotate %32 by %c319_i32 dim 0 : vector<320x128xf32>, i32 -> vector<320x128xf32>
    %78 = vector.broadcast %42 : vector<320x1xf32> to vector<320x128xf32>
    %79 = arith.addf %77, %78 : vector<320x128xf32>
    %80 = arith.maximumf %76, %79 : vector<320x128xf32>
    %c2_i32_35 = arith.constant 2 : i32
    %81 = tpu.dynamic_rotate %32 by %c2_i32_35 dim 0 : vector<320x128xf32>, i32 -> vector<320x128xf32>
    %82 = vector.broadcast %57 : vector<320x1xf32> to vector<320x128xf32>
    %83 = arith.addf %81, %82 : vector<320x128xf32>
    %84 = arith.maximumf %80, %83 : vector<320x128xf32>
    %c318_i32 = arith.constant 318 : i32
    %85 = tpu.dynamic_rotate %32 by %c318_i32 dim 0 : vector<320x128xf32>, i32 -> vector<320x128xf32>
    %86 = vector.broadcast %62 : vector<320x1xf32> to vector<320x128xf32>
    %87 = arith.addf %85, %86 : vector<320x128xf32>
    %88 = arith.maximumf %84, %87 : vector<320x128xf32>
    %c16_i32_36 = arith.constant 16 : i32
    %89 = tpu.dynamic_rotate %88 by %c16_i32_36 dim 0 : vector<320x128xf32>, i32 -> vector<320x128xf32>
    %90 = vector.broadcast %47 : vector<320x1xf32> to vector<320x128xf32>
    %91 = arith.addf %89, %90 : vector<320x128xf32>
    %92 = arith.maximumf %88, %91 : vector<320x128xf32>
    %c304_i32 = arith.constant 304 : i32
    %93 = tpu.dynamic_rotate %88 by %c304_i32 dim 0 : vector<320x128xf32>, i32 -> vector<320x128xf32>
    %94 = vector.broadcast %52 : vector<320x1xf32> to vector<320x128xf32>
    %95 = arith.addf %93, %94 : vector<320x128xf32>
    %96 = arith.maximumf %92, %95 : vector<320x128xf32>
    %c32_i32 = arith.constant 32 : i32
    %97 = tpu.dynamic_rotate %88 by %c32_i32 dim 0 : vector<320x128xf32>, i32 -> vector<320x128xf32>
    %98 = vector.broadcast %67 : vector<320x1xf32> to vector<320x128xf32>
    %99 = arith.addf %97, %98 : vector<320x128xf32>
    %100 = arith.maximumf %96, %99 : vector<320x128xf32>
    %c288_i32 = arith.constant 288 : i32
    %101 = tpu.dynamic_rotate %88 by %c288_i32 dim 0 : vector<320x128xf32>, i32 -> vector<320x128xf32>
    %102 = vector.broadcast %72 : vector<320x1xf32> to vector<320x128xf32>
    %103 = arith.addf %101, %102 : vector<320x128xf32>
    %104 = arith.maximumf %100, %103 : vector<320x128xf32>
    %c1_i32_37 = arith.constant 1 : i32
    %105 = tpu.dynamic_rotate %104 by %c1_i32_37 dim 0 : vector<320x128xf32>, i32 -> vector<320x128xf32>
    %106 = vector.broadcast %37 : vector<320x1xf32> to vector<320x128xf32>
    %107 = arith.addf %105, %106 : vector<320x128xf32>
    %108 = arith.maximumf %104, %107 : vector<320x128xf32>
    %c319_i32_38 = arith.constant 319 : i32
    %109 = tpu.dynamic_rotate %104 by %c319_i32_38 dim 0 : vector<320x128xf32>, i32 -> vector<320x128xf32>
    %110 = vector.broadcast %42 : vector<320x1xf32> to vector<320x128xf32>
    %111 = arith.addf %109, %110 : vector<320x128xf32>
    %112 = arith.maximumf %108, %111 : vector<320x128xf32>
    %c2_i32_39 = arith.constant 2 : i32
    %113 = tpu.dynamic_rotate %104 by %c2_i32_39 dim 0 : vector<320x128xf32>, i32 -> vector<320x128xf32>
    %114 = vector.broadcast %57 : vector<320x1xf32> to vector<320x128xf32>
    %115 = arith.addf %113, %114 : vector<320x128xf32>
    %116 = arith.maximumf %112, %115 : vector<320x128xf32>
    %c318_i32_40 = arith.constant 318 : i32
    %117 = tpu.dynamic_rotate %104 by %c318_i32_40 dim 0 : vector<320x128xf32>, i32 -> vector<320x128xf32>
    %118 = vector.broadcast %62 : vector<320x1xf32> to vector<320x128xf32>
    %119 = arith.addf %117, %118 : vector<320x128xf32>
    %120 = arith.maximumf %116, %119 : vector<320x128xf32>
    %c16_i32_41 = arith.constant 16 : i32
    %121 = tpu.dynamic_rotate %120 by %c16_i32_41 dim 0 : vector<320x128xf32>, i32 -> vector<320x128xf32>
    %122 = vector.broadcast %47 : vector<320x1xf32> to vector<320x128xf32>
    %123 = arith.addf %121, %122 : vector<320x128xf32>
    %124 = arith.maximumf %120, %123 : vector<320x128xf32>
    %c304_i32_42 = arith.constant 304 : i32
    %125 = tpu.dynamic_rotate %120 by %c304_i32_42 dim 0 : vector<320x128xf32>, i32 -> vector<320x128xf32>
    %126 = vector.broadcast %52 : vector<320x1xf32> to vector<320x128xf32>
    %127 = arith.addf %125, %126 : vector<320x128xf32>
    %128 = arith.maximumf %124, %127 : vector<320x128xf32>
    %c32_i32_43 = arith.constant 32 : i32
    %129 = tpu.dynamic_rotate %120 by %c32_i32_43 dim 0 : vector<320x128xf32>, i32 -> vector<320x128xf32>
    %130 = vector.broadcast %67 : vector<320x1xf32> to vector<320x128xf32>
    %131 = arith.addf %129, %130 : vector<320x128xf32>
    %132 = arith.maximumf %128, %131 : vector<320x128xf32>
    %c288_i32_44 = arith.constant 288 : i32
    %133 = tpu.dynamic_rotate %120 by %c288_i32_44 dim 0 : vector<320x128xf32>, i32 -> vector<320x128xf32>
    %134 = vector.broadcast %72 : vector<320x1xf32> to vector<320x128xf32>
    %135 = arith.addf %133, %134 : vector<320x128xf32>
    %136 = arith.maximumf %132, %135 : vector<320x128xf32>
    %c1_i32_45 = arith.constant 1 : i32
    %137 = tpu.dynamic_rotate %136 by %c1_i32_45 dim 0 : vector<320x128xf32>, i32 -> vector<320x128xf32>
    %138 = vector.broadcast %37 : vector<320x1xf32> to vector<320x128xf32>
    %139 = arith.addf %137, %138 : vector<320x128xf32>
    %140 = arith.maximumf %136, %139 : vector<320x128xf32>
    %c319_i32_46 = arith.constant 319 : i32
    %141 = tpu.dynamic_rotate %136 by %c319_i32_46 dim 0 : vector<320x128xf32>, i32 -> vector<320x128xf32>
    %142 = vector.broadcast %42 : vector<320x1xf32> to vector<320x128xf32>
    %143 = arith.addf %141, %142 : vector<320x128xf32>
    %144 = arith.maximumf %140, %143 : vector<320x128xf32>
    %c2_i32_47 = arith.constant 2 : i32
    %145 = tpu.dynamic_rotate %136 by %c2_i32_47 dim 0 : vector<320x128xf32>, i32 -> vector<320x128xf32>
    %146 = vector.broadcast %57 : vector<320x1xf32> to vector<320x128xf32>
    %147 = arith.addf %145, %146 : vector<320x128xf32>
    %148 = arith.maximumf %144, %147 : vector<320x128xf32>
    %c318_i32_48 = arith.constant 318 : i32
    %149 = tpu.dynamic_rotate %136 by %c318_i32_48 dim 0 : vector<320x128xf32>, i32 -> vector<320x128xf32>
    %150 = vector.broadcast %62 : vector<320x1xf32> to vector<320x128xf32>
    %151 = arith.addf %149, %150 : vector<320x128xf32>
    %152 = arith.maximumf %148, %151 : vector<320x128xf32>
    %c16_i32_49 = arith.constant 16 : i32
    %153 = tpu.dynamic_rotate %152 by %c16_i32_49 dim 0 : vector<320x128xf32>, i32 -> vector<320x128xf32>
    %154 = vector.broadcast %47 : vector<320x1xf32> to vector<320x128xf32>
    %155 = arith.addf %153, %154 : vector<320x128xf32>
    %156 = arith.maximumf %152, %155 : vector<320x128xf32>
    %c304_i32_50 = arith.constant 304 : i32
    %157 = tpu.dynamic_rotate %152 by %c304_i32_50 dim 0 : vector<320x128xf32>, i32 -> vector<320x128xf32>
    %158 = vector.broadcast %52 : vector<320x1xf32> to vector<320x128xf32>
    %159 = arith.addf %157, %158 : vector<320x128xf32>
    %160 = arith.maximumf %156, %159 : vector<320x128xf32>
    %c32_i32_51 = arith.constant 32 : i32
    %161 = tpu.dynamic_rotate %152 by %c32_i32_51 dim 0 : vector<320x128xf32>, i32 -> vector<320x128xf32>
    %162 = vector.broadcast %67 : vector<320x1xf32> to vector<320x128xf32>
    %163 = arith.addf %161, %162 : vector<320x128xf32>
    %164 = arith.maximumf %160, %163 : vector<320x128xf32>
    %c288_i32_52 = arith.constant 288 : i32
    %165 = tpu.dynamic_rotate %152 by %c288_i32_52 dim 0 : vector<320x128xf32>, i32 -> vector<320x128xf32>
    %166 = vector.broadcast %72 : vector<320x1xf32> to vector<320x128xf32>
    %167 = arith.addf %165, %166 : vector<320x128xf32>
    %168 = arith.maximumf %164, %167 : vector<320x128xf32>
    %169 = vector.extract_strided_slice %13 {offsets = [96, 0], sizes = [128, 128], strides = [1, 1]} : vector<320x128xf32> to vector<128x128xf32>
    %c0_53 = arith.constant 0 : index
    %c0_54 = arith.constant 0 : index
    %170 = vector.load %arg5[%c0_53, %c0_54] : memref<512x128xbf16, #tpu.memory_space<vmem>>, vector<128x128xbf16>
    %171 = arith.truncf %169 : vector<128x128xf32> to vector<128x128xbf16>
    %cst_55 = arith.constant dense<0.000000e+00> : vector<128x128xf32>
    %172 = tpu.matmul %171, %170, %cst_55 {dimension_numbers = #tpu.dot_dimension_numbers<[1], [0], [0], [1], [0, 0, 1, 1], [], []>} : vector<128x128xbf16>, vector<128x128xbf16>, vector<128x128xf32> -> vector<128x128xf32>
    %173 = vector.extract_strided_slice %104 {offsets = [96, 0], sizes = [128, 128], strides = [1, 1]} : vector<320x128xf32> to vector<128x128xf32>
    %c128 = arith.constant 128 : index
    %c0_56 = arith.constant 0 : index
    %174 = vector.load %arg5[%c128, %c0_56] : memref<512x128xbf16, #tpu.memory_space<vmem>>, vector<128x128xbf16>
    %175 = arith.truncf %173 : vector<128x128xf32> to vector<128x128xbf16>
    %cst_57 = arith.constant dense<0.000000e+00> : vector<128x128xf32>
    %176 = tpu.matmul %175, %174, %cst_57 {dimension_numbers = #tpu.dot_dimension_numbers<[1], [0], [0], [1], [0, 0, 1, 1], [], []>} : vector<128x128xbf16>, vector<128x128xbf16>, vector<128x128xf32> -> vector<128x128xf32>
    %177 = arith.addf %172, %176 : vector<128x128xf32>
    %178 = vector.extract_strided_slice %136 {offsets = [96, 0], sizes = [128, 128], strides = [1, 1]} : vector<320x128xf32> to vector<128x128xf32>
    %c256 = arith.constant 256 : index
    %c0_58 = arith.constant 0 : index
    %179 = vector.load %arg5[%c256, %c0_58] : memref<512x128xbf16, #tpu.memory_space<vmem>>, vector<128x128xbf16>
    %180 = arith.truncf %178 : vector<128x128xf32> to vector<128x128xbf16>
    %cst_59 = arith.constant dense<0.000000e+00> : vector<128x128xf32>
    %181 = tpu.matmul %180, %179, %cst_59 {dimension_numbers = #tpu.dot_dimension_numbers<[1], [0], [0], [1], [0, 0, 1, 1], [], []>} : vector<128x128xbf16>, vector<128x128xbf16>, vector<128x128xf32> -> vector<128x128xf32>
    %182 = arith.addf %177, %181 : vector<128x128xf32>
    %183 = vector.extract_strided_slice %168 {offsets = [96, 0], sizes = [128, 128], strides = [1, 1]} : vector<320x128xf32> to vector<128x128xf32>
    %c384 = arith.constant 384 : index
    %c0_60 = arith.constant 0 : index
    %184 = vector.load %arg5[%c384, %c0_60] : memref<512x128xbf16, #tpu.memory_space<vmem>>, vector<128x128xbf16>
    %185 = arith.truncf %183 : vector<128x128xf32> to vector<128x128xbf16>
    %cst_61 = arith.constant dense<0.000000e+00> : vector<128x128xf32>
    %186 = tpu.matmul %185, %184, %cst_61 {dimension_numbers = #tpu.dot_dimension_numbers<[1], [0], [0], [1], [0, 0, 1, 1], [], []>} : vector<128x128xbf16>, vector<128x128xbf16>, vector<128x128xf32> -> vector<128x128xf32>
    %187 = arith.addf %182, %186 : vector<128x128xf32>
    %c0_62 = arith.constant 0 : index
    %c0_63 = arith.constant 0 : index
    %188 = vector.load %arg6[%c0_62, %c0_63] : memref<1x128xf32, #tpu.memory_space<vmem>>, vector<1x128xf32>
    %189 = vector.broadcast %188 : vector<1x128xf32> to vector<128x128xf32>
    %190 = arith.addf %187, %189 : vector<128x128xf32>
    %cst_64 = arith.constant 0.000000e+00 : f32
    %191 = vector.broadcast %cst_64 : f32 to vector<128x128xf32>
    %192 = arith.subf %191, %190 : vector<128x128xf32>
    %193 = math.exp %192 : vector<128x128xf32>
    %cst_65 = arith.constant 1.000000e+00 : f32
    %194 = vector.broadcast %cst_65 : f32 to vector<128x128xf32>
    %195 = arith.addf %194, %193 : vector<128x128xf32>
    %196 = tpu.reciprocal %195 {approx = true} : vector<128x128xf32> -> vector<128x128xf32>
    %197 = arith.mulf %190, %196 : vector<128x128xf32>
    %c0_66 = arith.constant 0 : index
    %c0_67 = arith.constant 0 : index
    %c0_68 = arith.constant 0 : index
    %c0_69 = arith.constant 0 : index
    %198 = vector.load %arg9[%c0_66, %c0_67, %c0_68, %c0_69] : memref<1x1x128x128xf32, #tpu.memory_space<vmem>>, vector<1x1x128x128xf32>
    %199 = vector.shape_cast %198 : vector<1x1x128x128xf32> to vector<128x128xf32>
    %200 = vector.shape_cast %197 : vector<128x128xf32> to vector<1x1x128x128xf32>
    tpu.vector_store %arg9[%c0_66, %c0_67, %c0_68, %c0_69], %200 {strides = array<i32>} : memref<1x1x128x128xf32, #tpu.memory_space<vmem>>, vector<1x1x128x128xf32>,
    return
  }
  func.func @transform_0(%arg0: i32, %arg1: i32) -> (i32, i32, i32, i32) {
    %c0_i32 = arith.constant 0 : i32
    %c0_i32_0 = arith.constant 0 : i32
    %c0_i32_1 = arith.constant 0 : i32
    return %arg0, %arg1, %c0_i32, %c0_i32_0 : i32, i32, i32, i32
  }
  func.func @transform_1(%arg0: i32, %arg1: i32) -> (i32, i32) {
    %c0_i32 = arith.constant 0 : i32
    %c0_i32_0 = arith.constant 0 : i32
    %c0_i32_1 = arith.constant 0 : i32
    return %c0_i32, %c0_i32_0 : i32, i32
  }
  func.func @transform_2(%arg0: i32, %arg1: i32) -> (i32, i32) {
    %c0_i32 = arith.constant 0 : i32
    %c0_i32_0 = arith.constant 0 : i32
    %c0_i32_1 = arith.constant 0 : i32
    return %c0_i32, %c0_i32_0 : i32, i32
  }
  func.func @transform_3(%arg0: i32, %arg1: i32) -> (i32, i32) {
    %c0_i32 = arith.constant 0 : i32
    %c0_i32_0 = arith.constant 0 : i32
    %c0_i32_1 = arith.constant 0 : i32
    return %c0_i32, %c0_i32_0 : i32, i32
  }
  func.func @transform_4(%arg0: i32, %arg1: i32) -> (i32, i32) {
    %c0_i32 = arith.constant 0 : i32
    %c0_i32_0 = arith.constant 0 : i32
    %c0_i32_1 = arith.constant 0 : i32
    return %c0_i32, %c0_i32_0 : i32, i32
  }
  func.func @transform_5(%arg0: i32, %arg1: i32) -> (i32, i32) {
    %c0_i32 = arith.constant 0 : i32
    %c0_i32_0 = arith.constant 0 : i32
    %c0_i32_1 = arith.constant 0 : i32
    return %c0_i32, %c0_i32_0 : i32, i32
  }
  func.func @transform_6(%arg0: i32, %arg1: i32) -> (i32, i32) {
    %c0_i32 = arith.constant 0 : i32
    %c0_i32_0 = arith.constant 0 : i32
    %c0_i32_1 = arith.constant 0 : i32
    return %c0_i32, %c0_i32_0 : i32, i32
  }
  func.func @transform_7(%arg0: i32, %arg1: i32) -> (i32, i32, i32, i32) {
    %c0_i32 = arith.constant 0 : i32
    %c0_i32_0 = arith.constant 0 : i32
    %c0_i32_1 = arith.constant 0 : i32
    return %arg0, %arg1, %c0_i32, %c0_i32_0 : i32, i32, i32, i32
  }
}

</mosaic_0001>

<bundles_post_ra>
// kernel: tpu_custom_call.1
= control target key start
LH: loop header
LB: loop body
LE: loop exit
PB: predicated region body
PF: predicated region fallthrough
CT: control target
= control target key end

     0   :  { %12 = vsyncpa [#allocation3], 0  ;;  %s17496_s0 = inlined_call_operand.vmem [shape: bf16[2,2,320,128], index: 0, kind: input, shape index: {}]   ;;  %s17497_s1 = inlined_call_operand.hbm [shape: bf16[128,128], index: 1, kind: input, shape index: {}]   ;;  %s17498_s2 = inlined_call_operand.vmem [shape: f32[1,128], index: 2, kind: input, shape index: {}]   ;;  %s17499_s3 = inlined_call_operand.hbm [shape: bf16[512,128], index: 3, kind: input, shape index: {}]   ;;  %s17500_s4 = inlined_call_operand.vmem [shape: f32[1,128], index: 4, kind: input, shape index: {}]   ;;  %s17501_s5 = inlined_call_operand.vmem [shape: s32[320,1], index: 5, kind: input, shape index: {}]   ;;  %s17502_s6 = inlined_call_operand.vmem [shape: s32[320,1], index: 6, kind: input, shape index: {}]   ;;  %s17503_s7 = inlined_call_operand.hbm [shape: f32[2,2,128,128], index: 7, kind: output, shape index: {}]  }
   0x1   :  { %13 = vsyncpa [#allocation6], 0 }
   0x2   :  { %14 = vsyncpa [#allocation4], 0 }
   0x3   :  { %16 = vsyncpa [#allocation4 + $0x1], 0  ;;  %s8982_s24 = smov 0   ;;  %s8984_s25 = smov 0  }
   0x4   :  { %s8986_s26 = smov 0   ;;  %s8988_s27 = smov 0  }
   0x5   :  { %s8990_s28 = smov 0   ;;  %s8992_s29 = smov 0  }
   0x6   :  { %s8994_s30 = smov 0   ;;  %s8996_s8 = smov 0  }
   0x7 LB: > { %18224 = sst [smem:[#allocation11_spill]] %s8911_s26  ;;  %s6903_s9 = sadd.s32 4294967295, %s8931_s8   ;;  %s8931_s8 = sphi %s8996_s8, %s22_s8   ;;  %s8927_s30 = sphi %s8994_s30, %s20139_s30   ;;  %s8923_s29 = sphi %s8992_s29, %s20138_s29   ;;  %s8919_s28 = sphi %s8990_s28, %s20137_s28   ;;  %s8915_s27 = sphi %s8988_s27, %s20136_s27   ;;  %s8911_s26 = sphi %s8986_s26, %s20135_s26   ;;  %s8907_s25 = sphi %s8984_s25, %s20141_s25   ;;  %s8903_s24 = sphi %s8982_s24, %s20140_s24  }
   0x8   : > { %18225 = sst [smem:[#allocation12_spill]] %s8923_s29  ;;  %s6904_s10 = sadd.s32 4294967294, %s8931_s8  }
   0x9   : > { %18226 = sst [smem:[#allocation13_spill]] %s8927_s30  ;;  %s31_s11 = sadd.s32 1, %s8923_s29 }
   0xa   : > { %s34_s12 = sadd.s32 1, %s8927_s30  ;;  %p32_p0 = scmp.ge.s32.totalorder %s31_s11, 2 }
   0xb   : > { %s197_s13 = sadd.s32 1, %s8911_s26  ;;  %p207_p1 = scmp.ne.s32.totalorder %s8911_s26, %s8907_s25 }
   0xc   : > { %p208_p2 = scmp.eq.s32.totalorder %s6903_s9, 3  ;;  %s20143_s11 = smov (%p32_p0, %s31_s11), 0 }
   0xd   : > { %18227 = sst [smem:[#allocation14_spill]] %s20143_s11  ;;  %s20145_s12 = smov (!%p32_p0, %s34_s12), %s8927_s30 }
   0xe   : > { %s193_s14 = ssub.s32 %s8923_s29, %s20143_s11  ;;  %p9034_p3 = por %p208_p2, %p207_p1 }
   0xf   : > { %p36_p4 = scmp.ge.s32.totalorder %s20145_s12, 2  ;;  %p213_p5 = scmp.ne.s32.totalorder %s8907_s25, %s8903_s24 }
  0x10   : > { %s18228_s15 = scalar_select %p9034_p3, 1, 0 }
  0x11   : > { %p214_p6 = scmp.eq.s32.totalorder %s6904_s10, 3  ;;  %p6905_p7 = scmp.ge.s32.totalorder %s8931_s8, 1 }
  0x12   : > { %s20147_s12 = smov (%p36_p4, %s20145_s12), 0  ;;  %p221_p9 = scmp.lt.s32.totalorder %s8931_s8, 5 }
  0x13   : > { %18229 = sst [smem:[#allocation15_spill]] %s20147_s12  ;;  %p9043_p8 = por %p214_p6, %p213_p5 }
  0x14   : > { %s192_s17 = ssub.s32 %s8927_s30, %s20147_s12  ;;  %p9050_p10 = pnand %p6905_p7, %p221_p9 }
  0x15   : > { %s18230_s16 = scalar_select %p9043_p8, 1, 0 }
  0x16   : > { %s194_s18 = sor.u32 %s193_s14, %s192_s17  ;;  %p9054_p12 = scmp.eq.s32.totalorder %s6903_s9, 0 }
  0x17   : > { %18231 = sst [smem:[#allocation16_spill]] %s18230_s16  ;;  %p195_p11 = scmp.eq.s32.totalorder %s194_s18, 0 }
  0x18   : > { %s18232_s19 = scalar_select %p9050_p10, 1, 0 }
  0x19   : > { %s18233_s20 = scalar_select %p9054_p12, 1, 0 }
  0x1a   : > { %p7336_p13 = pneg %p9050_p10  ;;  %s8933_s22 = smov [#allocation2]  }
  0x1b   : > { %s9061_s21 = scalar_select %p195_p11, %s8911_s26, %s197_s13  }
  0x1c   : > { %s233_s23 = sshll.u32 %s8933_s22, 4  ;;  %p9065_p0 = pnand %p9054_p12, %p7336_p13  ;;  %s234_s23 = int_to_ptr.vmem [resolvable:$true] %s233_s23 }
  0x1d   : > { %18234 = sst [smem:[#allocation17_spill]] %s9061_s21  ;;  %s8773_s17 = scalar_lea.hbm %s17497_s1, 1024 }
  0x1e   : > { %p8774_p1 = scmp.ne.s32.totalorder %s17497_s1, %s8773_s17  ;;  %p8775_p2 = pneg %p9065_p0 }
  0x1f   : > { %p8780_p6 = scmp.lt.u32.totalorder %s8773_s17, %s17497_s1 }
  0x20   : > { %p8776_p4 = pnand %p8775_p2, %p8774_p1 }
  0x22   : > { %p8777_p5 = pneg %p8776_p4 }
  0x24   : > { %p8782_p7 = pnand %p8780_p6, %p8777_p5 }
  0x26   : > { %8785 = shalt.err (!%p8782_p7)
}
  0x27   : > { %s8786_s11 = scalar_lea.vmem %s234_s23, 1024  ;;  %p8794_p8 = scmp.lt.s32.totalorder %s234_s23, %s234_s23 }
  0x28   : > { %p8787_p9 = scmp.ne.s32.totalorder %s234_s23, %s8786_s11  ;;  %p8795_p3 = scmp.lt.s32.totalorder %s8786_s11, %s8786_s11 }
  0x2a   : > { %p8789_p11 = pnand %p8787_p9, %p8775_p2  ;;  %p8796_p12 = por %p8795_p3, %p8794_p8 }
  0x2c   : > { %p8790_p13 = pneg %p8789_p11 }
  0x2e   : > { %p8797_p10 = pnand %p8796_p12, %p8790_p13 }
  0x30   : > { %8800 = shalt.err (!%p8797_p10)
}
  0x31   : > { %s8934_s12 = smov 64   ;;  %s8935_s14 = smov 4  }
  0x32   : > { %7339 = dma.hbm_to_vmem [thread:$0]  (!%p9065_p0), %s17497_s1, 1024, %s234_s23, [#allocation3], %s8934_s12, %s8934_s12, %s8935_s14  }
  0x33   : > { %s8936_s18 = smov [#allocation5]   ;;  %s8801_s29 = scalar_lea.hbm %s17499_s3, 4096 }
  0x34   : > { %s249_s13 = sshll.u32 %s8936_s18, 4  ;;  %p8802_p3 = scmp.ne.s32.totalorder %s17499_s3, %s8801_s29  ;;  %s250_s13 = int_to_ptr.vmem [resolvable:$true] %s249_s13 }
  0x35   : > { %p8808_p12 = scmp.lt.u32.totalorder %s8801_s29, %s17499_s3 }
  0x36   : > { %p8804_p8 = pnand %p8802_p3, %p8775_p2 }
  0x38   : > { %p8805_p10 = pneg %p8804_p8 }
  0x3a   : > { %p8810_p1 = pnand %p8808_p12, %p8805_p10 }
  0x3c   : > { %8813 = shalt.err (!%p8810_p1)
}
  0x3d   : > { %s8814_s23 = scalar_lea.vmem %s250_s13, 4096  ;;  %p8822_p7 = scmp.lt.s32.totalorder %s250_s13, %s250_s13 }
  0x3e   : > { %p8815_p4 = scmp.ne.s32.totalorder %s250_s13, %s8814_s23  ;;  %p8823_p9 = scmp.lt.s32.totalorder %s8814_s23, %s8814_s23 }
  0x40   : > { %p8817_p5 = pnand %p8815_p4, %p8775_p2  ;;  %p8824_p11 = por %p8823_p9, %p8822_p7 }
  0x42   : > { %p8818_p6 = pneg %p8817_p5 }
  0x44   : > { %p8825_p13 = pnand %p8824_p11, %p8818_p6 }
  0x46   : > { %8828 = shalt.err (!%p8825_p13)
}
  0x47   : > { %7342 = dma.hbm_to_vmem [thread:$0]  (!%p9065_p0), %s17499_s3, 4096, %s250_s13, [#allocation6], %s8934_s12, %s8934_s12, %s8935_s14  }
  0x48   : > { %p18236_p3 = scmp.ne.s32.totalorder %s18232_s19, 0 }
  0x4a   : > { %286 = sbr.rel (%p18236_p3) target bundleno = 1440 (0x5a0), region = 48 }
  0x51   : > { %p18237_p8 = scmp.ne.s32.totalorder %s18233_s20, 0 }
  0x53   : > { %8890 = dma.done.wait (%p18237_p8), [#allocation3], 1024  }
  0x54   : > { %8892 = vsyncadd (%p18237_p8), [#allocation3], 4294966272 }
  0x55   : > { %8894 = dma.done.wait (%p18237_p8), [#allocation6], 4096  }
  0x56   : > { %8896 = vsyncadd (%p18237_p8), [#allocation6], 4294963200  ;;  %v8937_v0 = vmov 0   ;;  %s6943_s26 = sshll.u32 %s8915_s27, 3  ;;  %v8281_v1 = vld [vmem:[#allocation2] sm:$0xff]   ;;  %v8282_v3 = vld [vmem:[#allocation2 + $0x8] sm:$0xff]  }
  0x57   : > { %7435 = vset.pattern.permute.xlu1 %v8937_v0  ;;  %7424 = vset.pattern.permute.xlu0 %v8937_v0  ;;  %s6944_s29 = sadd.s32 4294967290, %s6943_s26  ;;  %v1004_v4 = vld [vmem:[%s17501_s5 + $0x20] sm:$0xff]  ;;  %v1005_v5 = vld [vmem:[%s17501_s5 + $0x28] sm:$0xff]  ;;  %v8283_v15 = vld [vmem:[#allocation2 + $0x10] sm:$0xff]   ;;  %v17520_v22 = vmov -inf   ;;  %p326_p0 = scmp.lt.s32.totalorder %s8919_s28, 1 }
  0x58   : > { %v9122_v2 = vstv %s6944_s29  ;;  %7076 = vmatprep.subr.bf16.mxu0 %v8281_v1  ;;  %v9133_v6 = vld [vmem:[%s17502_s6 + $0x20] sm:$0xff]  ;;  %v9138_v7 = vld [vmem:[%s17502_s6 + $0x28] sm:$0xff]  ;;  %v1006_v16 = vld [vmem:[%s17501_s5 + $0x30] sm:$0xff]  ;;  %p328_p2 = scmp.lt.s32.totalorder %s8915_s27, 1  ;;  %s6979_s20 = sshll.u32 %s8915_s27, 4 }
  0x59   : > { %7077 = vmatpush3.bf16.msra.mxu0 %v8281_v1  ;;  %v1087_v8 = vadd.s32 %v9122_v2, %v1004_v4  ;;  %v1088_v9 = vadd.s32 %v9122_v2, %v1005_v5  ;;  %v1000_v10 = vld [vmem:[%s17501_s5] sm:$0xff]  ;;  %v1001_v11 = vld [vmem:[%s17501_s5 + $0x8] sm:$0xff]  ;;  %vm1247_vm0 = vcmp.lt.s32.totalorder %v9133_v6, 16  ;;  %vm1248_vm6 = vcmp.lt.s32.totalorder %v9138_v7, 16  ;;  %v1007_v18 = vld [vmem:[%s17501_s5 + $0x38] sm:$0xff]  ;;  %s9279_s29 = scalar_select %p326_p0, %s8919_s28, 1 }
  0x5a   : > { %7078 = vmatprep.subr.bf16.mxu0 %v8282_v3  ;;  %v9152_v12 = vld [vmem:[%s17502_s6] sm:$0xff]  ;;  %v1083_v13 = vadd.s32 %v9122_v2, %v1000_v10  ;;  %v1084_v14 = vadd.s32 %v9122_v2, %v1001_v11  ;;  %v9163_v17 = vld [vmem:[%s17502_s6 + $0x8] sm:$0xff]  ;;  %v1089_v19 = vadd.s32 %v9122_v2, %v1006_v16  ;;  %v1090_v20 = vadd.s32 %v9122_v2, %v1007_v18  ;;  %v1002_v21 = vld [vmem:[%s17501_s5 + $0x10] sm:$0xff]  ;;  %s9295_s10 = scalar_select %p328_p2, %s8915_s27, 1 }
  0x5b   : > { %vm1127_vm1 = vcmp.ge.s32.totalorder %v1087_v8, 0  ;;  %vm1128_vm2 = vcmp.ge.s32.totalorder %v1088_v9, 0  ;;  %vm1167_vm3 = vcmp.lt.s32.totalorder %v1087_v8, 16  ;;  %vm1168_vm4 = vcmp.lt.s32.totalorder %v1088_v9, 16  ;;  %v9182_v24 = vld [vmem:[%s17502_s6 + $0x30] sm:$0xff]  ;;  %v1003_v25 = vld [vmem:[%s17501_s5 + $0x18] sm:$0xff] }
  0x5c   : > { %vm1207_vm5 = vmand %vm1127_vm1, %vm1167_vm3  ;;  %vm1123_vm8 = vcmp.ge.s32.totalorder %v1083_v13, 0  ;;  %vm1163_vm9 = vcmp.lt.s32.totalorder %v1083_v13, 16  ;;  %vm1124_vm11 = vcmp.ge.s32.totalorder %v1084_v14, 0  ;;  %vm1164_vm12 = vcmp.lt.s32.totalorder %v1084_v14, 16  ;;  %v9194_v27 = vld [vmem:[%s17502_s6 + $0x38] sm:$0xff]  ;;  %v1010_v32 = vld [vmem:[%s17501_s5 + $0x50] sm:$0xff] }
  0x5d   : > { %7079 = vmatpush3.bf16.msra.mxu0 %v8282_v3  ;;  %vm1208_vm7 = vmand %vm1128_vm2, %vm1168_vm4  ;;  %vm1243_vm14 = vcmp.lt.s32.totalorder %v9152_v12, 16  ;;  %vm1129_vm2 = vcmp.ge.s32.totalorder %v1089_v19, 0  ;;  %vm1169_vm3 = vcmp.lt.s32.totalorder %v1089_v19, 16  ;;  %v1085_v29 = vadd.s32 %v9122_v2, %v1002_v21  ;;  %v8284_v30 = vld [vmem:[#allocation2 + $0x18] sm:$0xff]   ;;  %v9217_v36 = vld [vmem:[%s17502_s6 + $0x10] sm:$0xff]  ;;  %s7325_s11 = smul.u32 80, %s9279_s29 }
  0x5e   : > { %vm1287_vm10 = vmand %vm1207_vm5, %vm1247_vm0  ;;  %7080 = vmatprep.subr.bf16.mxu0 %v8283_v15  ;;  %vm1244_vm0 = vcmp.lt.s32.totalorder %v9163_v17, 16  ;;  %vm1130_vm5 = vcmp.ge.s32.totalorder %v1090_v20, 0  ;;  %v1086_v31 = vadd.s32 %v9122_v2, %v1003_v25  ;;  %v1011_v34 = vld [vmem:[%s17501_s5 + $0x58] sm:$0xff]  ;;  %v1093_v39 = vadd.s32 %v9122_v2, %v1010_v32  ;;  %v1008_v40 = vld [vmem:[%s17501_s5 + $0x40] sm:$0xff]  ;;  %s7324_s21 = smul.u32 40, %s9295_s10  ;;  %s323_s10 = sand.u32 1, %s8907_s25  }
  0x5f   : > { %vm1288_vm13 = vmand %vm1208_vm7, %vm1248_vm6  ;;  %v1327_v23 = vsel %vm1287_vm10, 0.0, %v17520_v22  ;;  %vm1170_vm6 = vcmp.lt.s32.totalorder %v1090_v20, 16  ;;  %vm1250_vm10 = vcmp.lt.s32.totalorder %v9194_v27, 16  ;;  %v9223_v38 = vld [vmem:[%s17502_s6 + $0x18] sm:$0xff]  ;;  %v1094_v41 = vadd.s32 %v9122_v2, %v1011_v34  ;;  %v8285_v42 = vld [vmem:[#allocation2 + $0x20] sm:$0xff]   ;;  %s6912_s12 = sshll.u32 %s323_s10, 7 }
  0x60   : > { %v1328_v26 = vsel %vm1288_vm13, 0.0, %v17520_v22  ;;  %vm1203_vm15 = vmand %vm1123_vm8, %vm1163_vm9  ;;  %vm1249_vm8 = vcmp.lt.s32.totalorder %v9182_v24, 16  ;;  %vm1165_vm13 = vcmp.lt.s32.totalorder %v1085_v29, 16  ;;  %v1009_v44 = vld [vmem:[%s17501_s5 + $0x48] sm:$0xff]  ;;  %v9247_v46 = vld [vmem:[%s17502_s6 + $0x50] sm:$0xff]  ;;  %v1091_v49 = vadd.s32 %v9122_v2, %v1008_v40  ;;  %s9360_s14 = sadd.s32 %s7325_s11, %s7324_s21  ;;  %p20131_p12 = scmp.ne.s32.totalorder %s18228_s15, 0 }
  0x61   : > { %v7436_v28 = vpack.i.bf16 %v1328_v26, %v1327_v23  ;;  %vm1204_vm1 = vmand %vm1124_vm11, %vm1164_vm12  ;;  %7081 = vmatpush3.bf16.msra.mxu0 %v8283_v15  ;;  %vm1125_vm12 = vcmp.ge.s32.totalorder %v1085_v29, 0  ;;  %v9254_v48 = vld [vmem:[%s17502_s6 + $0x58] sm:$0xff]  ;;  %v1092_v50 = vadd.s32 %v9122_v2, %v1009_v44  ;;  %v1014_v51 = vld [vmem:[%s17501_s5 + $0x70] sm:$0xff]  ;;  %s6913_s11 = sshll.u32 %s9360_s14, 2  ;;  %s6980_s14 = sshll.u32 %s8919_s28, 5 }
  0x62   : > { %vm1283_vm4 = vmand %vm1203_vm15, %vm1243_vm14  ;;  %7082 = vmatprep.subr.bf16.mxu0 %v8284_v30  ;;  %vm1126_vm15 = vcmp.ge.s32.totalorder %v1086_v31, 0  ;;  %v9271_v53 = vld [vmem:[%s17502_s6 + $0x40] sm:$0xff]  ;;  %v1015_v54 = vld [vmem:[%s17501_s5 + $0x78] sm:$0xff]  ;;  %v1097_v58 = vadd.s32 %v9122_v2, %v1014_v51  ;;  %s9411_s9 = scalar_lea.vmem %s17496_s0, %s6913_s11  ;;  %s6793_s17 = sadd.s32 %s6980_s14, %s6979_s20 }
  0x63   : > { %7437 = vperm.xlu1 %7435, %v7436_v28   ;;  %vm1284_vm7 = vmand %vm1204_vm1, %vm1244_vm0  ;;  %v1323_v33 = vsel %vm1283_vm4, 0.0, %v17520_v22  ;;  %vm1166_vm0 = vcmp.lt.s32.totalorder %v1086_v31, 16  ;;  %vm1246_vm4 = vcmp.lt.s32.totalorder %v9223_v38, 16  ;;  %v9289_v57 = vld [vmem:[%s17502_s6 + $0x48] sm:$0xff]  ;;  %v1098_v60 = vadd.s32 %v9122_v2, %v1015_v54  ;;  %v1012_v61 = vld [vmem:[%s17501_s5 + $0x60] sm:$0xff]  ;;  %s6981_s29 = sshll.u32 %s6793_s17, 7 }
  0x64   : > { %v1324_v35 = vsel %vm1284_vm7, 0.0, %v17520_v22  ;;  %vm1209_vm9 = vmand %vm1129_vm2, %vm1169_vm3  ;;  %vm1245_vm2 = vcmp.lt.s32.totalorder %v9217_v36, 16  ;;  %vm1173_vm7 = vcmp.lt.s32.totalorder %v1093_v39, 16  ;;  %v8286_v59 = vld [vmem:[#allocation2 + $0x28] sm:$0xff]   ;;  %v9317_v1 = vld [vmem:[%s17502_s6 + $0x70] sm:$0xff]  ;;  %v1095_v5 = vadd.s32 %v9122_v2, %v1012_v61  ;;  %s17435_s27 = scalar_lea.hbm %s17503_s7, %s6981_s29  ;;  %s17444_s28 = scalar_lea.sflag [#allocation4], %s323_s10 }
  0x65   : > { %v7425_v37 = vpack.i.bf16 %v1324_v35, %v1323_v33  ;;  %vm1210_vm11 = vmand %vm1130_vm5, %vm1170_vm6  ;;  %7083 = vmatpush3.bf16.msra.mxu0 %v8284_v30  ;;  %vm1133_vm6 = vcmp.ge.s32.totalorder %v1093_v39, 0  ;;  %v1013_v63 = vld [vmem:[%s17501_s5 + $0x68] sm:$0xff]  ;;  %v9322_v3 = vld [vmem:[%s17502_s6 + $0x78] sm:$0xff]  ;;  %s8939_s23 = smov [#allocation7]  }
  0x66   : > { %vm1289_vm14 = vmand %vm1209_vm9, %vm1249_vm8  ;;  %7084 = vmatprep.subr.bf16.mxu0 %v8285_v42  ;;  %vm1134_vm9 = vcmp.ge.s32.totalorder %v1094_v41, 0  ;;  %v1018_v8 = vld [vmem:[%s17501_s5 + $0x90] sm:$0xff]  ;;  %v1096_v9 = vadd.s32 %v9122_v2, %v1013_v63  ;;  %v1019_v13 = vld [vmem:[%s17501_s5 + $0x98] sm:$0xff]  ;;  %s8833_s30 = sshll.u32 %s8939_s23, 4  ;;  %s8834_s30 = int_to_ptr.vmem [resolvable:$false] %s8833_s30 }
  0x67   : > { %7426 = vperm.xlu0 %7424, %v7425_v37   ;;  %vm1290_vm1 = vmand %vm1210_vm11, %vm1250_vm10  ;;  %v1329_v43 = vsel %vm1289_vm14, 0.0, %v17520_v22  ;;  %vm1174_vm10 = vcmp.lt.s32.totalorder %v1094_v41, 16  ;;  %vm1254_vm14 = vcmp.lt.s32.totalorder %v9254_v48, 16  ;;  %v8287_v10 = vld [vmem:[#allocation2 + $0x30] sm:$0xff]   ;;  %v9349_v15 = vld [vmem:[%s17502_s6 + $0x60] sm:$0xff]  ;;  %v1101_v19 = vadd.s32 %v9122_v2, %v1018_v8  ;;  %s8835_s21 = scalar_lea.vmem %s8834_s30, 4096 }
  0x68   : > { %v1330_v45 = vsel %vm1290_vm1, 0.0, %v17520_v22  ;;  %vm1205_vm3 = vmand %vm1125_vm12, %vm1165_vm13  ;;  %vm1253_vm12 = vcmp.lt.s32.totalorder %v9247_v46, 16  ;;  %vm1171_vm1 = vcmp.lt.s32.totalorder %v1091_v49, 16  ;;  %v9355_v18 = vld [vmem:[%s17502_s6 + $0x68] sm:$0xff]  ;;  %v1102_v20 = vadd.s32 %v9122_v2, %v1019_v13  ;;  %v1016_v21 = vld [vmem:[%s17501_s5 + $0x80] sm:$0xff] }
  0x69   : > { %v7441_v47 = vpack.i.bf16 %v1330_v45, %v1329_v43  ;;  %vm1206_vm5 = vmand %vm1126_vm15, %vm1166_vm0  ;;  %7085 = vmatpush3.bf16.msra.mxu0 %v8285_v42  ;;  %vm1131_vm0 = vcmp.ge.s32.totalorder %v1091_v49, 0  ;;  %v1017_v25 = vld [vmem:[%s17501_s5 + $0x88] sm:$0xff]  ;;  %v9382_v28 = vld [vmem:[%s17502_s6 + $0x90] sm:$0xff]  ;;  %v1099_v31 = vadd.s32 %v9122_v2, %v1016_v21 }
  0x6a   : > { %vm1285_vm8 = vmand %vm1205_vm3, %vm1245_vm2  ;;  %vm1132_vm3 = vcmp.ge.s32.totalorder %v1092_v50, 0  ;;  %7086 = vmatprep.subr.bf16.mxu0 %v8286_v59  ;;  %v9389_v30 = vld [vmem:[%s17502_s6 + $0x98] sm:$0xff]  ;;  %v1100_v33 = vadd.s32 %v9122_v2, %v1017_v25  ;;  %v1022_v34 = vld [vmem:[%s17501_s5 + $0xb0] sm:$0xff] }
  0x6b   : > { %7442 = vperm.xlu1 %7435, %v7441_v47   ;;  %vm1286_vm11 = vmand %vm1206_vm5, %vm1246_vm4  ;;  %v1325_v52 = vsel %vm1285_vm8, 0.0, %v17520_v22  ;;  %vm1172_vm4 = vcmp.lt.s32.totalorder %v1092_v50, 16  ;;  %vm1252_vm8 = vcmp.lt.s32.totalorder %v9289_v57, 16  ;;  %v8288_v32 = vld [vmem:[#allocation2 + $0x38] sm:$0xff]   ;;  %v9403_v37 = vld [vmem:[%s17502_s6 + $0x80] sm:$0xff]  ;;  %v1105_v44 = vadd.s32 %v9122_v2, %v1022_v34 }
  0x6c   : > { %v1326_v55 = vsel %vm1286_vm11, 0.0, %v17520_v22  ;;  %vm1213_vm13 = vmand %vm1133_vm6, %vm1173_vm7  ;;  %vm1251_vm6 = vcmp.lt.s32.totalorder %v9271_v53, 16  ;;  %vm1177_vm11 = vcmp.lt.s32.totalorder %v1097_v58, 16  ;;  %v1023_v39 = vld [vmem:[%s17501_s5 + $0xb8] sm:$0xff]  ;;  %v9420_v41 = vld [vmem:[%s17502_s6 + $0x88] sm:$0xff] }
  0x6d   : > { %v7430_v56 = vpack.i.bf16 %v1326_v55, %v1325_v52  ;;  %vm1214_vm15 = vmand %vm1134_vm9, %vm1174_vm10  ;;  %7087 = vmatpush3.bf16.msra.mxu0 %v8286_v59  ;;  %vm1137_vm10 = vcmp.ge.s32.totalorder %v1097_v58, 0  ;;  %v1020_v42 = vld [vmem:[%s17501_s5 + $0xa0] sm:$0xff]  ;;  %v1021_v45 = vld [vmem:[%s17501_s5 + $0xa8] sm:$0xff]  ;;  %v1106_v47 = vadd.s32 %v9122_v2, %v1023_v39 }
  0x6e   : > { %vm1293_vm2 = vmand %vm1213_vm13, %vm1253_vm12  ;;  %vm1138_vm13 = vcmp.ge.s32.totalorder %v1098_v60, 0  ;;  %7088 = vmatprep.subr.bf16.mxu0 %v8287_v10  ;;  %v8289_v49 = vld [vmem:[%s9411_s9] sm:$0xff]   ;;  %v8290_v51 = vld [vmem:[%s9411_s9 + $0x8] sm:$0xff]   ;;  %v1103_v58 = vadd.s32 %v9122_v2, %v1020_v42  ;;  %v1104_v59 = vadd.s32 %v9122_v2, %v1021_v45 }
  0x6f   : > { %7431 = vperm.xlu0 %7424, %v7430_v56   ;;  %vm1294_vm5 = vmand %vm1214_vm15, %vm1254_vm14  ;;  %v1333_v62 = vsel %vm1293_vm2, 0.0, %v17520_v22  ;;  %vm1178_vm14 = vcmp.lt.s32.totalorder %v1098_v60, 16  ;;  %vm1258_vm2 = vcmp.lt.s32.totalorder %v9322_v3, 16  ;;  %v9446_v54 = vld [vmem:[%s17502_s6 + $0xb0] sm:$0xff]  ;;  %7092 = vmatprep.mubr.bf16.mxu0 %v8289_v49  ;;  %v9452_v56 = vld [vmem:[%s17502_s6 + $0xb8] sm:$0xff] }
  0x70   : > { %v1334_v0 = vsel %vm1294_vm5, 0.0, %v17520_v22  ;;  %vm1211_vm7 = vmand %vm1131_vm0, %vm1171_vm1  ;;  %vm1257_vm0 = vcmp.lt.s32.totalorder %v9317_v1, 16  ;;  %vm1175_vm5 = vcmp.lt.s32.totalorder %v1095_v5, 16  ;;  %v1026_v60 = vld [vmem:[%s17501_s5 + $0xd0] sm:$0xff]  ;;  %v9525_v34 = vld [vmem:[%s17502_s6 + $0xc0] sm:$0xff] }
  0x71   : > { %v7451_v4 = vpack.i.bf16 %v1334_v0, %v1333_v62  ;;  %vm1212_vm9 = vmand %vm1132_vm3, %vm1172_vm4  ;;  %vm1135_vm4 = vcmp.ge.s32.totalorder %v1095_v5, 0  ;;  %7089 = vmatpush3.bf16.msra.mxu0 %v8287_v10  ;;  %v1027_v62 = vld [vmem:[%s17501_s5 + $0xd8] sm:$0xff]  ;;  %v9472_v0 = vld [vmem:[%s17502_s6 + $0xa0] sm:$0xff]  ;;  %v1109_v8 = vadd.s32 %v9122_v2, %v1026_v60 }
  0x72   : > { %vm1291_vm12 = vmand %vm1211_vm7, %vm1251_vm6  ;;  %vm1136_vm7 = vcmp.ge.s32.totalorder %v1096_v9, 0  ;;  %7090 = vmatprep.subr.bf16.mxu0 %v8288_v32  ;;  %v9477_v5 = vld [vmem:[%s17502_s6 + $0xa8] sm:$0xff]  ;;  %v1110_v10 = vadd.s32 %v9122_v2, %v1027_v62  ;;  %v8291_v21 = vld [vmem:[%s9411_s9 + $0x10] sm:$0xff]  }
  0x73   : > { %7452 = vperm.xlu1 %7435, %v7451_v4   ;;  %vm1292_vm15 = vmand %vm1212_vm9, %vm1252_vm8  ;;  %v1331_v11 = vsel %vm1291_vm12, 0.0, %v17520_v22  ;;  %vm1176_vm8 = vcmp.lt.s32.totalorder %v1096_v9, 16  ;;  %vm1256_vm12 = vcmp.lt.s32.totalorder %v9355_v18, 16  ;;  %v9483_v9 = vld [vmem:[%s17502_s6 + $0xd0] sm:$0xff]  ;;  %v9531_v39 = vld [vmem:[%s17502_s6 + $0xc8] sm:$0xff] }
  0x74   : > { %v1332_v14 = vsel %vm1292_vm15, 0.0, %v17520_v22  ;;  %vm1217_vm1 = vmand %vm1137_vm10, %vm1177_vm11  ;;  %vm1255_vm10 = vcmp.lt.s32.totalorder %v9349_v15, 16  ;;  %vm1181_vm15 = vcmp.lt.s32.totalorder %v1101_v19, 16  ;;  %v9537_v42 = vld [vmem:[%s17502_s6 + $0xf0] sm:$0xff]  ;;  %v1029_v49 = vld [vmem:[%s17501_s5 + $0xe8] sm:$0xff] }
  0x75   : > { %v7446_v16 = vpack.i.bf16 %v1332_v14, %v1331_v11  ;;  %vm1218_vm3 = vmand %vm1138_vm13, %vm1178_vm14  ;;  %vm1141_vm14 = vcmp.ge.s32.totalorder %v1101_v19, 0  ;;  %7091 = vmatpush3.bf16.msra.mxu0 %v8288_v32  ;;  %v1024_v11 = vld [vmem:[%s17501_s5 + $0xc0] sm:$0xff]  ;;  %v9496_v14 = vld [vmem:[%s17502_s6 + $0xd8] sm:$0xff] }
  0x76   : > { %vm1297_vm6 = vmand %vm1217_vm1, %vm1257_vm0  ;;  %vm1142_vm1 = vcmp.ge.s32.totalorder %v1102_v20, 0  ;;  %v1107_v25 = vadd.s32 %v9122_v2, %v1024_v11  ;;  %v8292_v32 = vld [vmem:[%s9411_s9 + $0x18] sm:$0xff]   ;;  %v9572_v60 = vld [vmem:[%s17502_s6 + $0xe0] sm:$0xff] }
  0x77   : > { %7447 = vperm.xlu0 %7424, %v7446_v16   ;;  %vm1298_vm9 = vmand %vm1218_vm3, %vm1258_vm2  ;;  %v1337_v23 = vsel %vm1297_vm6, 0.0, %v17520_v22  ;;  %vm1182_vm2 = vcmp.lt.s32.totalorder %v1102_v20, 16  ;;  %vm1262_vm6 = vcmp.lt.s32.totalorder %v9389_v30, 16  ;;  %v1025_v16 = vld [vmem:[%s17501_s5 + $0xc8] sm:$0xff]  ;;  %v1030_v20 = vld [vmem:[%s17501_s5 + $0xf0] sm:$0xff] }
  0x78   : > { %v1338_v26 = vsel %vm1298_vm9, 0.0, %v17520_v22  ;;  %vm1215_vm11 = vmand %vm1135_vm4, %vm1175_vm5  ;;  %vm1261_vm4 = vcmp.lt.s32.totalorder %v9382_v28, 16  ;;  %vm1179_vm9 = vcmp.lt.s32.totalorder %v1099_v31, 16  ;;  %7093 = vmatmul.mubr.bf16.vlgmr.msra.gmra.mrb[0].mxu0 %v8290_v51  ;;  %v1034_v51 = vld [vmem:[%s17501_s5 + $0x110] sm:$0xff]  ;;  %v8294_v62 = vld [vmem:[%s9411_s9 + $0x28] sm:$0xff]  }
  0x79   : > { %v7461_v29 = vpack.i.bf16 %v1338_v26, %v1337_v23  ;;  %vm1216_vm13 = vmand %vm1136_vm7, %vm1176_vm8  ;;  %vm1139_vm8 = vcmp.ge.s32.totalorder %v1099_v31, 0  ;;  %v1108_v26 = vadd.s32 %v9122_v2, %v1025_v16  ;;  %7096 = vmatprep.mubr.bf16.mxu0 %v8291_v21  ;;  %v1031_v31 = vld [vmem:[%s17501_s5 + $0xf8] sm:$0xff]  ;;  %v9589_v11 = vld [vmem:[%s17502_s6 + $0xe8] sm:$0xff] }
  0x7a   : > { %vm1295_vm0 = vmand %vm1215_vm11, %vm1255_vm10  ;;  %vm1140_vm11 = vcmp.ge.s32.totalorder %v1100_v33, 0  ;;  %v9595_v16 = vld [vmem:[%s17502_s6 + $0x110] sm:$0xff] }
  0x7b   : > { %7462 = vperm.xlu1 %7435, %v7461_v29   ;;  %vm1296_vm3 = vmand %vm1216_vm13, %vm1256_vm12  ;;  %v1335_v35 = vsel %vm1295_vm0, 0.0, %v17520_v22  ;;  %vm1180_vm12 = vcmp.lt.s32.totalorder %v1100_v33, 16  ;;  %vm1260_vm0 = vcmp.lt.s32.totalorder %v9420_v41, 16 }
  0x7c   : > { %v1336_v40 = vsel %vm1296_vm3, 0.0, %v17520_v22  ;;  %vm1221_vm5 = vmand %vm1141_vm14, %vm1181_vm15  ;;  %vm1259_vm14 = vcmp.lt.s32.totalorder %v9403_v37, 16  ;;  %vm1185_vm3 = vcmp.lt.s32.totalorder %v1105_v44, 16 }
  0x7d   : > { %v7456_v43 = vpack.i.bf16 %v1336_v40, %v1335_v35  ;;  %vm1222_vm7 = vmand %vm1142_vm1, %vm1182_vm2  ;;  %vm1145_vm2 = vcmp.ge.s32.totalorder %v1105_v44, 0  ;;  %v1113_v40 = vadd.s32 %v9122_v2, %v1030_v20  ;;  %v1028_v44 = vld [vmem:[%s17501_s5 + $0xe0] sm:$0xff] }
  0x7e   : > { %vm1301_vm10 = vmand %vm1221_vm5, %vm1261_vm4  ;;  %vm1146_vm5 = vcmp.ge.s32.totalorder %v1106_v47, 0  ;;  %v1032_v20 = vld [vmem:[%s17501_s5 + $0x100] sm:$0xff] }
  0x7f   : > { %7457 = vperm.xlu0 %7424, %v7456_v43   ;;  %vm1302_vm13 = vmand %vm1222_vm7, %vm1262_vm6  ;;  %v1341_v50 = vsel %vm1301_vm10, 0.0, %v17520_v22  ;;  %vm1186_vm6 = vcmp.lt.s32.totalorder %v1106_v47, 16  ;;  %vm1266_vm10 = vcmp.lt.s32.totalorder %v9452_v56, 16  ;;  %v1114_v43 = vadd.s32 %v9122_v2, %v1031_v31  ;;  %v9550_v47 = vld [vmem:[%s17502_s6 + $0xf8] sm:$0xff] }
  0x80   : > { %v1342_v52 = vsel %vm1302_vm13, 0.0, %v17520_v22  ;;  %vm1219_vm15 = vmand %vm1139_vm8, %vm1179_vm9  ;;  %vm1265_vm8 = vcmp.lt.s32.totalorder %v9446_v54, 16  ;;  %vm1183_vm13 = vcmp.lt.s32.totalorder %v1103_v58, 16  ;;  %7097 = vmatmul.mubr.bf16.gmra.mrb[4].mxu0 %v8292_v32  ;;  %v1115_v32 = vadd.s32 %v9122_v2, %v1032_v20  ;;  %v8299_v20 = vld [vmem:[%s9411_s9 + $0x50] sm:$0xff]  }
  0x81   : > { %v7471_v55 = vpack.i.bf16 %v1342_v52, %v1341_v50  ;;  %vm1220_vm1 = vmand %vm1140_vm11, %vm1180_vm12  ;;  %vm1143_vm12 = vcmp.ge.s32.totalorder %v1103_v58, 0  ;;  %v1035_v58 = vld [vmem:[%s17501_s5 + $0x118] sm:$0xff] }
  0x82   : > { %vm1299_vm4 = vmand %vm1219_vm15, %vm1259_vm14  ;;  %vm1144_vm15 = vcmp.ge.s32.totalorder %v1104_v59, 0 }
  0x83   : > { %7472 = vperm.xlu1 %7435, %v7471_v55   ;;  %vm1300_vm7 = vmand %vm1220_vm1, %vm1260_vm0  ;;  %v1339_v61 = vsel %vm1299_vm4, 0.0, %v17520_v22  ;;  %vm1184_vm0 = vcmp.lt.s32.totalorder %v1104_v59, 16  ;;  %vm1264_vm4 = vcmp.lt.s32.totalorder %v9477_v5, 16  ;;  %v1111_v55 = vadd.s32 %v9122_v2, %v1028_v44  ;;  %v8293_v59 = vld [vmem:[%s9411_s9 + $0x20] sm:$0xff]  }
  0x84   : > { %v1340_v63 = vsel %vm1300_vm7, 0.0, %v17520_v22  ;;  %vm1225_vm9 = vmand %vm1145_vm2, %vm1185_vm3  ;;  %vm1263_vm2 = vcmp.lt.s32.totalorder %v9472_v0, 16  ;;  %vm1189_vm7 = vcmp.lt.s32.totalorder %v1109_v8, 16  ;;  %7100 = vmatprep.mubr.bf16.mxu0 %v8293_v59  ;;  %v1036_v59 = vld [vmem:[%s17501_s5 + $0x120] sm:$0xff] }
  0x85   : > { %v7466_v4 = vpack.i.bf16 %v1340_v63, %v1339_v61  ;;  %vm1226_vm11 = vmand %vm1146_vm5, %vm1186_vm6  ;;  %vm1149_vm6 = vcmp.ge.s32.totalorder %v1109_v8, 0  ;;  %v1112_v61 = vadd.s32 %v9122_v2, %v1029_v49  ;;  %v8295_v8 = vld [vmem:[%s9411_s9 + $0x30] sm:$0xff]  }
  0x86   : > { %vm1305_vm14 = vmand %vm1225_vm9, %vm1265_vm8  ;;  %vm1150_vm9 = vcmp.ge.s32.totalorder %v1110_v10, 0 }
  0x87   : > { %7467 = vperm.xlu0 %7424, %v7466_v4   ;;  %vm1306_vm1 = vmand %vm1226_vm11, %vm1266_vm10  ;;  %v1345_v13 = vsel %vm1305_vm14, 0.0, %v17520_v22  ;;  %vm1190_vm10 = vcmp.lt.s32.totalorder %v1110_v10, 16  ;;  %vm1270_vm14 = vcmp.lt.s32.totalorder %v9496_v14, 16 }
  0x88   : > { %v1346_v19 = vsel %vm1306_vm1, 0.0, %v17520_v22  ;;  %vm1223_vm3 = vmand %vm1143_vm12, %vm1183_vm13  ;;  %vm1269_vm12 = vcmp.lt.s32.totalorder %v9483_v9, 16  ;;  %vm1187_vm1 = vcmp.lt.s32.totalorder %v1107_v25, 16  ;;  %7101 = vmatmul.mubr.bf16.gmra.mrb[8].mxu0 %v8294_v62  ;;  %v1037_v62 = vld [vmem:[%s17501_s5 + $0x128] sm:$0xff] }
  0x89   : > { %v7481_v23 = vpack.i.bf16 %v1346_v19, %v1345_v13  ;;  %vm1224_vm5 = vmand %vm1144_vm15, %vm1184_vm0  ;;  %vm1147_vm0 = vcmp.ge.s32.totalorder %v1107_v25, 0  ;;  %v1117_v13 = vadd.s32 %v9122_v2, %v1034_v51  ;;  %v1118_v19 = vadd.s32 %v9122_v2, %v1035_v58  ;;  %7104 = vmatprep.mubr.bf16.mxu0 %v8295_v8  ;;  %v1033_v25 = vld [vmem:[%s17501_s5 + $0x108] sm:$0xff] }
  0x8a   : > { %vm1303_vm8 = vmand %vm1223_vm3, %vm1263_vm2  ;;  %vm1148_vm3 = vcmp.ge.s32.totalorder %v1108_v26, 0 }
  0x8b   : > { %7482 = vperm.xlu1 %7435, %v7481_v23   ;;  %vm1304_vm11 = vmand %vm1224_vm5, %vm1264_vm4  ;;  %v1343_v29 = vsel %vm1303_vm8, 0.0, %v17520_v22  ;;  %vm1188_vm4 = vcmp.lt.s32.totalorder %v1108_v26, 16  ;;  %vm1268_vm8 = vcmp.lt.s32.totalorder %v9531_v39, 16  ;;  %v9608_v23 = vld [vmem:[%s17502_s6 + $0x118] sm:$0xff] }
  0x8c   : > { %v1344_v33 = vsel %vm1304_vm11, 0.0, %v17520_v22  ;;  %vm1229_vm13 = vmand %vm1149_vm6, %vm1189_vm7  ;;  %vm1267_vm6 = vcmp.lt.s32.totalorder %v9525_v34, 16  ;;  %vm1193_vm11 = vcmp.lt.s32.totalorder %v1113_v40, 16 }
  0x8d   : > { %v7476_v35 = vpack.i.bf16 %v1344_v33, %v1343_v29  ;;  %vm1230_vm15 = vmand %vm1150_vm9, %vm1190_vm10  ;;  %vm1153_vm10 = vcmp.ge.s32.totalorder %v1113_v40, 0  ;;  %v1038_v29 = vld [vmem:[%s17501_s5 + $0x130] sm:$0xff]  ;;  %v8296_v33 = vld [vmem:[%s9411_s9 + $0x38] sm:$0xff]   ;;  %v1116_v40 = vadd.s32 %v9122_v2, %v1033_v25 }
  0x8e   : > { %vm1309_vm2 = vmand %vm1229_vm13, %vm1269_vm12  ;;  %vm1154_vm13 = vcmp.ge.s32.totalorder %v1114_v43, 0  ;;  %v9689_v25 = vld [vmem:[%s17502_s6 + $0x120] sm:$0xff] }
  0x8f   : > { %7477 = vperm.xlu0 %7424, %v7476_v35   ;;  %vm1310_vm5 = vmand %vm1230_vm15, %vm1270_vm14  ;;  %v1349_v45 = vsel %vm1309_vm2, 0.0, %v17520_v22  ;;  %vm1194_vm14 = vcmp.lt.s32.totalorder %v1114_v43, 16  ;;  %vm1274_vm2 = vcmp.lt.s32.totalorder %v9550_v47, 16  ;;  %v9627_v35 = vld [vmem:[%s17502_s6 + $0x100] sm:$0xff] }
  0x90   : > { %v1350_v50 = vsel %vm1310_vm5, 0.0, %v17520_v22  ;;  %vm1227_vm7 = vmand %vm1147_vm0, %vm1187_vm1  ;;  %vm1273_vm0 = vcmp.lt.s32.totalorder %v9537_v42, 16  ;;  %vm1191_vm5 = vcmp.lt.s32.totalorder %v1111_v55, 16  ;;  %v8297_v43 = vld [vmem:[%s9411_s9 + $0x40] sm:$0xff]   ;;  %7105 = vmatmul.mubr.bf16.gmra.mrb[12].mxu0 %v8296_v33 }
  0x91   : > { %v7491_v52 = vpack.i.bf16 %v1350_v50, %v1349_v45  ;;  %vm1228_vm9 = vmand %vm1148_vm3, %vm1188_vm4  ;;  %vm1151_vm4 = vcmp.ge.s32.totalorder %v1111_v55, 0  ;;  %v1039_v45 = vld [vmem:[%s17501_s5 + $0x138] sm:$0xff]  ;;  %v9645_v50 = vld [vmem:[%s17502_s6 + $0x108] sm:$0xff]  ;;  %7108 = vmatprep.mubr.bf16.mxu0 %v8297_v43 }
  0x92   : > { %vm1307_vm12 = vmand %vm1227_vm7, %vm1267_vm6  ;;  %vm1152_vm7 = vcmp.ge.s32.totalorder %v1112_v61, 0  ;;  %v9652_v55 = vld [vmem:[%s17502_s6 + $0x130] sm:$0xff]  ;;  %v1122_v58 = vadd.s32 %v9122_v2, %v1039_v45 }
  0x93   : > { %7492 = vperm.xlu1 %7435, %v7491_v52   ;;  %vm1308_vm15 = vmand %vm1228_vm9, %vm1268_vm8  ;;  %v1347_v63 = vsel %vm1307_vm12, 0.0, %v17520_v22  ;;  %vm1192_vm8 = vcmp.lt.s32.totalorder %v1112_v61, 16  ;;  %vm1272_vm12 = vcmp.lt.s32.totalorder %v9589_v11, 16  ;;  %v1121_v52 = vadd.s32 %v9122_v2, %v1038_v29 }
  0x94   : > { %v1348_v4 = vsel %vm1308_vm15, 0.0, %v17520_v22  ;;  %vm1233_vm1 = vmand %vm1153_vm10, %vm1193_vm11  ;;  %vm1271_vm10 = vcmp.lt.s32.totalorder %v9572_v60, 16  ;;  %vm1197_vm15 = vcmp.lt.s32.totalorder %v1117_v13, 16 }
  0x95   : > { %v7486_v10 = vpack.i.bf16 %v1348_v4, %v1347_v63  ;;  %vm1234_vm3 = vmand %vm1154_vm13, %vm1194_vm14  ;;  %vm1157_vm14 = vcmp.ge.s32.totalorder %v1117_v13, 0  ;;  %v9672_v4 = vld [vmem:[%s17502_s6 + $0x138] sm:$0xff]  ;;  %v8298_v13 = vld [vmem:[%s9411_s9 + $0x48] sm:$0xff]  }
  0x96   : > { %vm1313_vm6 = vmand %vm1233_vm1, %vm1273_vm0  ;;  %vm1158_vm1 = vcmp.ge.s32.totalorder %v1118_v19, 0 }
  0x97   : > { %7487 = vperm.xlu0 %7424, %v7486_v10   ;;  %vm1314_vm9 = vmand %vm1234_vm3, %vm1274_vm2  ;;  %v1353_v21 = vsel %vm1313_vm6, 0.0, %v17520_v22  ;;  %vm1198_vm2 = vcmp.lt.s32.totalorder %v1118_v19, 16  ;;  %vm1278_vm6 = vcmp.lt.s32.totalorder %v9608_v23, 16  ;;  %v1119_v10 = vadd.s32 %v9122_v2, %v1036_v59 }
  0x98   : > { %v1354_v26 = vsel %vm1314_vm9, 0.0, %v17520_v22  ;;  %vm1231_vm11 = vmand %vm1151_vm4, %vm1191_vm5  ;;  %vm1277_vm4 = vcmp.lt.s32.totalorder %v9595_v16, 16  ;;  %vm1195_vm9 = vcmp.lt.s32.totalorder %v1115_v32, 16  ;;  %v1120_v19 = vadd.s32 %v9122_v2, %v1037_v62  ;;  %7109 = vmatmul.mubr.bf16.gmra.mrb[16].mxu0 %v8298_v13  ;;  %v8303_v13 = vld [vmem:[%s9411_s9 + $0x70] sm:$0xff]  }
  0x99   : > { %v7501_v31 = vpack.i.bf16 %v1354_v26, %v1353_v21  ;;  %vm1232_vm13 = vmand %vm1152_vm7, %vm1192_vm8  ;;  %vm1155_vm8 = vcmp.ge.s32.totalorder %v1115_v32, 0  ;;  %v9699_v26 = vld [vmem:[%s17502_s6 + $0x128] sm:$0xff]  ;;  %7112 = vmatprep.mubr.bf16.mxu0 %v8299_v20 }
  0x9a   : > { %vm1311_vm0 = vmand %vm1231_vm11, %vm1271_vm10  ;;  %vm1156_vm11 = vcmp.ge.s32.totalorder %v1116_v40, 0 }
  0x9b   : > { %7502 = vperm.xlu1 %7435, %v7501_v31   ;;  %vm1312_vm3 = vmand %vm1232_vm13, %vm1272_vm12  ;;  %v1351_v44 = vsel %vm1311_vm0, 0.0, %v17520_v22  ;;  %vm1196_vm12 = vcmp.lt.s32.totalorder %v1116_v40, 16  ;;  %vm1276_vm0 = vcmp.lt.s32.totalorder %v9645_v50, 16  ;;  %v8300_v40 = vld [vmem:[%s9411_s9 + $0x58] sm:$0xff]  }
  0x9c   : > { %v1352_v49 = vsel %vm1312_vm3, 0.0, %v17520_v22  ;;  %vm1237_vm5 = vmand %vm1157_vm14, %vm1197_vm15  ;;  %vm1275_vm14 = vcmp.lt.s32.totalorder %v9627_v35, 16  ;;  %vm1201_vm3 = vcmp.lt.s32.totalorder %v1121_v52, 16 }
  0x9d   : > { %v7496_v51 = vpack.i.bf16 %v1352_v49, %v1351_v44  ;;  %vm1238_vm7 = vmand %vm1158_vm1, %vm1198_vm2  ;;  %vm1161_vm2 = vcmp.ge.s32.totalorder %v1121_v52, 0 }
  0x9e   : > { %vm1317_vm10 = vmand %vm1237_vm5, %vm1277_vm4  ;;  %vm1162_vm5 = vcmp.ge.s32.totalorder %v1122_v58, 0 }
  0x9f   : > { %7497 = vperm.xlu0 %7424, %v7496_v51   ;;  %vm1318_vm13 = vmand %vm1238_vm7, %vm1278_vm6  ;;  %v1357_v61 = vsel %vm1317_vm10, 0.0, %v17520_v22  ;;  %vm1202_vm6 = vcmp.lt.s32.totalorder %v1122_v58, 16  ;;  %vm1603_vm7 = vcmp.ge.s32.totalorder %v9152_v12, 1  ;;  %vm1281_vm10 = vcmp.lt.s32.totalorder %v9652_v55, 16 }
  0xa0   : > { %v1358_v63 = vsel %vm1318_vm13, 0.0, %v17520_v22  ;;  %vm1235_vm15 = vmand %vm1155_vm8, %vm1195_vm9  ;;  %vm1282_vm13 = vcmp.lt.s32.totalorder %v9672_v4, 16  ;;  %7113 = vmatmul.mubr.bf16.gmra.mrb[20].mxu0 %v8300_v40 }
  0xa1   : > { %v7511_v8 = vpack.i.bf16 %v1358_v63, %v1357_v61  ;;  %vm1236_vm1 = vmand %vm1156_vm11, %vm1196_vm12  ;;  %vm1605_vm11 = vcmp.ge.s32.totalorder %v9217_v36, 1  ;;  %v8302_v63 = vld [vmem:[%s9411_s9 + $0x68] sm:$0xff]  }
  0xa2   : > { %vm1315_vm4 = vmand %vm1235_vm15, %vm1275_vm14  ;;  %vm1606_vm14 = vcmp.ge.s32.totalorder %v9223_v38, 1  ;;  %v1645_v36 = vsel %vm1605_vm11, 0.0, %v17520_v22  ;;  %v8301_v38 = vld [vmem:[%s9411_s9 + $0x60] sm:$0xff]  }
  0xa3   : > { %7512 = vperm.xlu1 %7435, %v7511_v8   ;;  %vm1316_vm9 = vmand %vm1236_vm1, %vm1276_vm0  ;;  %v1355_v21 = vsel %vm1315_vm4, 0.0, %v17520_v22  ;;  %vm1159_vm0 = vcmp.ge.s32.totalorder %v1119_v10, 0  ;;  %vm1199_vm1 = vcmp.lt.s32.totalorder %v1119_v10, 16  ;;  %v1646_v33 = vsel %vm1606_vm14, 0.0, %v17520_v22  ;;  %7116 = vmatprep.mubr.bf16.mxu0 %v8301_v38 }
  0xa4   : > { %v1356_v2 = vsel %vm1316_vm9, 0.0, %v17520_v22  ;;  %vm1241_vm12 = vmand %vm1161_vm2, %vm1201_vm3  ;;  %vm1160_vm9 = vcmp.ge.s32.totalorder %v1120_v19, 0  ;;  %vm1200_vm2 = vcmp.lt.s32.totalorder %v1120_v19, 16  ;;  %vm1604_vm3 = vcmp.ge.s32.totalorder %v9163_v17, 1 }
  0xa5   : > { %v7506_v29 = vpack.i.bf16 %v1356_v2, %v1355_v21  ;;  %vm1242_vm15 = vmand %vm1162_vm5, %vm1202_vm6  ;;  %vm1279_vm5 = vcmp.lt.s32.totalorder %v9689_v25, 16  ;;  %vm1609_vm6 = vcmp.ge.s32.totalorder %v9182_v24, 1  ;;  %v1643_v24 = vsel %vm1603_vm7, 0.0, %v17520_v22 }
  0xa6   : > { %vm1321_vm4 = vmand %vm1241_vm12, %vm1281_vm10  ;;  %vm1610_vm10 = vcmp.ge.s32.totalorder %v9194_v27, 1  ;;  %vm1280_vm12 = vcmp.lt.s32.totalorder %v9699_v26, 16  ;;  %v1644_v27 = vsel %vm1604_vm3, 0.0, %v17520_v22  ;;  %v1649_v44 = vsel %vm1609_vm6, 0.0, %v17520_v22 }
  0xa7   : > { %7507 = vperm.xlu0 %7424, %v7506_v29   ;;  %vm1322_vm8 = vmand %vm1242_vm15, %vm1282_vm13  ;;  %v1361_v31 = vsel %vm1321_vm4, 0.0, %v17520_v22  ;;  %v1650_v45 = vsel %vm1610_vm10, 0.0, %v17520_v22  ;;  %vm1608_vm14 = vcmp.ge.s32.totalorder %v9138_v7, 1  ;;  %v7531_v51 = vpack.i.bf16 %v1646_v33, %v1645_v36 }
  0xa8   : > { %v1362_v32 = vsel %vm1322_vm8, 0.0, %v17520_v22  ;;  %vm1239_vm11 = vmand %vm1159_vm0, %vm1199_vm1  ;;  %vm1613_vm0 = vcmp.ge.s32.totalorder %v9247_v46, 1  ;;  %vm1614_vm7 = vcmp.ge.s32.totalorder %v9254_v48, 1  ;;  %v7526_v17 = vpack.i.bf16 %v1644_v27, %v1643_v24  ;;  %7117 = vmatmul.mubr.bf16.gmra.mrb[24].mxu0 %v8302_v63  ;;  %v8304_v24 = vld [vmem:[%s9411_s9 + $0x78] sm:$0xff]  }
  0xa9   : > { %v7521_v43 = vpack.i.bf16 %v1362_v32, %v1361_v31  ;;  %vm1240_vm13 = vmand %vm1160_vm9, %vm1200_vm2  ;;  %vm1611_vm1 = vcmp.ge.s32.totalorder %v9271_v53, 1  ;;  %vm1612_vm4 = vcmp.ge.s32.totalorder %v9289_v57, 1  ;;  %v7541_v58 = vpack.i.bf16 %v1650_v45, %v1649_v44  ;;  %7120 = vmatprep.mubr.bf16.mxu0 %v8303_v13  ;;  %v8305_v45 = vld [vmem:[%s9411_s9 + $0x80] sm:$0xff]  }
  0xaa   : > { %vm1319_vm8 = vmand %vm1239_vm11, %vm1279_vm5  ;;  %vm18238_vm9 = vcmp.ge.s32.totalorder %v9133_v6, 1  ;;  %v1648_v59 = vsel %vm1608_vm14, 0.0, %v17520_v22  ;;  %v1653_v46 = vsel %vm1613_vm0, 0.0, %v17520_v22  ;;  %v1654_v48 = vsel %vm1614_vm7, 0.0, %v17520_v22 }
  0xab   : > { %7522 = vperm.xlu1 %7435, %v7521_v43   ;;  %vm1320_vm15 = vmand %vm1240_vm13, %vm1280_vm12  ;;  %v1359_v49 = vsel %vm1319_vm8, 0.0, %v17520_v22  ;;  %v1647_v7 = vsel %vm18238_vm9, 0.0, %v17520_v22  ;;  %vm1617_vm2 = vcmp.ge.s32.totalorder %v9317_v1, 1  ;;  %vm1618_vm3 = vcmp.ge.s32.totalorder %v9322_v3, 1 }
  0xac   : > { %v1360_v12 = vsel %vm1320_vm15, 0.0, %v17520_v22  ;;  %v1651_v53 = vsel %vm1611_vm1, 0.0, %v17520_v22  ;;  %v1652_v6 = vsel %vm1612_vm4, 0.0, %v17520_v22  ;;  %vm1615_vm5 = vcmp.ge.s32.totalorder %v9349_v15, 1 }
  0xad   : > { %v7516_v52 = vpack.i.bf16 %v1360_v12, %v1359_v49  ;;  %vm1616_vm6 = vcmp.ge.s32.totalorder %v9355_v18, 1  ;;  %v7536_v57 = vpack.i.bf16 %v1648_v59, %v1647_v7  ;;  %v7551_v61 = vpack.i.bf16 %v1654_v48, %v1653_v46 }
  0xae   : > { %v1657_v62 = vsel %vm1617_vm2, 0.0, %v17520_v22  ;;  %v1658_v1 = vsel %vm1618_vm3, 0.0, %v17520_v22  ;;  %v7546_v3 = vpack.i.bf16 %v1652_v6, %v1651_v53  ;;  %v9754_v8 = vsel %vm1615_vm5, 0.0, %v17520_v22  ;;  %v9873_v6 = vld [vmem:[%s17502_s6 + $0x10] sm:$0xff] }
  0xaf   : > { %7517 = vperm.xlu0 %7424, %v7516_v52   ;;  %7532 = vperm.xlu1 %7435, %v7531_v51   ;;  %v9757_v10 = vsel %vm1616_vm6, 0.0, %v17520_v22  ;;  %vm1621_vm10 = vcmp.ge.s32.totalorder %v9382_v28, 1  ;;  %vm1622_vm11 = vcmp.ge.s32.totalorder %v9389_v30, 1  ;;  %vm1619_vm12 = vcmp.ge.s32.totalorder %v9403_v37, 1 }
  0xb0   : > { %vm1620_vm13 = vcmp.ge.s32.totalorder %v9420_v41, 1  ;;  %vm1625_vm8 = vcmp.ge.s32.totalorder %v9446_v54, 1  ;;  %vm1626_vm14 = vcmp.ge.s32.totalorder %v9452_v56, 1  ;;  %vm1623_vm15 = vcmp.ge.s32.totalorder %v9472_v0, 1  ;;  %7121 = vmatmul.mubr.bf16.gmra.mrb[28].mxu0 %v8304_v24  ;;  %v9957_v24 = vld [vmem:[%s17502_s6 + $0x28] sm:$0xff] }
  0xb1   : > { %vm1624_vm0 = vcmp.ge.s32.totalorder %v9477_v5, 1  ;;  %vm1629_vm7 = vcmp.ge.s32.totalorder %v9483_v9, 1  ;;  %v7561_v15 = vpack.i.bf16 %v1658_v1, %v1657_v62  ;;  %v7556_v18 = vpack.i.bf16 %v9757_v10, %v9754_v8  ;;  %7124 = vmatprep.mubr.bf16.mxu0 %v8305_v45  ;;  %v8307_v8 = vld [vmem:[%s9411_s9 + $0x90] sm:$0xff]   ;;  %18242 = vst [vmem:[#allocation21_spill] sm:$0xff] %v9957_v24  ;;  %v9973_v62 = vld [vmem:[%s17502_s6 + $0x58] sm:$0xff] }
  0xb2   : > { %v1661_v19 = vsel %vm1621_vm10, 0.0, %v17520_v22  ;;  %vm1630_vm1 = vcmp.ge.s32.totalorder %v9496_v14, 1  ;;  %v1662_v20 = vsel %vm1622_vm11, 0.0, %v17520_v22  ;;  %v9775_v21 = vsel %vm1619_vm12, 0.0, %v17520_v22  ;;  %v9967_v45 = vld [vmem:[%s17502_s6 + $0x50] sm:$0xff]  ;;  %18244 = vst [vmem:[#allocation23_spill] sm:$0xff] %v9973_v62 }
  0xb3   : > { %7527 = vperm.xlu0 %7424, %v7526_v17   ;;  %7542 = vperm.xlu1 %7435, %v7541_v58   ;;  %v9778_v2 = vsel %vm1620_vm13, 0.0, %v17520_v22  ;;  %v9781_v29 = vsel %vm1625_vm8, 0.0, %v17520_v22  ;;  %v9786_v36 = vsel %vm1626_vm14, 0.0, %v17520_v22  ;;  %v9791_v31 = vsel %vm1623_vm15, 0.0, %v17520_v22  ;;  %18243 = vst [vmem:[#allocation22_spill] sm:$0xff] %v9967_v45 }
  0xb4   : > { %v9796_v32 = vsel %vm1624_vm0, 0.0, %v17520_v22  ;;  %v9801_v33 = vsel %vm1629_vm7, 0.0, %v17520_v22  ;;  %v9804_v40 = vsel %vm1630_vm1, 0.0, %v17520_v22  ;;  %vm1627_vm4 = vcmp.ge.s32.totalorder %v9525_v34, 1 }
  0xb5   : > { %vm1628_vm9 = vcmp.ge.s32.totalorder %v9531_v39, 1  ;;  %vm1633_vm2 = vcmp.ge.s32.totalorder %v9537_v42, 1  ;;  %v7571_v43 = vpack.i.bf16 %v1662_v20, %v1661_v19  ;;  %vm1634_vm3 = vcmp.ge.s32.totalorder %v9550_v47, 1 }
  0xb6   : > { %vm1631_vm5 = vcmp.ge.s32.totalorder %v9572_v60, 1  ;;  %vm1632_vm6 = vcmp.ge.s32.totalorder %v9589_v11, 1  ;;  %v7566_v27 = vpack.i.bf16 %v9778_v2, %v9775_v21  ;;  %v7581_v44 = vpack.i.bf16 %v9786_v36, %v9781_v29  ;;  %v9927_v21 = vld [vmem:[%s17502_s6] sm:$0xff]  ;;  %v9933_v2 = vld [vmem:[%s17502_s6 + $0x8] sm:$0xff]  ;;  %v9939_v29 = vld [vmem:[%s17502_s6 + $0x30] sm:$0xff] }
  0xb7   : > { %7537 = vperm.xlu0 %7424, %v7536_v57   ;;  %7552 = vperm.xlu1 %7435, %v7551_v61   ;;  %vm1637_vm10 = vcmp.ge.s32.totalorder %v9595_v16, 1  ;;  %vm1638_vm11 = vcmp.ge.s32.totalorder %v9608_v23, 1  ;;  %v7576_v38 = vpack.i.bf16 %v9796_v32, %v9791_v31  ;;  %v9827_v51 = vsel %vm1627_vm4, 0.0, %v17520_v22  ;;  %v9879_v57 = vld [vmem:[%s17502_s6 + $0x18] sm:$0xff]  ;;  %18239 = vst [vmem:[#allocation18_spill] sm:$0xff] %v9939_v29  ;;  %v10029_v31 = vld [vmem:[%s17502_s6 + $0x48] sm:$0xff] }
  0xb8   : > { %v9832_v12 = vsel %vm1628_vm9, 0.0, %v17520_v22  ;;  %v9837_v17 = vsel %vm1633_vm2, 0.0, %v17520_v22  ;;  %v9842_v52 = vsel %vm1634_vm3, 0.0, %v17520_v22  ;;  %v9847_v58 = vsel %vm1631_vm5, 0.0, %v17520_v22  ;;  %v9945_v36 = vld [vmem:[%s17502_s6 + $0x38] sm:$0xff]  ;;  %v10035_v32 = vld [vmem:[%s17502_s6 + $0x70] sm:$0xff] }
  0xb9   : > { %v9852_v7 = vsel %vm1632_vm6, 0.0, %v17520_v22  ;;  %v9855_v59 = vsel %vm1637_vm10, 0.0, %v17520_v22  ;;  %v9858_v46 = vsel %vm1638_vm11, 0.0, %v17520_v22  ;;  %vm1635_vm12 = vcmp.ge.s32.totalorder %v9627_v35, 1  ;;  %18240 = vst [vmem:[#allocation19_spill] sm:$0xff] %v9945_v36 }
  0xba   : > { %vm1636_vm13 = vcmp.ge.s32.totalorder %v9645_v50, 1  ;;  %vm1641_vm8 = vcmp.ge.s32.totalorder %v9652_v55, 1  ;;  %vm1642_vm14 = vcmp.ge.s32.totalorder %v9672_v4, 1  ;;  %vm1639_vm15 = vcmp.ge.s32.totalorder %v9689_v25, 1 }
  0xbb   : > { %7547 = vperm.xlu0 %7424, %v7546_v3   ;;  %7562 = vperm.xlu1 %7435, %v7561_v15   ;;  %vm1640_vm0 = vcmp.ge.s32.totalorder %v9699_v26, 1  ;;  %vm1685_vm7 = vcmp.lt.s32.totalorder %v9873_v6, 15  ;;  %vm1686_vm1 = vcmp.lt.s32.totalorder %v9879_v57, 15  ;;  %v9889_v1 = vsel %vm1635_vm12, 0.0, %v17520_v22  ;;  %v8306_v3 = vld [vmem:[%s9411_s9 + $0x88] sm:$0xff]  }
  0xbc   : > { %v9894_v63 = vsel %vm1636_vm13, 0.0, %v17520_v22  ;;  %v9901_v10 = vsel %vm1641_vm8, 0.0, %v17520_v22  ;;  %v9906_v13 = vsel %vm1642_vm14, 0.0, %v17520_v22  ;;  %v9911_v15 = vsel %vm1639_vm15, 0.0, %v17520_v22  ;;  %7125 = vmatmul.mubr.bf16.gmra.mrb[32].mxu0 %v8306_v3 }
  0xbd   : > { %v9919_v19 = vsel %vm1685_vm7, 0.0, %v17520_v22  ;;  %v9922_v20 = vsel %vm1686_vm1, 0.0, %v17520_v22  ;;  %vm1683_vm4 = vcmp.lt.s32.totalorder %v9927_v21, 15  ;;  %vm1684_vm9 = vcmp.lt.s32.totalorder %v9933_v2, 15  ;;  %7128 = vmatprep.mubr.bf16.mxu0 %v8307_v8 }
  0xbe   : > { %vm1689_vm2 = vcmp.lt.s32.totalorder %v9939_v29, 15  ;;  %vm1690_vm3 = vcmp.lt.s32.totalorder %v9945_v36, 15  ;;  %vm1688_vm6 = vcmp.lt.s32.totalorder %v9957_v24, 15  ;;  %vm1693_vm10 = vcmp.lt.s32.totalorder %v9967_v45, 15  ;;  %v10023_v24 = vld [vmem:[%s17502_s6 + $0x40] sm:$0xff] }
  0xbf   : > { %7557 = vperm.xlu0 %7424, %v7556_v18   ;;  %7572 = vperm.xlu1 %7435, %v7571_v43   ;;  %v9916_v18 = vsel %vm1640_vm0, 0.0, %v17520_v22  ;;  %v9951_v43 = vld [vmem:[%s17502_s6 + $0x20] sm:$0xff]  ;;  %vm1694_vm11 = vcmp.lt.s32.totalorder %v9973_v62, 15  ;;  %v9983_v61 = vsel %vm1683_vm4, 0.0, %v17520_v22  ;;  %v9988_v53 = vsel %vm1684_vm9, 0.0, %v17520_v22 }
  0xc0   : > { %18241 = vst [vmem:[#allocation20_spill] sm:$0xff] %v9951_v43  ;;  %vm1687_vm5 = vcmp.lt.s32.totalorder %v9951_v43, 15  ;;  %v9993_v48 = vsel %vm1689_vm2, 0.0, %v17520_v22  ;;  %v10006_v49 = vsel %vm1688_vm6, 0.0, %v17520_v22  ;;  %v18245_v3 = vpack.i.bf16 %v9804_v40, %v9801_v33  ;;  %v10041_v33 = vld [vmem:[%s17502_s6 + $0x78] sm:$0xff]  ;;  %v10047_v40 = vld [vmem:[%s17502_s6 + $0x60] sm:$0xff] }
  0xc1   : > { %v10015_v62 = vsel %vm1693_vm10, 0.0, %v17520_v22  ;;  %v10018_v45 = vsel %vm1694_vm11, 0.0, %v17520_v22  ;;  %vm1691_vm12 = vcmp.lt.s32.totalorder %v10023_v24, 15  ;;  %vm1692_vm13 = vcmp.lt.s32.totalorder %v10029_v31, 15 }
  0xc2   : > { %vm1697_vm8 = vcmp.lt.s32.totalorder %v10035_v32, 15  ;;  %vm1698_vm14 = vcmp.lt.s32.totalorder %v10041_v33, 15  ;;  %vm1695_vm15 = vcmp.lt.s32.totalorder %v10047_v40, 15  ;;  %vm1701_vm7 = vcmp.lt.s32.totalorder %v9382_v28, 15 }
  0xc3   : > { %7567 = vperm.xlu0 %7424, %v7566_v27   ;;  %7582 = vperm.xlu1 %7435, %v7581_v44   ;;  %v9998_v44 = vsel %vm1690_vm3, 0.0, %v17520_v22  ;;  %v10003_v27 = vsel %vm1687_vm5, 0.0, %v17520_v22  ;;  %vm1702_vm1 = vcmp.lt.s32.totalorder %v9389_v30, 15  ;;  %v8308_v22 = vld [vmem:[%s9411_s9 + $0x98] sm:$0xff]   ;;  %v18247_v29 = vmov -inf   ;;  %s17386_s9 = scalar_lea.vmem [#allocation7], %s6912_s12 }
  0xc4   : > { %v18248_v28 = vpack.i.bf16 %v9832_v12, %v9827_v51  ;;  %v18249_v30 = vpack.i.bf16 %v9842_v52, %v9837_v17  ;;  %v10086_v36 = vsel %vm1697_vm8, 0.0, %v18247_v29  ;;  %v10091_v43 = vsel %vm1698_vm14, 0.0, %v18247_v29  ;;  %7129 = vmatmul.mubr.bf16.gmra.mrb[36].mxu0 %v8308_v22  ;;  %s6796_s18 = sshll.u32 %s17386_s9, 4  ;;  %s17437_s18 = int_to_ptr.vmem [resolvable:$true] %s6796_s18 }
  0xc5   : > { %v10096_v8 = vsel %vm1695_vm15, 0.0, %v18247_v29  ;;  %v10102_v12 = vsel %vm1701_vm7, 0.0, %v18247_v29  ;;  %v10105_v17 = vsel %vm1702_vm1, 0.0, %v18247_v29  ;;  %vm1699_vm4 = vcmp.lt.s32.totalorder %v9403_v37, 15  ;;  %s8829_s11 = scalar_lea.vmem %s17437_s18, 2048  ;;  %p8836_p5 = scmp.lt.s32.totalorder %s17437_s18, %s8834_s30 }
  0xc6   : > { %vm1700_vm9 = vcmp.lt.s32.totalorder %v9420_v41, 15  ;;  %vm1705_vm2 = vcmp.lt.s32.totalorder %v9446_v54, 15  ;;  %vm1706_vm3 = vcmp.lt.s32.totalorder %v9452_v56, 15  ;;  %vm1703_vm5 = vcmp.lt.s32.totalorder %v9472_v0, 15  ;;  %v18264_v54 = vld [vmem:[#allocation18_spill] sm:$0xff]  ;;  %v18265_v41 = vld [vmem:[#allocation19_spill] sm:$0xff]  ;;  %p8830_p10 = scmp.ne.s32.totalorder %s17437_s18, %s8829_s11  ;;  %p8837_p6 = scmp.lt.s32.totalorder %s8835_s21, %s8829_s11 }
  0xc7   : > { %7577 = vperm.xlu0 %7424, %v7576_v38   ;;  %7592 = vperm.xlu1 %7435, %v18245_v3   ;;  %v10053_v38 = vld [vmem:[%s17502_s6 + $0x68] sm:$0xff]  ;;  %v10075_v3 = vsel %vm1692_vm13, 0.0, %v18247_v29  ;;  %vm1704_vm6 = vcmp.lt.s32.totalorder %v9477_v5, 15  ;;  %vm1709_vm10 = vcmp.lt.s32.totalorder %v9483_v9, 15  ;;  %vm1710_vm11 = vcmp.lt.s32.totalorder %v9496_v14, 15 }
  0xc8   : > { %18246 = vst [vmem:[#allocation24_spill] sm:$0xff] %v10053_v38  ;;  %vm1696_vm0 = vcmp.lt.s32.totalorder %v10053_v38, 15  ;;  %v10070_v38 = vsel %vm1691_vm12, 0.0, %v18247_v29  ;;  %v18250_v22 = vpack.i.bf16 %v9852_v7, %v9847_v58  ;;  %v18251_v37 = vpack.i.bf16 %v9858_v46, %v9855_v59  ;;  %p8831_p1 = pnand %p8830_p10, %p20131_p12  ;;  %p8838_p7 = por %p8837_p6, %p8836_p5 }
  0xc9   : > { %v10099_v51 = vsel %vm1696_vm0, 0.0, %v18247_v29  ;;  %v10130_v56 = vsel %vm1699_vm4, 0.0, %v18247_v29  ;;  %v10133_v0 = vsel %vm1700_vm9, 0.0, %v18247_v29  ;;  %v10136_v5 = vsel %vm1705_vm2, 0.0, %v18247_v29 }
  0xca   : > { %v10139_v9 = vsel %vm1706_vm3, 0.0, %v18247_v29  ;;  %v10142_v14 = vsel %vm1703_vm5, 0.0, %v18247_v29  ;;  %v10145_v58 = vsel %vm1704_vm6, 0.0, %v18247_v29  ;;  %v10148_v7 = vsel %vm1709_vm10, 0.0, %v18247_v29  ;;  %p8832_p4 = pneg %p8831_p1 }
  0xcb   : > { %7587 = vperm.xlu0 %7424, %v18248_v28   ;;  %7602 = vperm.xlu1 %7435, %v18249_v30   ;;  %v10151_v59 = vsel %vm1710_vm11, 0.0, %v18247_v29  ;;  %vm1707_vm12 = vcmp.lt.s32.totalorder %v9525_v34, 15  ;;  %vm1708_vm13 = vcmp.lt.s32.totalorder %v9531_v39, 15  ;;  %vm1713_vm8 = vcmp.lt.s32.totalorder %v9537_v42, 15 }
  0xcc   : > { %vm1714_vm14 = vcmp.lt.s32.totalorder %v9550_v47, 15  ;;  %vm1711_vm15 = vcmp.lt.s32.totalorder %v9572_v60, 15  ;;  %vm1712_vm0 = vcmp.lt.s32.totalorder %v9589_v11, 15  ;;  %v18252_v46 = vpack.i.bf16 %v9894_v63, %v9889_v1  ;;  %p8839_p9 = pnand %p8838_p7, %p8832_p4 }
  0xcd   : > { %v18253_v30 = vpack.i.bf16 %v9906_v13, %v9901_v10  ;;  %vm1717_vm7 = vcmp.lt.s32.totalorder %v9595_v16, 15  ;;  %vm1718_vm1 = vcmp.lt.s32.totalorder %v9608_v23, 15  ;;  %v10176_v60 = vsel %vm1707_vm12, 0.0, %v18247_v29 }
  0xce   : > { %v10179_v11 = vsel %vm1708_vm13, 0.0, %v18247_v29  ;;  %v10182_v1 = vsel %vm1713_vm8, 0.0, %v18247_v29  ;;  %v10185_v63 = vsel %vm1714_vm14, 0.0, %v18247_v29  ;;  %v10188_v10 = vsel %vm1711_vm15, 0.0, %v18247_v29 }
  0xcf   : > { %7597 = vperm.xlu0 %7424, %v18250_v22   ;;  %7612 = vperm.xlu1 %7435, %v18251_v37   ;;  %v10191_v13 = vsel %vm1712_vm0, 0.0, %v18247_v29  ;;  %v10194_v22 = vsel %vm1717_vm7, 0.0, %v18247_v29  ;;  %v10197_v37 = vsel %vm1718_vm1, 0.0, %v18247_v29  ;;  %vm1715_vm4 = vcmp.lt.s32.totalorder %v9627_v35, 15 }
  0xd0   : > { %vm1716_vm9 = vcmp.lt.s32.totalorder %v9645_v50, 15  ;;  %vm1721_vm2 = vcmp.lt.s32.totalorder %v9652_v55, 15  ;;  %vm1722_vm3 = vcmp.lt.s32.totalorder %v9672_v4, 15  ;;  %vm1719_vm5 = vcmp.lt.s32.totalorder %v9689_v25, 15 }
  0xd1   : > { %vm1720_vm6 = vcmp.lt.s32.totalorder %v9699_v26, 15  ;;  %vm1909_vm10 = vcmp.ge.s32.totalorder %v9873_v6, 2  ;;  %vm1910_vm11 = vcmp.ge.s32.totalorder %v9879_v57, 2  ;;  %v10234_v42 = vsel %vm1719_vm5, 0.0, %v18247_v29 }
  0xd2   : > { %18258 = vst [vmem:[#allocation27_spill] sm:$0xff] %v10234_v42  ;;  %v18261_v47 = vpack.i.bf16 %v9998_v44, %v9993_v48  ;;  %v10246_v39 = vsel %vm1909_vm10, 0.0, %v18247_v29  ;;  %v10249_v34 = vsel %vm1910_vm11, 0.0, %v18247_v29  ;;  %vm1907_vm12 = vcmp.ge.s32.totalorder %v9927_v21, 2 }
  0xd3   : > { %7607 = vperm.xlu0 %7424, %v18252_v46   ;;  %7622 = vperm.xlu1 %7435, %v18253_v30   ;;  %v18254_v46 = vpack.i.bf16 %v9916_v18, %v9911_v15  ;;  %v18255_v30 = vpack.i.bf16 %v9922_v20, %v9919_v19  ;;  %v10222_v19 = vsel %vm1715_vm4, 0.0, %v18247_v29  ;;  %v10225_v20 = vsel %vm1716_vm9, 0.0, %v18247_v29  ;;  %18262 = vst [vmem:[#allocation29_spill] sm:$0xff] %v10246_v39 }
  0xd4   : > { %v10237_v15 = vsel %vm1720_vm6, 0.0, %v18247_v29  ;;  %v18260_v18 = vpack.i.bf16 %v9988_v53, %v9983_v61  ;;  %18263 = vst [vmem:[#allocation30_spill] sm:$0xff] %v10249_v34  ;;  %vm1908_vm13 = vcmp.ge.s32.totalorder %v9933_v2, 2  ;;  %vm1913_vm8 = vcmp.ge.s32.totalorder %v18264_v54, 2  ;;  %v18266_v53 = vld [vmem:[#allocation20_spill] sm:$0xff]  ;;  %v18267_v61 = vld [vmem:[#allocation21_spill] sm:$0xff] }
  0xd5   : > { %18259 = vst [vmem:[#allocation28_spill] sm:$0xff] %v10237_v15  ;;  %vm1914_vm14 = vcmp.ge.s32.totalorder %v18265_v41, 2  ;;  %vm1911_vm15 = vcmp.ge.s32.totalorder %v18266_v53, 2  ;;  %vm1912_vm0 = vcmp.ge.s32.totalorder %v18267_v61, 2  ;;  %v10268_v53 = vsel %vm1907_vm12, 0.0, %v18247_v29 }
  0xd6   : > { %18270 = vst [vmem:[#allocation18_spill] sm:$0xff] %v10268_v53  ;;  %v10271_v61 = vsel %vm1908_vm13, 0.0, %v18247_v29  ;;  %v18272_v48 = vpack.i.bf16 %v10006_v49, %v10003_v27  ;;  %v18273_v44 = vpack.i.bf16 %v10018_v45, %v10015_v62  ;;  %v10283_v28 = vsel %vm1914_vm14, 0.0, %v18247_v29  ;;  %v18280_v62 = vld [vmem:[#allocation24_spill] sm:$0xff] }
  0xd7   : > { %7617 = vperm.xlu0 %7424, %v18254_v46   ;;  %7632 = vperm.xlu1 %7435, %v18255_v30   ;;  %v10228_v46 = vsel %vm1721_vm2, 0.0, %v18247_v29  ;;  %v10231_v30 = vsel %vm1722_vm3, 0.0, %v18247_v29  ;;  %18271 = vst [vmem:[#allocation19_spill] sm:$0xff] %v10271_v61  ;;  %v10286_v52 = vsel %vm1911_vm15, 0.0, %v18247_v29  ;;  %v10289_v39 = vsel %vm1912_vm0, 0.0, %v18247_v29  ;;  %v10398_v61 = vld [vmem:[%s17502_s6 + $0xa8] sm:$0xff] }
  0xd8   : > { %18256 = vst [vmem:[#allocation25_spill] sm:$0xff] %v10228_v46  ;;  %18257 = vst [vmem:[#allocation26_spill] sm:$0xff] %v10231_v30  ;;  %v10280_v46 = vsel %vm1913_vm8, 0.0, %v18247_v29  ;;  %vm1915_vm4 = vcmp.ge.s32.totalorder %v10023_v24, 2  ;;  %vm1916_vm9 = vcmp.ge.s32.totalorder %v10029_v31, 2  ;;  %vm1921_vm2 = vcmp.ge.s32.totalorder %v10035_v32, 2 }
  0xd9   : > { %18276 = vst [vmem:[#allocation31_spill] sm:$0xff] %v10286_v52  ;;  %18277 = vst [vmem:[#allocation32_spill] sm:$0xff] %v10289_v39  ;;  %vm1922_vm3 = vcmp.ge.s32.totalorder %v10041_v33, 2  ;;  %vm1919_vm5 = vcmp.ge.s32.totalorder %v10047_v40, 2  ;;  %vm1920_vm6 = vcmp.ge.s32.totalorder %v18280_v62, 2  ;;  %v18283_v27 = vpack.i.bf16 %v10075_v3, %v10070_v38  ;;  %v10386_v52 = vld [vmem:[%s17502_s6 + $0xb8] sm:$0xff] }
  0xda   : > { %v18284_v45 = vpack.i.bf16 %v10091_v43, %v10086_v36  ;;  %v10332_v53 = vsel %vm1915_vm4, 0.0, %v18247_v29  ;;  %v10337_v38 = vsel %vm1916_vm9, 0.0, %v18247_v29  ;;  %v10342_v36 = vsel %vm1921_vm2, 0.0, %v18247_v29  ;;  %v10392_v39 = vld [vmem:[%s17502_s6 + $0xa0] sm:$0xff]  ;;  %18292 = vst [vmem:[#allocation43_spill] sm:$0xff] %v10398_v61  ;;  %v10414_v30 = vld [vmem:[%s17502_s6 + $0xd0] sm:$0xff] }
  0xdb   : > { %7627 = vperm.xlu0 %7424, %v18260_v18   ;;  %7642 = vperm.xlu1 %7435, %v18261_v47   ;;  %v18268_v47 = vld [vmem:[#allocation22_spill] sm:$0xff]  ;;  %v18269_v18 = vld [vmem:[#allocation23_spill] sm:$0xff]  ;;  %18285 = vst [vmem:[#allocation36_spill] sm:$0xff] %v10332_v53  ;;  %18286 = vst [vmem:[#allocation37_spill] sm:$0xff] %v10337_v38  ;;  %v10347_v43 = vsel %vm1922_vm3, 0.0, %v18247_v29  ;;  %v10352_v3 = vsel %vm1919_vm5, 0.0, %v18247_v29  ;;  %v18293_v42 = vpack.i.bf16 %v10099_v51, %v10096_v8 }
  0xdc   : > { %vm1917_vm7 = vcmp.ge.s32.totalorder %v18268_v47, 2  ;;  %vm1918_vm1 = vcmp.ge.s32.totalorder %v18269_v18, 2  ;;  %18274 = vst [vmem:[#allocation22_spill] sm:$0xff] %v10280_v46  ;;  %18275 = vst [vmem:[#allocation23_spill] sm:$0xff] %v10283_v28  ;;  %v10368_v46 = vld [vmem:[%s17502_s6 + $0x80] sm:$0xff]  ;;  %vm1930_vm14 = vcmp.ge.s32.totalorder %v10386_v52, 2  ;;  %v18294_v15 = vpack.i.bf16 %v10105_v17, %v10102_v12 }
  0xdd   : > { %v10292_v34 = vsel %vm1917_vm7, 0.0, %v18247_v29  ;;  %v10295_v49 = vsel %vm1918_vm1, 0.0, %v18247_v29  ;;  %18287 = vst [vmem:[#allocation38_spill] sm:$0xff] %v10342_v36  ;;  %18288 = vst [vmem:[#allocation39_spill] sm:$0xff] %v10347_v43  ;;  %vm1923_vm12 = vcmp.ge.s32.totalorder %v10368_v46, 2  ;;  %vm1927_vm15 = vcmp.ge.s32.totalorder %v10392_v39, 2 }
  0xde   : > { %18278 = vst [vmem:[#allocation33_spill] sm:$0xff] %v10292_v34  ;;  %18279 = vst [vmem:[#allocation34_spill] sm:$0xff] %v10295_v49  ;;  %v10374_v34 = vld [vmem:[%s17502_s6 + $0x88] sm:$0xff]  ;;  %v10380_v49 = vld [vmem:[%s17502_s6 + $0xb0] sm:$0xff]  ;;  %vm1928_vm0 = vcmp.ge.s32.totalorder %v10398_v61, 2  ;;  %vm1933_vm7 = vcmp.ge.s32.totalorder %v10414_v30, 2 }
  0xdf   : > { %7637 = vperm.xlu0 %7424, %v18272_v48   ;;  %7652 = vperm.xlu1 %7435, %v18273_v44   ;;  %v10310_v48 = vld [vmem:[%s17502_s6 + $0x90] sm:$0xff]  ;;  %v10316_v44 = vld [vmem:[%s17502_s6 + $0x98] sm:$0xff]  ;;  %18289 = vst [vmem:[#allocation40_spill] sm:$0xff] %v10352_v3  ;;  %vm1924_vm13 = vcmp.ge.s32.totalorder %v10374_v34, 2  ;;  %vm1929_vm8 = vcmp.ge.s32.totalorder %v10380_v49, 2  ;;  %18291 = vst [vmem:[#allocation42_spill] sm:$0xff] %v10392_v39  ;;  %v18300_v39 = vpack.i.bf16 %v10139_v9, %v10136_v5 }
  0xe0   : > { %18281 = vst [vmem:[#allocation24_spill] sm:$0xff] %v10310_v48  ;;  %vm1925_vm10 = vcmp.ge.s32.totalorder %v10310_v48, 2  ;;  %18282 = vst [vmem:[#allocation35_spill] sm:$0xff] %v10316_v44  ;;  %vm1926_vm11 = vcmp.ge.s32.totalorder %v10316_v44, 2  ;;  %v10420_v8 = vld [vmem:[%s17502_s6 + $0xd8] sm:$0xff]  ;;  %v10426_v51 = vld [vmem:[%s17502_s6 + $0xc0] sm:$0xff] }
  0xe1   : > { %v10363_v28 = vsel %vm1926_vm11, 0.0, %v18247_v29  ;;  %18295 = vst [vmem:[#allocation44_spill] sm:$0xff] %v10414_v30  ;;  %18296 = vst [vmem:[#allocation45_spill] sm:$0xff] %v10420_v8  ;;  %vm1934_vm1 = vcmp.ge.s32.totalorder %v10420_v8, 2  ;;  %vm1931_vm4 = vcmp.ge.s32.totalorder %v10426_v51, 2  ;;  %v10432_v12 = vld [vmem:[%s17502_s6 + $0xc8] sm:$0xff] }
  0xe2   : > { %vm1932_vm9 = vcmp.ge.s32.totalorder %v10432_v12, 2  ;;  %v10438_v17 = vld [vmem:[%s17502_s6 + $0xf0] sm:$0xff]  ;;  %v10455_v48 = vsel %vm1924_vm13, 0.0, %v18247_v29  ;;  %v10460_v44 = vsel %vm1929_vm8, 0.0, %v18247_v29  ;;  %v10465_v36 = vsel %vm1930_vm14, 0.0, %v18247_v29  ;;  %v10514_v5 = vld [vmem:[%s17502_s6 + $0xe0] sm:$0xff] }
  0xe3   : > { %7647 = vperm.xlu0 %7424, %v18283_v27   ;;  %7662 = vperm.xlu1 %7435, %v18284_v45   ;;  %v10357_v27 = vsel %vm1920_vm6, 0.0, %v18247_v29  ;;  %v10360_v45 = vsel %vm1925_vm10, 0.0, %v18247_v29  ;;  %18297 = vst [vmem:[#allocation46_spill] sm:$0xff] %v10438_v17  ;;  %vm1937_vm2 = vcmp.ge.s32.totalorder %v10438_v17, 2  ;;  %v10470_v43 = vsel %vm1927_vm15, 0.0, %v18247_v29  ;;  %v10520_v9 = vld [vmem:[%s17502_s6 + $0xe8] sm:$0xff] }
  0xe4   : > { %18290 = vst [vmem:[#allocation41_spill] sm:$0xff] %v10357_v27  ;;  %v10475_v53 = vsel %vm1928_vm0, 0.0, %v18247_v29  ;;  %v10480_v38 = vsel %vm1933_vm7, 0.0, %v18247_v29  ;;  %v18299_v17 = vpack.i.bf16 %v10133_v0, %v10130_v56  ;;  %v10496_v61 = vsel %vm1931_vm4, 0.0, %v18247_v29 }
  0xe5   : > { %v10501_v30 = vsel %vm1932_vm9, 0.0, %v18247_v29  ;;  %v10504_v8 = vsel %vm1937_vm2, 0.0, %v18247_v29  ;;  %vm1935_vm5 = vcmp.ge.s32.totalorder %v10514_v5, 2  ;;  %vm1936_vm6 = vcmp.ge.s32.totalorder %v10520_v9, 2 }
  0xe6   : > { %vm1941_vm10 = vcmp.ge.s32.totalorder %v9595_v16, 2  ;;  %vm1942_vm11 = vcmp.ge.s32.totalorder %v9608_v23, 2  ;;  %v18302_v0 = vpack.i.bf16 %v10151_v59, %v10148_v7  ;;  %v10546_v23 = vsel %vm1935_vm5, 0.0, %v18247_v29  ;;  %v18332_v16 = vld [vmem:[#allocation19_spill] sm:$0xff]  ;;  %v18333_v59 = vld [vmem:[#allocation18_spill] sm:$0xff] }
  0xe7   : > { %7657 = vperm.xlu0 %7424, %v18293_v42   ;;  %7672 = vperm.xlu1 %7435, %v18294_v15   ;;  %v10444_v42 = vld [vmem:[%s17502_s6 + $0xf8] sm:$0xff]  ;;  %v10450_v15 = vsel %vm1923_vm12, 0.0, %v18247_v29  ;;  %v10549_v3 = vsel %vm1936_vm6, 0.0, %v18247_v29  ;;  %v10552_v27 = vsel %vm1941_vm10, 0.0, %v18247_v29  ;;  %vm1939_vm12 = vcmp.ge.s32.totalorder %v9627_v35, 2 }
  0xe8   : > { %18298 = vst [vmem:[#allocation47_spill] sm:$0xff] %v10444_v42  ;;  %vm1938_vm3 = vcmp.ge.s32.totalorder %v10444_v42, 2  ;;  %v10485_v42 = vsel %vm1934_vm1, 0.0, %v18247_v29  ;;  %vm1940_vm13 = vcmp.ge.s32.totalorder %v9645_v50, 2  ;;  %vm1945_vm8 = vcmp.ge.s32.totalorder %v9652_v55, 2 }
  0xe9   : > { %v10507_v56 = vsel %vm1938_vm3, 0.0, %v18247_v29  ;;  %vm1946_vm14 = vcmp.ge.s32.totalorder %v9672_v4, 2  ;;  %vm1943_vm15 = vcmp.ge.s32.totalorder %v9689_v25, 2  ;;  %vm1944_vm0 = vcmp.ge.s32.totalorder %v9699_v26, 2 }
  0xea   : > { %vm1989_vm7 = vcmp.lt.s32.totalorder %v9873_v6, 14  ;;  %vm1990_vm1 = vcmp.lt.s32.totalorder %v9879_v57, 14  ;;  %vm1987_vm4 = vcmp.lt.s32.totalorder %v9927_v21, 14  ;;  %vm1988_vm9 = vcmp.lt.s32.totalorder %v9933_v2, 14  ;;  %v10587_v6 = vpop.permute.xlu1 %7437 }
  0xeb   : > { %7667 = vperm.xlu0 %7424, %v18299_v17   ;;  %7682 = vperm.xlu1 %7435, %v18300_v39   ;;  %v18301_v17 = vpack.i.bf16 %v10145_v58, %v10142_v14  ;;  %v10556_v39 = vsel %vm1942_vm11, 0.0, %v18247_v29  ;;  %vm1993_vm2 = vcmp.lt.s32.totalorder %v18264_v54, 14  ;;  %vm1994_vm3 = vcmp.lt.s32.totalorder %v18265_v41, 14  ;;  %18305 = vst [vmem:[#allocation48_spill] sm:$0xff] %v10587_v6 }
  0xec   : > { %v18303_v35 = vpack.i.bf16 %v10179_v11, %v10176_v60  ;;  %v18304_v50 = vpack.i.bf16 %v10185_v63, %v10182_v1  ;;  %v10576_v55 = vsel %vm1939_vm12, 0.0, %v18247_v29  ;;  %v10579_v4 = vsel %vm1940_vm13, 0.0, %v18247_v29  ;;  %v18309_v11 = vld [vmem:[#allocation21_spill] sm:$0xff]  ;;  %v10633_v60 = vpop.permute.xlu0 %7426 }
  0xed   : > { %v10582_v25 = vsel %vm1945_vm8, 0.0, %v18247_v29  ;;  %v10585_v26 = vsel %vm1946_vm14, 0.0, %v18247_v29  ;;  %v10590_v57 = vsel %vm1943_vm15, 0.0, %v18247_v29  ;;  %v10593_v21 = vsel %vm1944_vm0, 0.0, %v18247_v29 }
  0xee   : > { %v10596_v2 = vsel %vm1989_vm7, 0.0, %v18247_v29  ;;  %v10599_v41 = vsel %vm1990_vm1, 0.0, %v18247_v29  ;;  %v10602_v54 = vsel %vm1987_vm4, 0.0, %v18247_v29  ;;  %v10605_v14 = vsel %vm1988_vm9, 0.0, %v18247_v29 }
  0xef   : > { %7677 = vperm.xlu0 %7424, %v18301_v17   ;;  %7692 = vperm.xlu1 %7435, %v18302_v0   ;;  %v10608_v58 = vsel %vm1993_vm2, 0.0, %v18247_v29  ;;  %v10611_v7 = vsel %vm1994_vm3, 0.0, %v18247_v29  ;;  %v18306_v63 = vpack.i.bf16 %v10191_v13, %v10188_v10  ;;  %v18307_v0 = vpack.i.bf16 %v10197_v37, %v10194_v22  ;;  %v10645_v22 = vpop.permute.xlu1 %7442  ;;  %v18322_v10 = vld [vmem:[#allocation30_spill] sm:$0xff] }
  0xf0   : > { %vm1992_vm6 = vcmp.lt.s32.totalorder %v18309_v11, 14  ;;  %vm1997_vm10 = vcmp.lt.s32.totalorder %v18268_v47, 14  ;;  %vm1998_vm11 = vcmp.lt.s32.totalorder %v18269_v18, 14  ;;  %vm1995_vm12 = vcmp.lt.s32.totalorder %v10023_v24, 14  ;;  %18311 = vst [vmem:[#allocation21_spill] sm:$0xff] %v10645_v22  ;;  %v18352_v22 = vld [vmem:[#allocation34_spill] sm:$0xff] }
  0xf1   : > { %vm1996_vm13 = vcmp.lt.s32.totalorder %v10029_v31, 14  ;;  %vm2001_vm8 = vcmp.lt.s32.totalorder %v10035_v32, 14  ;;  %vm2002_vm14 = vcmp.lt.s32.totalorder %v10041_v33, 14  ;;  %v10651_v11 = vsel %vm1992_vm6, 0.0, %v18247_v29  ;;  %v18313_v31 = vld [vmem:[#allocation26_spill] sm:$0xff]  ;;  %v18314_v32 = vld [vmem:[#allocation25_spill] sm:$0xff] }
  0xf2   : > { %vm1999_vm15 = vcmp.lt.s32.totalorder %v10047_v40, 14  ;;  %vm2000_vm0 = vcmp.lt.s32.totalorder %v18280_v62, 14  ;;  %v18312_v24 = vpack.i.bf16 %v10225_v20, %v10222_v19  ;;  %v18315_v47 = vpack.i.bf16 %v18313_v31, %v18314_v32  ;;  %v10689_v32 = vpop.permute.xlu0 %7431 }
  0xf3   : > { %7687 = vperm.xlu0 %7424, %v18303_v35   ;;  %7702 = vperm.xlu1 %7435, %v18304_v50   ;;  %v18308_v50 = vld [vmem:[#allocation20_spill] sm:$0xff]  ;;  %v10662_v33 = vsel %vm1997_vm10, 0.0, %v18247_v29  ;;  %v10665_v18 = vsel %vm1998_vm11, 0.0, %v18247_v29  ;;  %v10670_v40 = vsel %vm1995_vm12, 0.0, %v18247_v29  ;;  %v10673_v19 = vsel %vm1996_vm13, 0.0, %v18247_v29  ;;  %18318 = vst [vmem:[#allocation26_spill] sm:$0xff] %v10689_v32 }
  0xf4   : > { %vm1991_vm5 = vcmp.lt.s32.totalorder %v18308_v50, 14  ;;  %18310 = vst [vmem:[#allocation20_spill] sm:$0xff] %v10633_v60  ;;  %v10676_v20 = vsel %vm2001_vm8, 0.0, %v18247_v29  ;;  %v10679_v62 = vsel %vm2002_vm14, 0.0, %v18247_v29  ;;  %v10687_v31 = vsel %vm2000_vm0, 0.0, %v18247_v29  ;;  %v18320_v50 = vld [vmem:[#allocation27_spill] sm:$0xff] }
  0xf5   : > { %v10648_v37 = vsel %vm1991_vm5, 0.0, %v18247_v29  ;;  %vm2003_vm4 = vcmp.lt.s32.totalorder %v10368_v46, 14  ;;  %vm2004_vm9 = vcmp.lt.s32.totalorder %v10374_v34, 14  ;;  %v18323_v35 = vld [vmem:[#allocation29_spill] sm:$0xff]  ;;  %v10711_v46 = vpop.permute.xlu1 %7452  ;;  %vm2009_vm2 = vcmp.lt.s32.totalorder %v10380_v49, 14 }
  0xf6   : > { %v18324_v17 = vpack.i.bf16 %v18322_v10, %v18323_v35  ;;  %18325 = vst [vmem:[#allocation25_spill] sm:$0xff] %v10711_v46  ;;  %v10722_v10 = vsel %vm2004_vm9, 0.0, %v18247_v29  ;;  %vm2010_vm3 = vcmp.lt.s32.totalorder %v10386_v52, 14  ;;  %v18331_v34 = vld [vmem:[#allocation45_spill] sm:$0xff]  ;;  %v18334_v1 = vpack.i.bf16 %v18332_v16, %v18333_v59  ;;  %v18335_v35 = vld [vmem:[#allocation23_spill] sm:$0xff]  ;;  %v18336_v46 = vld [vmem:[#allocation22_spill] sm:$0xff] }
  0xf7   : > { %7697 = vperm.xlu0 %7424, %v18306_v63   ;;  %7712 = vperm.xlu1 %7435, %v18307_v0   ;;  %v18316_v63 = vld [vmem:[#allocation24_spill] sm:$0xff]  ;;  %v18317_v0 = vld [vmem:[#allocation35_spill] sm:$0xff]  ;;  %vm2014_vm11 = vcmp.lt.s32.totalorder %v18331_v34, 14  ;;  %v18337_v6 = vpack.i.bf16 %v18335_v35, %v18336_v46  ;;  %vm2011_vm12 = vcmp.lt.s32.totalorder %v10426_v51, 14  ;;  %vm2012_vm13 = vcmp.lt.s32.totalorder %v10432_v12, 14  ;;  %v18338_v52 = vld [vmem:[#allocation46_spill] sm:$0xff] }
  0xf8   : > { %vm2005_vm7 = vcmp.lt.s32.totalorder %v18316_v63, 14  ;;  %vm2006_vm1 = vcmp.lt.s32.totalorder %v18317_v0, 14  ;;  %v18319_v0 = vld [vmem:[#allocation28_spill] sm:$0xff]  ;;  %18327 = vst [vmem:[#allocation35_spill] sm:$0xff] %v10722_v10  ;;  %vm2017_vm8 = vcmp.lt.s32.totalorder %v18338_v52, 14  ;;  %v10746_v16 = vsel %vm2009_vm2, 0.0, %v18247_v29 }
  0xf9   : > { %v10695_v63 = vsel %vm2006_vm1, 0.0, %v18247_v29  ;;  %v18321_v13 = vpack.i.bf16 %v18319_v0, %v18320_v50  ;;  %v18329_v50 = vld [vmem:[#allocation43_spill] sm:$0xff]  ;;  %v18330_v0 = vld [vmem:[#allocation44_spill] sm:$0xff]  ;;  %v10766_v49 = vsel %vm2011_vm12, 0.0, %v18247_v29  ;;  %v10769_v35 = vsel %vm2012_vm13, 0.0, %v18247_v29  ;;  %v18353_v60 = vld [vmem:[#allocation33_spill] sm:$0xff] }
  0xfa   : > { %vm2008_vm6 = vcmp.lt.s32.totalorder %v18329_v50, 14  ;;  %vm2013_vm10 = vcmp.lt.s32.totalorder %v18330_v0, 14  ;;  %v10739_v50 = vpop.permute.xlu0 %7447  ;;  %v10763_v46 = vpop.permute.xlu1 %7462  ;;  %18345 = vst [vmem:[#allocation43_spill] sm:$0xff] %v10766_v49  ;;  %18346 = vst [vmem:[#allocation44_spill] sm:$0xff] %v10769_v35  ;;  %v10772_v0 = vsel %vm2017_vm8, 0.0, %v18247_v29  ;;  %v18350_v34 = vld [vmem:[#allocation31_spill] sm:$0xff]  ;;  %v18354_v32 = vpack.i.bf16 %v18352_v22, %v18353_v60 }
  0xfb   : > { %7707 = vperm.xlu0 %7424, %v18312_v24   ;;  %7722 = vperm.xlu1 %7435, %v18315_v47   ;;  %v10684_v24 = vsel %vm1999_vm15, 0.0, %v18247_v29  ;;  %v10692_v47 = vsel %vm2005_vm7, 0.0, %v18247_v29  ;;  %18340 = vst [vmem:[#allocation28_spill] sm:$0xff] %v10739_v50  ;;  %v10755_v12 = vsel %vm2008_vm6, 0.0, %v18247_v29  ;;  %v10758_v59 = vsel %vm2013_vm10, 0.0, %v18247_v29  ;;  %18347 = vst [vmem:[#allocation45_spill] sm:$0xff] %v10772_v0 }
  0xfc   : > { %18342 = vst [vmem:[#allocation30_spill] sm:$0xff] %v10758_v59  ;;  %vm2015_vm15 = vcmp.lt.s32.totalorder %v10514_v5, 14  ;;  %vm2016_vm0 = vcmp.lt.s32.totalorder %v10520_v9, 14  ;;  %v8598_v60 = vld [vmem:[%s17502_s6 + $0x118] sm:$0xff]  ;;  %v18358_v9 = vld [vmem:[#allocation36_spill] sm:$0xff]  ;;  %v18360_v10 = vld [vmem:[#allocation39_spill] sm:$0xff]  ;;  %v18373_v49 = vpack.i.bf16 %v10363_v28, %v10360_v45 }
  0xfd   : > { %vm2022_vm1 = vcmp.lt.s32.totalorder %v8598_v60, 14  ;;  %v18357_v60 = vld [vmem:[#allocation37_spill] sm:$0xff]  ;;  %v10867_v35 = vld [vmem:[%s17501_s5 + $0x10] sm:$0xff] }
  0xfe   : > { %v10801_v22 = vpop.permute.xlu0 %7457  ;;  %v18359_v5 = vpack.i.bf16 %v18357_v60, %v18358_v9  ;;  %v10825_v0 = vsel %vm2022_vm1, 0.0, %v18247_v29  ;;  %v10851_v60 = vld [vmem:[%s17501_s5 + $0x20] sm:$0xff]  ;;  %vm1763_vm12 = vcmp.ge.s32.totalorder %v10867_v35, 1  ;;  %v10873_v59 = vld [vmem:[%s17501_s5 + $0x18] sm:$0xff] }
  0xff   : > { %7717 = vperm.xlu0 %7424, %v18321_v13   ;;  %7732 = vperm.xlu1 %7435, %v18324_v17   ;;  %v10719_v17 = vsel %vm2003_vm4, 0.0, %v18247_v29  ;;  %v18328_v13 = vld [vmem:[#allocation42_spill] sm:$0xff]  ;;  %18355 = vst [vmem:[#allocation18_spill] sm:$0xff] %v10801_v22  ;;  %18364 = vst [vmem:[#allocation46_spill] sm:$0xff] %v10825_v0  ;;  %vm1765_vm10 = vcmp.ge.s32.totalorder %v10851_v60, 1  ;;  %vm1764_vm13 = vcmp.ge.s32.totalorder %v10873_v59, 1 }
 0x100   : > { %18326 = vst [vmem:[#allocation24_spill] sm:$0xff] %v10719_v17  ;;  %vm2007_vm5 = vcmp.lt.s32.totalorder %v18328_v13, 14  ;;  %v18339_v13 = vld [vmem:[#allocation47_spill] sm:$0xff]  ;;  %18344 = vst [vmem:[#allocation42_spill] sm:$0xff] %v10763_v46  ;;  %v18361_v17 = vld [vmem:[#allocation38_spill] sm:$0xff]  ;;  %v10905_v45 = vsel %vm1765_vm10, 0.0, %v18247_v29 }
 0x101   : > { %vm2018_vm14 = vcmp.lt.s32.totalorder %v18339_v13, 14  ;;  %v10752_v51 = vsel %vm2007_vm5, 0.0, %v18247_v29  ;;  %v18349_v13 = vld [vmem:[#allocation32_spill] sm:$0xff]  ;;  %v18362_v46 = vpack.i.bf16 %v18360_v10, %v18361_v17  ;;  %v8603_v17 = vld [vmem:[%s17502_s6 + $0x120] sm:$0xff]  ;;  %v8604_v10 = vld [vmem:[%s17502_s6 + $0x128] sm:$0xff]  ;;  %18368 = vst [vmem:[#allocation34_spill] sm:$0xff] %v10851_v60  ;;  %v18387_v60 = vpack.i.bf16 %v10455_v48, %v10450_v15 }
 0x102   : > { %18341 = vst [vmem:[#allocation27_spill] sm:$0xff] %v10752_v51  ;;  %v10775_v52 = vsel %vm2018_vm14, 0.0, %v18247_v29  ;;  %v18351_v50 = vpack.i.bf16 %v18349_v13, %v18350_v34  ;;  %v10807_v34 = vsel %vm2016_vm0, 0.0, %v18247_v29  ;;  %v8599_v13 = vld [vmem:[%s17502_s6 + $0x100] sm:$0xff]  ;;  %vm2023_vm5 = vcmp.lt.s32.totalorder %v8603_v17, 14  ;;  %v18371_v51 = vld [vmem:[#allocation40_spill] sm:$0xff] }
 0x103   : > { %7727 = vperm.xlu0 %7424, %v18334_v1   ;;  %7742 = vperm.xlu1 %7435, %v18337_v6   ;;  %v10749_v6 = vsel %vm2010_vm3, 0.0, %v18247_v29  ;;  %v10761_v1 = vsel %vm2014_vm11, 0.0, %v18247_v29  ;;  %18348 = vst [vmem:[#allocation19_spill] sm:$0xff] %v10775_v52  ;;  %vm2019_vm4 = vcmp.lt.s32.totalorder %v8599_v13, 14  ;;  %v10827_v52 = vpop.permute.xlu1 %7472  ;;  %vm2024_vm6 = vcmp.lt.s32.totalorder %v8604_v10, 14  ;;  %18379 = vst [vmem:[#allocation40_spill] sm:$0xff] %v10905_v45 }
 0x104   : > { %18343 = vst [vmem:[#allocation29_spill] sm:$0xff] %v10761_v1  ;;  %18365 = vst [vmem:[#allocation47_spill] sm:$0xff] %v10827_v52  ;;  %v10857_v52 = vld [vmem:[%s17501_s5 + $0x28] sm:$0xff]  ;;  %v18370_v1 = vld [vmem:[#allocation41_spill] sm:$0xff]  ;;  %v18397_v45 = vpack.i.bf16 %v10475_v53, %v10470_v43 }
 0x105   : > { %18369 = vst [vmem:[#allocation33_spill] sm:$0xff] %v10857_v52  ;;  %vm1766_vm11 = vcmp.ge.s32.totalorder %v10857_v52, 1  ;;  %v18372_v13 = vpack.i.bf16 %v18370_v1, %v18371_v51  ;;  %v10896_v51 = vsel %vm2024_vm6, 0.0, %v18247_v29  ;;  %v10921_v17 = vld [vmem:[%s17501_s5 + $0x40] sm:$0xff]  ;;  %v10927_v10 = vld [vmem:[%s17501_s5 + $0x48] sm:$0xff]  ;;  %v10939_v52 = vld [vmem:[%s17501_s5 + $0x30] sm:$0xff] }
 0x106   : > { %18377 = vst [vmem:[#allocation38_spill] sm:$0xff] %v10896_v51  ;;  %v10898_v1 = vpop.permute.xlu0 %7467  ;;  %18383 = vst [vmem:[#allocation52_spill] sm:$0xff] %v10921_v17  ;;  %vm1769_vm8 = vcmp.ge.s32.totalorder %v10921_v17, 1  ;;  %vm1770_vm14 = vcmp.ge.s32.totalorder %v10927_v10, 1  ;;  %v11005_v17 = vld [vmem:[%s17501_s5 + $0x88] sm:$0xff]  ;;  %v11025_v51 = vld [vmem:[%s17501_s5 + $0x78] sm:$0xff] }
 0x107   : > { %7737 = vperm.xlu0 %7424, %v18351_v50   ;;  %7752 = vperm.xlu1 %7435, %v18354_v32   ;;  %v8597_v50 = vld [vmem:[%s17502_s6 + $0x110] sm:$0xff]  ;;  %v10804_v32 = vsel %vm2015_vm15, 0.0, %v18247_v29  ;;  %18378 = vst [vmem:[#allocation41_spill] sm:$0xff] %v10898_v1  ;;  %18384 = vst [vmem:[#allocation53_spill] sm:$0xff] %v10927_v10  ;;  %vm1767_vm15 = vcmp.ge.s32.totalorder %v10939_v52, 1  ;;  %v10953_v1 = vld [vmem:[%s17501_s5 + $0x38] sm:$0xff] }
 0x108   : > { %vm2021_vm7 = vcmp.lt.s32.totalorder %v8597_v50, 14  ;;  %18356 = vst [vmem:[#allocation23_spill] sm:$0xff] %v10804_v32  ;;  %v8600_v50 = vld [vmem:[%s17502_s6 + $0x108] sm:$0xff]  ;;  %v10892_v32 = vsel %vm2023_vm5, 0.0, %v18247_v29  ;;  %18386 = vst [vmem:[#allocation55_spill] sm:$0xff] %v10939_v52  ;;  %vm1768_vm0 = vcmp.ge.s32.totalorder %v10953_v1, 1 }
 0x109   : > { %vm2020_vm9 = vcmp.lt.s32.totalorder %v8600_v50, 14  ;;  %v10822_v22 = vsel %vm2021_vm7, 0.0, %v18247_v29  ;;  %v8601_v50 = vld [vmem:[%s17502_s6 + $0x130] sm:$0xff]  ;;  %18376 = vst [vmem:[#allocation39_spill] sm:$0xff] %v10892_v32  ;;  %18389 = vst [vmem:[#allocation56_spill] sm:$0xff] %v10953_v1  ;;  %v10959_v48 = vsel %vm1769_vm8, 0.0, %v18247_v29 }
 0x10a   : > { %18363 = vst [vmem:[#allocation22_spill] sm:$0xff] %v10822_v22  ;;  %vm2025_vm2 = vcmp.lt.s32.totalorder %v8601_v50, 14  ;;  %v10846_v9 = vsel %vm2020_vm9, 0.0, %v18247_v29  ;;  %v10913_v50 = vsel %vm1763_vm12, 0.0, %v18247_v29  ;;  %18390 = vst [vmem:[#allocation57_spill] sm:$0xff] %v10959_v48  ;;  %v10962_v15 = vsel %vm1770_vm14, 0.0, %v18247_v29 }
 0x10b   : > { %7747 = vperm.xlu0 %7424, %v18359_v5   ;;  %7762 = vperm.xlu1 %7435, %v18362_v46   ;;  %v8602_v5 = vld [vmem:[%s17502_s6 + $0x138] sm:$0xff]  ;;  %v10843_v46 = vsel %vm2019_vm4, 0.0, %v18247_v29  ;;  %18367 = vst [vmem:[#allocation31_spill] sm:$0xff] %v10846_v9  ;;  %v10884_v22 = vsel %vm2025_vm2, 0.0, %v18247_v29  ;;  %18381 = vst [vmem:[#allocation50_spill] sm:$0xff] %v10913_v50  ;;  %v10994_v50 = vsel %vm1768_vm0, 0.0, %v18247_v29 }
 0x10c   : > { %vm2026_vm3 = vcmp.lt.s32.totalorder %v8602_v5, 14  ;;  %18366 = vst [vmem:[#allocation32_spill] sm:$0xff] %v10843_v46  ;;  %18374 = vst [vmem:[#allocation37_spill] sm:$0xff] %v10884_v22  ;;  %v10916_v5 = vsel %vm1764_vm13, 0.0, %v18247_v29  ;;  %v10988_v10 = vld [vmem:[%s17501_s5 + $0x58] sm:$0xff]  ;;  %vm1776_vm6 = vcmp.ge.s32.totalorder %v11025_v51, 1  ;;  %v18413_v46 = vpack.i.bf16 %v10549_v3, %v10546_v23 }
 0x10d   : > { %v10888_v0 = vsel %vm2026_vm3, 0.0, %v18247_v29  ;;  %18382 = vst [vmem:[#allocation51_spill] sm:$0xff] %v10916_v5  ;;  %18391 = vst [vmem:[#allocation58_spill] sm:$0xff] %v10962_v15  ;;  %vm1772_vm9 = vcmp.ge.s32.totalorder %v10988_v10, 1  ;;  %v10999_v5 = vld [vmem:[%s17501_s5 + $0x80] sm:$0xff]  ;;  %vm1778_vm3 = vcmp.ge.s32.totalorder %v11005_v17, 1 }
 0x10e   : > { %18375 = vst [vmem:[#allocation36_spill] sm:$0xff] %v10888_v0  ;;  %18394 = vst [vmem:[#allocation61_spill] sm:$0xff] %v10988_v10  ;;  %v10991_v28 = vpop.permute.xlu0 %7477  ;;  %vm1777_vm2 = vcmp.ge.s32.totalorder %v10999_v5, 1  ;;  %v11031_v22 = vld [vmem:[%s17501_s5 + $0xa0] sm:$0xff]  ;;  %v11037_v53 = vld [vmem:[%s17501_s5 + $0xa8] sm:$0xff]  ;;  %v11072_v48 = vsel %vm1778_vm3, 0.0, %v18247_v29  ;;  %v18410_v0 = vpack.i.bf16 %v10507_v56, %v10504_v8 }
 0x10f   : > { %7757 = vperm.xlu0 %7424, %v18372_v13   ;;  %7772 = vperm.xlu1 %7435, %v18373_v49   ;;  %v10910_v49 = vsel %vm1766_vm11, 0.0, %v18247_v29  ;;  %v10930_v13 = vpop.permute.xlu1 %7482  ;;  %18395 = vst [vmem:[#allocation62_spill] sm:$0xff] %v10991_v28  ;;  %18396 = vst [vmem:[#allocation63_spill] sm:$0xff] %v10994_v50  ;;  %v11011_v28 = vld [vmem:[%s17501_s5 + $0x70] sm:$0xff]  ;;  %vm1781_vm10 = vcmp.ge.s32.totalorder %v11031_v22, 1  ;;  %vm1782_vm11 = vcmp.ge.s32.totalorder %v11037_v53, 1 }
 0x110   : > { %18380 = vst [vmem:[#allocation49_spill] sm:$0xff] %v10910_v49  ;;  %18385 = vst [vmem:[#allocation54_spill] sm:$0xff] %v10930_v13  ;;  %v18388_v13 = vpack.i.bf16 %v10465_v36, %v10460_v44  ;;  %v10967_v44 = vld [vmem:[%s17501_s5 + $0x60] sm:$0xff]  ;;  %v10971_v36 = vsel %vm1767_vm15, 0.0, %v18247_v29  ;;  %vm1775_vm5 = vcmp.ge.s32.totalorder %v11011_v28, 1  ;;  %v18398_v49 = vpack.i.bf16 %v10485_v42, %v10480_v38  ;;  %v11091_v50 = vld [vmem:[%s17501_s5 + $0x90] sm:$0xff] }
 0x111   : > { %vm1773_vm7 = vcmp.ge.s32.totalorder %v10967_v44, 1  ;;  %18392 = vst [vmem:[#allocation59_spill] sm:$0xff] %v10971_v36  ;;  %18404 = vst [vmem:[#allocation69_spill] sm:$0xff] %v11072_v48  ;;  %v11077_v15 = vsel %vm1775_vm5, 0.0, %v18247_v29  ;;  %v11080_v10 = vsel %vm1776_vm6, 0.0, %v18247_v29  ;;  %v11083_v32 = vsel %vm1781_vm10, 0.0, %v18247_v29 }
 0x112   : > { %v11045_v43 = vsel %vm1773_vm7, 0.0, %v18247_v29  ;;  %18405 = vst [vmem:[#allocation70_spill] sm:$0xff] %v11077_v15  ;;  %18406 = vst [vmem:[#allocation71_spill] sm:$0xff] %v11080_v10  ;;  %v11086_v36 = vsel %vm1782_vm11, 0.0, %v18247_v29  ;;  %vm1779_vm12 = vcmp.ge.s32.totalorder %v11091_v50, 1  ;;  %v11132_v52 = vld [vmem:[%s17501_s5 + $0xc8] sm:$0xff] }
 0x113   : > { %7767 = vperm.xlu0 %7424, %v18387_v60   ;;  %7782 = vperm.xlu1 %7435, %v18388_v13   ;;  %v10976_v60 = vld [vmem:[%s17501_s5 + $0x68] sm:$0xff]  ;;  %v10982_v13 = vld [vmem:[%s17501_s5 + $0x50] sm:$0xff]  ;;  %v11040_v38 = vpop.permute.xlu1 %7492  ;;  %18400 = vst [vmem:[#allocation65_spill] sm:$0xff] %v11045_v43  ;;  %18407 = vst [vmem:[#allocation72_spill] sm:$0xff] %v11083_v32  ;;  %v11119_v56 = vsel %vm1779_vm12, 0.0, %v18247_v29  ;;  %vm1786_vm14 = vcmp.ge.s32.totalorder %v11132_v52, 1 }
 0x114   : > { %vm1774_vm1 = vcmp.ge.s32.totalorder %v10976_v60, 1  ;;  %18393 = vst [vmem:[#allocation60_spill] sm:$0xff] %v10982_v13  ;;  %vm1771_vm4 = vcmp.ge.s32.totalorder %v10982_v13, 1  ;;  %18399 = vst [vmem:[#allocation64_spill] sm:$0xff] %v11040_v38  ;;  %v11067_v38 = vsel %vm1777_vm2, 0.0, %v18247_v29  ;;  %v18409_v13 = vpack.i.bf16 %v10501_v30, %v10496_v61  ;;  %v11111_v30 = vld [vmem:[%s17501_s5 + $0x98] sm:$0xff] }
 0x115   : > { %v11050_v42 = vsel %vm1774_vm1, 0.0, %v18247_v29  ;;  %18403 = vst [vmem:[#allocation68_spill] sm:$0xff] %v11067_v38  ;;  %18408 = vst [vmem:[#allocation73_spill] sm:$0xff] %v11086_v36  ;;  %vm1780_vm13 = vcmp.ge.s32.totalorder %v11111_v30, 1  ;;  %v11138_v8 = vld [vmem:[%s17501_s5 + $0xb0] sm:$0xff]  ;;  %v11144_v61 = vld [vmem:[%s17501_s5 + $0xb8] sm:$0xff] }
 0x116   : > { %v11104_v1 = vpop.permute.xlu0 %7487  ;;  %vm1783_vm15 = vcmp.ge.s32.totalorder %v11138_v8, 1  ;;  %vm1784_vm0 = vcmp.ge.s32.totalorder %v11144_v61, 1  ;;  %v8629_v9 = vld [vmem:[%s17501_s5 + $0xe0] sm:$0xff]  ;;  %v8630_v32 = vld [vmem:[%s17501_s5 + $0xe8] sm:$0xff]  ;;  %v11167_v36 = vld [vmem:[%s17501_s5 + $0xd0] sm:$0xff] }
 0x117   : > { %7777 = vperm.xlu0 %7424, %v18397_v45   ;;  %7792 = vperm.xlu1 %7435, %v18398_v49   ;;  %v11055_v45 = vsel %vm1771_vm4, 0.0, %v18247_v29  ;;  %v11060_v49 = vsel %vm1772_vm9, 0.0, %v18247_v29  ;;  %18411 = vst [vmem:[#allocation74_spill] sm:$0xff] %v11104_v1  ;;  %vm1789_vm7 = vcmp.ge.s32.totalorder %v8629_v9, 1  ;;  %v11159_v1 = vsel %vm1780_vm13, 0.0, %v18247_v29  ;;  %v11173_v3 = vld [vmem:[%s17501_s5 + $0xd8] sm:$0xff] }
 0x118   : > { %18401 = vst [vmem:[#allocation66_spill] sm:$0xff] %v11055_v45  ;;  %18402 = vst [vmem:[#allocation67_spill] sm:$0xff] %v11060_v49  ;;  %vm1790_vm1 = vcmp.ge.s32.totalorder %v8630_v32, 1  ;;  %vm1787_vm4 = vcmp.ge.s32.totalorder %v11167_v36, 1  ;;  %vm1788_vm9 = vcmp.ge.s32.totalorder %v11173_v3, 1  ;;  %v8634_v23 = vld [vmem:[%s17501_s5 + $0x108] sm:$0xff]  ;;  %v18416_v9 = vpack.i.bf16 %v10579_v4, %v10576_v55 }
 0x119   : > { %vm1794_vm3 = vcmp.ge.s32.totalorder %v8634_v23, 1  ;;  %v11190_v32 = vsel %vm1786_vm14, 0.0, %v18247_v29  ;;  %v11209_v15 = vsel %vm1790_vm1, 0.0, %v18247_v29  ;;  %v11212_v10 = vsel %vm1787_vm4, 0.0, %v18247_v29  ;;  %v8635_v48 = vld [vmem:[%s17501_s5 + $0xf0] sm:$0xff]  ;;  %v8636_v43 = vld [vmem:[%s17501_s5 + $0xf8] sm:$0xff] }
 0x11a   : > { %v11215_v38 = vsel %vm1788_vm9, 0.0, %v18247_v29  ;;  %vm1791_vm5 = vcmp.ge.s32.totalorder %v8635_v48, 1  ;;  %v11230_v49 = vsel %vm1794_vm3, 0.0, %v18247_v29  ;;  %vm1792_vm6 = vcmp.ge.s32.totalorder %v8636_v43, 1  ;;  %v8637_v4 = vld [vmem:[%s17501_s5 + $0x120] sm:$0xff] }
 0x11b   : > { %7787 = vperm.xlu0 %7424, %v18409_v13   ;;  %7802 = vperm.xlu1 %7435, %v18410_v0   ;;  %v11124_v0 = vld [vmem:[%s17501_s5 + $0xc0] sm:$0xff]  ;;  %v11127_v13 = vpop.permute.xlu1 %7502  ;;  %v11253_v55 = vsel %vm1792_vm6, 0.0, %v18247_v29  ;;  %vm1797_vm10 = vcmp.ge.s32.totalorder %v8637_v4, 1  ;;  %v18420_v43 = vpack.i.bf16 %v10599_v41, %v10596_v2  ;;  %vm1846_vm14 = vcmp.lt.s32.totalorder %v10976_v60, 19 }
 0x11c   : > { %vm1785_vm8 = vcmp.ge.s32.totalorder %v11124_v0, 1  ;;  %18412 = vst [vmem:[#allocation75_spill] sm:$0xff] %v11127_v13  ;;  %v18414_v13 = vpack.i.bf16 %v10556_v39, %v10552_v27  ;;  %v8633_v39 = vld [vmem:[%s17501_s5 + $0x100] sm:$0xff]  ;;  %vm2078_vm1 = vcmp.ge.s32.totalorder %v10976_v60, 2  ;;  %v18423_v4 = vpack.i.bf16 %v10605_v14, %v10602_v54 }
 0x11d   : > { %v11179_v27 = vsel %vm1785_vm8, 0.0, %v18247_v29  ;;  %vm1793_vm2 = vcmp.ge.s32.totalorder %v8633_v39, 1  ;;  %v11204_v39 = vsel %vm1789_vm7, 0.0, %v18247_v29  ;;  %vm1845_vm8 = vcmp.lt.s32.totalorder %v10967_v44, 19 }
 0x11e   : > { %v11206_v23 = vpop.permute.xlu0 %7497  ;;  %v11227_v45 = vsel %vm1793_vm2, 0.0, %v18247_v29  ;;  %vm2077_vm7 = vcmp.ge.s32.totalorder %v10967_v44, 2  ;;  %vm1847_vm4 = vcmp.lt.s32.totalorder %v11011_v28, 19  ;;  %vm1848_vm9 = vcmp.lt.s32.totalorder %v11025_v51, 19 }
 0x11f   : > { %7797 = vperm.xlu0 %7424, %v18413_v46   ;;  %7812 = vperm.xlu1 %7435, %v18414_v13   ;;  %v11195_v46 = vsel %vm1783_vm15, 0.0, %v18247_v29  ;;  %v11200_v13 = vsel %vm1784_vm0, 0.0, %v18247_v29  ;;  %18415 = vst [vmem:[#allocation76_spill] sm:$0xff] %v11206_v23  ;;  %v18417_v23 = vpack.i.bf16 %v10585_v26, %v10582_v25  ;;  %v8638_v26 = vld [vmem:[%s17501_s5 + $0x128] sm:$0xff]  ;;  %v8639_v25 = vld [vmem:[%s17501_s5 + $0x110] sm:$0xff]  ;;  %vm1835_vm15 = vcmp.lt.s32.totalorder %v10867_v35, 19 }
 0x120   : > { %vm1798_vm11 = vcmp.ge.s32.totalorder %v8638_v26, 1  ;;  %vm1795_vm12 = vcmp.ge.s32.totalorder %v8639_v25, 1  ;;  %vm1836_vm0 = vcmp.lt.s32.totalorder %v10873_v59, 19  ;;  %v11297_v59 = vsel %vm1845_vm8, 0.0, %v18247_v29 }
 0x121   : > { %v11286_v2 = vsel %vm1798_vm11, 0.0, %v18247_v29  ;;  %v11300_v25 = vsel %vm1846_vm14, 0.0, %v18247_v29  ;;  %v18424_v26 = vpack.i.bf16 %v10611_v7, %v10608_v58  ;;  %vm2149_vm2 = vcmp.lt.s32.totalorder %v10967_v44, 18 }
 0x122   : > { %v11235_v48 = vpop.permute.xlu1 %7512  ;;  %vm2150_vm3 = vcmp.lt.s32.totalorder %v10976_v60, 18  ;;  %v18429_v58 = vpack.i.bf16 %v10651_v11, %v10648_v37  ;;  %v18430_v7 = vpack.i.bf16 %v10665_v18, %v10662_v33  ;;  %v11350_v54 = vsel %vm1848_vm9, 0.0, %v18247_v29 }
 0x123   : > { %7807 = vperm.xlu0 %7424, %v18416_v9   ;;  %7822 = vperm.xlu1 %7435, %v18417_v23   ;;  %18418 = vst [vmem:[#allocation77_spill] sm:$0xff] %v11235_v48  ;;  %v11248_v9 = vsel %vm1791_vm5, 0.0, %v18247_v29  ;;  %v18419_v23 = vpack.i.bf16 %v10593_v21, %v10590_v57  ;;  %v8640_v48 = vld [vmem:[%s17501_s5 + $0x118] sm:$0xff]  ;;  %v11283_v21 = vsel %vm1797_vm10, 0.0, %v18247_v29  ;;  %18432 = vst [vmem:[#allocation85_spill] sm:$0xff] %v11350_v54  ;;  %vm2079_vm5 = vcmp.ge.s32.totalorder %v11011_v28, 2 }
 0x124   : > { %vm1796_vm13 = vcmp.ge.s32.totalorder %v8640_v48, 1  ;;  %v11291_v48 = vsel %vm1795_vm12, 0.0, %v18247_v29  ;;  %vm2080_vm6 = vcmp.ge.s32.totalorder %v11025_v51, 2  ;;  %vm1849_vm10 = vcmp.lt.s32.totalorder %v10999_v5, 19 }
 0x125   : > { %v11294_v35 = vsel %vm1796_vm13, 0.0, %v18247_v29  ;;  %vm1850_vm11 = vcmp.lt.s32.totalorder %v11005_v17, 19  ;;  %v11357_v37 = vsel %vm2149_vm2, 0.0, %v18247_v29  ;;  %v11360_v11 = vsel %vm2150_vm3, 0.0, %v18247_v29 }
 0x126   : > { %v11275_v57 = vpop.permute.xlu0 %7507  ;;  %18433 = vst [vmem:[#allocation86_spill] sm:$0xff] %v11357_v37  ;;  %18434 = vst [vmem:[#allocation87_spill] sm:$0xff] %v11360_v11  ;;  %vm2151_vm12 = vcmp.lt.s32.totalorder %v11011_v28, 18  ;;  %vm2152_vm13 = vcmp.lt.s32.totalorder %v11025_v51, 18  ;;  %v2251_v60 = vlaneseq  ;;  %vm2081_vm8 = vcmp.ge.s32.totalorder %v10999_v5, 2 }
 0x127   : > { %7817 = vperm.xlu0 %7424, %v18419_v23   ;;  %7832 = vperm.xlu1 %7435, %v18420_v43   ;;  %18421 = vst [vmem:[#allocation78_spill] sm:$0xff] %v11275_v57  ;;  %v11309_v23 = vsel %vm1835_vm15, 0.0, %v18247_v29  ;;  %v11312_v43 = vsel %vm1836_vm0, 0.0, %v18247_v29  ;;  %v11318_v57 = vsel %vm2078_vm1, 0.0, %v18247_v29  ;;  %vm2082_vm14 = vcmp.ge.s32.totalorder %v11005_v17, 2 }
 0x128   : > { %18426 = vst [vmem:[#allocation81_spill] sm:$0xff] %v11318_v57  ;;  %v11381_v14 = vsel %vm2079_vm5, 0.0, %v18247_v29  ;;  %v11386_v44 = vsel %vm2080_vm6, 0.0, %v18247_v29  ;;  %vm1851_vm15 = vcmp.lt.s32.totalorder %v11091_v50, 19  ;;  %v11408_v51 = vsel %vm2081_vm8, 0.0, %v18247_v29 }
 0x129   : > { %18443 = vst [vmem:[#allocation94_spill] sm:$0xff] %v11408_v51  ;;  %v11411_v28 = vsel %vm2082_vm14, 0.0, %v18247_v29  ;;  %vm1852_vm0 = vcmp.lt.s32.totalorder %v11111_v30, 19  ;;  %v11420_v37 = vshrl.u32 %v2251_v60, 7  ;;  %v18447_v54 = vpack.i.bf16 %v10695_v63, %v10692_v47  ;;  %v18450_v47 = vld [vmem:[#allocation35_spill] sm:$0xff]  ;;  %v18451_v63 = vld [vmem:[#allocation24_spill] sm:$0xff] }
 0x12a   : > { %v11288_v41 = vpop.permute.xlu1 %7522  ;;  %18444 = vst [vmem:[#allocation95_spill] sm:$0xff] %v11411_v28  ;;  %v11433_v57 = vsel %vm1851_vm15, 0.0, %v18247_v29  ;;  %vm2154_vm1 = vcmp.lt.s32.totalorder %v11005_v17, 18  ;;  %vm2084_vm9 = vcmp.ge.s32.totalorder %v11111_v30, 2  ;;  %vm1853_vm2 = vcmp.lt.s32.totalorder %v11031_v22, 19  ;;  %v18466_v51 = vld [vmem:[#allocation29_spill] sm:$0xff] }
 0x12b   : > { %18422 = vst [vmem:[#allocation79_spill] sm:$0xff] %v11288_v41  ;;  %7827 = vperm.xlu0 %7424, %v18423_v4   ;;  %7842 = vperm.xlu1 %7435, %v18424_v26   ;;  %v11315_v41 = vsel %vm2077_vm7, 0.0, %v18247_v29  ;;  %18448 = vst [vmem:[#allocation97_spill] sm:$0xff] %v11433_v57  ;;  %vm2153_vm7 = vcmp.lt.s32.totalorder %v10999_v5, 18  ;;  %vm1854_vm3 = vcmp.lt.s32.totalorder %v11037_v53, 19  ;;  %vm2155_vm5 = vcmp.lt.s32.totalorder %v11091_v50, 18 }
 0x12c   : > { %18425 = vst [vmem:[#allocation80_spill] sm:$0xff] %v11315_v41  ;;  %vm2156_vm6 = vcmp.lt.s32.totalorder %v11111_v30, 18  ;;  %v18452_v5 = vpack.i.bf16 %v18450_v47, %v18451_v63  ;;  %v18453_v17 = vpack.i.bf16 %v10749_v6, %v10746_v16  ;;  %v11472_v60 = vsel %vm2084_vm9, 0.0, %v18247_v29  ;;  %v18464_v57 = vld [vmem:[#allocation27_spill] sm:$0xff]  ;;  %v18467_v28 = vld [vmem:[#allocation30_spill] sm:$0xff] }
 0x12d   : > { %18457 = vst [vmem:[#allocation100_spill] sm:$0xff] %v11472_v60  ;;  %v11475_v47 = vsel %vm1853_vm2, 0.0, %v18247_v29  ;;  %v11478_v16 = vsel %vm1854_vm3, 0.0, %v18247_v29  ;;  %v11481_v6 = vsel %vm2155_vm5, 0.0, %v18247_v29  ;;  %v11484_v63 = vsel %vm2156_vm6, 0.0, %v18247_v29  ;;  %v18506_v60 = vld [vmem:[#allocation39_spill] sm:$0xff] }
 0x12e   : > { %v11330_v4 = vpop.permute.xlu0 %7517  ;;  %v11332_v26 = vpop.permute.xlu1 %7532  ;;  %18458 = vst [vmem:[#allocation101_spill] sm:$0xff] %v11475_v47  ;;  %18459 = vst [vmem:[#allocation102_spill] sm:$0xff] %v11478_v16  ;;  %vm2157_vm8 = vcmp.lt.s32.totalorder %v11031_v22, 18  ;;  %vm2158_vm14 = vcmp.lt.s32.totalorder %v11037_v53, 18  ;;  %vm2087_vm15 = vcmp.ge.s32.totalorder %v11138_v8, 2  ;;  %vm2160_vm9 = vcmp.lt.s32.totalorder %v11144_v61, 18 }
 0x12f   : > { %18427 = vst [vmem:[#allocation82_spill] sm:$0xff] %v11330_v4  ;;  %18428 = vst [vmem:[#allocation83_spill] sm:$0xff] %v11332_v26  ;;  %7837 = vperm.xlu0 %7424, %v18429_v58   ;;  %7852 = vperm.xlu1 %7435, %v18430_v7   ;;  %v11347_v4 = vsel %vm1847_vm4, 0.0, %v18247_v29  ;;  %v18437_v58 = vpack.i.bf16 %v10673_v19, %v10670_v40  ;;  %v18438_v7 = vpack.i.bf16 %v10679_v62, %v10676_v20 }
 0x130   : > { %18431 = vst [vmem:[#allocation84_spill] sm:$0xff] %v11347_v4  ;;  %v11396_v40 = vsel %vm1850_vm11, 0.0, %v18247_v29  ;;  %v11401_v20 = vsel %vm2151_vm12, 0.0, %v18247_v29  ;;  %v11404_v62 = vsel %vm2152_vm13, 0.0, %v18247_v29  ;;  %v18446_v4 = vpack.i.bf16 %v10687_v31, %v10684_v24  ;;  %18460 = vst [vmem:[#allocation103_spill] sm:$0xff] %v11481_v6 }
 0x131   : > { %18440 = vst [vmem:[#allocation91_spill] sm:$0xff] %v11396_v40  ;;  %18441 = vst [vmem:[#allocation92_spill] sm:$0xff] %v11401_v20  ;;  %v11438_v19 = vsel %vm1852_vm0, 0.0, %v18247_v29  ;;  %vm2083_vm4 = vcmp.ge.s32.totalorder %v11091_v50, 2  ;;  %vm2086_vm11 = vcmp.ge.s32.totalorder %v11037_v53, 2  ;;  %v11466_v50 = vsel %vm2154_vm1, 0.0, %v18247_v29 }
 0x132   : > { %v11364_v33 = vpop.permute.xlu0 %7527  ;;  %v11366_v18 = vpop.permute.xlu1 %7542  ;;  %18442 = vst [vmem:[#allocation93_spill] sm:$0xff] %v11404_v62  ;;  %18449 = vst [vmem:[#allocation98_spill] sm:$0xff] %v11438_v19  ;;  %v11469_v30 = vsel %vm2083_vm4, 0.0, %v18247_v29  ;;  %vm1855_vm12 = vcmp.lt.s32.totalorder %v11138_v8, 19  ;;  %vm1856_vm13 = vcmp.lt.s32.totalorder %v11144_v61, 19  ;;  %v18465_v19 = vpack.i.bf16 %v10755_v12, %v18464_v57  ;;  %v18474_v12 = vld [vmem:[#allocation43_spill] sm:$0xff] }
 0x133   : > { %18435 = vst [vmem:[#allocation88_spill] sm:$0xff] %v11364_v33  ;;  %18436 = vst [vmem:[#allocation89_spill] sm:$0xff] %v11366_v18  ;;  %7847 = vperm.xlu0 %7424, %v18437_v58   ;;  %7862 = vperm.xlu1 %7435, %v18438_v7   ;;  %v11391_v33 = vsel %vm1849_vm10, 0.0, %v18247_v29  ;;  %vm2085_vm10 = vcmp.ge.s32.totalorder %v11031_v22, 2  ;;  %v18468_v20 = vpack.i.bf16 %v18466_v51, %v18467_v28  ;;  %v11517_v57 = vsel %vm1855_vm12, 0.0, %v18247_v29  ;;  %v18473_v28 = vld [vmem:[#allocation44_spill] sm:$0xff] }
 0x134   : > { %18439 = vst [vmem:[#allocation90_spill] sm:$0xff] %v11391_v33  ;;  %18455 = vst [vmem:[#allocation24_spill] sm:$0xff] %v11466_v50  ;;  %vm2088_vm0 = vcmp.ge.s32.totalorder %v11144_v61, 2  ;;  %v11529_v53 = vsel %vm2157_vm8, 0.0, %v18247_v29  ;;  %v11532_v51 = vsel %vm2158_vm14, 0.0, %v18247_v29  ;;  %vm1858_vm1 = vcmp.lt.s32.totalorder %v11132_v52, 19 }
 0x135   : > { %18456 = vst [vmem:[#allocation99_spill] sm:$0xff] %v11469_v30  ;;  %18461 = vst [vmem:[#allocation104_spill] sm:$0xff] %v11484_v63  ;;  %v18475_v11 = vpack.i.bf16 %v18473_v28, %v18474_v12  ;;  %v18476_v33 = vld [vmem:[#allocation19_spill] sm:$0xff]  ;;  %v18477_v62 = vld [vmem:[#allocation45_spill] sm:$0xff]  ;;  %vm2159_vm4 = vcmp.lt.s32.totalorder %v11138_v8, 18  ;;  %vm2089_vm2 = vcmp.ge.s32.totalorder %v11124_v0, 2 }
 0x136   : > { %v11414_v58 = vpop.permute.xlu0 %7537  ;;  %v11416_v7 = vpop.permute.xlu1 %7552  ;;  %18469 = vst [vmem:[#allocation27_spill] sm:$0xff] %v11517_v57  ;;  %18471 = vst [vmem:[#allocation30_spill] sm:$0xff] %v11529_v53  ;;  %vm2090_vm3 = vcmp.ge.s32.totalorder %v11132_v52, 2  ;;  %v11549_v6 = vsel %vm2087_vm15, 0.0, %v18247_v29  ;;  %v11560_v61 = vsel %vm1858_vm1, 0.0, %v18247_v29  ;;  %v11567_v12 = vsel %vm2159_vm4, 0.0, %v18247_v29 }
 0x137   : > { %18445 = vst [vmem:[#allocation96_spill] sm:$0xff] %v11414_v58  ;;  %7857 = vperm.xlu0 %7424, %v18446_v4   ;;  %7872 = vperm.xlu1 %7435, %v18447_v54   ;;  %v11463_v4 = vsel %vm2153_vm7, 0.0, %v18247_v29  ;;  %18472 = vst [vmem:[#allocation107_spill] sm:$0xff] %v11532_v51  ;;  %vm1857_vm7 = vcmp.lt.s32.totalorder %v11124_v0, 19  ;;  %v11570_v28 = vsel %vm2160_vm9, 0.0, %v18247_v29  ;;  %v18487_v51 = vld [vmem:[#allocation23_spill] sm:$0xff]  ;;  %v11662_v40 = vunpack.i.h.bf16 %v11416_v7 }
 0x138   : > { %18454 = vst [vmem:[#allocation35_spill] sm:$0xff] %v11463_v4  ;;  %18479 = vst [vmem:[#allocation44_spill] sm:$0xff] %v11549_v6  ;;  %v11557_v8 = vsel %vm1857_vm7, 0.0, %v18247_v29  ;;  %v18488_v57 = vpack.i.bf16 %v10807_v34, %v18487_v51  ;;  %v18490_v63 = vld [vmem:[#allocation22_spill] sm:$0xff]  ;;  %vm1859_vm5 = vcmp.lt.s32.totalorder %v11167_v36, 19  ;;  %vm1860_vm6 = vcmp.lt.s32.totalorder %v11173_v3, 19 }
 0x139   : > { %18481 = vst [vmem:[#allocation19_spill] sm:$0xff] %v11557_v8  ;;  %18482 = vst [vmem:[#allocation45_spill] sm:$0xff] %v11560_v61  ;;  %vm2091_vm12 = vcmp.ge.s32.totalorder %v11167_v36, 2  ;;  %v18494_v51 = vld [vmem:[#allocation31_spill] sm:$0xff]  ;;  %v18495_v53 = vld [vmem:[#allocation32_spill] sm:$0xff]  ;;  %vm2163_vm15 = vcmp.lt.s32.totalorder %v11167_v36, 18  ;;  %v11665_v61 = vunpack.i.l.bf16 %v11416_v7 }
 0x13a   : > { %v11446_v24 = vpop.permute.xlu0 %7547  ;;  %v11448_v31 = vpop.permute.xlu1 %7562  ;;  %18483 = vst [vmem:[#allocation108_spill] sm:$0xff] %v11567_v12  ;;  %18484 = vst [vmem:[#allocation109_spill] sm:$0xff] %v11570_v28  ;;  %v18496_v30 = vpack.i.bf16 %v18494_v51, %v18495_v53  ;;  %v18497_v34 = vld [vmem:[#allocation36_spill] sm:$0xff]  ;;  %v11644_v28 = vsel %vm2163_vm15, 0.0, %v18247_v29  ;;  %v18508_v36 = vld [vmem:[#allocation49_spill] sm:$0xff] }
 0x13b   : > { %7867 = vperm.xlu0 %7424, %v18452_v5   ;;  %7882 = vperm.xlu1 %7435, %v18453_v17   ;;  %v11487_v5 = vsel %vm2085_vm10, 0.0, %v18247_v29  ;;  %v11490_v17 = vsel %vm2086_vm11, 0.0, %v18247_v29  ;;  %vm2161_vm10 = vcmp.lt.s32.totalorder %v11124_v0, 18  ;;  %vm2162_vm11 = vcmp.lt.s32.totalorder %v11132_v52, 18  ;;  %v18498_v0 = vld [vmem:[#allocation37_spill] sm:$0xff]  ;;  %18511 = vst [vmem:[#allocation31_spill] sm:$0xff] %v11662_v40 }
 0x13c   : > { %18462 = vst [vmem:[#allocation105_spill] sm:$0xff] %v11487_v5  ;;  %18463 = vst [vmem:[#allocation106_spill] sm:$0xff] %v11490_v17  ;;  %v18478_v5 = vpack.i.bf16 %v18476_v33, %v18477_v62  ;;  %v11573_v17 = vsel %vm2089_vm2, 0.0, %v18247_v29  ;;  %v11576_v33 = vsel %vm2090_vm3, 0.0, %v18247_v29  ;;  %v18499_v16 = vpack.i.bf16 %v18497_v34, %v18498_v0  ;;  %v18521_v6 = vld [vmem:[#allocation53_spill] sm:$0xff]  ;;  %v18527_v40 = vld [vmem:[#allocation50_spill] sm:$0xff] }
 0x13d   : > { %18485 = vst [vmem:[#allocation110_spill] sm:$0xff] %v11573_v17  ;;  %18486 = vst [vmem:[#allocation111_spill] sm:$0xff] %v11576_v33  ;;  %v11612_v52 = vsel %vm1859_vm5, 0.0, %v18247_v29  ;;  %v11615_v17 = vsel %vm1860_vm6, 0.0, %v18247_v29  ;;  %v11620_v33 = vsel %vm2161_vm10, 0.0, %v18247_v29  ;;  %v11623_v53 = vsel %vm2162_vm11, 0.0, %v18247_v29 }
 0x13e   : > { %v11492_v54 = vpop.permute.xlu0 %7557  ;;  %v11494_v41 = vpop.permute.xlu1 %7572  ;;  %18512 = vst [vmem:[#allocation32_spill] sm:$0xff] %v11665_v61  ;;  %v11679_v26 = vunpack.i.l.bf16 %v11446_v24  ;;  %v11682_v7 = vunpack.i.h.bf16 %v11448_v31  ;;  %vm1842_vm9 = vcmp.lt.s32.totalorder %v18521_v6, 19  ;;  %vm2074_vm3 = vcmp.ge.s32.totalorder %v18521_v6, 2 }
 0x13f   : > { %7877 = vperm.xlu0 %7424, %v18465_v19   ;;  %7892 = vperm.xlu1 %7435, %v18468_v20   ;;  %v11520_v19 = vsel %vm1856_vm13, 0.0, %v18247_v29  ;;  %vm2092_vm13 = vcmp.ge.s32.totalorder %v11173_v3, 2 }
 0x140   : > { %18470 = vst [vmem:[#allocation29_spill] sm:$0xff] %v11520_v19  ;;  %v18489_v19 = vld [vmem:[#allocation46_spill] sm:$0xff]  ;;  %18516 = vst [vmem:[#allocation37_spill] sm:$0xff] %v11679_v26  ;;  %v18526_v26 = vld [vmem:[#allocation51_spill] sm:$0xff] }
 0x141   : > { %v18491_v47 = vpack.i.bf16 %v18489_v19, %v18490_v63  ;;  %v18493_v19 = vld [vmem:[#allocation56_spill] sm:$0xff]  ;;  %v18528_v61 = vpack.i.bf16 %v18526_v26, %v18527_v40 }
 0x142   : > { %v11524_v20 = vpop.permute.xlu0 %7567  ;;  %v11526_v22 = vpop.permute.xlu1 %7582  ;;  %vm1840_vm14 = vcmp.lt.s32.totalorder %v18493_v19, 19  ;;  %vm2072_vm6 = vcmp.ge.s32.totalorder %v18493_v19, 2 }
 0x143   : > { %7887 = vperm.xlu0 %7424, %v18475_v11   ;;  %7902 = vperm.xlu1 %7435, %v18478_v5   ;;  %v11552_v11 = vsel %vm2088_vm0, 0.0, %v18247_v29  ;;  %vm2164_vm0 = vcmp.lt.s32.totalorder %v11173_v3, 18  ;;  %v11635_v51 = vsel %vm1840_vm14, 0.0, %v18247_v29  ;;  %v18509_v3 = vld [vmem:[#allocation40_spill] sm:$0xff]  ;;  %v11730_v40 = vunpack.i.l.bf16 %v11524_v20 }
 0x144   : > { %18480 = vst [vmem:[#allocation43_spill] sm:$0xff] %v11552_v11  ;;  %18501 = vst [vmem:[#allocation46_spill] sm:$0xff] %v11635_v51  ;;  %v11647_v8 = vsel %vm2164_vm0, 0.0, %v18247_v29  ;;  %v18505_v11 = vld [vmem:[#allocation38_spill] sm:$0xff]  ;;  %v18510_v18 = vpack.i.bf16 %v18508_v36, %v18509_v3  ;;  %v18514_v36 = vld [vmem:[#allocation60_spill] sm:$0xff]  ;;  %vm3336_vm14 = vcmp.lt.s32.totalorder %v11420_v37, 6 }
 0x145   : > { %18504 = vst [vmem:[#allocation56_spill] sm:$0xff] %v11647_v8  ;;  %v18507_v4 = vpack.i.bf16 %v18505_v11, %v18506_v60  ;;  %vm1843_vm7 = vcmp.lt.s32.totalorder %v18514_v36, 19  ;;  %v18515_v3 = vld [vmem:[#allocation61_spill] sm:$0xff]  ;;  %18517 = vst [vmem:[#allocation38_spill] sm:$0xff] %v11682_v7  ;;  %v18520_v11 = vld [vmem:[#allocation52_spill] sm:$0xff]  ;;  %v11702_v7 = vunpack.i.l.bf16 %v11492_v54 }
 0x146   : > { %v11562_v62 = vpop.permute.xlu0 %7577  ;;  %v11564_v5 = vpop.permute.xlu1 %7592  ;;  %vm1844_vm1 = vcmp.lt.s32.totalorder %v18515_v3, 19  ;;  %vm1841_vm4 = vcmp.lt.s32.totalorder %v18520_v11, 19  ;;  %v18530_v8 = vld [vmem:[#allocation57_spill] sm:$0xff]  ;;  %vm2073_vm2 = vcmp.ge.s32.totalorder %v18520_v11, 2 }
 0x147   : > { %7897 = vperm.xlu0 %7424, %v18488_v57   ;;  %7912 = vperm.xlu1 %7435, %v18491_v47   ;;  %v18492_v57 = vld [vmem:[#allocation55_spill] sm:$0xff]  ;;  %18524 = vst [vmem:[#allocation61_spill] sm:$0xff] %v11702_v7  ;;  %v11727_v26 = vsel %vm1844_vm1, 0.0, %v18247_v29  ;;  %18536 = vst [vmem:[#allocation57_spill] sm:$0xff] %v11730_v40  ;;  %v11752_v36 = vunpack.i.h.bf16 %v11562_v62  ;;  %v11762_v40 = vunpack.i.l.bf16 %v11562_v62 }
 0x148   : > { %vm1839_vm8 = vcmp.lt.s32.totalorder %v18492_v57, 19  ;;  %18503 = vst [vmem:[#allocation55_spill] sm:$0xff] %v11644_v28  ;;  %v18529_v28 = vld [vmem:[#allocation58_spill] sm:$0xff]  ;;  %vm2071_vm5 = vcmp.ge.s32.totalorder %v18492_v57, 2 }
 0x149   : > { %v11632_v34 = vsel %vm1839_vm8, 0.0, %v18247_v29  ;;  %18535 = vst [vmem:[#allocation58_spill] sm:$0xff] %v11727_v26  ;;  %18541 = vst [vmem:[#allocation116_spill] sm:$0xff] %v11752_v36  ;;  %v18550_v36 = vld [vmem:[#allocation65_spill] sm:$0xff]  ;;  %vm2975_vm8 = vcmp.lt.s32.totalorder %v11420_v37, 2 }
 0x14a   : > { %v11597_v47 = vpop.permute.xlu0 %7587  ;;  %v11599_v63 = vpop.permute.xlu1 %7602  ;;  %18500 = vst [vmem:[#allocation23_spill] sm:$0xff] %v11632_v34  ;;  %v18531_v34 = vpack.i.bf16 %v18529_v28, %v18530_v8  ;;  %v11743_v28 = vsel %vm1842_vm9, 0.0, %v18247_v29  ;;  %18544 = vst [vmem:[#allocation119_spill] sm:$0xff] %v11762_v40  ;;  %v18551_v7 = vpack.i.bf16 %v11050_v42, %v18550_v36 }
 0x14b   : > { %7907 = vperm.xlu0 %7424, %v18496_v30   ;;  %7922 = vperm.xlu1 %7435, %v18499_v16   ;;  %v11626_v30 = vsel %vm2091_vm12, 0.0, %v18247_v29  ;;  %v11629_v16 = vsel %vm2092_vm13, 0.0, %v18247_v29  ;;  %18538 = vst [vmem:[#allocation113_spill] sm:$0xff] %v11743_v28  ;;  %v11789_v42 = vunpack.i.l.bf16 %v11597_v47  ;;  %v18563_v28 = vld [vmem:[#allocation68_spill] sm:$0xff]  ;;  %vm2253_vm12 = vcmp.lt.s32.totalorder %v11420_v37, 1 }
 0x14c   : > { %vm2614_vm13 = vcmp.lt.s32.totalorder %v11420_v37, 7 }
 0x14e   : > { %v11639_v0 = vpop.permute.xlu0 %7597  ;;  %v11641_v12 = vpop.permute.xlu1 %7612 }
 0x14f   : > { %18502 = vst [vmem:[#allocation22_spill] sm:$0xff] %v11641_v12  ;;  %7917 = vperm.xlu0 %7424, %v18507_v4   ;;  %7932 = vperm.xlu1 %7435, %v18510_v18   ;;  %v11672_v18 = vunpack.i.h.bf16 %v11446_v24  ;;  %v11691_v4 = vld [vmem:[%s17498_s2] ss:$0 sm:$0xff]  ;;  %v11699_v24 = vunpack.i.h.bf16 %v11492_v54  ;;  %v11722_v54 = vsel %vm1843_vm7, 0.0, %v18247_v29 }
 0x150   : > { %18534 = vst [vmem:[#allocation50_spill] sm:$0xff] %v11722_v54 }
 0x151   : > { %18513 = vst [vmem:[#allocation36_spill] sm:$0xff] %v11672_v18  ;;  %v11696_v18 = vunpack.i.l.bf16 %v11448_v31  ;;  %18523 = vst [vmem:[#allocation60_spill] sm:$0xff] %v11699_v24  ;;  %v11714_v31 = vunpack.i.l.bf16 %v11494_v41  ;;  %v7094_v24 = vpop.f32.mrb[0].mxu0 }
 0x152   : > { %v11684_v60 = vpop.permute.xlu0 %7607  ;;  %v11686_v50 = vpop.permute.xlu1 %7622 }
 0x153   : > { %18518 = vst [vmem:[#allocation39_spill] sm:$0xff] %v11684_v60  ;;  %18519 = vst [vmem:[#allocation49_spill] sm:$0xff] %v11686_v50  ;;  %v11705_v50 = vunpack.i.h.bf16 %v11494_v41  ;;  %7927 = vperm.xlu0 %7424, %v18528_v61   ;;  %7942 = vperm.xlu1 %7435, %v18531_v34   ;;  %v11733_v41 = vadd.f32 %v7094_v24, %v11691_v4  ;;  %v601_v8 = vpop.f32.mrb[1].mxu0  ;;  %v11738_v61 = vsel %vm1841_vm4, 0.0, %v18247_v29  ;;  %v11746_v34 = vunpack.i.h.bf16 %v11526_v22 }
 0x154   : > { %18522 = vst [vmem:[#allocation40_spill] sm:$0xff] %v11696_v18  ;;  %18532 = vst [vmem:[#allocation53_spill] sm:$0xff] %v11714_v31  ;;  %v11717_v18 = vunpack.i.h.bf16 %v11524_v20  ;;  %v11749_v20 = vunpack.i.l.bf16 %v11526_v22  ;;  %v11765_v31 = vunpack.i.h.bf16 %v11564_v5  ;;  %v18547_v22 = vld [vmem:[#allocation63_spill] sm:$0xff]  ;;  %v7095_v51 = vpop.f32.mrb[2].mxu0 }
 0x155   : > { %18525 = vst [vmem:[#allocation52_spill] sm:$0xff] %v11705_v50  ;;  %18537 = vst [vmem:[#allocation112_spill] sm:$0xff] %v11738_v61  ;;  %v762_v62 = vsub.f32 0.0, %v11733_v41  ;;  %v18560_v61 = vld [vmem:[#allocation66_spill] sm:$0xff] }
 0x156   : > { %18533 = vst [vmem:[#allocation51_spill] sm:$0xff] %v11717_v18  ;;  %18539 = vst [vmem:[#allocation114_spill] sm:$0xff] %v11746_v34  ;;  %v11754_v3 = vpop.permute.xlu0 %7617  ;;  %v11756_v24 = vpop.permute.xlu1 %7632  ;;  %v11759_v18 = vadd.f32 %v11691_v4, %v601_v8  ;;  %v11768_v34 = vunpack.i.l.bf16 %v11564_v5 }
 0x157   : > { %18540 = vst [vmem:[#allocation115_spill] sm:$0xff] %v11749_v20  ;;  %18542 = vst [vmem:[#allocation117_spill] sm:$0xff] %v11754_v3  ;;  %v18548_v20 = vld [vmem:[#allocation59_spill] sm:$0xff]  ;;  %7952 = vperm.xlu1 %7435, %v18551_v7   ;;  %v604_v5 = vpop.f32.mrb[3].mxu0  ;;  %v11792_v7 = vunpack.i.h.bf16 %v11599_v63 }
 0x158   : > { %18543 = vst [vmem:[#allocation118_spill] sm:$0xff] %v11756_v24  ;;  %18545 = vst [vmem:[#allocation120_spill] sm:$0xff] %v11765_v31  ;;  %v18549_v50 = vpack.i.bf16 %v18547_v22, %v18548_v20  ;;  %v760_v40 = vsub.f32 0.0, %v11759_v18  ;;  %v11781_v31 = vadd.f32 %v7095_v51, %v11691_v4  ;;  %v11795_v36 = vadd.f32 %v11691_v4, %v604_v5  ;;  %v18562_v5 = vld [vmem:[#allocation69_spill] sm:$0xff] }
 0x159   : > { %18546 = vst [vmem:[#allocation121_spill] sm:$0xff] %v11768_v34  ;;  %18553 = vst [vmem:[#allocation59_spill] sm:$0xff] %v11789_v42  ;;  %v11798_v22 = vunpack.i.l.bf16 %v11599_v63  ;;  %v804_v20 = vmul.f32 1.442695, %v762_v62  ;;  %v18559_v42 = vld [vmem:[#allocation67_spill] sm:$0xff]  ;;  %v18564_v54 = vpack.i.bf16 %v18562_v5, %v18563_v28  ;;  %v11820_v62 = vunpack.i.l.bf16 %v11639_v0 }
 0x15a   : > { %7937 = vperm.xlu0 %7424, %v18549_v50   ;;  %v11786_v50 = vunpack.i.h.bf16 %v11597_v47  ;;  %18554 = vst [vmem:[#allocation65_spill] sm:$0xff] %v11792_v7  ;;  %v11800_v51 = vpop.permute.xlu0 %7627  ;;  %v11802_v8 = vpop.permute.xlu1 %7642  ;;  %v800_v34 = vmul.f32 1.442695, %v760_v40  ;;  %v11806_v47 = vunpack.i.h.bf16 %v11639_v0  ;;  %v18561_v7 = vpack.i.bf16 %v18559_v42, %v18560_v61  ;;  %v18567_v5 = vld [vmem:[#allocation71_spill] sm:$0xff]  ;;  %v18570_v0 = vld [vmem:[#allocation73_spill] sm:$0xff] }
 0x15b   : > { %18555 = vst [vmem:[#allocation122_spill] sm:$0xff] %v11798_v22  ;;  %18556 = vst [vmem:[#allocation123_spill] sm:$0xff] %v11800_v51  ;;  %7962 = vperm.xlu1 %7435, %v18564_v54   ;;  %8341 = vpow2.f32 %v804_v20  ;;  %v761_v40 = vsub.f32 0.0, %v11795_v36  ;;  %v11842_v54 = vsel %vm2074_vm3, 0.0, %v18247_v29 }
 0x15c   : > { %18552 = vst [vmem:[#allocation63_spill] sm:$0xff] %v11786_v50  ;;  %18557 = vst [vmem:[#allocation124_spill] sm:$0xff] %v11802_v8  ;;  %v763_v50 = vsub.f32 0.0, %v11781_v31  ;;  %8343 = vpow2.f32 %v800_v34  ;;  %v11837_v34 = vsel %vm2073_vm2, 0.0, %v18247_v29 }
 0x15d   : > { %18558 = vst [vmem:[#allocation125_spill] sm:$0xff] %v11806_v47  ;;  %18565 = vst [vmem:[#allocation67_spill] sm:$0xff] %v11820_v62  ;;  %v18568_v47 = vld [vmem:[#allocation70_spill] sm:$0xff]  ;;  %v18571_v62 = vld [vmem:[#allocation72_spill] sm:$0xff] }
 0x15e   : > { %7947 = vperm.xlu0 %7424, %v18561_v7   ;;  %v806_v63 = vmul.f32 1.442695, %v763_v50  ;;  %v11826_v7 = vpop.permute.xlu0 %7637  ;;  %v7653_v20 = vpop.permute.xlu1 %7652  ;;  %v802_v50 = vmul.f32 1.442695, %v761_v40  ;;  %v18569_v22 = vpack.i.bf16 %v18567_v5, %v18568_v47  ;;  %v18572_v26 = vpack.i.bf16 %v18570_v0, %v18571_v62  ;;  %18573 = vst [vmem:[#allocation69_spill] sm:$0xff] %v11837_v34  ;;  %18574 = vst [vmem:[#allocation68_spill] sm:$0xff] %v11842_v54 }
 0x15f   : > { %18566 = vst [vmem:[#allocation66_spill] sm:$0xff] %v11826_v7  ;;  %v11881_v42 = vunpack.i.h.bf16 %v7653_v20  ;;  %v11883_v47 = vunpack.i.l.bf16 %v7653_v20 }
 0x160   : > { %8345 = vpow2.f32 %v806_v63  ;;  %7972 = vperm.xlu1 %7435, %v18572_v26   ;;  %v11847_v63 = vsel %vm2071_vm5, 0.0, %v18247_v29  ;;  %v7098_v26 = vpop.f32.mrb[4].mxu0 }
 0x161   : > { %18575 = vst [vmem:[#allocation71_spill] sm:$0xff] %v11847_v63  ;;  %8347 = vpow2.f32 %v802_v50  ;;  %v11857_v6 = vadd.f32 %v7098_v26, %v11691_v4  ;;  %v617_v40 = vpop.f32.mrb[5].mxu0  ;;  %v18577_v26 = vpack.i.bf16 %v11159_v1, %v11119_v56  ;;  %18579 = vst [vmem:[#allocation73_spill] sm:$0xff] %v11881_v42 }
 0x162   : > { %7957 = vperm.xlu0 %7424, %v18569_v22   ;;  %v11852_v22 = vsel %vm2072_vm6, 0.0, %v18247_v29  ;;  %v7648_v62 = vpop.permute.xlu0 %7647  ;;  %v7663_v5 = vpop.permute.xlu1 %7662  ;;  %v11860_v57 = vadd.f32 %v11691_v4, %v617_v40  ;;  %v18578_v40 = vpack.i.bf16 %v11190_v32, %v11179_v27  ;;  %18580 = vst [vmem:[#allocation72_spill] sm:$0xff] %v11883_v47 }
 0x163   : > { %18576 = vst [vmem:[#allocation70_spill] sm:$0xff] %v11852_v22  ;;  %v7099_v28 = vpop.f32.mrb[6].mxu0  ;;  %v766_v19 = vsub.f32 0.0, %v11857_v6  ;;  %v11885_v1 = vunpack.i.h.bf16 %v7648_v62  ;;  %v11890_v32 = vunpack.i.l.bf16 %v7648_v62  ;;  %v11893_v12 = vunpack.i.h.bf16 %v7663_v5  ;;  %v18652_v22 = vld [vmem:[#allocation93_spill] sm:$0xff] }
 0x164   : > { %7982 = vperm.xlu1 %7435, %v18578_v40   ;;  %v764_v50 = vsub.f32 0.0, %v11860_v57  ;;  %v11879_v0 = vadd.f32 %v7099_v28, %v11691_v4  ;;  %v620_v11 = vpop.f32.mrb[7].mxu0  ;;  %v11895_v42 = vunpack.i.l.bf16 %v7663_v5  ;;  %v18588_v62 = vpack.i.bf16 %v11209_v15, %v11204_v39 }
 0x165   : > { %18581 = vst [vmem:[#allocation126_spill] sm:$0xff] %v11885_v1  ;;  %v11888_v56 = vadd.f32 %v11691_v4, %v620_v11  ;;  %v8342_v27 = vpop.eup %8341  ;;  %18582 = vst [vmem:[#allocation127_spill] sm:$0xff] %v11890_v32  ;;  %v812_v61 = vmul.f32 1.442695, %v766_v19  ;;  %v18587_v11 = vpack.i.bf16 %v11200_v13, %v11195_v46  ;;  %v7102_v5 = vpop.f32.mrb[8].mxu0 }
 0x166   : > { %7967 = vperm.xlu0 %7424, %v18577_v26   ;;  %v7658_v26 = vpop.permute.xlu0 %7657  ;;  %v7673_v40 = vpop.permute.xlu1 %7672  ;;  %v808_v3 = vmul.f32 1.442695, %v764_v50  ;;  %v767_v28 = vsub.f32 0.0, %v11879_v0  ;;  %18583 = vst [vmem:[#allocation128_spill] sm:$0xff] %v11893_v12  ;;  %18584 = vst [vmem:[#allocation129_spill] sm:$0xff] %v11895_v42  ;;  %v882_v32 = vadd.f32 1.0, %v8342_v27 }
 0x167   : > { %v8344_v60 = vpop.eup %8343  ;;  %v11897_v20 = vunpack.i.h.bf16 %v7658_v26  ;;  %v11899_v1 = vunpack.i.l.bf16 %v7658_v26  ;;  %v11907_v50 = vunpack.i.h.bf16 %v7673_v40  ;;  %8349 = vpow2.f32 %v812_v61  ;;  %v633_v46 = vpop.f32.mrb[9].mxu0 }
 0x168   : > { %7992 = vperm.xlu1 %7435, %v18588_v62   ;;  %v880_v47 = vadd.f32 1.0, %v8344_v60  ;;  %8351 = vpow2.f32 %v808_v3  ;;  %v765_v26 = vsub.f32 0.0, %v11888_v56  ;;  %v814_v62 = vmul.f32 1.442695, %v767_v28 }
 0x169   : > { %18585 = vst [vmem:[#allocation130_spill] sm:$0xff] %v11897_v20  ;;  %18586 = vst [vmem:[#allocation131_spill] sm:$0xff] %v11899_v1  ;;  %v11911_v20 = vadd.f32 %v7102_v5, %v11691_v4  ;;  %8353 = vrcp.f32 %v882_v32  ;;  %v11916_v27 = vadd.f32 %v11691_v4, %v633_v46  ;;  %v18593_v3 = vpack.i.bf16 %v11215_v38, %v11212_v10  ;;  %v18595_v5 = vld [vmem:[#allocation34_spill] sm:$0xff]  ;;  %v18596_v32 = vld [vmem:[#allocation33_spill] sm:$0xff] }
 0x16a   : > { %7977 = vperm.xlu0 %7424, %v18587_v11   ;;  %v8346_v19 = vpop.eup %8345  ;;  %18589 = vst [vmem:[#allocation132_spill] sm:$0xff] %v11907_v50  ;;  %v11913_v11 = vunpack.i.l.bf16 %v7673_v40  ;;  %v7668_v15 = vpop.permute.xlu0 %7667  ;;  %vm1837_vm10 = vcmp.lt.s32.totalorder %v18595_v5, 19  ;;  %vm1838_vm11 = vcmp.lt.s32.totalorder %v18596_v32, 19  ;;  %8355 = vrcp.f32 %v880_v47  ;;  %v18638_v1 = vld [vmem:[#allocation90_spill] sm:$0xff] }
 0x16b   : > { %v883_v42 = vadd.f32 1.0, %v8346_v19  ;;  %v8348_v13 = vpop.eup %8347  ;;  %v7683_v39 = vpop.permute.xlu1 %7682  ;;  %v11918_v60 = vunpack.i.h.bf16 %v7668_v15  ;;  %v11920_v61 = vunpack.i.l.bf16 %v7668_v15  ;;  %v18594_v19 = vpack.i.bf16 %v11230_v49, %v11227_v45 }
 0x16c   : > { %18590 = vst [vmem:[#allocation133_spill] sm:$0xff] %v11913_v11  ;;  %v7103_v40 = vpop.f32.mrb[10].mxu0  ;;  %v881_v28 = vadd.f32 1.0, %v8348_v13  ;;  %v810_v46 = vmul.f32 1.442695, %v765_v26  ;;  %v11938_v45 = vunpack.i.h.bf16 %v7683_v39  ;;  %v11940_v49 = vunpack.i.l.bf16 %v7683_v39  ;;  %v18637_v11 = vld [vmem:[#allocation91_spill] sm:$0xff] }
 0x16d   : > { %18591 = vst [vmem:[#allocation134_spill] sm:$0xff] %v11918_v60  ;;  %18592 = vst [vmem:[#allocation135_spill] sm:$0xff] %v11920_v61  ;;  %8002 = vperm.xlu1 %7435, %v18594_v19   ;;  %v770_v60 = vsub.f32 0.0, %v11911_v20  ;;  %v636_v15 = vpop.f32.mrb[11].mxu0  ;;  %8357 = vrcp.f32 %v883_v42  ;;  %v768_v61 = vsub.f32 0.0, %v11916_v27  ;;  %v11933_v10 = vadd.f32 %v7103_v40, %v11691_v4 }
 0x16e   : > { %7987 = vperm.xlu0 %7424, %v18593_v3   ;;  %v11936_v38 = vadd.f32 %v11691_v4, %v636_v15  ;;  %18597 = vst [vmem:[#allocation34_spill] sm:$0xff] %v11938_v45  ;;  %18598 = vst [vmem:[#allocation33_spill] sm:$0xff] %v11940_v49  ;;  %v7678_v3 = vpop.permute.xlu0 %7677  ;;  %8359 = vrcp.f32 %v881_v28  ;;  %v18601_v42 = vpack.i.bf16 %v11253_v55, %v11248_v9  ;;  %v11955_v39 = vsel %vm1837_vm10, 0.0, %v18247_v29  ;;  %v7106_v9 = vpop.f32.mrb[12].mxu0 }
 0x16f   : > { %v7693_v47 = vpop.permute.xlu1 %7692  ;;  %v820_v26 = vmul.f32 1.442695, %v770_v60  ;;  %v11942_v13 = vunpack.i.h.bf16 %v7678_v3  ;;  %v11944_v19 = vunpack.i.l.bf16 %v7678_v3  ;;  %v18602_v40 = vpack.i.bf16 %v11286_v2, %v11283_v21  ;;  %18603 = vst [vmem:[#allocation138_spill] sm:$0xff] %v11955_v39  ;;  %v649_v5 = vpop.f32.mrb[13].mxu0  ;;  %v18640_v39 = vld [vmem:[#allocation83_spill] sm:$0xff] }
 0x170   : > { %v11960_v60 = vsel %vm1838_vm11, 0.0, %v18247_v29  ;;  %8361 = vpow2.f32 %v814_v62  ;;  %v816_v28 = vmul.f32 1.442695, %v768_v61  ;;  %v771_v15 = vsub.f32 0.0, %v11933_v10 }
 0x171   : > { %18599 = vst [vmem:[#allocation136_spill] sm:$0xff] %v11942_v13  ;;  %18600 = vst [vmem:[#allocation137_spill] sm:$0xff] %v11944_v19  ;;  %8012 = vperm.xlu1 %7435, %v18602_v40   ;;  %v769_v55 = vsub.f32 0.0, %v11936_v38  ;;  %v11964_v3 = vunpack.i.h.bf16 %v7693_v47  ;;  %v11966_v21 = vunpack.i.l.bf16 %v7693_v47  ;;  %8363 = vpow2.f32 %v810_v46 }
 0x172   : > { %7997 = vperm.xlu0 %7424, %v18601_v42   ;;  %18604 = vst [vmem:[#allocation139_spill] sm:$0xff] %v11960_v60  ;;  %v11969_v2 = vadd.f32 %v7106_v9, %v11691_v4  ;;  %v8350_v42 = vpop.eup %8349  ;;  %v7688_v32 = vpop.permute.xlu0 %7687  ;;  %8365 = vpow2.f32 %v820_v26  ;;  %v822_v62 = vmul.f32 1.442695, %v771_v15  ;;  %v11972_v61 = vadd.f32 %v11691_v4, %v649_v5 }
 0x173   : > { %18605 = vst [vmem:[#allocation140_spill] sm:$0xff] %v11964_v3  ;;  %18606 = vst [vmem:[#allocation141_spill] sm:$0xff] %v11966_v21  ;;  %v7703_v40 = vpop.permute.xlu1 %7702  ;;  %v8352_v19 = vpop.eup %8351  ;;  %v11976_v3 = vunpack.i.h.bf16 %v7688_v32  ;;  %v11978_v47 = vunpack.i.l.bf16 %v7688_v32  ;;  %v18611_v46 = vpack.i.bf16 %v11294_v35, %v11291_v48  ;;  %v18613_v26 = vpack.i.bf16 %v11300_v25, %v11297_v59 }
 0x174   : > { %18607 = vst [vmem:[#allocation142_spill] sm:$0xff] %v11969_v2  ;;  %18608 = vst [vmem:[#allocation143_spill] sm:$0xff] %v11972_v61  ;;  %v11983_v9 = vunpack.i.h.bf16 %v7703_v40  ;;  %v818_v15 = vmul.f32 1.442695, %v769_v55  ;;  %v7107_v5 = vpop.f32.mrb[14].mxu0  ;;  %v8354_v13 = vpop.eup %8353  ;;  %v886_v21 = vadd.f32 1.0, %v8350_v42  ;;  %8367 = vpow2.f32 %v816_v28 }
 0x175   : > { %18609 = vst [vmem:[#allocation144_spill] sm:$0xff] %v11976_v3  ;;  %18610 = vst [vmem:[#allocation145_spill] sm:$0xff] %v11978_v47  ;;  %8022 = vperm.xlu1 %7435, %v18613_v26   ;;  %v884_v49 = vadd.f32 1.0, %v8352_v19  ;;  %v774_v32 = vsub.f32 0.0, %v11969_v2  ;;  %v652_v3 = vpop.f32.mrb[15].mxu0  ;;  %v11990_v47 = vunpack.i.l.bf16 %v7703_v40  ;;  %v962_v48 = vmul.f32 %v8354_v13, %v11733_v41  ;;  %v8356_v59 = vpop.eup %8355 }
 0x176   : > { %8007 = vperm.xlu0 %7424, %v18611_v46   ;;  %18612 = vst [vmem:[#allocation146_spill] sm:$0xff] %v11983_v9  ;;  %8369 = vpow2.f32 %v822_v62  ;;  %v772_v35 = vsub.f32 0.0, %v11972_v61  ;;  %v7698_v25 = vpop.permute.xlu0 %7697  ;;  %v12001_v28 = vadd.f32 %v7107_v5, %v11691_v4  ;;  %v12004_v42 = vadd.f32 %v11691_v4, %v652_v3  ;;  %v18619_v46 = vld [vmem:[#allocation26_spill] sm:$0xff]  ;;  %v18621_v5 = vld [vmem:[#allocation80_spill] sm:$0xff] }
 0x177   : > { %18614 = vst [vmem:[#allocation147_spill] sm:$0xff] %v11990_v47  ;;  %v11996_v55 = vpop.permute.xlu1 %7712  ;;  %8371 = vrcp.f32 %v886_v21  ;;  %v11998_v19 = vmul.f32 1.442695, %v774_v32  ;;  %v8358_v41 = vpop.eup %8357  ;;  %v12006_v13 = vunpack.i.h.bf16 %v7698_v25  ;;  %v12008_v40 = vunpack.i.l.bf16 %v7698_v25  ;;  %v18620_v32 = vld [vmem:[#allocation81_spill] sm:$0xff]  ;;  %v18656_v61 = vld [vmem:[#allocation94_spill] sm:$0xff] }
 0x178   : > { %18615 = vst [vmem:[#allocation148_spill] sm:$0xff] %v11996_v55  ;;  %v18618_v62 = vpack.i.bf16 %v11312_v43, %v11309_v23  ;;  %v12014_v26 = vadd.low.f32.bf16 %v962_v48, %v18619_v46  ;;  %v960_v21 = vmul.f32 %v8356_v59, %v11759_v18  ;;  %v18622_v47 = vpack.i.bf16 %v18620_v32, %v18621_v5  ;;  %v8360_v3 = vpop.eup %8359  ;;  %v18623_v43 = vld [vmem:[#allocation20_spill] sm:$0xff]  ;;  %v18627_v59 = vld [vmem:[#allocation85_spill] sm:$0xff]  ;;  %v18631_v55 = vld [vmem:[#allocation86_spill] sm:$0xff] }
 0x179   : > { %18616 = vst [vmem:[#allocation149_spill] sm:$0xff] %v12006_v13  ;;  %18617 = vst [vmem:[#allocation150_spill] sm:$0xff] %v12008_v40  ;;  %v963_v25 = vmul.f32 %v8358_v41, %v11781_v31  ;;  %8373 = vrcp.f32 %v884_v49  ;;  %v12023_v40 = vpop.f32.mrb[16].mxu0  ;;  %v961_v18 = vmul.f32 %v8360_v3, %v11795_v36  ;;  %v12041_v41 = vmul.f32 1.442695, %v772_v35 }
 0x17a   : > { %8017 = vperm.xlu0 %7424, %v18618_v62   ;;  %8032 = vperm.xlu1 %7435, %v18622_v47   ;;  %v2213_v23 = vrot.slane %v12014_v26, 7  ;;  %v12027_v48 = vadd.low.f32.bf16 %v960_v21, %v18623_v43  ;;  %v12031_v47 = vpop.f32.mrb[17].mxu0  ;;  %v8362_v62 = vpop.eup %8361  ;;  %v2937_v49 = vrot.slane %v12014_v26, 6  ;;  %8375 = vpow2.f32 %v818_v15 }
 0x17b   : > { %v12033_v32 = vpop.permute.xlu0 %7707  ;;  %v12036_v5 = vadd.high.f32.bf16 %v963_v25, %v18619_v46  ;;  %v12038_v31 = vpop.permute.xlu1 %7722  ;;  %v18628_v46 = vld [vmem:[#allocation84_spill] sm:$0xff]  ;;  %v12061_v3 = vadd.high.f32.bf16 %v961_v18, %v18623_v43  ;;  %v18639_v12 = vpack.i.bf16 %v18637_v11, %v18638_v1 }
 0x17c   : > { %18624 = vst [vmem:[#allocation26_spill] sm:$0xff] %v12027_v48  ;;  %18625 = vst [vmem:[#allocation81_spill] sm:$0xff] %v12033_v32  ;;  %v12043_v21 = vpop.eup %8363  ;;  %v18629_v25 = vpack.i.bf16 %v18627_v59, %v18628_v46  ;;  %v12055_v15 = vpop.f32.mrb[18].mxu0  ;;  %v18636_v46 = vpack.i.bf16 %v11386_v44, %v11381_v14  ;;  %v18641_v59 = vunpack.i.h.bf16 %v18640_v39 }
 0x17d   : > { %18626 = vst [vmem:[#allocation80_spill] sm:$0xff] %v12038_v31  ;;  %v18630_v31 = vld [vmem:[#allocation87_spill] sm:$0xff]  ;;  %v12057_v35 = vpop.eup %8365  ;;  %v17739_v36 = vrot.slane %v12036_v5, 7  ;;  %18633 = vst [vmem:[#allocation20_spill] sm:$0xff] %v12061_v3  ;;  %v12063_v9 = vpop.f32.mrb[19].mxu0  ;;  %v2936_v18 = vrot.slane %v12061_v3, 6 }
 0x17e   : > { %8027 = vperm.xlu0 %7424, %v18629_v25   ;;  %v18632_v45 = vpack.i.bf16 %v18630_v31, %v18631_v55  ;;  %v887_v25 = vadd.f32 1.0, %v8362_v62  ;;  %v12068_v55 = vpop.eup %8367  ;;  %v18642_v62 = vrot.slane %v12036_v5, 1  ;;  %v18644_v44 = vrot.slane %v12036_v5, 6  ;;  %v12107_v1 = vpop.f32.mrb[20].mxu0 }
 0x17f   : > { %v12071_v31 = vpop.permute.xlu0 %7717  ;;  %v12073_v32 = vpop.permute.xlu1 %7732  ;;  %v2290_v43 = vsel %vm2253_vm12, %v2213_v23, %v17739_v36 }
 0x180   : > { %8042 = vperm.xlu1 %7435, %v18632_v45   ;;  %v2212_v45 = vrot.slane %v12061_v3, 7  ;;  %18634 = vst [vmem:[#allocation85_spill] sm:$0xff] %v12071_v31  ;;  %18635 = vst [vmem:[#allocation84_spill] sm:$0xff] %v12073_v32  ;;  %v12081_v13 = vpop.eup %8369  ;;  %v12095_v60 = vadd.f32 %v18641_v59, %v2290_v43  ;;  %v18643_v31 = vrot.slane %v12014_v26, 1  ;;  %v12114_v43 = vpop.f32.mrb[21].mxu0  ;;  %8377 = vrcp.f32 %v887_v25 }
 0x181   : > { %v8372_v29 = vpop.eup %8371  ;;  %18645 = vst [vmem:[#allocation87_spill] sm:$0xff] %v12114_v43  ;;  %v12142_v34 = vpop.f32.mrb[22].mxu0  ;;  %v18660_v43 = vrot.slane %v12061_v3, 1 }
 0x182   : > { %8037 = vperm.xlu0 %7424, %v18636_v46   ;;  %v2291_v36 = vsel %vm2253_vm12, %v2212_v45, %v2213_v23  ;;  %v2651_v14 = vsel %vm2614_vm13, %v18643_v31, %v18642_v62  ;;  %v966_v11 = vmul.f32 %v8372_v29, %v11857_v6  ;;  %v3013_v46 = vsel %vm2975_vm8, %v2936_v18, %v2937_v49 }
 0x183   : > { %v8675_v23 = vadd.low.f32.bf16 %v2291_v36, %v18640_v39  ;;  %v8676_v59 = vadd.low.f32.bf16 %v2651_v14, %v11756_v24  ;;  %v8374_v50 = vpop.eup %8373  ;;  %v2537_v31 = vmax.f32 %v12036_v5, %v12095_v60  ;;  %v8677_v62 = vadd.low.f32.bf16 %v3013_v46, %v12073_v32  ;;  %v12123_v29 = vpop.permute.xlu0 %7727  ;;  %v18651_v14 = vld [vmem:[#allocation21_spill] sm:$0xff] }
 0x184   : > { %8052 = vperm.xlu1 %7435, %v18639_v12   ;;  %v3012_v12 = vsel %vm2975_vm8, %v2937_v49, %v18644_v44  ;;  %v18646_v44 = vunpack.i.h.bf16 %v12073_v32  ;;  %18648 = vst [vmem:[#allocation91_spill] sm:$0xff] %v12123_v29  ;;  %v18649_v6 = vrot.slane %v12027_v48, 7  ;;  %v12129_v49 = vpop.permute.xlu1 %7742  ;;  %v12132_v39 = vadd.low.f32.bf16 %v966_v11, %v18651_v14  ;;  %v18653_v32 = vld [vmem:[#allocation92_spill] sm:$0xff] }
 0x185   : > { %18650 = vst [vmem:[#allocation90_spill] sm:$0xff] %v12129_v49  ;;  %v964_v60 = vmul.f32 %v8374_v50, %v11860_v57  ;;  %v2536_v46 = vmax.f32 %v12014_v26, %v8675_v23  ;;  %v18659_v11 = vrot.slane %v12014_v26, 1  ;;  %v18661_v50 = vrot.slane %v12027_v48, 6 }
 0x186   : > { %v12121_v63 = vadd.f32 %v18646_v44, %v3012_v12  ;;  %v2292_v36 = vsel %vm2253_vm12, %v18649_v6, %v2212_v45  ;;  %v18654_v12 = vpack.i.bf16 %v18652_v22, %v18653_v32  ;;  %v18655_v44 = vld [vmem:[#allocation95_spill] sm:$0xff]  ;;  %v8376_v45 = vpop.eup %8375  ;;  %v18658_v6 = vld [vmem:[#allocation88_spill] sm:$0xff]  ;;  %v12155_v32 = vpop.f32.mrb[23].mxu0 }
 0x187   : > { %v18657_v2 = vpack.i.bf16 %v18655_v44, %v18656_v61  ;;  %v8679_v54 = vadd.high.f32.bf16 %v2292_v36, %v18658_v6  ;;  %v2652_v57 = vsel %vm2614_vm13, %v18660_v43, %v18659_v11  ;;  %v3014_v22 = vsel %vm2975_vm8, %v18661_v50, %v2936_v18  ;;  %v18662_v61 = vld [vmem:[#allocation48_spill] sm:$0xff]  ;;  %v12165_v11 = vpop.permute.xlu0 %7737 }
 0x188   : > { %18647 = vst [vmem:[#allocation86_spill] sm:$0xff] %v12121_v63  ;;  %8047 = vperm.xlu0 %7424, %v18654_v12   ;;  %v12159_v23 = vadd.low.f32.bf16 %v964_v60, %v18662_v61  ;;  %v2897_v36 = vmax.f32 %v2536_v46, %v8676_v59  ;;  %v8681_v12 = vadd.high.f32.bf16 %v2652_v57, %v11800_v51  ;;  %v885_v43 = vadd.f32 1.0, %v12043_v21  ;;  %v7753_v18 = vpop.permute.xlu1 %7752  ;;  %v18664_v60 = vld [vmem:[#allocation98_spill] sm:$0xff]  ;;  %v18665_v46 = vld [vmem:[#allocation97_spill] sm:$0xff]  ;;  %v12180_v51 = vpop.f32.mrb[24].mxu0 }
 0x189   : > { %8062 = vperm.xlu1 %7435, %v18657_v2   ;;  %v2535_v44 = vmax.f32 %v12061_v3, %v8679_v54  ;;  %v8682_v6 = vadd.high.f32.bf16 %v3014_v22, %v12123_v29  ;;  %18663 = vst [vmem:[#allocation21_spill] sm:$0xff] %v12165_v11  ;;  %v18666_v57 = vpack.i.bf16 %v18664_v60, %v18665_v46  ;;  %v18667_v54 = vld [vmem:[#allocation24_spill] sm:$0xff]  ;;  %v18668_v22 = vld [vmem:[#allocation35_spill] sm:$0xff]  ;;  %v18675_v59 = vunpack.i.l.bf16 %v11414_v58 }
 0x18a   : > { %v17756_v2 = vrot.slane %v12159_v23, 1  ;;  %v12169_v48 = vmax.f32 %v2897_v36, %v8677_v62  ;;  %v18669_v25 = vpack.i.bf16 %v18667_v54, %v18668_v22  ;;  %8379 = vrcp.f32 %v885_v43 }
 0x18b   : > { %v2896_v21 = vmax.f32 %v2535_v44, %v8681_v12  ;;  %v18670_v62 = vrot.slane %v12036_v5, 1  ;;  %v12191_v44 = vpop.f32.mrb[25].mxu0  ;;  %v18671_v43 = vunpack.i.h.bf16 %v11756_v24  ;;  %v18673_v22 = vrot.slane %v12159_v23, 7  ;;  %v7748_v29 = vpop.permute.xlu0 %7747  ;;  %v18680_v24 = vld [vmem:[#allocation102_spill] sm:$0xff] }
 0x18c   : > { %8057 = vperm.xlu0 %7424, %v18666_v57   ;;  %v7763_v46 = vpop.permute.xlu1 %7762  ;;  %v890_v50 = vadd.f32 1.0, %v12057_v35  ;;  %v18685_v35 = vrot.slane %v12036_v5, 6 }
 0x18d   : > { %8072 = vperm.xlu1 %7435, %v18669_v25   ;;  %v2650_v36 = vsel %vm2614_vm13, %v18670_v62, %v17756_v2  ;;  %v12195_v54 = vmax.f32 %v2896_v21, %v8682_v6  ;;  %v18674_v25 = vrot.slane %v12036_v5, 7  ;;  %v888_v6 = vadd.f32 1.0, %v12068_v55  ;;  %v12218_v2 = vpop.f32.mrb[26].mxu0 }
 0x18e   : > { %v2858_v57 = vadd.f32 %v18671_v43, %v2650_v36  ;;  %v12210_v21 = vunpack.i.h.bf16 %v7753_v18  ;;  %v18677_v36 = vld [vmem:[#allocation100_spill] sm:$0xff]  ;;  %v18678_v43 = vld [vmem:[#allocation99_spill] sm:$0xff]  ;;  %8381 = vrcp.f32 %v890_v50 }
 0x18f   : > { %18672 = vst [vmem:[#allocation93_spill] sm:$0xff] %v12195_v54  ;;  %v2289_v62 = vsel %vm2253_vm12, %v18674_v25, %v18673_v22  ;;  %v18679_v12 = vpack.i.bf16 %v18677_v36, %v18678_v43  ;;  %v18681_v22 = vld [vmem:[#allocation101_spill] sm:$0xff]  ;;  %v18689_v36 = vunpack.i.l.bf16 %v12165_v11  ;;  %8383 = vrcp.f32 %v888_v6  ;;  %v18695_v50 = vld [vmem:[#allocation104_spill] sm:$0xff] }
 0x190   : > { %v12206_v60 = vadd.f32 %v18675_v59, %v2289_v62  ;;  %18676 = vst [vmem:[#allocation92_spill] sm:$0xff] %v12210_v21  ;;  %v18682_v25 = vpack.i.bf16 %v18680_v24, %v18681_v22  ;;  %v12220_v54 = vmax.f32 %v2537_v31, %v2858_v57  ;;  %v18684_v59 = vrot.slane %v12159_v23, 6  ;;  %v18699_v43 = vld [vmem:[#allocation105_spill] sm:$0xff] }
 0x191   : > { %8067 = vperm.xlu0 %7424, %v18679_v12   ;;  %v12228_v62 = vunpack.i.l.bf16 %v7753_v18  ;;  %v12230_v21 = vunpack.i.h.bf16 %v7748_v29  ;;  %v12232_v12 = vpop.f32.mrb[27].mxu0  ;;  %v12240_v57 = vunpack.i.l.bf16 %v7748_v29  ;;  %v891_v18 = vadd.f32 1.0, %v12081_v13  ;;  %v18696_v29 = vld [vmem:[#allocation103_spill] sm:$0xff]  ;;  %v8378_v13 = vpop.eup %8377 }
 0x192   : > { %8082 = vperm.xlu1 %7435, %v18682_v25   ;;  %18683 = vst [vmem:[#allocation95_spill] sm:$0xff] %v12220_v54  ;;  %v3011_v55 = vsel %vm2975_vm8, %v18685_v35, %v18684_v59  ;;  %18688 = vst [vmem:[#allocation98_spill] sm:$0xff] %v12232_v12  ;;  %v889_v22 = vadd.f32 1.0, %v8376_v45  ;;  %v7758_v25 = vpop.permute.xlu0 %7757  ;;  %v7773_v59 = vpop.permute.xlu1 %7772  ;;  %v12245_v35 = vunpack.i.h.bf16 %v7763_v46 }
 0x193   : > { %18686 = vst [vmem:[#allocation94_spill] sm:$0xff] %v12228_v62  ;;  %18687 = vst [vmem:[#allocation48_spill] sm:$0xff] %v12230_v21  ;;  %v12238_v31 = vadd.f32 %v18689_v36, %v3011_v55  ;;  %v12247_v21 = vunpack.i.l.bf16 %v7763_v46  ;;  %v12249_v24 = vunpack.i.h.bf16 %v7758_v25  ;;  %v12251_v55 = vunpack.i.l.bf16 %v7758_v25  ;;  %v18698_v62 = vld [vmem:[#allocation106_spill] sm:$0xff] }
 0x194   : > { %18690 = vst [vmem:[#allocation97_spill] sm:$0xff] %v12240_v57  ;;  %18691 = vst [vmem:[#allocation24_spill] sm:$0xff] %v12245_v35  ;;  %v18697_v36 = vpack.i.bf16 %v18695_v50, %v18696_v29  ;;  %v18700_v6 = vpack.i.bf16 %v18698_v62, %v18699_v43  ;;  %8385 = vrcp.f32 %v891_v18  ;;  %v12259_v45 = vunpack.i.h.bf16 %v7773_v59  ;;  %v8380_v43 = vpop.eup %8379 }
 0x195   : > { %18692 = vst [vmem:[#allocation35_spill] sm:$0xff] %v12247_v21  ;;  %18693 = vst [vmem:[#allocation100_spill] sm:$0xff] %v12249_v24  ;;  %v12261_v12 = vunpack.i.l.bf16 %v7773_v59  ;;  %v775_v46 = vsub.f32 0.0, %v12001_v28  ;;  %v12264_v21 = vpop.f32.mrb[28].mxu0  ;;  %v967_v25 = vmul.f32 %v8378_v13, %v11879_v0  ;;  %8387 = vrcp.f32 %v889_v22 }
 0x196   : > { %18694 = vst [vmem:[#allocation99_spill] sm:$0xff] %v12251_v55  ;;  %8077 = vperm.xlu0 %7424, %v18697_v36   ;;  %8092 = vperm.xlu1 %7435, %v18700_v6   ;;  %18701 = vst [vmem:[#allocation102_spill] sm:$0xff] %v12259_v45  ;;  %v773_v50 = vsub.f32 0.0, %v12004_v42  ;;  %v12270_v29 = vadd.f32 %v12023_v40, %v11691_v4  ;;  %v12272_v62 = vpop.f32.mrb[29].mxu0  ;;  %8389 = vpow2.f32 %v11998_v19  ;;  %v7768_v18 = vpop.permute.xlu0 %7767  ;;  %v18706_v19 = vld [vmem:[#allocation29_spill] sm:$0xff] }
 0x197   : > { %18702 = vst [vmem:[#allocation101_spill] sm:$0xff] %v12261_v12  ;;  %18703 = vst [vmem:[#allocation104_spill] sm:$0xff] %v12264_v21  ;;  %v830_v59 = vmul.f32 1.442695, %v775_v46  ;;  %v7783_v36 = vpop.permute.xlu1 %7782  ;;  %v12277_v6 = vadd.f32 %v11691_v4, %v12031_v47  ;;  %v12281_v0 = vadd.f32 %v12055_v15, %v11691_v4  ;;  %v12284_v22 = vadd.high.f32.bf16 %v967_v25, %v18651_v14  ;;  %v18707_v46 = vld [vmem:[#allocation27_spill] sm:$0xff]  ;;  %v18710_v47 = vld [vmem:[#allocation30_spill] sm:$0xff] }
 0x198   : > { %18704 = vst [vmem:[#allocation103_spill] sm:$0xff] %v12272_v62  ;;  %v965_v40 = vmul.f32 %v8380_v43, %v11888_v56  ;;  %8391 = vpow2.f32 %v12041_v41  ;;  %v12288_v13 = vunpack.i.h.bf16 %v7768_v18  ;;  %v18708_v45 = vpack.i.bf16 %v18706_v19, %v18707_v46  ;;  %v18709_v12 = vld [vmem:[#allocation107_spill] sm:$0xff]  ;;  %v12296_v24 = vpop.f32.mrb[30].mxu0  ;;  %v8382_v19 = vpop.eup %8381 }
 0x199   : > { %v18711_v55 = vpack.i.bf16 %v18709_v12, %v18710_v47  ;;  %18712 = vst [vmem:[#allocation105_spill] sm:$0xff] %v12296_v24  ;;  %v12298_v15 = vunpack.i.l.bf16 %v7768_v18  ;;  %8393 = vpow2.f32 %v830_v59  ;;  %v826_v14 = vmul.f32 1.442695, %v773_v50  ;;  %v12302_v56 = vpop.f32.mrb[31].mxu0  ;;  %v18719_v41 = vld [vmem:[#allocation43_spill] sm:$0xff]  ;;  %v18720_v59 = vld [vmem:[#allocation44_spill] sm:$0xff] }
 0x19a   : > { %18705 = vst [vmem:[#allocation106_spill] sm:$0xff] %v12288_v13  ;;  %8087 = vperm.xlu0 %7424, %v18708_v45   ;;  %v12300_v25 = vunpack.i.h.bf16 %v7783_v36  ;;  %18715 = vst [vmem:[#allocation107_spill] sm:$0xff] %v12302_v56  ;;  %v12306_v43 = vadd.high.f32.bf16 %v965_v40, %v18662_v61  ;;  %v17770_v45 = vrot.slane %v12284_v22, 1  ;;  %v17772_v12 = vrot.slane %v12284_v22, 6  ;;  %v12312_v18 = vpop.permute.xlu0 %7777  ;;  %v18723_v13 = vld [vmem:[#allocation19_spill] sm:$0xff] }
 0x19b   : > { %8102 = vperm.xlu1 %7435, %v18711_v55   ;;  %18713 = vst [vmem:[#allocation29_spill] sm:$0xff] %v12298_v15  ;;  %8395 = vpow2.f32 %v826_v14  ;;  %v12310_v55 = vunpack.i.l.bf16 %v7783_v36  ;;  %v18717_v61 = vrot.slane %v12132_v39, 1  ;;  %v18718_v36 = vrot.slane %v12132_v39, 6 }
 0x19c   : > { %18714 = vst [vmem:[#allocation27_spill] sm:$0xff] %v12300_v25  ;;  %v2216_v46 = vrot.slane %v12306_v43, 7  ;;  %v2940_v47 = vrot.slane %v12306_v43, 6  ;;  %v18721_v50 = vpack.i.bf16 %v18719_v41, %v18720_v59  ;;  %v12333_v25 = vpop.permute.xlu1 %7792  ;;  %v18726_v56 = vunpack.i.h.bf16 %v12129_v49  ;;  %v12346_v41 = vpop.f32.mrb[32].mxu0 }
 0x19d   : > { %18716 = vst [vmem:[#allocation30_spill] sm:$0xff] %v12310_v55  ;;  %v2647_v40 = vsel %vm2614_vm13, %v18717_v61, %v17770_v45  ;;  %v3008_v14 = vsel %vm2975_vm8, %v18718_v36, %v17772_v12  ;;  %v18722_v55 = vld [vmem:[#allocation45_spill] sm:$0xff]  ;;  %v8384_v61 = vpop.eup %8383  ;;  %v18725_v45 = vunpack.i.l.bf16 %v11802_v8  ;;  %v2579_v36 = vrot.slane %v12306_v43, 1  ;;  %18728 = vst [vmem:[#allocation44_spill] sm:$0xff] %v12346_v41 }
 0x19e   : > { %8097 = vperm.xlu0 %7424, %v18721_v50   ;;  %v18724_v15 = vpack.i.bf16 %v18722_v55, %v18723_v13  ;;  %v12342_v24 = vadd.f32 %v18726_v56, %v3008_v14  ;;  %v970_v12 = vmul.f32 %v8382_v19, %v11911_v20  ;;  %v18729_v50 = vrot.slane %v12132_v39, 7  ;;  %v12364_v19 = vpop.f32.mrb[33].mxu0  ;;  %v18734_v14 = vld [vmem:[#allocation89_spill] sm:$0xff]  ;;  %v12378_v8 = vpop.permute.xlu0 %7787 }
 0x19f   : > { %v2861_v35 = vadd.f32 %v18725_v45, %v2647_v40  ;;  %v18731_v55 = vrot.slane %v12159_v23, 7  ;;  %v18732_v59 = vrot.slane %v12159_v23, 6  ;;  %18733 = vst [vmem:[#allocation45_spill] sm:$0xff] %v12364_v19  ;;  %v8386_v40 = vpop.eup %8385  ;;  %v18736_v62 = vunpack.i.l.bf16 %v12129_v49  ;;  %v18743_v49 = vld [vmem:[#allocation109_spill] sm:$0xff] }
 0x1a0   : > { %8112 = vperm.xlu1 %7435, %v18724_v15   ;;  %18727 = vst [vmem:[#allocation43_spill] sm:$0xff] %v12342_v24  ;;  %v2287_v13 = vsel %vm2253_vm12, %v2216_v46, %v18729_v50  ;;  %v18730_v15 = vrot.slane %v12132_v39, 6  ;;  %v18735_v50 = vunpack.i.l.bf16 %v18734_v14  ;;  %v12396_v14 = vpop.f32.mrb[34].mxu0 }
 0x1a1   : > { %v2288_v56 = vsel %vm2253_vm12, %v18731_v55, %v2216_v46  ;;  %v3010_v20 = vsel %vm2975_vm8, %v18732_v59, %v2940_v47  ;;  %v18738_v46 = vrot.slane %v12132_v39, 1  ;;  %v18739_v59 = vrot.slane %v12159_v23, 1  ;;  %18746 = vst [vmem:[#allocation19_spill] sm:$0xff] %v12396_v14  ;;  %v7803_v14 = vpop.permute.xlu1 %7802 }
 0x1a2   : > { %v3009_v45 = vsel %vm2975_vm8, %v2940_v47, %v18730_v15  ;;  %v2500_v41 = vadd.f32 %v18735_v50, %v2287_v13  ;;  %v18737_v15 = vunpack.i.h.bf16 %v11414_v58  ;;  %v8388_v47 = vpop.eup %8387  ;;  %v18740_v50 = vunpack.i.h.bf16 %v11826_v7 }
 0x1a3   : > { %v12370_v21 = vadd.f32 %v18736_v62, %v3009_v45  ;;  %v2648_v55 = vsel %vm2614_vm13, %v2579_v36, %v18738_v46  ;;  %v2649_v13 = vsel %vm2614_vm13, %v18739_v59, %v2579_v36  ;;  %v18741_v45 = vunpack.i.h.bf16 %v12165_v11  ;;  %v18744_v46 = vld [vmem:[#allocation108_spill] sm:$0xff]  ;;  %v8390_v63 = vpop.eup %8389  ;;  %v12406_v11 = vpop.f32.mrb[35].mxu0 }
 0x1a4   : > { %v2499_v24 = vadd.f32 %v18737_v15, %v2288_v56  ;;  %v2860_v62 = vadd.f32 %v18740_v50, %v2648_v55  ;;  %v18742_v56 = vld [vmem:[#allocation25_spill] sm:$0xff]  ;;  %v18745_v19 = vpack.i.bf16 %v18743_v49, %v18744_v46  ;;  %v2540_v54 = vmax.f32 %v12132_v39, %v2500_v41  ;;  %v18748_v50 = vld [vmem:[#allocation111_spill] sm:$0xff]  ;;  %v8392_v49 = vpop.eup %8391 }
 0x1a5   : > { %v12388_v58 = vadd.f32 %v18741_v45, %v3010_v20  ;;  %v12391_v15 = vadd.low.f32.bf16 %v970_v12, %v18742_v56  ;;  %v18747_v55 = vunpack.i.l.bf16 %v11826_v7  ;;  %v968_v20 = vmul.f32 %v8384_v61, %v11916_v27  ;;  %v18749_v45 = vld [vmem:[#allocation110_spill] sm:$0xff]  ;;  %v8394_v7 = vpop.eup %8393 }
 0x1a6   : > { %8107 = vperm.xlu0 %7424, %v18745_v19   ;;  %v2539_v36 = vmax.f32 %v12306_v43, %v2499_v24  ;;  %v18750_v12 = vpack.i.bf16 %v18748_v50, %v18749_v45  ;;  %v971_v24 = vmul.f32 %v8386_v40, %v11933_v10  ;;  %v18751_v27 = vmax.f32 %v12159_v23, %v12206_v60  ;;  %v18752_v50 = vld [vmem:[#allocation28_spill] sm:$0xff] }
 0x1a7   : > { %v2859_v59 = vadd.f32 %v18747_v55, %v2649_v13  ;;  %v12412_v13 = vmax.f32 %v2540_v54, %v2861_v35  ;;  %v12422_v45 = vadd.low.f32.bf16 %v968_v20, %v18752_v50  ;;  %v969_v41 = vmul.f32 %v8388_v47, %v11936_v38  ;;  %v8396_v35 = vpop.eup %8395  ;;  %v18783_v38 = vld [vmem:[#allocation112_spill] sm:$0xff] }
 0x1a8   : > { %8122 = vperm.xlu1 %7435, %v18750_v12   ;;  %v12419_v55 = vmax.f32 %v2539_v36, %v2860_v62  ;;  %v12425_v12 = vadd.high.f32.bf16 %v971_v24, %v18742_v56  ;;  %v894_v10 = vadd.f32 1.0, %v8390_v63  ;;  %v892_v40 = vadd.f32 1.0, %v8392_v49 }
 0x1a9   : > { %v12417_v61 = vmax.f32 %v18751_v27, %v2859_v59  ;;  %v18753_v54 = vpack.i.bf16 %v11615_v17, %v11612_v52  ;;  %v7798_v59 = vpop.permute.xlu0 %7797  ;;  %v18754_v63 = vpack.i.bf16 %v11623_v53, %v11620_v33  ;;  %v17785_v52 = vrot.slane %v12422_v45, 6  ;;  %v18791_v17 = vld [vmem:[#allocation143_spill] sm:$0xff] }
 0x1aa   : > { %v12447_v49 = vadd.high.f32.bf16 %v969_v41, %v18752_v50  ;;  %8397 = vrcp.f32 %v894_v10  ;;  %v895_v24 = vadd.f32 1.0, %v8394_v7  ;;  %v18755_v33 = vrot.slane %v12284_v22, 6 }
 0x1ab   : > { %8117 = vperm.xlu0 %7424, %v18753_v54   ;;  %8399 = vrcp.f32 %v892_v40  ;;  %v893_v27 = vadd.f32 1.0, %v8396_v35  ;;  %v12456_v54 = vunpack.i.h.bf16 %v12312_v18  ;;  %v18758_v41 = vpack.i.bf16 %v11629_v16, %v11626_v30  ;;  %v18759_v40 = vld [vmem:[#allocation46_spill] sm:$0xff]  ;;  %v18760_v35 = vld [vmem:[#allocation23_spill] sm:$0xff] }
 0x1ac   : > { %8132 = vperm.xlu1 %7435, %v18754_v63   ;;  %v3007_v53 = vsel %vm2975_vm8, %v18755_v33, %v17785_v52  ;;  %v12458_v63 = vpop.permute.xlu1 %7812  ;;  %v18761_v52 = vpack.i.bf16 %v18759_v40, %v18760_v35  ;;  %8401 = vrcp.f32 %v895_v24  ;;  %v12473_v56 = vunpack.i.l.bf16 %v12312_v18  ;;  %v18770_v35 = vld [vmem:[#allocation56_spill] sm:$0xff] }
 0x1ad   : > { %18756 = vst [vmem:[#allocation25_spill] sm:$0xff] %v12456_v54  ;;  %18757 = vst [vmem:[#allocation109_spill] sm:$0xff] %v12458_v63  ;;  %v12464_v7 = vadd.f32 %v12240_v57, %v3007_v53  ;;  %v18763_v30 = vsub.f32 0.0, %v12270_v29  ;;  %v18764_v53 = vsub.f32 0.0, %v12277_v6  ;;  %8403 = vrcp.f32 %v893_v27  ;;  %v18793_v63 = vld [vmem:[#allocation42_spill] sm:$0xff] }
 0x1ae   : > { %18762 = vst [vmem:[#allocation108_spill] sm:$0xff] %v12473_v56  ;;  %v12480_v20 = vunpack.i.h.bf16 %v12333_v25  ;;  %v12483_v10 = vunpack.i.l.bf16 %v12333_v25  ;;  %v12486_v40 = vunpack.i.h.bf16 %v12378_v8  ;;  %v12491_v18 = vunpack.i.l.bf16 %v12378_v8  ;;  %v18777_v8 = vld [vmem:[#allocation50_spill] sm:$0xff] }
 0x1af   : > { %8127 = vperm.xlu0 %7424, %v18758_v41   ;;  %v836_v16 = vmul.f32 1.442695, %v18763_v30  ;;  %v832_v41 = vmul.f32 1.442695, %v18764_v53  ;;  %v779_v24 = vsub.f32 0.0, %v12281_v0  ;;  %v12496_v27 = vadd.f32 %v11691_v4, %v12063_v9  ;;  %v18771_v30 = vld [vmem:[#allocation55_spill] sm:$0xff] }
 0x1b0   : > { %8142 = vperm.xlu1 %7435, %v18761_v52   ;;  %18765 = vst [vmem:[#allocation111_spill] sm:$0xff] %v12480_v20  ;;  %18766 = vst [vmem:[#allocation110_spill] sm:$0xff] %v12483_v10  ;;  %v12488_v52 = vpop.permute.xlu0 %7807  ;;  %v18772_v53 = vpack.i.bf16 %v18770_v35, %v18771_v30  ;;  %v12501_v25 = vunpack.i.h.bf16 %v7803_v14  ;;  %v12503_v33 = vunpack.i.l.bf16 %v7803_v14  ;;  %v12505_v46 = vunpack.i.h.bf16 %v7798_v59  ;;  %v18781_v30 = vld [vmem:[#allocation87_spill] sm:$0xff] }
 0x1b1   : > { %18767 = vst [vmem:[#allocation28_spill] sm:$0xff] %v12486_v40  ;;  %18768 = vst [vmem:[#allocation46_spill] sm:$0xff] %v12488_v52  ;;  %8405 = vpow2.f32 %v836_v16  ;;  %v18776_v16 = vld [vmem:[#allocation58_spill] sm:$0xff]  ;;  %v838_v50 = vmul.f32 1.442695, %v779_v24  ;;  %v777_v19 = vsub.f32 0.0, %v12496_v27  ;;  %v12511_v9 = vunpack.i.l.bf16 %v7798_v59 }
 0x1b2   : > { %18769 = vst [vmem:[#allocation23_spill] sm:$0xff] %v12491_v18  ;;  %8407 = vpow2.f32 %v832_v41  ;;  %18773 = vst [vmem:[#allocation56_spill] sm:$0xff] %v12501_v25  ;;  %v18778_v47 = vpack.i.bf16 %v18776_v16, %v18777_v8  ;;  %v12515_v35 = vadd.f32 %v12107_v1, %v11691_v4  ;;  %v12517_v41 = vpop.permute.xlu1 %7822  ;;  %v12521_v14 = vadd.f32 %v11691_v4, %v18781_v30  ;;  %v18782_v1 = vld [vmem:[#allocation113_spill] sm:$0xff]  ;;  %v12535_v30 = vld [vmem:[%s17498_s2] ss:$0 sm:$0xff] }
 0x1b3   : > { %8137 = vperm.xlu0 %7424, %v18772_v53   ;;  %18774 = vst [vmem:[#allocation55_spill] sm:$0xff] %v12503_v33  ;;  %18775 = vst [vmem:[#allocation151_spill] sm:$0xff] %v12505_v46  ;;  %8409 = vpow2.f32 %v838_v50  ;;  %v834_v24 = vmul.f32 1.442695, %v777_v19  ;;  %v18784_v36 = vpack.i.bf16 %v18782_v1, %v18783_v38  ;;  %v12539_v50 = vadd.f32 %v12535_v30, %v12142_v34  ;;  %v18786_v38 = vld [vmem:[#allocation68_spill] sm:$0xff]  ;;  %v18789_v53 = vld [vmem:[#allocation142_spill] sm:$0xff] }
 0x1b4   : > { %8152 = vperm.xlu1 %7435, %v18778_v47   ;;  %18779 = vst [vmem:[#allocation58_spill] sm:$0xff] %v12511_v9  ;;  %18780 = vst [vmem:[#allocation50_spill] sm:$0xff] %v12517_v41  ;;  %v782_v59 = vsub.f32 0.0, %v12515_v35  ;;  %v8398_v62 = vpop.eup %8397  ;;  %v780_v4 = vsub.f32 0.0, %v12521_v14  ;;  %v12543_v19 = vadd.f32 %v12535_v30, %v12155_v32  ;;  %v12545_v47 = vpop.permute.xlu0 %7817 }
 0x1b5   : > { %18785 = vst [vmem:[#allocation87_spill] sm:$0xff] %v12545_v47  ;;  %v8400_v8 = vpop.eup %8399  ;;  %v12551_v16 = vmul.f32 %v8398_v62, %v18789_v53  ;;  %8411 = vpow2.f32 %v834_v24  ;;  %v783_v41 = vsub.f32 0.0, %v12539_v50  ;;  %v18794_v62 = vld [vmem:[#allocation70_spill] sm:$0xff]  ;;  %v18795_v53 = vld [vmem:[#allocation71_spill] sm:$0xff] }
 0x1b6   : > { %v844_v60 = vmul.f32 1.442695, %v782_v59  ;;  %v12554_v57 = vmul.f32 %v8400_v8, %v18791_v17  ;;  %v840_v34 = vmul.f32 1.442695, %v780_v4  ;;  %v781_v32 = vsub.f32 0.0, %v12543_v19  ;;  %v8402_v52 = vpop.eup %8401  ;;  %v12567_v17 = vpop.f32.mrb[36].mxu0 }
 0x1b7   : > { %8147 = vperm.xlu0 %7424, %v18784_v36   ;;  %v18787_v36 = vld [vmem:[#allocation69_spill] sm:$0xff]  ;;  %18790 = vst [vmem:[#allocation113_spill] sm:$0xff] %v12551_v16  ;;  %v12560_v46 = vadd.low.f32.bf16 %v12551_v16, %v18793_v63  ;;  %v18796_v24 = vpack.i.bf16 %v18794_v62, %v18795_v53  ;;  %v8404_v59 = vpop.eup %8403  ;;  %v18797_v8 = vld [vmem:[#allocation18_spill] sm:$0xff]  ;;  %v12579_v9 = vpop.f32.mrb[37].mxu0 }
 0x1b8   : > { %v18788_v1 = vpack.i.bf16 %v18786_v38, %v18787_v36  ;;  %18792 = vst [vmem:[#allocation112_spill] sm:$0xff] %v12554_v57  ;;  %8413 = vpow2.f32 %v844_v60  ;;  %v12571_v4 = vadd.low.f32.bf16 %v12554_v57, %v18797_v8  ;;  %v12574_v36 = vmul.f32 %v8402_v52, %v12001_v28  ;;  %v18800_v38 = vld [vmem:[#allocation138_spill] sm:$0xff]  ;;  %v12600_v25 = vpop.f32.mrb[38].mxu0 }
 0x1b9   : > { %8415 = vpow2.f32 %v840_v34  ;;  %v846_v60 = vmul.f32 1.442695, %v783_v41  ;;  %v12585_v57 = vmul.f32 %v8404_v59, %v12004_v42  ;;  %18803 = vst [vmem:[#allocation142_spill] sm:$0xff] %v12600_v25  ;;  %v12612_v52 = vadd.f32 %v12535_v30, %v12180_v51 }
 0x1ba   : > { %8162 = vperm.xlu1 %7435, %v18788_v1   ;;  %18798 = vst [vmem:[#allocation68_spill] sm:$0xff] %v12574_v36  ;;  %v18799_v1 = vld [vmem:[#allocation139_spill] sm:$0xff]  ;;  %v12618_v34 = vadd.f32 %v12535_v30, %v12191_v44  ;;  %v3298_v41 = vrot.slane %v12014_v26, 2 }
 0x1bb   : > { %8157 = vperm.xlu0 %7424, %v18796_v24   ;;  %v18801_v47 = vpack.i.bf16 %v18799_v1, %v18800_v38  ;;  %v8406_v62 = vpop.eup %8405  ;;  %18802 = vst [vmem:[#allocation69_spill] sm:$0xff] %v12585_v57  ;;  %v12598_v1 = vadd.high.f32.bf16 %v12585_v57, %v18797_v8  ;;  %8417 = vpow2.f32 %v846_v60  ;;  %v12614_v24 = vpop.permute.xlu0 %7827  ;;  %v17803_v8 = vrot.slane %v12159_v23, 2 }
 0x1bc   : > { %v8408_v28 = vpop.eup %8407  ;;  %v898_v42 = vadd.f32 1.0, %v8406_v62  ;;  %18805 = vst [vmem:[#allocation42_spill] sm:$0xff] %v12614_v24  ;;  %v784_v51 = vsub.f32 0.0, %v12618_v34 }
 0x1bd   : > { %v896_v59 = vadd.f32 1.0, %v8408_v28  ;;  %v8410_v53 = vpop.eup %8409  ;;  %v842_v28 = vmul.f32 1.442695, %v781_v32  ;;  %v3299_v32 = vrot.slane %v12036_v5, 2 }
 0x1be   : > { %8172 = vperm.xlu1 %7435, %v18801_v47   ;;  %v12592_v47 = vadd.high.f32.bf16 %v12574_v36, %v18793_v63  ;;  %v12605_v63 = vpop.permute.xlu1 %7832  ;;  %8419 = vrcp.f32 %v898_v42  ;;  %v899_v62 = vadd.f32 1.0, %v8410_v53  ;;  %v786_v53 = vsub.f32 0.0, %v12612_v52 }
 0x1bf   : > { %18804 = vst [vmem:[#allocation143_spill] sm:$0xff] %v12605_v63  ;;  %8421 = vrcp.f32 %v896_v59  ;;  %v8412_v60 = vpop.eup %8411  ;;  %v3373_v38 = vsel %vm3336_vm14, %v3298_v41, %v3299_v32  ;;  %v3372_v5 = vsel %vm3336_vm14, %v3299_v32, %v17803_v8  ;;  %v18807_v57 = vunpack.i.h.bf16 %v12605_v63  ;;  %v18811_v8 = vld [vmem:[#allocation86_spill] sm:$0xff] }
 0x1c0   : > { %8423 = vrcp.f32 %v899_v62  ;;  %v897_v42 = vadd.f32 1.0, %v8412_v60  ;;  %v852_v36 = vmul.f32 1.442695, %v786_v53  ;;  %v848_v62 = vmul.f32 1.442695, %v784_v51 }
 0x1c1   : > { %8425 = vpow2.f32 %v842_v28  ;;  %v8693_v28 = vadd.low.f32.bf16 %v3373_v38, %v12605_v63  ;;  %v12644_v51 = vadd.f32 %v12535_v30, %v12218_v2  ;;  %v18810_v38 = vld [vmem:[#allocation95_spill] sm:$0xff]  ;;  %v18822_v63 = vrot.slane %v12132_v39, 7 }
 0x1c2   : > { %v8414_v59 = vpop.eup %8413  ;;  %8427 = vrcp.f32 %v897_v42  ;;  %v12633_v60 = vpop.permute.xlu1 %7842  ;;  %v3580_v42 = vadd.f32 %v18807_v57, %v3372_v5  ;;  %v18814_v57 = vld [vmem:[#allocation98_spill] sm:$0xff] }
 0x1c3   : > { %v8416_v16 = vpop.eup %8415  ;;  %v902_v44 = vadd.f32 1.0, %v8414_v59  ;;  %18806 = vst [vmem:[#allocation70_spill] sm:$0xff] %v12633_v60  ;;  %v18808_v59 = vld [vmem:[#allocation26_spill] sm:$0xff]  ;;  %v12639_v33 = vmax.f32 %v12169_v48, %v8693_v28  ;;  %v12653_v5 = vadd.f32 %v12535_v30, %v18814_v57 }
 0x1c4   : > { %v900_v26 = vadd.f32 1.0, %v8416_v16  ;;  %v17804_v53 = vrot.slane %v18808_v59, 2  ;;  %v3297_v16 = vrot.slane %v12061_v3, 2 }
 0x1c5   : > { %8429 = vrcp.f32 %v902_v44  ;;  %18809 = vst [vmem:[#allocation71_spill] sm:$0xff] %v12639_v33  ;;  %v8418_v32 = vpop.eup %8417  ;;  %v18812_v44 = vmax.f32 %v18810_v38, %v18811_v8 }
 0x1c6   : > { %8431 = vrcp.f32 %v900_v26  ;;  %v903_v28 = vadd.f32 1.0, %v8418_v32  ;;  %v3374_v2 = vsel %vm3336_vm14, %v3297_v16, %v3298_v41  ;;  %v785_v41 = vsub.f32 0.0, %v12653_v5 }
 0x1c7   : > { %8433 = vpow2.f32 %v852_v36  ;;  %v12649_v25 = vmax.f32 %v18812_v44, %v3580_v42  ;;  %v12662_v36 = vsel %vm3336_vm14, %v17804_v53, %v3297_v16  ;;  %v8695_v44 = vadd.high.f32.bf16 %v3374_v2, %v12614_v24  ;;  %v18818_v53 = vld [vmem:[#allocation47_spill] sm:$0xff] }
 0x1c8   : > { %v8420_v26 = vpop.eup %8419  ;;  %8435 = vpow2.f32 %v848_v62  ;;  %18815 = vst [vmem:[#allocation139_spill] sm:$0xff] %v12662_v36  ;;  %v787_v62 = vsub.f32 0.0, %v12644_v51  ;;  %v18821_v2 = vrot.slane %v12284_v22, 7  ;;  %v18825_v36 = vld [vmem:[#allocation89_spill] sm:$0xff] }
 0x1c9   : > { %18813 = vst [vmem:[#allocation18_spill] sm:$0xff] %v12649_v25  ;;  %v8422_v8 = vpop.eup %8421  ;;  %v12665_v42 = vmul.f32 %v8420_v26, %v12270_v29  ;;  %8437 = vrcp.f32 %v903_v28  ;;  %v18819_v26 = vld [vmem:[#allocation93_spill] sm:$0xff] }
 0x1ca   : > { %v12672_v32 = vmul.f32 %v8422_v8, %v12277_v6  ;;  %v8424_v57 = vpop.eup %8423  ;;  %v12681_v48 = vmax.f32 %v18819_v26, %v8695_v44  ;;  %v854_v38 = vmul.f32 1.442695, %v787_v62  ;;  %v2286_v6 = vsel %vm2253_vm12, %v18822_v63, %v18821_v2  ;;  %v18823_v8 = vld [vmem:[#allocation41_spill] sm:$0xff] }
 0x1cb   : > { %18816 = vst [vmem:[#allocation138_spill] sm:$0xff] %v12665_v42  ;;  %v12678_v29 = vadd.low.f32.bf16 %v12665_v42, %v18818_v53  ;;  %v8426_v28 = vpop.eup %8425  ;;  %v12694_v24 = vmul.f32 %v8424_v57, %v12281_v0  ;;  %v850_v42 = vmul.f32 1.442695, %v785_v41  ;;  %v18826_v44 = vunpack.i.h.bf16 %v18825_v36  ;;  %v12708_v41 = vpop.f32.mrb[39].mxu0 }
 0x1cc   : > { %18817 = vst [vmem:[#allocation26_spill] sm:$0xff] %v12672_v32  ;;  %18820 = vst [vmem:[#allocation95_spill] sm:$0xff] %v12681_v48  ;;  %v12691_v16 = vadd.low.f32.bf16 %v12672_v32, %v18823_v8  ;;  %v8428_v62 = vpop.eup %8427  ;;  %v901_v63 = vadd.f32 1.0, %v8426_v28  ;;  %v18828_v28 = vrot.slane %v12422_v45, 1  ;;  %v18829_v2 = vrot.slane %v12284_v22, 1 }
 0x1cd   : > { %18824 = vst [vmem:[#allocation86_spill] sm:$0xff] %v12694_v24  ;;  %v2501_v26 = vadd.f32 %v18826_v44, %v2286_v6  ;;  %v12706_v0 = vadd.high.f32.bf16 %v12694_v24, %v18818_v53  ;;  %v12711_v6 = vmul.f32 %v8428_v62, %v12496_v27  ;;  %v18834_v24 = vld [vmem:[#allocation54_spill] sm:$0xff] }
 0x1ce   : > { %8439 = vrcp.f32 %v901_v63  ;;  %v2646_v33 = vsel %vm2614_vm13, %v18829_v2, %v18828_v28  ;;  %v18832_v2 = vld [vmem:[#allocation124_spill] sm:$0xff] }
 0x1cf   : > { %v8430_v57 = vpop.eup %8429  ;;  %18827 = vst [vmem:[#allocation98_spill] sm:$0xff] %v12711_v6  ;;  %v2541_v44 = vmax.f32 %v12284_v22, %v2501_v26  ;;  %v12728_v26 = vadd.high.f32.bf16 %v12711_v6, %v18823_v8  ;;  %8441 = vpow2.f32 %v854_v38  ;;  %v18833_v28 = vunpack.i.h.bf16 %v18832_v2 }
 0x1d0   : > { %v8432_v25 = vpop.eup %8431  ;;  %v12724_v27 = vmul.f32 %v8430_v57, %v12515_v35  ;;  %8443 = vpow2.f32 %v850_v42  ;;  %v3302_v35 = vrot.slane %v12132_v39, 2  ;;  %v12750_v42 = vpop.permute.xlu0 %7837  ;;  %v3301_v8 = vrot.slane %v12306_v43, 2 }
 0x1d1   : > { %v8434_v62 = vpop.eup %8433  ;;  %v12731_v63 = vmul.f32 %v8432_v25, %v12521_v14  ;;  %v2862_v32 = vadd.f32 %v18833_v28, %v2646_v33  ;;  %v18835_v14 = vld [vmem:[#allocation62_spill] sm:$0xff]  ;;  %18836 = vst [vmem:[#allocation41_spill] sm:$0xff] %v12750_v42  ;;  %v3303_v28 = vrot.slane %v12284_v22, 2  ;;  %v18838_v25 = vld [vmem:[#allocation43_spill] sm:$0xff]  ;;  %v18839_v43 = vunpack.i.l.bf16 %v12633_v60 }
 0x1d2   : > { %18830 = vst [vmem:[#allocation47_spill] sm:$0xff] %v12724_v27  ;;  %v8436_v53 = vpop.eup %8435  ;;  %v12737_v3 = vadd.low.f32.bf16 %v12724_v27, %v18834_v24  ;;  %v906_v48 = vadd.f32 1.0, %v8434_v62  ;;  %v17817_v27 = vrot.slane %v12422_v45, 2  ;;  %v18843_v62 = vmax.f32 %v12412_v13, %v12370_v21  ;;  %v18849_v21 = vld [vmem:[#allocation103_spill] sm:$0xff] }
 0x1d3   : > { %18831 = vst [vmem:[#allocation93_spill] sm:$0xff] %v12731_v63  ;;  %v12745_v38 = vadd.low.f32.bf16 %v12731_v63, %v18835_v14  ;;  %v8438_v33 = vpop.eup %8437  ;;  %v904_v63 = vadd.f32 1.0, %v8436_v53  ;;  %v2902_v2 = vmax.f32 %v2541_v44, %v2862_v32  ;;  %v3369_v44 = vsel %vm3336_vm14, %v3302_v35, %v3303_v28 }
 0x1d4   : > { %8445 = vrcp.f32 %v906_v48  ;;  %v12756_v57 = vmul.f32 %v8438_v33, %v12539_v50  ;;  %v3368_v32 = vsel %vm3336_vm14, %v3303_v28, %v17817_v27  ;;  %v3370_v27 = vsel %vm3336_vm14, %v3301_v8, %v3302_v35 }
 0x1d5   : > { %8447 = vrcp.f32 %v904_v63  ;;  %v3263_v50 = vmax.f32 %v2902_v2, %v18838_v25  ;;  %v3583_v63 = vadd.f32 %v18839_v43, %v3369_v44  ;;  %v18841_v25 = vunpack.i.h.bf16 %v12633_v60  ;;  %v18847_v43 = vld [vmem:[#allocation104_spill] sm:$0xff]  ;;  %v18872_v60 = vld [vmem:[#allocation74_spill] sm:$0xff] }
 0x1d6   : > { %18837 = vst [vmem:[#allocation54_spill] sm:$0xff] %v12756_v57  ;;  %v12762_v48 = vadd.high.f32.bf16 %v12756_v57, %v18834_v24  ;;  %v18842_v28 = vrot.slane %v12159_v23, 2  ;;  %v12801_v35 = vadd.f32 %v12535_v30, %v18847_v43  ;;  %v12811_v13 = vadd.f32 %v12535_v30, %v18849_v21  ;;  %v18863_v43 = vld [vmem:[#allocation31_spill] sm:$0xff] }
 0x1d7   : > { %v3584_v39 = vadd.f32 %v18841_v25, %v3368_v32  ;;  %v12793_v57 = vmax.f32 %v18843_v62, %v3583_v63  ;;  %v18852_v63 = vmax.f32 %v12419_v55, %v12388_v58 }
 0x1d8   : > { %v8440_v53 = vpop.eup %8439  ;;  %v3371_v24 = vsel %vm3336_vm14, %v18842_v28, %v3301_v8  ;;  %v788_v58 = vsub.f32 0.0, %v12811_v13 }
 0x1d9   : > { %v12780_v2 = vmul.f32 %v8440_v53, %v12543_v19  ;;  %v8442_v33 = vpop.eup %8441  ;;  %18844 = vst [vmem:[#allocation43_spill] sm:$0xff] %v12793_v57  ;;  %v18845_v19 = vunpack.i.l.bf16 %v12750_v42  ;;  %v18846_v53 = vunpack.i.h.bf16 %v12750_v42  ;;  %v12807_v28 = vmax.f32 %v3263_v50, %v3584_v39 }
 0x1da   : > { %v8444_v23 = vpop.eup %8443  ;;  %v907_v25 = vadd.f32 1.0, %v8442_v33  ;;  %v7853_v33 = vpop.permute.xlu1 %7852  ;;  %v18882_v57 = vrot.slane %v12447_v49, 7 }
 0x1db   : > { %18840 = vst [vmem:[#allocation62_spill] sm:$0xff] %v12780_v2  ;;  %v3581_v44 = vadd.f32 %v18845_v19, %v3371_v24  ;;  %v3582_v32 = vadd.f32 %v18846_v53, %v3370_v27  ;;  %v12805_v8 = vadd.high.f32.bf16 %v12780_v2, %v18835_v14  ;;  %18848 = vst [vmem:[#allocation104_spill] sm:$0xff] %v12807_v28  ;;  %v905_v62 = vadd.f32 1.0, %v8444_v23 }
 0x1dc   : > { %v18850_v27 = vmax.f32 %v12417_v61, %v12238_v31  ;;  %v790_v14 = vsub.f32 0.0, %v12801_v35  ;;  %8449 = vrcp.f32 %v907_v25  ;;  %v12831_v55 = vunpack.i.h.bf16 %v7853_v33 }
 0x1dd   : > { %v12821_v19 = vmax.f32 %v18852_v63, %v3582_v32  ;;  %8451 = vrcp.f32 %v905_v62  ;;  %v18857_v32 = vrot.slane %v12425_v12, 7  ;;  %v18858_v23 = vrot.slane %v12391_v15, 7 }
 0x1de   : > { %v12816_v24 = vmax.f32 %v18850_v27, %v3581_v44  ;;  %v8446_v39 = vpop.eup %8445  ;;  %v860_v61 = vmul.f32 1.442695, %v790_v14  ;;  %18855 = vst [vmem:[#allocation154_spill] sm:$0xff] %v12831_v55  ;;  %v12833_v44 = vunpack.i.l.bf16 %v7853_v33  ;;  %v18861_v27 = vld [vmem:[#allocation64_spill] sm:$0xff]  ;;  %v856_v14 = vmul.f32 1.442695, %v788_v58 }
 0x1df   : > { %18853 = vst [vmem:[#allocation152_spill] sm:$0xff] %v12821_v19  ;;  %v12828_v31 = vmul.f32 %v8446_v39, %v12612_v52  ;;  %v2282_v21 = vsel %vm2253_vm12, %v18858_v23, %v18857_v32  ;;  %v18859_v25 = vmov %v18858_v23  ;;  %v18860_v52 = vrot.slane %v12447_v49, 7  ;;  %v18862_v33 = vld [vmem:[#allocation32_spill] sm:$0xff]  ;;  %v8448_v53 = vpop.eup %8447 }
 0x1e0   : > { %18851 = vst [vmem:[#allocation103_spill] sm:$0xff] %v12816_v24  ;;  %18856 = vst [vmem:[#allocation155_spill] sm:$0xff] %v12833_v44  ;;  %8453 = vpow2.f32 %v860_v61  ;;  %v2505_v50 = vadd.f32 %v18863_v43, %v2282_v21  ;;  %v18864_v32 = vrot.slane %v12571_v4, 1  ;;  %v18865_v23 = vrot.slane %v12425_v12, 1 }
 0x1e1   : > { %18854 = vst [vmem:[#allocation153_spill] sm:$0xff] %v12828_v31  ;;  %v2283_v62 = vsel %vm2253_vm12, %v18860_v52, %v18859_v25  ;;  %v12849_v63 = vadd.low.f32.bf16 %v12828_v31, %v18861_v27  ;;  %v18867_v52 = vrot.slane %v12391_v15, 1  ;;  %v18868_v58 = vrot.slane %v12425_v12, 6 }
 0x1e2   : > { %v2504_v39 = vadd.f32 %v18862_v33, %v2283_v62  ;;  %v2642_v42 = vsel %vm2614_vm13, %v18865_v23, %v18864_v32  ;;  %v18866_v25 = vmov %v18865_v23  ;;  %v18869_v62 = vrot.slane %v12391_v15, 6 }
 0x1e3   : > { %v2643_v61 = vsel %vm2614_vm13, %v18867_v52, %v18866_v25  ;;  %v12875_v23 = vmul.f32 %v8448_v53, %v12618_v34  ;;  %8455 = vpow2.f32 %v856_v14  ;;  %v2545_v25 = vmax.f32 %v12425_v12, %v2505_v50  ;;  %v18871_v52 = vld [vmem:[#allocation72_spill] sm:$0xff]  ;;  %v18877_v50 = vld [vmem:[#allocation94_spill] sm:$0xff] }
 0x1e4   : > { %v3004_v21 = vsel %vm2975_vm8, %v18869_v62, %v18868_v58  ;;  %v2544_v43 = vmax.f32 %v12391_v15, %v2504_v39  ;;  %v2865_v33 = vadd.f32 %v18871_v52, %v2643_v61  ;;  %v18873_v58 = vld [vmem:[#allocation73_spill] sm:$0xff]  ;;  %v18874_v2 = vrot.slane %v12391_v15, 6  ;;  %v18876_v53 = vld [vmem:[#allocation92_spill] sm:$0xff]  ;;  %v7848_v39 = vpop.permute.xlu0 %7847 }
 0x1e5   : > { %18870 = vst [vmem:[#allocation64_spill] sm:$0xff] %v12875_v23  ;;  %v12882_v36 = vadd.low.f32.bf16 %v12875_v23, %v18872_v60  ;;  %v2866_v62 = vadd.f32 %v18873_v58, %v2642_v42  ;;  %v18875_v32 = vrot.slane %v12447_v49, 6  ;;  %v3227_v14 = vadd.f32 %v18876_v53, %v3004_v21  ;;  %v12898_v42 = vld [vmem:[%s17501_s5 + $0x50] sm:$0xff]  ;;  %v12912_v52 = vld [vmem:[%s17501_s5 + $0x58] sm:$0xff] }
 0x1e6   : > { %v2905_v31 = vmax.f32 %v2544_v43, %v2865_v33  ;;  %v3306_v61 = vrot.slane %v12391_v15, 2  ;;  %v3307_v23 = vrot.slane %v12425_v12, 2  ;;  %vm2075_vm15 = vcmp.ge.s32.totalorder %v12898_v42, 2  ;;  %v8450_v33 = vpop.eup %8449 }
 0x1e7   : > { %v3005_v34 = vsel %vm2975_vm8, %v18875_v32, %v18874_v2  ;;  %v2906_v43 = vmax.f32 %v2545_v25, %v2866_v62  ;;  %vm2076_vm0 = vcmp.ge.s32.totalorder %v12912_v52, 2  ;;  %v8452_v58 = vpop.eup %8451  ;;  %v12916_v21 = vmul.f32 %v8450_v33, %v12644_v51  ;;  %v18887_v33 = vld [vmem:[#allocation37_spill] sm:$0xff] }
 0x1e8   : > { %v3226_v6 = vadd.f32 %v18877_v50, %v3005_v34  ;;  %v17829_v34 = vrot.slane %v12571_v4, 2  ;;  %v3365_v53 = vsel %vm3336_vm14, %v3306_v61, %v3307_v23  ;;  %v12907_v50 = vunpack.i.h.bf16 %v7848_v39 }
 0x1e9   : > { %18879 = vst [vmem:[#allocation156_spill] sm:$0xff] %v12916_v21  ;;  %v3267_v25 = vmax.f32 %v2906_v43, %v3227_v14  ;;  %v12922_v62 = vmul.f32 %v8452_v58, %v12653_v5  ;;  %v18883_v28 = vrot.slane %v12422_v45, 7  ;;  %vm2147_vm5 = vcmp.lt.s32.totalorder %v12898_v42, 18 }
 0x1ea   : > { %v3266_v32 = vmax.f32 %v2905_v31, %v3226_v6  ;;  %18878 = vst [vmem:[#allocation74_spill] sm:$0xff] %v12907_v50  ;;  %v3587_v6 = vadd.f32 %v12833_v44, %v3365_v53  ;;  %v12919_v31 = vunpack.i.l.bf16 %v7848_v39  ;;  %v3364_v2 = vsel %vm3336_vm14, %v3307_v23, %v17829_v34  ;;  %v8454_v58 = vpop.eup %8453 }
 0x1eb   : > { %18881 = vst [vmem:[#allocation158_spill] sm:$0xff] %v12922_v62  ;;  %v2284_v51 = vsel %vm2253_vm12, %v18883_v28, %v18882_v57  ;;  %v18884_v14 = vmov %v18883_v28  ;;  %v18885_v53 = vrot.slane %v12284_v22, 7  ;;  %v12942_v39 = vadd.high.f32.bf16 %v12916_v21, %v18861_v27  ;;  %v18888_v22 = vld [vmem:[#allocation36_spill] sm:$0xff] }
 0x1ec   : > { %18880 = vst [vmem:[#allocation157_spill] sm:$0xff] %v12919_v31  ;;  %v3588_v23 = vadd.f32 %v12831_v55, %v3364_v2  ;;  %v12945_v43 = vmax.f32 %v3266_v32, %v3587_v6  ;;  %v12950_v57 = vadd.high.f32.bf16 %v12922_v62, %v18872_v60  ;;  %v910_v28 = vadd.f32 1.0, %v8454_v58  ;;  %v18894_v58 = vld [vmem:[#allocation126_spill] sm:$0xff]  ;;  %v18898_v55 = vld [vmem:[#allocation105_spill] sm:$0xff] }
 0x1ed   : > { %v2285_v5 = vsel %vm2253_vm12, %v18885_v53, %v18884_v14  ;;  %v2503_v44 = vadd.f32 %v18888_v22, %v2284_v51  ;;  %v18889_v14 = vrot.slane %v12391_v15, 1  ;;  %v18890_v53 = vrot.slane %v12447_v49, 1  ;;  %v8456_v60 = vpop.eup %8455  ;;  %v18919_v22 = vld [vmem:[#allocation129_spill] sm:$0xff] }
 0x1ee   : > { %18886 = vst [vmem:[#allocation159_spill] sm:$0xff] %v12945_v43  ;;  %v2502_v34 = vadd.f32 %v18887_v33, %v2285_v5  ;;  %v12962_v5 = vmax.f32 %v3267_v25, %v3588_v23  ;;  %8457 = vrcp.f32 %v910_v28  ;;  %v908_v21 = vadd.f32 1.0, %v8456_v60  ;;  %v18893_v23 = vld [vmem:[#allocation127_spill] sm:$0xff]  ;;  %v18897_v60 = vld [vmem:[#allocation48_spill] sm:$0xff] }
 0x1ef   : > { %v2644_v27 = vsel %vm2614_vm13, %v18890_v53, %v18889_v14  ;;  %v2543_v14 = vmax.f32 %v12447_v49, %v2503_v44  ;;  %v18892_v32 = vrot.slane %v12422_v45, 1  ;;  %v18895_v51 = vrot.slane %v12447_v49, 6 }
 0x1f0   : > { %18891 = vst [vmem:[#allocation160_spill] sm:$0xff] %v12962_v5  ;;  %v2542_v62 = vmax.f32 %v12422_v45, %v2502_v34  ;;  %v2864_v2 = vadd.f32 %v18894_v58, %v2644_v27  ;;  %v18896_v28 = vrot.slane %v12422_v45, 6  ;;  %v3305_v44 = vrot.slane %v12447_v49, 2 }
 0x1f1   : > { %v2645_v25 = vsel %vm2614_vm13, %v18892_v32, %v18890_v53  ;;  %8459 = vrcp.f32 %v908_v21  ;;  %v12987_v33 = vadd.f32 %v12535_v30, %v18898_v55  ;;  %v18899_v32 = vmov -inf   ;;  %v7863_v21 = vpop.permute.xlu1 %7862 }
 0x1f2   : > { %v2863_v6 = vadd.f32 %v18893_v23, %v2645_v25  ;;  %v3006_v34 = vsel %vm2975_vm8, %v18896_v28, %v18895_v51  ;;  %v2111_v27 = vsel %vm2075_vm15, 0.0, %v18899_v32  ;;  %v2904_v25 = vmax.f32 %v2543_v14, %v2864_v2  ;;  %v18901_v14 = vld [vmem:[#allocation107_spill] sm:$0xff] }
 0x1f3   : > { %v3225_v15 = vadd.f32 %v18897_v60, %v3006_v34  ;;  %v3366_v58 = vsel %vm3336_vm14, %v3305_v44, %v3306_v61  ;;  %v18900_v51 = vrot.slane %v12422_v45, 2  ;;  %v791_v34 = vsub.f32 0.0, %v12987_v33 }
 0x1f4   : > { %v2903_v53 = vmax.f32 %v2542_v62, %v2863_v6  ;;  %v3586_v55 = vadd.f32 %v12907_v50, %v3366_v58  ;;  %v2112_v62 = vsel %vm2076_vm0, 0.0, %v18899_v32  ;;  %v13007_v45 = vadd.f32 %v12535_v30, %v18901_v14 }
 0x1f5   : > { %v3367_v49 = vsel %vm3336_vm14, %v18900_v51, %v3305_v44  ;;  %v3265_v6 = vmax.f32 %v2904_v25, %v3225_v15  ;;  %v8166_v61 = vpack.i.bf16 %v2112_v62, %v2111_v27  ;;  %v862_v44 = vmul.f32 1.442695, %v791_v34  ;;  %v18911_v62 = vld [vmem:[#allocation38_spill] sm:$0xff] }
 0x1f6   : > { %v3585_v28 = vadd.f32 %v12919_v31, %v3367_v49  ;;  %v3264_v2 = vmax.f32 %v2903_v53, %v12464_v7  ;;  %v13009_v51 = vunpack.i.h.bf16 %v7863_v21  ;;  %v13011_v49 = vunpack.i.l.bf16 %v7863_v21  ;;  %v18910_v21 = vld [vmem:[#allocation40_spill] sm:$0xff] }
 0x1f7   : > { %v18904_v58 = vrot.slane %v12592_v47, 7  ;;  %v18905_v50 = vrot.slane %v12560_v46, 7  ;;  %v13021_v7 = vmax.f32 %v3265_v6, %v3586_v55  ;;  %8167 = vperm.xlu0 %7424, %v8166_v61   ;;  %v789_v15 = vsub.f32 0.0, %v13007_v45 }
 0x1f8   : > { %18902 = vst [vmem:[#allocation105_spill] sm:$0xff] %v13009_v51  ;;  %18903 = vst [vmem:[#allocation107_spill] sm:$0xff] %v13011_v49  ;;  %v13019_v60 = vmax.f32 %v3264_v2, %v3585_v28  ;;  %v18909_v53 = vrot.slane %v12598_v1, 7  ;;  %8461 = vpow2.f32 %v862_v44  ;;  %v18913_v28 = vrot.slane %v12592_v47, 1  ;;  %v8458_v2 = vpop.eup %8457 }
 0x1f9   : > { %v2278_v31 = vsel %vm2253_vm12, %v18905_v50, %v18904_v58  ;;  %18907 = vst [vmem:[#allocation162_spill] sm:$0xff] %v13021_v7  ;;  %v18908_v27 = vmov %v18905_v50  ;;  %v18912_v50 = vrot.slane %v12691_v16, 1  ;;  %v858_v6 = vmul.f32 1.442695, %v789_v15 }
 0x1fa   : > { %18906 = vst [vmem:[#allocation161_spill] sm:$0xff] %v13019_v60  ;;  %v2279_v25 = vsel %vm2253_vm12, %v18909_v53, %v18908_v27  ;;  %v2509_v14 = vadd.f32 %v18911_v62, %v2278_v31  ;;  %v18914_v61 = vmov %v18913_v28  ;;  %v18915_v58 = vrot.slane %v12560_v46, 1  ;;  %v18916_v27 = vld [vmem:[#allocation128_spill] sm:$0xff] }
 0x1fb   : > { %v2508_v34 = vadd.f32 %v18910_v21, %v2279_v25  ;;  %v2638_v55 = vsel %vm2614_vm13, %v18913_v28, %v18912_v50  ;;  %v18917_v31 = vrot.slane %v12592_v47, 6  ;;  %v18918_v25 = vrot.slane %v12560_v46, 6  ;;  %v7858_v21 = vpop.permute.xlu0 %7857 }
 0x1fc   : > { %v2639_v44 = vsel %vm2614_vm13, %v18915_v58, %v18914_v61  ;;  %v2870_v53 = vadd.f32 %v18916_v27, %v2638_v55  ;;  %v990_v50 = vmul.f32 %v8458_v2, %v12801_v35  ;;  %v2549_v28 = vmax.f32 %v12592_v47, %v2509_v14  ;;  %v18922_v27 = vld [vmem:[#allocation24_spill] sm:$0xff]  ;;  %v8460_v35 = vpop.eup %8459  ;;  %v18923_v2 = vld [vmem:[#allocation75_spill] sm:$0xff] }
 0x1fd   : > { %v3000_v23 = vsel %vm2975_vm8, %v18918_v25, %v18917_v31  ;;  %v2548_v15 = vmax.f32 %v12560_v46, %v2508_v34  ;;  %v2869_v62 = vadd.f32 %v18919_v22, %v2639_v44  ;;  %8463 = vpow2.f32 %v858_v6  ;;  %v18924_v44 = vld [vmem:[#allocation35_spill] sm:$0xff] }
 0x1fe   : > { %v18920_v61 = vmov %v18918_v25  ;;  %v18921_v55 = vrot.slane %v12598_v1, 6  ;;  %v3231_v43 = vadd.f32 %v18922_v27, %v3000_v23  ;;  %v3310_v31 = vrot.slane %v12560_v46, 2  ;;  %v18926_v27 = vld [vmem:[#allocation76_spill] sm:$0xff] }
 0x1ff   : > { %v13064_v34 = vadd.low.f32.bf16 %v990_v50, %v18923_v2  ;;  %v2909_v14 = vmax.f32 %v2548_v15, %v2869_v62  ;;  %v2910_v25 = vmax.f32 %v2549_v28, %v2870_v53  ;;  %v988_v6 = vmul.f32 %v8460_v35, %v12811_v13 }
 0x200   : > { %v3001_v58 = vsel %vm2975_vm8, %v18921_v55, %v18920_v61  ;;  %v3311_v5 = vrot.slane %v12592_v47, 2  ;;  %v17844_v60 = vrot.slane %v12691_v16, 2  ;;  %v13070_v7 = vunpack.i.h.bf16 %v7858_v21 }
 0x201   : > { %v3230_v22 = vadd.f32 %v18924_v44, %v3001_v58  ;;  %v13076_v62 = vadd.low.f32.bf16 %v988_v6, %v18926_v27  ;;  %v3271_v53 = vmax.f32 %v2910_v25, %v3231_v43  ;;  %v13086_v35 = vunpack.i.l.bf16 %v7858_v21 }
 0x202   : > { %18925 = vst [vmem:[#allocation75_spill] sm:$0xff] %v13070_v7  ;;  %v3360_v13 = vsel %vm3336_vm14, %v3311_v5, %v17844_v60  ;;  %v3361_v15 = vsel %vm3336_vm14, %v3310_v31, %v3311_v5  ;;  %v18934_v60 = vld [vmem:[#allocation61_spill] sm:$0xff]  ;;  %v18936_v6 = vrot.slane %v12560_v46, 1  ;;  %v18937_v55 = vrot.slane %v12598_v1, 1 }
 0x203   : > { %v3270_v50 = vmax.f32 %v2909_v14, %v3230_v22  ;;  %v3591_v28 = vadd.f32 %v13011_v49, %v3361_v15  ;;  %v3592_v58 = vadd.f32 %v13009_v51, %v3360_v13  ;;  %18927 = vst [vmem:[#allocation76_spill] sm:$0xff] %v13086_v35  ;;  %v18928_v22 = vrot.slane %v12598_v1, 7  ;;  %v8462_v13 = vpop.eup %8461 }
 0x204   : > { %v18929_v14 = vrot.slane %v12571_v4, 7  ;;  %v18931_v15 = vrot.slane %v12425_v12, 7  ;;  %v911_v51 = vadd.f32 1.0, %v8462_v13  ;;  %v2640_v49 = vsel %vm2614_vm13, %v18937_v55, %v18936_v6  ;;  %v18943_v6 = vld [vmem:[#allocation130_spill] sm:$0xff] }
 0x205   : > { %v13103_v61 = vmax.f32 %v3270_v50, %v3591_v28  ;;  %v13105_v23 = vmax.f32 %v3271_v53, %v3592_v58  ;;  %v18938_v44 = vmov %v18937_v55  ;;  %v18940_v53 = vrot.slane %v12598_v1, 6 }
 0x206   : > { %v2280_v43 = vsel %vm2253_vm12, %v18929_v14, %v18928_v22  ;;  %v18930_v5 = vmov %v18929_v14  ;;  %v18935_v14 = vld [vmem:[#allocation60_spill] sm:$0xff]  ;;  %v18941_v28 = vrot.slane %v12571_v4, 6  ;;  %8465 = vrcp.f32 %v911_v51 }
 0x207   : > { %v2281_v21 = vsel %vm2253_vm12, %v18931_v15, %v18930_v5  ;;  %18932 = vst [vmem:[#allocation163_spill] sm:$0xff] %v13103_v61  ;;  %18933 = vst [vmem:[#allocation164_spill] sm:$0xff] %v13105_v23  ;;  %v2507_v25 = vadd.f32 %v18935_v14, %v2280_v43  ;;  %v18939_v5 = vrot.slane %v12571_v4, 1  ;;  %v18942_v15 = vld [vmem:[#allocation131_spill] sm:$0xff]  ;;  %v8464_v13 = vpop.eup %8463  ;;  %v18946_v14 = vld [vmem:[#allocation100_spill] sm:$0xff]  ;;  %v18948_v51 = vrot.slane %v12571_v4, 2 }
 0x208   : > { %v2506_v22 = vadd.f32 %v18934_v60, %v2281_v21  ;;  %v3002_v58 = vsel %vm2975_vm8, %v18941_v28, %v18940_v53  ;;  %v2868_v21 = vadd.f32 %v18943_v6, %v2640_v49  ;;  %v18944_v60 = vmov %v18941_v28  ;;  %v18947_v23 = vld [vmem:[#allocation99_spill] sm:$0xff]  ;;  %v18967_v6 = vld [vmem:[#allocation132_spill] sm:$0xff] }
 0x209   : > { %v2641_v50 = vsel %vm2614_vm13, %v18939_v5, %v18938_v44  ;;  %v2547_v43 = vmax.f32 %v12598_v1, %v2507_v25  ;;  %v18945_v44 = vrot.slane %v12425_v12, 6  ;;  %v3229_v61 = vadd.f32 %v18946_v14, %v3002_v58 }
 0x20a   : > { %v2546_v46 = vmax.f32 %v12571_v4, %v2506_v22  ;;  %v2867_v55 = vadd.f32 %v18942_v15, %v2641_v50  ;;  %v3309_v53 = vrot.slane %v12598_v1, 2  ;;  %v909_v22 = vadd.f32 1.0, %v8464_v13  ;;  %v8645_v1 = vld [vmem:[%s17501_s5 + $0x48] sm:$0xff]  ;;  %v7873_v13 = vpop.permute.xlu1 %7872 }
 0x20b   : > { %v3003_v5 = vsel %vm2975_vm8, %v18945_v44, %v18944_v60  ;;  %v2908_v25 = vmax.f32 %v2547_v43, %v2868_v21  ;;  %v8644_v60 = vld [vmem:[%s17501_s5 + $0x40] sm:$0xff]  ;;  %vm2146_vm1 = vcmp.lt.s32.totalorder %v8645_v1, 18  ;;  %v8646_v21 = vld [vmem:[%s17501_s5 + $0x30] sm:$0xff]  ;;  %v13178_v1 = vunpack.i.l.bf16 %v7873_v13 }
 0x20c   : > { %v2907_v28 = vmax.f32 %v2546_v46, %v2867_v55  ;;  %v3228_v50 = vadd.f32 %v18947_v23, %v3003_v5  ;;  %v3362_v49 = vsel %vm3336_vm14, %v3309_v53, %v3310_v31  ;;  %v3363_v12 = vsel %vm3336_vm14, %v18948_v51, %v3309_v53 }
 0x20d   : > { %vm2145_vm7 = vcmp.lt.s32.totalorder %v8644_v60, 18  ;;  %8467 = vrcp.f32 %v909_v22  ;;  %v3269_v46 = vmax.f32 %v2908_v25, %v3229_v61  ;;  %v3589_v31 = vadd.f32 %v13086_v35, %v3363_v12  ;;  %v8647_v61 = vld [vmem:[%s17501_s5 + $0x38] sm:$0xff]  ;;  %v18950_v25 = vld [vmem:[#allocation44_spill] sm:$0xff] }
 0x20e   : > { %v3268_v58 = vmax.f32 %v2907_v28, %v3228_v50  ;;  %v3590_v4 = vadd.f32 %v13070_v7, %v3362_v49  ;;  %v2181_v43 = vsel %vm2145_vm7, 0.0, %v18899_v32  ;;  %v2182_v55 = vsel %vm2146_vm1, 0.0, %v18899_v32  ;;  %v18951_v49 = vld [vmem:[#allocation45_spill] sm:$0xff] }
 0x20f   : > { %vm2143_vm4 = vcmp.lt.s32.totalorder %v8646_v21, 18  ;;  %v8181_v5 = vpack.i.bf16 %v2182_v55, %v2181_v43  ;;  %vm2144_vm9 = vcmp.lt.s32.totalorder %v8647_v61, 18  ;;  %v13170_v50 = vadd.f32 %v12535_v30, %v18950_v25  ;;  %18953 = vst [vmem:[#allocation45_spill] sm:$0xff] %v13178_v1 }
 0x210   : > { %v13159_v44 = vmax.f32 %v3268_v58, %v3589_v31  ;;  %v2179_v53 = vsel %vm2143_vm4, 0.0, %v18899_v32  ;;  %v13165_v22 = vmax.f32 %v3269_v46, %v3590_v4  ;;  %v2180_v28 = vsel %vm2144_vm9, 0.0, %v18899_v32 }
 0x211   : > { %v13174_v51 = vadd.f32 %v12535_v30, %v18951_v49  ;;  %8182 = vperm.xlu1 %7435, %v8181_v5   ;;  %v8176_v12 = vpack.i.bf16 %v2180_v28, %v2179_v53  ;;  %v13176_v60 = vunpack.i.h.bf16 %v7873_v13  ;;  %v18954_v58 = vrot.slane %v12706_v0, 7  ;;  %v18958_v13 = vld [vmem:[#allocation52_spill] sm:$0xff]  ;;  %v18959_v53 = vld [vmem:[#allocation53_spill] sm:$0xff] }
 0x212   : > { %18949 = vst [vmem:[#allocation165_spill] sm:$0xff] %v13159_v44  ;;  %v18955_v46 = vrot.slane %v12678_v29, 7  ;;  %v794_v4 = vsub.f32 0.0, %v13170_v50  ;;  %v18957_v21 = vrot.slane %v12728_v26, 7  ;;  %v18960_v25 = vrot.slane %v12745_v38, 1 }
 0x213   : > { %18952 = vst [vmem:[#allocation44_spill] sm:$0xff] %v13176_v60  ;;  %v792_v43 = vsub.f32 0.0, %v13174_v51  ;;  %8177 = vperm.xlu0 %7424, %v8176_v12   ;;  %v18961_v49 = vrot.slane %v12706_v0, 1  ;;  %v18963_v35 = vrot.slane %v12678_v29, 1  ;;  %v18965_v12 = vrot.slane %v12678_v29, 6 }
 0x214   : > { %v2274_v31 = vsel %vm2253_vm12, %v18955_v46, %v18954_v58  ;;  %v18956_v55 = vmov %v18955_v46  ;;  %v18969_v14 = vrot.slane %v12728_v26, 6  ;;  %vm2148_vm6 = vcmp.lt.s32.totalorder %v12912_v52, 18 }
 0x215   : > { %v2275_v5 = vsel %vm2253_vm12, %v18957_v21, %v18956_v55  ;;  %v2513_v61 = vadd.f32 %v18958_v13, %v2274_v31  ;;  %v2634_v58 = vsel %vm2614_vm13, %v18961_v49, %v18960_v25  ;;  %v18962_v46 = vmov %v18961_v49  ;;  %v8466_v21 = vpop.eup %8465  ;;  %v18966_v25 = vld [vmem:[#allocation133_spill] sm:$0xff] }
 0x216   : > { %v2512_v28 = vadd.f32 %v18959_v53, %v2275_v5  ;;  %v2635_v23 = vsel %vm2614_vm13, %v18963_v35, %v18962_v46  ;;  %v18964_v55 = vrot.slane %v12706_v0, 6  ;;  %v868_v5 = vmul.f32 1.442695, %v794_v4  ;;  %v18970_v4 = vld [vmem:[#allocation101_spill] sm:$0xff] }
 0x217   : > { %v864_v15 = vmul.f32 1.442695, %v792_v43  ;;  %v2553_v53 = vmax.f32 %v12706_v0, %v2513_v61  ;;  %v2873_v49 = vadd.f32 %v18966_v25, %v2635_v23  ;;  %v991_v13 = vmul.f32 %v8466_v21, %v12987_v33  ;;  %v18971_v61 = vld [vmem:[#allocation102_spill] sm:$0xff]  ;;  %v8468_v33 = vpop.eup %8467 }
 0x218   : > { %v2996_v31 = vsel %vm2975_vm8, %v18965_v12, %v18964_v55  ;;  %v2552_v7 = vmax.f32 %v12678_v29, %v2512_v28  ;;  %v2874_v35 = vadd.f32 %v18967_v6, %v2634_v58  ;;  %v18968_v46 = vmov %v18965_v12  ;;  %v7868_v12 = vpop.permute.xlu0 %7867 }
 0x219   : > { %v2997_v55 = vsel %vm2975_vm8, %v18969_v14, %v18968_v46  ;;  %8469 = vpow2.f32 %v868_v5  ;;  %v3235_v44 = vadd.f32 %v18971_v61, %v2996_v31  ;;  %v3314_v23 = vrot.slane %v12678_v29, 2 }
 0x21a   : > { %v3234_v43 = vadd.f32 %v18970_v4, %v2997_v55  ;;  %v13229_v28 = vadd.high.f32.bf16 %v991_v13, %v18923_v2  ;;  %8471 = vpow2.f32 %v864_v15  ;;  %v2913_v58 = vmax.f32 %v2552_v7, %v2873_v49  ;;  %v18991_v4 = vld [vmem:[#allocation106_spill] sm:$0xff] }
 0x21b   : > { %v2914_v21 = vmax.f32 %v2553_v53, %v2874_v35  ;;  %v989_v6 = vmul.f32 %v8468_v33, %v13007_v45  ;;  %v3315_v25 = vrot.slane %v12706_v0, 2  ;;  %v17856_v14 = vrot.slane %v12745_v38, 2 }
 0x21c   : > { %v13234_v5 = vunpack.i.h.bf16 %v7868_v12  ;;  %v3274_v61 = vmax.f32 %v2913_v58, %v3234_v43  ;;  %v13250_v49 = vunpack.i.l.bf16 %v7868_v12  ;;  %v18974_v35 = vrot.slane %v12728_v26, 7 }
 0x21d   : > { %v13240_v2 = vadd.high.f32.bf16 %v989_v6, %v18926_v27  ;;  %v3275_v7 = vmax.f32 %v2914_v21, %v3235_v44  ;;  %v3356_v45 = vsel %vm3336_vm14, %v3315_v25, %v17856_v14  ;;  %v3357_v15 = vsel %vm3336_vm14, %v3314_v23, %v3315_v25 }
 0x21e   : > { %18972 = vst [vmem:[#allocation166_spill] sm:$0xff] %v13234_v5  ;;  %v3595_v13 = vadd.f32 %v13178_v1, %v3357_v15  ;;  %v3596_v53 = vadd.f32 %v13176_v60, %v3356_v45  ;;  %18973 = vst [vmem:[#allocation167_spill] sm:$0xff] %v13250_v49  ;;  %v18975_v27 = vrot.slane %v12691_v16, 7  ;;  %v18977_v58 = vrot.slane %v12592_v47, 7  ;;  %v18978_v15 = vld [vmem:[#allocation57_spill] sm:$0xff] }
 0x21f   : > { %v18980_v31 = vrot.slane %v12678_v29, 1  ;;  %v18981_v43 = vrot.slane %v12728_v26, 1  ;;  %v18983_v46 = vrot.slane %v12691_v16, 1  ;;  %v18990_v60 = vld [vmem:[#allocation29_spill] sm:$0xff]  ;;  %v18996_v42 = vrot.slane %v12762_v48, 7 }
 0x220   : > { %v2276_v6 = vsel %vm2253_vm12, %v18975_v27, %v18974_v35  ;;  %v18976_v25 = vmov %v18975_v27  ;;  %v13267_v21 = vmax.f32 %v3274_v61, %v3595_v13  ;;  %v13269_v45 = vmax.f32 %v3275_v7, %v3596_v53  ;;  %v18979_v35 = vld [vmem:[#allocation51_spill] sm:$0xff] }
 0x221   : > { %v2277_v12 = vsel %vm2253_vm12, %v18977_v58, %v18976_v25  ;;  %v2511_v27 = vadd.f32 %v18979_v35, %v2276_v6  ;;  %v2636_v33 = vsel %vm2614_vm13, %v18981_v43, %v18980_v31  ;;  %v18982_v44 = vmov %v18981_v43  ;;  %v18988_v58 = vld [vmem:[#allocation135_spill] sm:$0xff] }
 0x222   : > { %v2510_v55 = vadd.f32 %v18978_v15, %v2277_v12  ;;  %v2637_v61 = vsel %vm2614_vm13, %v18983_v46, %v18982_v44  ;;  %v18984_v7 = vrot.slane %v12728_v26, 6  ;;  %v18985_v13 = vrot.slane %v12691_v16, 6  ;;  %v18989_v44 = vld [vmem:[#allocation134_spill] sm:$0xff]  ;;  %v18992_v15 = vld [vmem:[#allocation19_spill] sm:$0xff] }
 0x223   : > { %v18987_v6 = vrot.slane %v12592_v47, 6  ;;  %v2551_v25 = vmax.f32 %v12728_v26, %v2511_v27  ;;  %v2871_v46 = vadd.f32 %v18988_v58, %v2637_v61  ;;  %v2872_v12 = vadd.f32 %v18989_v44, %v2636_v33  ;;  %v8470_v14 = vpop.eup %8469  ;;  %v13311_v27 = vld [vmem:[%s17501_s5 + $0x20] sm:$0xff] }
 0x224   : > { %v2998_v53 = vsel %vm2975_vm8, %v18985_v13, %v18984_v7  ;;  %v18986_v29 = vmov %v18985_v13  ;;  %v2550_v43 = vmax.f32 %v12691_v16, %v2510_v55  ;;  %v3313_v13 = vrot.slane %v12728_v26, 2 }
 0x225   : > { %v2999_v31 = vsel %vm2975_vm8, %v18987_v6, %v18986_v29  ;;  %v3233_v7 = vadd.f32 %v18991_v4, %v2998_v53  ;;  %v13306_v47 = vadd.f32 %v12535_v30, %v18992_v15  ;;  %v8472_v29 = vpop.eup %8471  ;;  %v914_v6 = vadd.f32 1.0, %v8470_v14 }
 0x226   : > { %v3232_v1 = vadd.f32 %v18990_v60, %v2999_v31  ;;  %v2911_v55 = vmax.f32 %v2550_v43, %v2871_v46  ;;  %v2912_v35 = vmax.f32 %v2551_v25, %v2872_v12  ;;  %vm2069_vm2 = vcmp.ge.s32.totalorder %v13311_v27, 2 }
 0x227   : > { %v912_v33 = vadd.f32 1.0, %v8472_v29  ;;  %v3358_v61 = vsel %vm3336_vm14, %v3313_v13, %v3314_v23  ;;  %v18993_v26 = vrot.slane %v12691_v16, 2  ;;  %v795_v14 = vsub.f32 0.0, %v13306_v47  ;;  %v13326_v23 = vld [vmem:[%s17501_s5 + $0x28] sm:$0xff]  ;;  %v7883_v16 = vpop.permute.xlu1 %7882 }
 0x228   : > { %8473 = vrcp.f32 %v914_v6  ;;  %v3272_v53 = vmax.f32 %v2911_v55, %v3232_v1  ;;  %v3273_v31 = vmax.f32 %v2912_v35, %v3233_v7  ;;  %v3594_v25 = vadd.f32 %v13234_v5, %v3358_v61 }
 0x229   : > { %v3359_v15 = vsel %vm3336_vm14, %v18993_v26, %v3313_v13  ;;  %8475 = vrcp.f32 %v912_v33  ;;  %v870_v46 = vmul.f32 1.442695, %v795_v14  ;;  %vm2070_vm3 = vcmp.ge.s32.totalorder %v13326_v23, 2 }
 0x22a   : > { %v3593_v43 = vadd.f32 %v13250_v49, %v3359_v15  ;;  %v2105_v1 = vsel %vm2069_vm2, 0.0, %v18899_v32  ;;  %v2106_v35 = vsel %vm2070_vm3, 0.0, %v18899_v32  ;;  %v13336_v7 = vmax.f32 %v3273_v31, %v3594_v25  ;;  %v19000_v31 = vld [vmem:[#allocation115_spill] sm:$0xff]  ;;  %v19001_v25 = vld [vmem:[#allocation114_spill] sm:$0xff] }
 0x22b   : > { %8477 = vpow2.f32 %v870_v46  ;;  %v8191_v13 = vpack.i.bf16 %v2106_v35, %v2105_v1  ;;  %v2183_v29 = vsel %vm2147_vm5, 0.0, %v18899_v32  ;;  %v2184_v6 = vsel %vm2148_vm6, 0.0, %v18899_v32  ;;  %v19013_v49 = vld [vmem:[#allocation27_spill] sm:$0xff] }
 0x22c   : > { %v13329_v12 = vmax.f32 %v3272_v53, %v3593_v43  ;;  %v13343_v55 = vadd.f32 %v12535_v30, %v12406_v11  ;;  %v13345_v33 = vunpack.i.h.bf16 %v7883_v16  ;;  %v8186_v61 = vpack.i.bf16 %v2184_v6, %v2183_v29 }
 0x22d   : > { %8192 = vperm.xlu1 %7435, %v8191_v13   ;;  %v13347_v26 = vunpack.i.l.bf16 %v7883_v16  ;;  %v18997_v15 = vrot.slane %v12737_v3, 7  ;;  %v18999_v53 = vrot.slane %v12805_v8, 7  ;;  %v19002_v16 = vrot.slane %v12882_v36, 1 }
 0x22e   : > { %18994 = vst [vmem:[#allocation19_spill] sm:$0xff] %v13345_v33  ;;  %v793_v30 = vsub.f32 0.0, %v13343_v55  ;;  %v19003_v1 = vrot.slane %v12762_v48, 1  ;;  %8187 = vperm.xlu0 %7424, %v8186_v61   ;;  %v19005_v29 = vrot.slane %v12737_v3, 1  ;;  %v19010_v61 = vrot.slane %v12805_v8, 6 }
 0x22f   : > { %18995 = vst [vmem:[#allocation168_spill] sm:$0xff] %v13347_v26  ;;  %v2270_v52 = vsel %vm2253_vm12, %v18997_v15, %v18996_v42  ;;  %v18998_v14 = vmov %v18997_v15  ;;  %v19006_v42 = vld [vmem:[#allocation34_spill] sm:$0xff]  ;;  %vm2141_vm15 = vcmp.lt.s32.totalorder %v13311_v27, 18  ;;  %vm2142_vm0 = vcmp.lt.s32.totalorder %v13326_v23, 18 }
 0x230   : > { %v2271_v11 = vsel %vm2253_vm12, %v18999_v53, %v18998_v14  ;;  %v2517_v46 = vadd.f32 %v19001_v25, %v2270_v52  ;;  %v2630_v35 = vsel %vm2614_vm13, %v19003_v1, %v19002_v16  ;;  %v19004_v13 = vmov %v19003_v1 }
 0x231   : > { %v2516_v43 = vadd.f32 %v19000_v31, %v2271_v11  ;;  %v2631_v6 = vsel %vm2614_vm13, %v19005_v29, %v19004_v13  ;;  %v2878_v15 = vadd.f32 %v19006_v42, %v2630_v35  ;;  %v19007_v14 = vrot.slane %v12762_v48, 6  ;;  %v19011_v35 = vld [vmem:[#allocation33_spill] sm:$0xff]  ;;  %v7878_v42 = vpop.permute.xlu0 %7877  ;;  %v19012_v31 = vld [vmem:[#allocation30_spill] sm:$0xff] }
 0x232   : > { %v19008_v52 = vrot.slane %v12737_v3, 6  ;;  %v866_v1 = vmul.f32 1.442695, %v793_v30  ;;  %v2557_v13 = vmax.f32 %v12762_v48, %v2517_v46  ;;  %v2877_v29 = vadd.f32 %v19011_v35, %v2631_v6  ;;  %v8474_v60 = vpop.eup %8473 }
 0x233   : > { %v2556_v25 = vmax.f32 %v12737_v3, %v2516_v43  ;;  %v17866_v30 = vrot.slane %v12882_v36, 2  ;;  %v8476_v43 = vpop.eup %8475  ;;  %v994_v46 = vmul.f32 %v8474_v60, %v13170_v50  ;;  %v19016_v60 = vld [vmem:[#allocation77_spill] sm:$0xff]  ;;  %v19182_v58 = vrot.slane %v18808_v59, 2 }
 0x234   : > { %v2992_v53 = vsel %vm2975_vm8, %v19008_v52, %v19007_v14  ;;  %v19009_v11 = vmov %v19008_v52  ;;  %v17865_v14 = vrot.slane %v12737_v3, 2  ;;  %v3319_v52 = vrot.slane %v12762_v48, 2 }
 0x235   : > { %v2993_v16 = vsel %vm2975_vm8, %v19010_v61, %v19009_v11  ;;  %v3239_v4 = vadd.f32 %v19013_v49, %v2992_v53  ;;  %8479 = vpow2.f32 %v866_v1  ;;  %v2917_v44 = vmax.f32 %v2556_v25, %v2877_v29  ;;  %v8478_v50 = vpop.eup %8477 }
 0x236   : > { %v3238_v5 = vadd.f32 %v19012_v31, %v2993_v16  ;;  %v2918_v11 = vmax.f32 %v2557_v13, %v2878_v15  ;;  %v3353_v6 = vsel %vm3336_vm14, %v17865_v14, %v3319_v52  ;;  %v13402_v61 = vunpack.i.h.bf16 %v7878_v42  ;;  %v8309_v16 = vld [vmem:[#allocation5 + $0x40] sm:$0xff]  }
 0x237   : > { %v13404_v53 = vunpack.i.l.bf16 %v7878_v42  ;;  %v992_v49 = vmul.f32 %v8476_v43, %v13174_v51  ;;  %v3352_v15 = vsel %vm3336_vm14, %v3319_v52, %v17866_v30  ;;  %v13412_v13 = vadd.low.f32.bf16 %v994_v46, %v19016_v60  ;;  %7132 = vmatprep.subr.bf16.mxu1 %v8309_v16  ;;  %v19022_v46 = vld [vmem:[#allocation116_spill] sm:$0xff] }
 0x238   : > { %19014 = vst [vmem:[#allocation169_spill] sm:$0xff] %v13402_v61  ;;  %v3278_v1 = vmax.f32 %v2917_v44, %v3238_v5  ;;  %v3279_v25 = vmax.f32 %v2918_v11, %v3239_v4  ;;  %v3599_v29 = vadd.f32 %v13347_v26, %v3353_v6  ;;  %v3600_v14 = vadd.f32 %v13345_v33, %v3352_v15  ;;  %v19019_v4 = vld [vmem:[#allocation78_spill] sm:$0xff]  ;;  %v8310_v15 = vld [vmem:[#allocation5 + $0x48] sm:$0xff]  }
 0x239   : > { %19015 = vst [vmem:[#allocation170_spill] sm:$0xff] %v13404_v53  ;;  %v19017_v42 = vrot.slane %v12805_v8, 7  ;;  %v19018_v31 = vrot.slane %v12745_v38, 7  ;;  %v13423_v5 = vadd.low.f32.bf16 %v992_v49, %v19019_v4  ;;  %v915_v44 = vadd.f32 1.0, %v8478_v50  ;;  %7133 = vmatpush3.bf16.msra.mxu1 %v8309_v16  ;;  %v19023_v26 = vld [vmem:[#allocation119_spill] sm:$0xff] }
 0x23a   : > { %v19021_v11 = vrot.slane %v12706_v0, 7  ;;  %v13436_v49 = vmax.f32 %v3279_v25, %v3600_v14  ;;  %7134 = vmatprep.subr.bf16.mxu1 %v8310_v15  ;;  %v19024_v16 = vrot.slane %v12737_v3, 1  ;;  %v19027_v25 = vrot.slane %v12745_v38, 1 }
 0x23b   : > { %v2272_v51 = vsel %vm2253_vm12, %v19018_v31, %v19017_v42  ;;  %v19020_v52 = vmov %v19018_v31  ;;  %v13434_v42 = vmax.f32 %v3278_v1, %v3599_v29  ;;  %8481 = vrcp.f32 %v915_v44  ;;  %v19030_v31 = vld [vmem:[#allocation137_spill] sm:$0xff] }
 0x23c   : > { %v2273_v43 = vsel %vm2253_vm12, %v19021_v11, %v19020_v52  ;;  %v2515_v6 = vadd.f32 %v19022_v46, %v2272_v51  ;;  %v19025_v52 = vrot.slane %v12805_v8, 1  ;;  %v19028_v44 = vrot.slane %v12805_v8, 6 }
 0x23d   : > { %v2514_v35 = vadd.f32 %v19023_v26, %v2273_v43  ;;  %v19029_v11 = vrot.slane %v12745_v38, 6  ;;  %v19033_v46 = vrot.slane %v12706_v0, 6  ;;  %7135 = vmatpush3.bf16.msra.mxu1 %v8310_v15 }
 0x23e   : > { %v2555_v51 = vmax.f32 %v12805_v8, %v2515_v6  ;;  %v2632_v1 = vsel %vm2614_vm13, %v19025_v52, %v19024_v16  ;;  %v19026_v14 = vmov %v19025_v52  ;;  %v8311_v6 = vld [vmem:[#allocation5 + $0x50] sm:$0xff]  }
 0x23f   : > { %v2633_v29 = vsel %vm2614_vm13, %v19027_v25, %v19026_v14  ;;  %v2994_v43 = vsel %vm2975_vm8, %v19029_v11, %v19028_v44  ;;  %v2554_v50 = vmax.f32 %v12745_v38, %v2514_v35  ;;  %v19031_v16 = vld [vmem:[#allocation136_spill] sm:$0xff]  ;;  %v19032_v33 = vmov %v19029_v11  ;;  %7136 = vmatprep.subr.bf16.mxu1 %v8311_v6 }
 0x240   : > { %v2875_v30 = vadd.f32 %v19030_v31, %v2633_v29  ;;  %v2876_v52 = vadd.f32 %v19031_v16, %v2632_v1  ;;  %v2995_v14 = vsel %vm2975_vm8, %v19033_v46, %v19032_v33  ;;  %v3237_v26 = vadd.f32 %v12456_v54, %v2994_v43  ;;  %v13475_v35 = vld [vmem:[%s17501_s5 + $0x10] sm:$0xff]  ;;  %v8480_v1 = vpop.eup %8479  ;;  %v13481_v33 = vld [vmem:[%s17501_s5 + $0x18] sm:$0xff]  ;;  %v7893_v16 = vpop.permute.xlu1 %7892 }
 0x241   : > { %v3236_v25 = vadd.f32 %v12473_v56, %v2995_v14  ;;  %v3317_v44 = vrot.slane %v12805_v8, 2  ;;  %vm2067_vm10 = vcmp.ge.s32.totalorder %v13475_v35, 2  ;;  %vm2068_vm11 = vcmp.ge.s32.totalorder %v13481_v33, 2  ;;  %v8312_v46 = vld [vmem:[#allocation5 + $0x58] sm:$0xff]   ;;  %7137 = vmatpush3.bf16.msra.mxu1 %v8311_v6  ;;  %v13507_v6 = vld [vmem:[%s17498_s2] ss:$0 sm:$0xff] }
 0x242   : > { %v2915_v0 = vmax.f32 %v2554_v50, %v2875_v30  ;;  %v2916_v29 = vmax.f32 %v2555_v51, %v2876_v52  ;;  %v2103_v8 = vsel %vm2067_vm10, 0.0, %v18899_v32  ;;  %v913_v15 = vadd.f32 1.0, %v8480_v1  ;;  %7138 = vmatprep.subr.bf16.mxu1 %v8312_v46 }
 0x243   : > { %v19034_v11 = vrot.slane %v12737_v3, 2  ;;  %v19035_v14 = vrot.slane %v12745_v38, 2  ;;  %v2104_v50 = vsel %vm2068_vm11, 0.0, %v18899_v32  ;;  %v8313_v38 = vld [vmem:[#allocation5 + $0x60] sm:$0xff]   ;;  %v13511_v27 = vadd.f32 %v13507_v6, %v12567_v17 }
 0x244   : > { %v3276_v51 = vmax.f32 %v2915_v0, %v3236_v25  ;;  %v3277_v52 = vmax.f32 %v2916_v29, %v3237_v26  ;;  %8483 = vrcp.f32 %v913_v15  ;;  %v8201_v3 = vpack.i.bf16 %v2104_v50, %v2103_v8 }
 0x245   : > { %v3354_v43 = vsel %vm3336_vm14, %v3317_v44, %v19034_v11  ;;  %v3355_v30 = vsel %vm3336_vm14, %v19035_v14, %v3317_v44  ;;  %v2177_v26 = vsel %vm2141_vm15, 0.0, %v18899_v32  ;;  %v2178_v25 = vsel %vm2142_vm0, 0.0, %v18899_v32  ;;  %v8482_v23 = vpop.eup %8481  ;;  %7139 = vmatpush3.bf16.msra.mxu1 %v8312_v46 }
 0x246   : > { %v3597_v54 = vadd.f32 %v13404_v53, %v3355_v30  ;;  %v3598_v56 = vadd.f32 %v13402_v61, %v3354_v43  ;;  %8202 = vperm.xlu1 %7435, %v8201_v3   ;;  %v8196_v0 = vpack.i.bf16 %v2178_v25, %v2177_v26  ;;  %v13519_v29 = vunpack.i.l.bf16 %v7893_v16  ;;  %v19044_v3 = vld [vmem:[#allocation121_spill] sm:$0xff]  ;;  %7140 = vmatprep.subr.bf16.mxu1 %v8313_v38  ;;  %v8314_v25 = vld [vmem:[#allocation5 + $0x68] sm:$0xff]  }
 0x247   : > { %v19038_v8 = vrot.slane %v12942_v39, 7  ;;  %v19039_v15 = vrot.slane %v12849_v63, 7  ;;  %v19041_v17 = vrot.slane %v12950_v57, 7  ;;  %v19042_v14 = vrot.slane %v13076_v62, 1  ;;  %v19051_v53 = vld [vmem:[#allocation141_spill] sm:$0xff] }
 0x248   : > { %v13498_v1 = vmax.f32 %v3276_v51, %v3597_v54  ;;  %v13500_v44 = vmax.f32 %v3277_v52, %v3598_v56  ;;  %v13515_v54 = vadd.f32 %v13507_v6, %v12579_v9  ;;  %v13517_v56 = vunpack.i.h.bf16 %v7893_v16  ;;  %19037 = vst [vmem:[#allocation78_spill] sm:$0xff] %v13519_v29  ;;  %8197 = vperm.xlu0 %7424, %v8196_v0  }
 0x249   : > { %v2266_v11 = vsel %vm2253_vm12, %v19039_v15, %v19038_v8  ;;  %v19040_v43 = vmov %v19039_v15  ;;  %v19043_v30 = vrot.slane %v12942_v39, 1  ;;  %v995_v50 = vmul.f32 %v8482_v23, %v13306_v47  ;;  %v19045_v8 = vld [vmem:[#allocation120_spill] sm:$0xff]  ;;  %7141 = vmatpush3.bf16.msra.mxu1 %v8313_v38 }
 0x24a   : > { %19036 = vst [vmem:[#allocation77_spill] sm:$0xff] %v13517_v56  ;;  %v2267_v9 = vsel %vm2253_vm12, %v19041_v17, %v19040_v43  ;;  %v798_v51 = vsub.f32 0.0, %v13511_v27  ;;  %v796_v52 = vsub.f32 0.0, %v13515_v54  ;;  %v2521_v15 = vadd.f32 %v19045_v8, %v2266_v11  ;;  %7142 = vmatprep.subr.bf16.mxu1 %v8314_v25 }
 0x24b   : > { %v2626_v16 = vsel %vm2614_vm13, %v19043_v30, %v19042_v14  ;;  %v2520_v26 = vadd.f32 %v19044_v3, %v2267_v9  ;;  %v19046_v43 = vmov %v19043_v30  ;;  %v19047_v17 = vrot.slane %v12849_v63, 1  ;;  %v19048_v14 = vld [vmem:[#allocation140_spill] sm:$0xff] }
 0x24c   : > { %v2882_v47 = vadd.f32 %v19048_v14, %v2626_v16  ;;  %v19049_v0 = vrot.slane %v12942_v39, 6  ;;  %v19050_v23 = vrot.slane %v12849_v63, 6  ;;  %v13558_v30 = vadd.high.f32.bf16 %v995_v50, %v19016_v60  ;;  %v8315_v60 = vld [vmem:[#allocation5 + $0x70] sm:$0xff]  }
 0x24d   : > { %v2627_v46 = vsel %vm2614_vm13, %v19047_v17, %v19046_v43  ;;  %v876_v11 = vmul.f32 1.442695, %v798_v51  ;;  %v872_v3 = vmul.f32 1.442695, %v796_v52  ;;  %v2560_v8 = vmax.f32 %v12849_v63, %v2520_v26  ;;  %7143 = vmatpush3.bf16.msra.mxu1 %v8314_v25 }
 0x24e   : > { %v2988_v9 = vsel %vm2975_vm8, %v19050_v23, %v19049_v0  ;;  %v2561_v61 = vmax.f32 %v12942_v39, %v2521_v15  ;;  %v2881_v43 = vadd.f32 %v19051_v53, %v2627_v46  ;;  %v19052_v16 = vmov %v19050_v23  ;;  %v7888_v23 = vpop.permute.xlu0 %7887  ;;  %v8484_v46 = vpop.eup %8483  ;;  %7144 = vmatprep.subr.bf16.mxu1 %v8315_v60 }
 0x24f   : > { %v19053_v17 = vrot.slane %v12950_v57, 6  ;;  %v3243_v0 = vadd.f32 %v12480_v20, %v2988_v9  ;;  %8485 = vpow2.f32 %v876_v11  ;;  %v3322_v15 = vrot.slane %v12849_v63, 2 }
 0x250   : > { %8487 = vpow2.f32 %v872_v3  ;;  %v2921_v52 = vmax.f32 %v2560_v8, %v2881_v43  ;;  %v2922_v26 = vmax.f32 %v2561_v61, %v2882_v47  ;;  %v17879_v9 = vrot.slane %v13076_v62, 2 }
 0x251   : > { %v2989_v14 = vsel %vm2975_vm8, %v19053_v17, %v19052_v16  ;;  %v3323_v16 = vrot.slane %v12942_v39, 2  ;;  %v13576_v17 = vunpack.i.h.bf16 %v7888_v23  ;;  %v13578_v38 = vunpack.i.l.bf16 %v7888_v23  ;;  %7145 = vmatpush3.bf16.msra.mxu1 %v8315_v60  ;;  %v19074_v60 = vld [vmem:[#allocation142_spill] sm:$0xff] }
 0x252   : > { %v3242_v51 = vadd.f32 %v12483_v10, %v2989_v14  ;;  %v993_v11 = vmul.f32 %v8484_v46, %v13343_v55  ;;  %v3283_v14 = vmax.f32 %v2922_v26, %v3243_v0  ;;  %v19056_v3 = vrot.slane %v12950_v57, 7 }
 0x253   : > { %19054 = vst [vmem:[#allocation171_spill] sm:$0xff] %v13576_v17  ;;  %19055 = vst [vmem:[#allocation172_spill] sm:$0xff] %v13578_v38  ;;  %v19057_v61 = vrot.slane %v12882_v36, 7  ;;  %v3348_v47 = vsel %vm3336_vm14, %v3323_v16, %v17879_v9  ;;  %v3349_v43 = vsel %vm3336_vm14, %v3322_v15, %v3323_v16  ;;  %v19059_v0 = vrot.slane %v12762_v48, 7 }
 0x254   : > { %v3282_v50 = vmax.f32 %v2921_v52, %v3242_v51  ;;  %v19060_v51 = vld [vmem:[#allocation63_spill] sm:$0xff]  ;;  %v13601_v25 = vadd.high.f32.bf16 %v993_v11, %v19019_v4  ;;  %v3603_v26 = vadd.f32 %v13519_v29, %v3349_v43  ;;  %v3604_v46 = vadd.f32 %v13517_v56, %v3348_v47  ;;  %v19070_v29 = vld [vmem:[#allocation145_spill] sm:$0xff] }
 0x255   : > { %v2268_v8 = vsel %vm2253_vm12, %v19057_v61, %v19056_v3  ;;  %v19058_v55 = vmov %v19057_v61  ;;  %v19061_v3 = vld [vmem:[#allocation59_spill] sm:$0xff]  ;;  %v19062_v9 = vrot.slane %v12849_v63, 1  ;;  %v19063_v10 = vrot.slane %v12950_v57, 1 }
 0x256   : > { %v2269_v23 = vsel %vm2253_vm12, %v19059_v0, %v19058_v55  ;;  %v2519_v52 = vadd.f32 %v19060_v51, %v2268_v8  ;;  %v19065_v4 = vrot.slane %v12882_v36, 1  ;;  %v19066_v47 = vrot.slane %v12950_v57, 6 }
 0x257   : > { %v2518_v61 = vadd.f32 %v19061_v3, %v2269_v23  ;;  %v2628_v55 = vsel %vm2614_vm13, %v19063_v10, %v19062_v9  ;;  %v19064_v8 = vmov %v19063_v10  ;;  %v19067_v43 = vrot.slane %v12882_v36, 6  ;;  %v8316_v23 = vld [vmem:[#allocation5 + $0x78] sm:$0xff]   ;;  %v19181_v3 = vld [vmem:[#allocation50_spill] sm:$0xff] }
 0x258   : > { %v2559_v16 = vmax.f32 %v12950_v57, %v2519_v52  ;;  %v2629_v11 = vsel %vm2614_vm13, %v19065_v4, %v19064_v8  ;;  %v13627_v52 = vmax.f32 %v3282_v50, %v3603_v26  ;;  %v13629_v10 = vmax.f32 %v3283_v14, %v3604_v46  ;;  %v19071_v4 = vld [vmem:[#allocation144_spill] sm:$0xff]  ;;  %7146 = vmatprep.subr.bf16.mxu1 %v8316_v23 }
 0x259   : > { %v2990_v0 = vsel %vm2975_vm8, %v19067_v43, %v19066_v47  ;;  %v2558_v9 = vmax.f32 %v12882_v36, %v2518_v61  ;;  %v2879_v8 = vadd.f32 %v19070_v29, %v2629_v11  ;;  %v2880_v53 = vadd.f32 %v19071_v4, %v2628_v55  ;;  %v8486_v46 = vpop.eup %8485  ;;  %7147 = vmatpush3.bf16.msra.mxu1 %v8316_v23 }
 0x25a   : > { %19068 = vst [vmem:[#allocation173_spill] sm:$0xff] %v13627_v52  ;;  %19069 = vst [vmem:[#allocation174_spill] sm:$0xff] %v13629_v10  ;;  %v19072_v56 = vmov %v19067_v43  ;;  %v19073_v20 = vrot.slane %v12762_v48, 6  ;;  %v3241_v50 = vadd.f32 %v12486_v40, %v2990_v0  ;;  %v3321_v14 = vrot.slane %v12950_v57, 2  ;;  %v13650_v48 = vld [vmem:[%s17501_s5 + $0xe0] sm:$0xff]  ;;  %v8488_v57 = vpop.eup %8487 }
 0x25b   : > { %v13645_v26 = vadd.f32 %v13507_v6, %v19074_v60  ;;  %v2919_v61 = vmax.f32 %v2558_v9, %v2879_v8  ;;  %v2920_v55 = vmax.f32 %v2559_v16, %v2880_v53  ;;  %vm1861_vm7 = vcmp.lt.s32.totalorder %v13650_v48, 19 }
 0x25c   : > { %v2991_v47 = vsel %vm2975_vm8, %v19073_v20, %v19072_v56  ;;  %v13656_v20 = vld [vmem:[%s17501_s5 + $0xe8] sm:$0xff]  ;;  %v918_v56 = vadd.f32 1.0, %v8486_v46  ;;  %v3350_v11 = vsel %vm3336_vm14, %v3321_v14, %v3322_v15  ;;  %v19075_v53 = vrot.slane %v12882_v36, 2  ;;  %v7903_v36 = vpop.permute.xlu1 %7902 }
 0x25d   : > { %v3240_v43 = vadd.f32 %v12491_v18, %v2991_v47  ;;  %vm1862_vm1 = vcmp.lt.s32.totalorder %v13656_v20, 19  ;;  %v799_v0 = vsub.f32 0.0, %v13645_v26  ;;  %v916_v9 = vadd.f32 1.0, %v8488_v57 }
 0x25e   : > { %v3351_v16 = vsel %vm3336_vm14, %v19075_v53, %v3321_v14  ;;  %v3281_v47 = vmax.f32 %v2920_v55, %v3241_v50  ;;  %8489 = vrcp.f32 %v918_v56  ;;  %v3602_v63 = vadd.f32 %v13576_v17, %v3350_v11 }
 0x25f   : > { %v3280_v8 = vmax.f32 %v2919_v61, %v3240_v43  ;;  %v3601_v60 = vadd.f32 %v13578_v38, %v3351_v16  ;;  %v878_v46 = vmul.f32 1.442695, %v799_v0  ;;  %v1897_v15 = vsel %vm1861_vm7, 0.0, %v18899_v32  ;;  %v19084_v0 = vld [vmem:[#allocation122_spill] sm:$0xff] }
 0x260   : > { %8491 = vrcp.f32 %v916_v9  ;;  %v1898_v43 = vsel %vm1862_vm1, 0.0, %v18899_v32  ;;  %vm2139_vm4 = vcmp.lt.s32.totalorder %v13475_v35, 18  ;;  %v13677_v50 = vmax.f32 %v3281_v47, %v3602_v63 }
 0x261   : > { %v13671_v40 = vmax.f32 %v3280_v8, %v3601_v60  ;;  %8493 = vpow2.f32 %v878_v46  ;;  %v8211_v14 = vpack.i.bf16 %v1898_v43, %v1897_v15  ;;  %vm2140_vm9 = vcmp.lt.s32.totalorder %v13481_v33, 18  ;;  %v19085_v8 = vld [vmem:[#allocation65_spill] sm:$0xff] }
 0x262   : > { %19077 = vst [vmem:[#allocation175_spill] sm:$0xff] %v13677_v50  ;;  %v2175_v61 = vsel %vm2139_vm4, 0.0, %v18899_v32  ;;  %v2176_v55 = vsel %vm2140_vm9, 0.0, %v18899_v32  ;;  %v13684_v57 = vadd.f32 %v13507_v6, %v12708_v41  ;;  %v13686_v56 = vunpack.i.h.bf16 %v7903_v36 }
 0x263   : > { %19076 = vst [vmem:[#allocation142_spill] sm:$0xff] %v13671_v40  ;;  %8212 = vperm.xlu1 %7435, %v8211_v14   ;;  %v8206_v35 = vpack.i.bf16 %v2176_v55, %v2175_v61  ;;  %v13688_v11 = vunpack.i.l.bf16 %v7903_v36  ;;  %v19080_v63 = vrot.slane %v13229_v28, 7  ;;  %v19081_v53 = vrot.slane %v13064_v34, 7  ;;  %v19090_v61 = vld [vmem:[#allocation146_spill] sm:$0xff] }
 0x264   : > { %19078 = vst [vmem:[#allocation176_spill] sm:$0xff] %v13686_v56  ;;  %v19083_v16 = vrot.slane %v13240_v2, 7  ;;  %v797_v6 = vsub.f32 0.0, %v13684_v57  ;;  %v19086_v60 = vrot.slane %v13423_v5, 1  ;;  %v19087_v46 = vrot.slane %v13229_v28, 1 }
 0x265   : > { %19079 = vst [vmem:[#allocation177_spill] sm:$0xff] %v13688_v11  ;;  %v2262_v33 = vsel %vm2253_vm12, %v19081_v53, %v19080_v63  ;;  %v19082_v23 = vmov %v19081_v53  ;;  %8207 = vperm.xlu0 %7424, %v8206_v35   ;;  %v19089_v43 = vrot.slane %v13064_v34, 1  ;;  %v19091_v63 = vrot.slane %v13229_v28, 6 }
 0x266   : > { %v2263_v41 = vsel %vm2253_vm12, %v19083_v16, %v19082_v23  ;;  %v2525_v47 = vadd.f32 %v19085_v8, %v2262_v33  ;;  %v2622_v15 = vsel %vm2614_vm13, %v19087_v46, %v19086_v60  ;;  %v19088_v36 = vmov %v19087_v46 }
 0x267   : > { %v2524_v9 = vadd.f32 %v19084_v0, %v2263_v41  ;;  %v2623_v14 = vsel %vm2614_vm13, %v19089_v43, %v19088_v36  ;;  %v2886_v55 = vadd.f32 %v19090_v61, %v2622_v15  ;;  %v19092_v53 = vrot.slane %v13064_v34, 6  ;;  %v19095_v15 = vld [vmem:[#allocation147_spill] sm:$0xff]  ;;  %v7898_v43 = vpop.permute.xlu0 %7897  ;;  %v19097_v0 = vld [vmem:[#allocation56_spill] sm:$0xff] }
 0x268   : > { %v19094_v35 = vrot.slane %v13240_v2, 6  ;;  %v874_v41 = vmul.f32 1.442695, %v797_v6  ;;  %v2565_v46 = vmax.f32 %v13229_v28, %v2525_v47  ;;  %v2885_v36 = vadd.f32 %v19095_v15, %v2623_v14  ;;  %v19096_v61 = vld [vmem:[#allocation55_spill] sm:$0xff] }
 0x269   : > { %v2984_v33 = vsel %vm2975_vm8, %v19092_v53, %v19091_v63  ;;  %v19093_v23 = vmov %v19092_v53  ;;  %v2564_v60 = vmax.f32 %v13064_v34, %v2524_v9  ;;  %v3326_v63 = vrot.slane %v13064_v34, 2 }
 0x26a   : > { %v2985_v16 = vsel %vm2975_vm8, %v19094_v35, %v19093_v23  ;;  %v3247_v17 = vadd.f32 %v19097_v0, %v2984_v33  ;;  %v3327_v53 = vrot.slane %v13229_v28, 2  ;;  %8495 = vpow2.f32 %v874_v41  ;;  %v8490_v23 = vpop.eup %8489 }
 0x26b   : > { %v3246_v8 = vadd.f32 %v19096_v61, %v2985_v16  ;;  %v2925_v38 = vmax.f32 %v2564_v60, %v2885_v36  ;;  %v2926_v18 = vmax.f32 %v2565_v46, %v2886_v55  ;;  %v17896_v6 = vrot.slane %v13423_v5, 2  ;;  %v8492_v41 = vpop.eup %8491 }
 0x26c   : > { %v3345_v9 = vsel %vm3336_vm14, %v3326_v63, %v3327_v53  ;;  %v13740_v47 = vunpack.i.h.bf16 %v7898_v43  ;;  %v13742_v14 = vunpack.i.l.bf16 %v7898_v43  ;;  %v19100_v35 = vrot.slane %v13240_v2, 7  ;;  %v8494_v0 = vpop.eup %8493 }
 0x26d   : > { %v19101_v33 = vrot.slane %v13076_v62, 7  ;;  %v998_v55 = vmul.f32 %v8490_v23, %v13511_v27  ;;  %v3286_v60 = vmax.f32 %v2925_v38, %v3246_v8  ;;  %v3287_v46 = vmax.f32 %v2926_v18, %v3247_v17  ;;  %v19104_v18 = vld [vmem:[#allocation79_spill] sm:$0xff]  ;;  %v19106_v23 = vld [vmem:[#allocation125_spill] sm:$0xff] }
 0x26e   : > { %19098 = vst [vmem:[#allocation178_spill] sm:$0xff] %v13740_v47  ;;  %19099 = vst [vmem:[#allocation179_spill] sm:$0xff] %v13742_v14  ;;  %v3344_v36 = vsel %vm3336_vm14, %v3327_v53, %v17896_v6  ;;  %v996_v43 = vmul.f32 %v8492_v41, %v13515_v54  ;;  %v3607_v15 = vadd.f32 %v13688_v11, %v3345_v9  ;;  %v919_v38 = vadd.f32 1.0, %v8494_v0  ;;  %v19105_v8 = vld [vmem:[#allocation67_spill] sm:$0xff]  ;;  %v19107_v54 = vld [vmem:[#allocation82_spill] sm:$0xff] }
 0x26f   : > { %v2264_v16 = vsel %vm2253_vm12, %v19101_v33, %v19100_v35  ;;  %v3608_v61 = vadd.f32 %v13686_v56, %v3344_v36  ;;  %v19102_v4 = vmov %v19101_v33  ;;  %v19103_v35 = vrot.slane %v12942_v39, 7 }
 0x270   : > { %v13765_v17 = vadd.low.f32.bf16 %v998_v55, %v19104_v18  ;;  %v2523_v33 = vadd.f32 %v19106_v23, %v2264_v16  ;;  %v13770_v41 = vadd.low.f32.bf16 %v996_v43, %v19107_v54  ;;  %v13772_v9 = vmax.f32 %v3286_v60, %v3607_v15  ;;  %v19118_v15 = vld [vmem:[#allocation58_spill] sm:$0xff] }
 0x271   : > { %v2265_v27 = vsel %vm2253_vm12, %v19103_v35, %v19102_v4  ;;  %v13774_v36 = vmax.f32 %v3287_v46, %v3608_v61  ;;  %v19108_v6 = vrot.slane %v13064_v34, 1  ;;  %v19109_v56 = vrot.slane %v13240_v2, 1  ;;  %v19113_v35 = vld [vmem:[#allocation149_spill] sm:$0xff] }
 0x272   : > { %v2522_v53 = vadd.f32 %v19105_v8, %v2265_v27  ;;  %8497 = vrcp.f32 %v919_v38  ;;  %v2563_v61 = vmax.f32 %v13240_v2, %v2523_v33  ;;  %v19111_v60 = vrot.slane %v13076_v62, 1 }
 0x273   : > { %v2624_v4 = vsel %vm2614_vm13, %v19109_v56, %v19108_v6  ;;  %v19110_v34 = vmov %v19109_v56  ;;  %v19112_v6 = vld [vmem:[#allocation150_spill] sm:$0xff]  ;;  %v19114_v38 = vrot.slane %v13240_v2, 6  ;;  %v19117_v55 = vrot.slane %v12942_v39, 6 }
 0x274   : > { %v2562_v16 = vmax.f32 %v13076_v62, %v2522_v53  ;;  %v2625_v56 = vsel %vm2614_vm13, %v19111_v60, %v19110_v34  ;;  %v2884_v27 = vadd.f32 %v19113_v35, %v2624_v4  ;;  %v19115_v53 = vrot.slane %v13076_v62, 6  ;;  %v19119_v60 = vld [vmem:[#allocation151_spill] sm:$0xff]  ;;  %v8496_v11 = vpop.eup %8495 }
 0x275   : > { %v2883_v46 = vadd.f32 %v19112_v6, %v2625_v56  ;;  %v3325_v4 = vrot.slane %v13240_v2, 2  ;;  %vm2093_vm2 = vcmp.ge.s32.totalorder %v13650_v48, 2  ;;  %vm2094_vm3 = vcmp.ge.s32.totalorder %v13656_v20, 2 }
 0x276   : > { %v2986_v43 = vsel %vm2975_vm8, %v19115_v53, %v19114_v38  ;;  %v19116_v33 = vmov %v19115_v53  ;;  %v2924_v6 = vmax.f32 %v2563_v61, %v2884_v27  ;;  %v2129_v38 = vsel %vm2093_vm2, 0.0, %v18899_v32  ;;  %v13825_v27 = vpop.permute.xlu0 %7907 }
 0x277   : > { %v2987_v0 = vsel %vm2975_vm8, %v19117_v55, %v19116_v33  ;;  %v3245_v56 = vadd.f32 %v19119_v60, %v2986_v43  ;;  %v2923_v35 = vmax.f32 %v2562_v16, %v2883_v46  ;;  %v917_v53 = vadd.f32 1.0, %v8496_v11  ;;  %v13821_v43 = vpop.permute.xlu1 %7912  ;;  %19122 = vst [vmem:[#allocation82_spill] sm:$0xff] %v13825_v27 }
 0x278   : > { %v3244_v34 = vadd.f32 %v19118_v15, %v2987_v0  ;;  %v3346_v39 = vsel %vm3336_vm14, %v3325_v4, %v3326_v63  ;;  %v19120_v55 = vrot.slane %v13076_v62, 2  ;;  %v2130_v2 = vsel %vm2094_vm3, 0.0, %v18899_v32  ;;  %19121 = vst [vmem:[#allocation79_spill] sm:$0xff] %v13821_v43  ;;  %v13830_v62 = vld [vmem:[%s17501_s5 + $0xf0] sm:$0xff]  ;;  %v13836_v63 = vld [vmem:[%s17501_s5 + $0xf8] sm:$0xff] }
 0x279   : > { %v3285_v16 = vmax.f32 %v2924_v6, %v3245_v56  ;;  %v3606_v46 = vadd.f32 %v13740_v47, %v3346_v39  ;;  %8499 = vrcp.f32 %v917_v53  ;;  %v8221_v11 = vpack.i.bf16 %v2130_v2, %v2129_v38 }
 0x27a   : > { %v3347_v0 = vsel %vm3336_vm14, %v19120_v55, %v3325_v4  ;;  %v3284_v33 = vmax.f32 %v2923_v35, %v3244_v34  ;;  %vm1863_vm5 = vcmp.lt.s32.totalorder %v13830_v62, 19  ;;  %vm1864_vm6 = vcmp.lt.s32.totalorder %v13836_v63, 19 }
 0x27b   : > { %v3605_v61 = vadd.f32 %v13742_v14, %v3347_v0  ;;  %v13841_v35 = vmax.f32 %v3285_v16, %v3606_v46  ;;  %v1899_v34 = vsel %vm1863_vm5, 0.0, %v18899_v32  ;;  %v1900_v56 = vsel %vm1864_vm6, 0.0, %v18899_v32  ;;  %8222 = vperm.xlu1 %7435, %v8221_v11   ;;  %v19127_v46 = vld [vmem:[#allocation22_spill] sm:$0xff] }
 0x27c   : > { %v8216_v4 = vpack.i.bf16 %v1900_v56, %v1899_v34  ;;  %v19123_v39 = vrot.slane %v13558_v30, 7  ;;  %v19124_v55 = vrot.slane %v13412_v13, 7  ;;  %v8498_v2 = vpop.eup %8497  ;;  %v19126_v16 = vrot.slane %v13601_v25, 7 }
 0x27d   : > { %v13839_v6 = vmax.f32 %v3284_v33, %v3605_v61  ;;  %v19128_v11 = vunpack.i.h.bf16 %v19127_v46  ;;  %v19129_v56 = vrot.slane %v13770_v41, 1  ;;  %v19130_v38 = vrot.slane %v13558_v30, 1 }
 0x27e   : > { %v2258_v0 = vsel %vm2253_vm12, %v19124_v55, %v19123_v39  ;;  %v19125_v33 = vmov %v19124_v55  ;;  %v19132_v55 = vrot.slane %v13412_v13, 1  ;;  %v999_v14 = vmul.f32 %v8498_v2, %v13645_v26  ;;  %8217 = vperm.xlu0 %7424, %v8216_v4   ;;  %v13886_v4 = vpop.permute.xlu0 %7917 }
 0x27f   : > { %v2259_v61 = vsel %vm2253_vm12, %v19126_v16, %v19125_v33  ;;  %v2529_v34 = vadd.f32 %v19128_v11, %v2258_v0  ;;  %v2618_v53 = vsel %vm2614_vm13, %v19130_v38, %v19129_v56  ;;  %v19131_v39 = vmov %v19130_v38  ;;  %v19134_v16 = vld [vmem:[#allocation148_spill] sm:$0xff]  ;;  %v13880_v38 = vpop.permute.xlu1 %7922  ;;  %19137 = vst [vmem:[#allocation180_spill] sm:$0xff] %v13886_v4 }
 0x280   : > { %v2619_v47 = vsel %vm2614_vm13, %v19132_v55, %v19131_v39  ;;  %v19133_v33 = vunpack.i.l.bf16 %v19127_v46  ;;  %v19135_v11 = vunpack.i.l.bf16 %v19134_v16  ;;  %v19136_v23 = vunpack.i.h.bf16 %v19134_v16 }
 0x281   : > { %v2569_v56 = vmax.f32 %v13558_v30, %v2529_v34  ;;  %v2968_v8 = vrot.slane %v13601_v25, 6  ;;  %v2969_v39 = vrot.slane %v13412_v13, 6  ;;  %v17907_v26 = vrot.slane %v13558_v30, 6 }
 0x282   : > { %v2528_v0 = vadd.f32 %v19133_v33, %v2259_v61  ;;  %v2889_v60 = vadd.f32 %v19135_v11, %v2619_v47  ;;  %v2890_v15 = vadd.f32 %v19136_v23, %v2618_v53  ;;  %v13889_v2 = vadd.high.f32.bf16 %v999_v14, %v19104_v18  ;;  %v19138_v11 = vld [vmem:[#allocation109_spill] sm:$0xff] }
 0x283   : > { %v3330_v61 = vrot.slane %v13412_v13, 2  ;;  %v3331_v23 = vrot.slane %v13558_v30, 2  ;;  %v2980_v34 = vsel %vm2975_vm8, %v2969_v39, %v17907_v26  ;;  %v2981_v55 = vsel %vm2975_vm8, %v2968_v8, %v2969_v39  ;;  %v8500_v14 = vpop.eup %8499 }
 0x284   : > { %v2568_v47 = vmax.f32 %v13412_v13, %v2528_v0  ;;  %v2930_v53 = vmax.f32 %v2569_v56, %v2890_v15  ;;  %v17908_v33 = vrot.slane %v13770_v41, 2  ;;  %v19139_v16 = vunpack.i.l.bf16 %v19138_v11 }
 0x285   : > { %v19140_v15 = vunpack.i.h.bf16 %v19138_v11  ;;  %v3341_v39 = vsel %vm3336_vm14, %v3330_v61, %v3331_v23  ;;  %v997_v18 = vmul.f32 %v8500_v14, %v13684_v57  ;;  %v19143_v11 = vrot.slane %v13601_v25, 7  ;;  %v19148_v57 = vld [vmem:[#allocation39_spill] sm:$0xff] }
 0x286   : > { %v2929_v0 = vmax.f32 %v2568_v47, %v2889_v60  ;;  %v3250_v46 = vadd.f32 %v19139_v16, %v2981_v55  ;;  %v3340_v26 = vsel %vm3336_vm14, %v3331_v23, %v17908_v33  ;;  %v19141_v60 = vunpack.i.l.bf16 %v13821_v43 }
 0x287   : > { %v3251_v56 = vadd.f32 %v19140_v15, %v2980_v34  ;;  %v19142_v16 = vunpack.i.h.bf16 %v13821_v43  ;;  %v13919_v15 = vpop.permute.xlu1 %7932  ;;  %v19144_v23 = vrot.slane %v13423_v5, 7  ;;  %v19151_v34 = vrot.slane %v13412_v13, 1 }
 0x288   : > { %v3290_v51 = vmax.f32 %v2929_v0, %v3250_v46  ;;  %v3611_v47 = vadd.f32 %v19141_v60, %v3341_v39  ;;  %v19146_v39 = vrot.slane %v13229_v28, 7  ;;  %v13934_v60 = vpop.permute.xlu0 %7927  ;;  %v13949_v43 = vadd.high.f32.bf16 %v997_v18, %v19107_v54 }
 0x289   : > { %v3612_v55 = vadd.f32 %v19142_v16, %v3340_v26  ;;  %v3291_v33 = vmax.f32 %v2930_v53, %v3251_v56  ;;  %v2260_v46 = vsel %vm2253_vm12, %v19144_v23, %v19143_v11  ;;  %v19145_v0 = vmov %v19144_v23 }
 0x28a   : > { %v2261_v26 = vsel %vm2253_vm12, %v19146_v39, %v19145_v0  ;;  %v13936_v16 = vmax.f32 %v3290_v51, %v3611_v47  ;;  %v19149_v53 = vunpack.i.l.bf16 %v19148_v57  ;;  %v19150_v56 = vunpack.i.h.bf16 %v19148_v57 }
 0x28b   : > { %v19152_v11 = vrot.slane %v13601_v25, 1  ;;  %v13951_v0 = vmax.f32 %v3291_v33, %v3612_v55  ;;  %v19155_v47 = vrot.slane %v13423_v5, 1  ;;  %v2967_v33 = vrot.slane %v13423_v5, 6 }
 0x28c   : > { %19147 = vst [vmem:[#allocation181_spill] sm:$0xff] %v13936_v16  ;;  %v2526_v14 = vadd.f32 %v19149_v53, %v2261_v26  ;;  %v2527_v29 = vadd.f32 %v19150_v56, %v2260_v46  ;;  %v19156_v46 = vld [vmem:[#allocation81_spill] sm:$0xff]  ;;  %v2248_v18 = vrot.slane %v13949_v43, 7  ;;  %vm2096_vm10 = vcmp.ge.s32.totalorder %v13836_v63, 2 }
 0x28d   : > { %v2620_v23 = vsel %vm2614_vm13, %v19152_v11, %v19151_v34  ;;  %19153 = vst [vmem:[#allocation182_spill] sm:$0xff] %v13951_v0  ;;  %v19154_v51 = vmov %v19152_v11  ;;  %v19157_v26 = vunpack.i.h.bf16 %v19156_v46  ;;  %v19158_v34 = vunpack.i.l.bf16 %v19156_v46 }
 0x28e   : > { %v2621_v39 = vsel %vm2614_vm13, %v19155_v47, %v19154_v51  ;;  %v2566_v53 = vmax.f32 %v13423_v5, %v2526_v14  ;;  %v2567_v56 = vmax.f32 %v13601_v25, %v2527_v29  ;;  %v3329_v11 = vrot.slane %v13601_v25, 2 }
 0x28f   : > { %v2888_v13 = vadd.f32 %v19157_v26, %v2620_v23  ;;  %v2887_v54 = vadd.f32 %v19158_v34, %v2621_v39  ;;  %v2982_v14 = vsel %vm2975_vm8, %v2967_v33, %v2968_v8  ;;  %v19159_v29 = vrot.slane %v13229_v28, 6  ;;  %v13976_v39 = vpop.permute.xlu1 %7942  ;;  %v13978_v26 = vld [vmem:[#allocation5] sm:$0xff]  }
 0x290   : > { %19160 = vst [vmem:[#allocation183_spill] sm:$0xff] %v13976_v39  ;;  %19161 = vst [vmem:[#allocation184_spill] sm:$0xff] %v13978_v26  ;;  %v19162_v34 = vld [vmem:[#allocation46_spill] sm:$0xff]  ;;  %v19165_v8 = vrot.slane %v13423_v5, 2  ;;  %vm2165_vm11 = vcmp.lt.s32.totalorder %v13650_v48, 18  ;;  %7164 = vmatprep.subr.bf16.mxu1 %v13978_v26  ;;  %vm2095_vm0 = vcmp.ge.s32.totalorder %v13830_v62, 2 }
 0x291   : > { %v2927_v51 = vmax.f32 %v2566_v53, %v2887_v54  ;;  %v2928_v47 = vmax.f32 %v2567_v56, %v2888_v13  ;;  %v2983_v23 = vsel %vm2975_vm8, %v19159_v29, %v2967_v33  ;;  %v19163_v55 = vunpack.i.l.bf16 %v19162_v34  ;;  %v13990_v53 = vpop.permute.xlu0 %7937 }
 0x292   : > { %v19164_v25 = vunpack.i.h.bf16 %v19162_v34  ;;  %v3342_v13 = vsel %vm3336_vm14, %v3329_v11, %v3330_v61  ;;  %v3343_v28 = vsel %vm3336_vm14, %v19165_v8, %v3329_v11  ;;  %19166 = vst [vmem:[#allocation185_spill] sm:$0xff] %v13990_v53  ;;  %v19167_v56 = vunpack.i.l.bf16 %v13825_v27  ;;  %v14003_v11 = vld [vmem:[%s17501_s5 + $0x100] sm:$0xff] }
 0x293   : > { %v3248_v46 = vadd.f32 %v19163_v55, %v2983_v23  ;;  %v19168_v33 = vunpack.i.h.bf16 %v13825_v27  ;;  %v2132_v55 = vsel %vm2096_vm10, 0.0, %v18899_v32  ;;  %v2201_v5 = vsel %vm2165_vm11, 0.0, %v18899_v32 }
 0x294   : > { %v3249_v57 = vadd.f32 %v19164_v25, %v2982_v14  ;;  %v3609_v54 = vadd.f32 %v19167_v56, %v3343_v28  ;;  %vm1865_vm15 = vcmp.lt.s32.totalorder %v14003_v11, 19  ;;  %v8231_v23 = vpack.i.bf16 %v2201_v5, %v2132_v55  ;;  %v14029_v55 = vpop.permute.xlu1 %7952 }
 0x295   : > { %v3610_v29 = vadd.f32 %v19168_v33, %v3342_v13  ;;  %v3288_v61 = vmax.f32 %v2927_v51, %v3248_v46  ;;  %v1901_v25 = vsel %vm1865_vm15, 0.0, %v18899_v32  ;;  %v19171_v51 = vrot.slane %v13889_v2, 7 }
 0x296   : > { %v3289_v14 = vmax.f32 %v2928_v47, %v3249_v57  ;;  %v2131_v57 = vsel %vm2095_vm0, 0.0, %v18899_v32  ;;  %8232 = vperm.xlu1 %7435, %v8231_v23   ;;  %v19172_v47 = vrot.slane %v13765_v17, 7  ;;  %v19175_v33 = vrot.slane %v13765_v17, 1 }
 0x297   : > { %v14008_v13 = vmax.f32 %v3288_v61, %v3609_v54  ;;  %v8226_v46 = vpack.i.bf16 %v2131_v57, %v1901_v25  ;;  %v19174_v54 = vrot.slane %v13889_v2, 1  ;;  %v19176_v61 = vld [vmem:[#allocation49_spill] sm:$0xff]  ;;  %v19177_v23 = vrot.slane %v18808_v59, 1 }
 0x298   : > { %v14010_v48 = vmax.f32 %v3289_v14, %v3610_v29  ;;  %v2254_v8 = vsel %vm2253_vm12, %v19172_v47, %v19171_v51  ;;  %v19173_v28 = vmov %v19172_v47  ;;  %v19179_v51 = vld [vmem:[#allocation80_spill] sm:$0xff]  ;;  %v3334_v34 = vrot.slane %v13765_v17, 2 }
 0x299   : > { %19169 = vst [vmem:[#allocation186_spill] sm:$0xff] %v14008_v13  ;;  %v2255_v56 = vsel %vm2253_vm12, %v2248_v18, %v19173_v28  ;;  %v2615_v29 = vsel %vm2614_vm13, %v19175_v33, %v19174_v54  ;;  %v8721_v5 = vadd.high.f32.bf16 %v2254_v8, %v19176_v61  ;;  %v19178_v25 = vmov %v19174_v54  ;;  %v14040_v28 = vpop.permute.xlu0 %7947 }
 0x29a   : > { %19170 = vst [vmem:[#allocation187_spill] sm:$0xff] %v14010_v48  ;;  %v8720_v14 = vadd.low.f32.bf16 %v2255_v56, %v19176_v61  ;;  %v2654_v57 = vsel %vm2614_vm13, %v19178_v25, %v19177_v23  ;;  %v8722_v47 = vadd.low.f32.bf16 %v2615_v29, %v19179_v51  ;;  %19180 = vst [vmem:[#allocation49_spill] sm:$0xff] %v14040_v28  ;;  %8227 = vperm.xlu0 %7424, %v8226_v46   ;;  %v19186_v25 = vld [vmem:[#allocation117_spill] sm:$0xff] }
 0x29b   : > { %v8723_v54 = vadd.high.f32.bf16 %v2654_v57, %v19179_v51  ;;  %v2972_v33 = vrot.slane %v13949_v43, 6  ;;  %v2973_v56 = vrot.slane %v13765_v17, 6  ;;  %v17918_v8 = vrot.slane %v13889_v2, 6 }
 0x29c   : > { %v2572_v61 = vmax.f32 %v13765_v17, %v8720_v14  ;;  %v2573_v27 = vmax.f32 %v13889_v2, %v8721_v5  ;;  %v3335_v23 = vrot.slane %v13889_v2, 2  ;;  %v19187_v16 = vunpack.i.l.bf16 %v19186_v25 }
 0x29d   : > { %v2976_v46 = vsel %vm2975_vm8, %v2973_v56, %v17918_v8  ;;  %v2977_v29 = vsel %vm2975_vm8, %v2972_v33, %v2973_v56  ;;  %v19183_v8 = vrot.slane %v13770_v41, 7  ;;  %v19188_v0 = vrot.slane %v13765_v17, 1 }
 0x29e   : > { %v2933_v57 = vmax.f32 %v2572_v61, %v8722_v47  ;;  %v2934_v51 = vmax.f32 %v2573_v27, %v8723_v54  ;;  %v8724_v14 = vadd.low.f32.bf16 %v2977_v29, %v19181_v3  ;;  %v8725_v5 = vadd.high.f32.bf16 %v2976_v46, %v19181_v3  ;;  %v14075_v54 = vpop.permute.xlu1 %7962 }
 0x29f   : > { %v3337_v31 = vsel %vm3336_vm14, %v3334_v34, %v3335_v23  ;;  %v3376_v26 = vsel %vm3336_vm14, %v3335_v23, %v19182_v58  ;;  %v2256_v56 = vsel %vm2253_vm12, %v19183_v8, %v2248_v18  ;;  %v19184_v47 = vmov %v19183_v8  ;;  %v14079_v23 = vpop.permute.xlu0 %7957 }
 0x2a0   : > { %v19185_v27 = vrot.slane %v13558_v30, 7  ;;  %v3294_v61 = vmax.f32 %v2933_v57, %v8724_v14  ;;  %v3295_v46 = vmax.f32 %v2934_v51, %v8725_v5  ;;  %v8726_v29 = vadd.low.f32.bf16 %v3337_v31, %v13880_v38 }
 0x2a1   : > { %v8727_v58 = vadd.high.f32.bf16 %v3376_v26, %v13880_v38  ;;  %v8728_v8 = vadd.high.f32.bf16 %v2256_v56, %v19186_v25  ;;  %v19189_v48 = vrot.slane %v13949_v43, 1  ;;  %v19191_v31 = vrot.slane %v13770_v41, 1 }
 0x2a2   : > { %v2257_v3 = vsel %vm2253_vm12, %v19185_v27, %v19184_v47  ;;  %v14096_v26 = vmax.f32 %v3294_v61, %v8726_v29  ;;  %v3333_v27 = vrot.slane %v13949_v43, 2  ;;  %vm2097_vm7 = vcmp.ge.s32.totalorder %v14003_v11, 2 }
 0x2a3   : > { %v2530_v18 = vadd.f32 %v19187_v16, %v2257_v3  ;;  %v2616_v47 = vsel %vm2614_vm13, %v19189_v48, %v19188_v0  ;;  %v19190_v57 = vmov %v19189_v48  ;;  %v14098_v51 = vmax.f32 %v3295_v46, %v8727_v58  ;;  %v19194_v16 = vld [vmem:[#allocation85_spill] sm:$0xff]  ;;  %v14112_v3 = vld [vmem:[%s17501_s5 + $0x108] sm:$0xff] }
 0x2a4   : > { %v2617_v38 = vsel %vm2614_vm13, %v19191_v31, %v19190_v57  ;;  %19192 = vst [vmem:[#allocation80_spill] sm:$0xff] %v14096_v26  ;;  %v19195_v14 = vunpack.i.l.bf16 %v19194_v16  ;;  %v8729_v17 = vadd.high.f32.bf16 %v2616_v47, %v19194_v16  ;;  %v2571_v0 = vmax.f32 %v13949_v43, %v8728_v8  ;;  %v19197_v8 = vld [vmem:[#allocation87_spill] sm:$0xff] }
 0x2a5   : > { %19193 = vst [vmem:[#allocation50_spill] sm:$0xff] %v14098_v51  ;;  %v2570_v56 = vmax.f32 %v13770_v41, %v2530_v18  ;;  %v2971_v48 = vrot.slane %v13770_v41, 6  ;;  %vm2167_vm1 = vcmp.lt.s32.totalorder %v13830_v62, 18  ;;  %vm1866_vm4 = vcmp.lt.s32.totalorder %v14112_v3, 19  ;;  %v14122_v18 = vpop.permute.xlu1 %7972  ;;  %v19203_v62 = vld [vmem:[#allocation71_spill] sm:$0xff] }
 0x2a6   : > { %v2891_v5 = vadd.f32 %v19195_v14, %v2617_v38  ;;  %vm2166_vm9 = vcmp.lt.s32.totalorder %v13656_v20, 18  ;;  %v2932_v46 = vmax.f32 %v2571_v0, %v8729_v17  ;;  %v19196_v43 = vrot.slane %v13558_v30, 6 }
 0x2a7   : > { %v2978_v29 = vsel %vm2975_vm8, %v2971_v48, %v2972_v33  ;;  %v19198_v47 = vunpack.i.l.bf16 %v19197_v8  ;;  %v3338_v38 = vsel %vm3336_vm14, %v3333_v27, %v3334_v34  ;;  %v19199_v14 = vrot.slane %v13770_v41, 2 }
 0x2a8   : > { %v2931_v61 = vmax.f32 %v2570_v56, %v2891_v5  ;;  %v2979_v58 = vsel %vm2975_vm8, %v19196_v43, %v2971_v48  ;;  %v8730_v31 = vadd.high.f32.bf16 %v2978_v29, %v19197_v8  ;;  %v14133_v5 = vpop.permute.xlu0 %7967  ;;  %v19200_v30 = vunpack.i.l.bf16 %v13886_v4 }
 0x2a9   : > { %v3252_v57 = vadd.f32 %v19198_v47, %v2979_v58  ;;  %v3339_v33 = vsel %vm3336_vm14, %v19199_v14, %v3333_v27  ;;  %v8731_v56 = vadd.high.f32.bf16 %v3338_v38, %v13886_v4  ;;  %v2133_v0 = vsel %vm2097_vm7, 0.0, %v18899_v32 }
 0x2aa   : > { %v3613_v17 = vadd.f32 %v19200_v30, %v3339_v33  ;;  %v2203_v34 = vsel %vm2167_vm1, 0.0, %v18899_v32  ;;  %v3293_v41 = vmax.f32 %v2932_v46, %v8730_v31  ;;  %v1902_v27 = vsel %vm1866_vm4, 0.0, %v18899_v32  ;;  %v19207_v33 = vld [vmem:[#allocation20_spill] sm:$0xff] }
 0x2ab   : > { %v3292_v48 = vmax.f32 %v2931_v61, %v3252_v57  ;;  %v8241_v29 = vpack.i.bf16 %v2203_v34, %v2133_v0  ;;  %v2202_v43 = vsel %vm2166_vm9, 0.0, %v18899_v32  ;;  %v8732_v14 = vadd.low.f32.bf16 %v19203_v62, %v13919_v15  ;;  %v19204_v61 = vld [vmem:[#allocation18_spill] sm:$0xff]  ;;  %v14170_v0 = vpop.permute.xlu1 %7982  ;;  %v19210_v34 = vld [vmem:[#allocation88_spill] sm:$0xff] }
 0x2ac   : > { %v14152_v47 = vmax.f32 %v3293_v41, %v8731_v56  ;;  %v8236_v38 = vpack.i.bf16 %v1902_v27, %v2202_v43  ;;  %v8733_v46 = vadd.high.f32.bf16 %v19204_v61, %v13919_v15  ;;  %v19205_v57 = vrot.slane %v18808_v59, 7  ;;  %v19211_v15 = vld [vmem:[#allocation123_spill] sm:$0xff] }
 0x2ad   : > { %v14150_v58 = vmax.f32 %v3292_v48, %v3613_v17  ;;  %8242 = vperm.xlu1 %7435, %v8241_v29   ;;  %v19206_v31 = vrot.slane %v13889_v2, 7  ;;  %v19208_v30 = vrot.slane %v19207_v33, 1  ;;  %v19209_v17 = vrot.slane %v18808_v59, 1  ;;  %v14182_v33 = vpop.permute.xlu0 %7977 }
 0x2ae   : > { %19202 = vst [vmem:[#allocation189_spill] sm:$0xff] %v14152_v47  ;;  %8237 = vperm.xlu0 %7424, %v8236_v38   ;;  %v19212_v29 = vrot.slane %v18808_v59, 6  ;;  %v19213_v27 = vrot.slane %v13889_v2, 6  ;;  %v14188_v38 = vmax.f32 %v12821_v19, %v8733_v46  ;;  %vm2098_vm2 = vcmp.ge.s32.totalorder %v14112_v3, 2  ;;  %v14202_v46 = vld [vmem:[%s17501_s5 + $0x110] sm:$0xff] }
 0x2af   : > { %19201 = vst [vmem:[#allocation188_spill] sm:$0xff] %v14150_v58  ;;  %v2293_v20 = vsel %vm2253_vm12, %v19206_v31, %v19205_v57  ;;  %v2653_v56 = vsel %vm2614_vm13, %v19209_v17, %v19208_v30  ;;  %v19214_v57 = vld [vmem:[#allocation95_spill] sm:$0xff]  ;;  %v14185_v30 = vmax.f32 %v12816_v24, %v8732_v14  ;;  %vm2169_vm3 = vcmp.lt.s32.totalorder %v14003_v11, 18 }
 0x2b0   : > { %v8734_v48 = vadd.low.f32.bf16 %v2293_v20, %v19210_v34  ;;  %v8735_v41 = vadd.low.f32.bf16 %v2653_v56, %v19211_v15  ;;  %v3015_v43 = vsel %vm2975_vm8, %v19213_v27, %v19212_v29  ;;  %v8736_v31 = vadd.high.f32.bf16 %v19214_v57, %v13934_v60  ;;  %19216 = vst [vmem:[#allocation88_spill] sm:$0xff] %v14188_v38  ;;  %v19217_v20 = vld [vmem:[#allocation91_spill] sm:$0xff]  ;;  %v8321_v15 = vld [vmem:[#allocation5 + $0xc0] sm:$0xff]  }
 0x2b1   : > { %19215 = vst [vmem:[#allocation20_spill] sm:$0xff] %v14185_v30  ;;  %v8737_v17 = vadd.low.f32.bf16 %v3015_v43, %v19217_v20  ;;  %v2134_v34 = vsel %vm2098_vm2, 0.0, %v18899_v32  ;;  %v2205_v14 = vsel %vm2169_vm3, 0.0, %v18899_v32  ;;  %vm1867_vm5 = vcmp.lt.s32.totalorder %v14202_v46, 19  ;;  %7228 = vmatprep.subr.bf16.mxu0 %v8321_v15  ;;  %v19218_v20 = vld [vmem:[#allocation104_spill] sm:$0xff] }
 0x2b2   : > { %v2534_v2 = vmax.f32 %v18808_v59, %v8734_v48  ;;  %v14194_v56 = vmax.f32 %v19204_v61, %v8736_v31  ;;  %vm2168_vm6 = vcmp.lt.s32.totalorder %v13836_v63, 18  ;;  %v17924_v59 = vunpack.i.h.bf16 %v13976_v39  ;;  %v14216_v63 = vpop.permute.xlu1 %7992  ;;  %7229 = vmatpush3.bf16.msra.mxu0 %v8321_v15  ;;  %v8661_v15 = vld [vmem:[%s17501_s5 + $0x118] sm:$0xff] }
 0x2b3   : > { %v8251_v29 = vpack.i.bf16 %v2205_v14, %v2134_v34  ;;  %v1903_v27 = vsel %vm1867_vm5, 0.0, %v18899_v32  ;;  %v2204_v11 = vsel %vm2168_vm6, 0.0, %v18899_v32  ;;  %v17926_v31 = vunpack.i.l.bf16 %v13976_v39  ;;  %19220 = vst [vmem:[#allocation91_spill] sm:$0xff] %v14216_v63  ;;  %v14225_v34 = vpop.permute.xlu0 %7987  ;;  %v19221_v14 = vld [vmem:[#allocation43_spill] sm:$0xff] }
 0x2b4   : > { %v2895_v48 = vmax.f32 %v2534_v2, %v8735_v41  ;;  %v8246_v43 = vpack.i.bf16 %v1903_v27, %v2204_v11  ;;  %v14213_v4 = vadd.f32 %v17924_v59, %v19218_v20  ;;  %v17927_v8 = vunpack.i.h.bf16 %v13990_v53  ;;  %v14221_v2 = vld [vmem:[%s17501_s5 + $0x120] sm:$0xff]  ;;  %v19225_v11 = vld [vmem:[#allocation139_spill] sm:$0xff] }
 0x2b5   : > { %8252 = vperm.xlu1 %7435, %v8251_v29   ;;  %vm1869_vm10 = vcmp.lt.s32.totalorder %v14221_v2, 19  ;;  %vm2170_vm11 = vcmp.lt.s32.totalorder %v14112_v3, 18  ;;  %v14230_v27 = vadd.f32 %v17926_v31, %v19221_v14  ;;  %v19226_v3 = vld [vmem:[#allocation42_spill] sm:$0xff]  ;;  %vm1868_vm15 = vcmp.lt.s32.totalorder %v8661_v15, 19 }
 0x2b6   : > { %19219 = vst [vmem:[#allocation123_spill] sm:$0xff] %v14213_v4  ;;  %v3256_v41 = vmax.f32 %v2895_v48, %v8737_v17  ;;  %8247 = vperm.xlu0 %7424, %v8246_v43   ;;  %v19223_v17 = vld [vmem:[#allocation162_spill] sm:$0xff]  ;;  %v14237_v48 = vadd.f32 %v17927_v8, %v12821_v19  ;;  %v1905_v29 = vsel %vm1869_vm10, 0.0, %v18899_v32  ;;  %v19227_v59 = vadd.low.f32.bf16 %v19225_v11, %v19226_v3  ;;  %v19229_v8 = vld [vmem:[#allocation161_spill] sm:$0xff]  ;;  %v14271_v39 = vpop.permute.xlu1 %8002 }
 0x2b7   : > { %19222 = vst [vmem:[#allocation190_spill] sm:$0xff] %v14230_v27  ;;  %v8738_v43 = vadd.low.f32.bf16 %v12816_v24, %v13990_v53  ;;  %v2206_v31 = vsel %vm2170_vm11, 0.0, %v18899_v32  ;;  %vm2099_vm0 = vcmp.ge.s32.totalorder %v14202_v46, 2  ;;  %v14263_v53 = vunpack.i.h.bf16 %v14029_v55  ;;  %19233 = vst [vmem:[#allocation192_spill] sm:$0xff] %v14271_v39 }
 0x2b8   : > { %19224 = vst [vmem:[#allocation162_spill] sm:$0xff] %v14237_v48  ;;  %v14243_v16 = vmax.f32 %v3256_v41, %v19227_v59  ;;  %v8261_v51 = vpack.i.bf16 %v1905_v29, %v2206_v31  ;;  %v1904_v59 = vsel %vm1868_vm15, 0.0, %v18899_v32  ;;  %v8325_v41 = vld [vmem:[#allocation5 + $0xc8] sm:$0xff]   ;;  %v2135_v25 = vsel %vm2099_vm0, 0.0, %v18899_v32 }
 0x2b9   : > { %v14259_v3 = vmax.f32 %v19221_v14, %v8738_v43  ;;  %19231 = vst [vmem:[#allocation161_spill] sm:$0xff] %v14263_v53  ;;  %v14267_v26 = vunpack.i.l.bf16 %v14029_v55  ;;  %7230 = vmatprep.subr.bf16.mxu0 %v8325_v41  ;;  %v8256_v43 = vpack.i.bf16 %v2135_v25, %v1904_v59  ;;  %v8662_v55 = vld [vmem:[%s17501_s5 + $0x128] sm:$0xff]  ;;  %v19239_v59 = vunpack.i.h.bf16 %v14040_v28 }
 0x2ba   : > { %19228 = vst [vmem:[#allocation139_spill] sm:$0xff] %v14243_v16  ;;  %v8739_v11 = vadd.low.f32.bf16 %v14243_v16, %v13934_v60  ;;  %8262 = vperm.xlu1 %7435, %v8261_v51   ;;  %v19234_v16 = vld [vmem:[#allocation160_spill] sm:$0xff]  ;;  %vm1870_vm7 = vcmp.lt.s32.totalorder %v8662_v55, 19  ;;  %v14283_v51 = vpop.permute.xlu0 %7997  ;;  %7231 = vmatpush3.bf16.msra.mxu0 %v8325_v41  ;;  %v19236_v31 = vld [vmem:[#allocation159_spill] sm:$0xff]  ;;  %vm2101_vm1 = vcmp.ge.s32.totalorder %v14221_v2, 2  ;;  %vm2100_vm4 = vcmp.ge.s32.totalorder %v8661_v15, 2 }
 0x2bb   : > { %19230 = vst [vmem:[#allocation42_spill] sm:$0xff] %v14259_v3  ;;  %19232 = vst [vmem:[#allocation191_spill] sm:$0xff] %v14267_v26  ;;  %v14278_v57 = vadd.f32 %v14263_v53, %v19234_v16  ;;  %v14287_v29 = vadd.f32 %v14267_v26, %v19236_v31  ;;  %v14297_v53 = vadd.f32 %v19239_v59, %v19223_v17  ;;  %v1906_v38 = vsel %vm1870_vm7, 0.0, %v18899_v32  ;;  %v19241_v26 = vld [vmem:[#allocation165_spill] sm:$0xff]  ;;  %v14325_v59 = vpop.permute.xlu1 %8012 }
 0x2bc   : > { %v14274_v60 = vmax.f32 %v19203_v62, %v8739_v11  ;;  %19235 = vst [vmem:[#allocation193_spill] sm:$0xff] %v14283_v51  ;;  %v19237_v11 = vunpack.i.l.bf16 %v14040_v28  ;;  %8257 = vperm.xlu0 %7424, %v8256_v43   ;;  %vm2171_vm9 = vcmp.lt.s32.totalorder %v14202_v46, 18  ;;  %v2137_v28 = vsel %vm2101_vm1, 0.0, %v18899_v32 }
 0x2bd   : > { %19240 = vst [vmem:[#allocation195_spill] sm:$0xff] %v14297_v53  ;;  %v8271_v43 = vpack.i.bf16 %v2137_v28, %v1906_v38  ;;  %v2136_v14 = vsel %vm2100_vm4, 0.0, %v18899_v32  ;;  %v2207_v41 = vsel %vm2171_vm9, 0.0, %v18899_v32  ;;  %v14314_v62 = vunpack.i.h.bf16 %v14075_v54  ;;  %v19246_v28 = vld [vmem:[#allocation164_spill] sm:$0xff] }
 0x2be   : > { %v14292_v25 = vadd.f32 %v19237_v11, %v19229_v8  ;;  %v8266_v46 = vpack.i.bf16 %v2207_v41, %v2136_v14  ;;  %v14317_v61 = vunpack.i.l.bf16 %v14075_v54  ;;  %v14320_v11 = vunpack.i.h.bf16 %v14079_v23  ;;  %v14332_v14 = vpop.permute.xlu0 %8007  ;;  %v19247_v54 = vld [vmem:[#allocation163_spill] sm:$0xff] }
 0x2bf   : > { %19242 = vst [vmem:[#allocation165_spill] sm:$0xff] %v14314_v62  ;;  %v14323_v30 = vunpack.i.l.bf16 %v14079_v23  ;;  %8272 = vperm.xlu1 %7435, %v8271_v43   ;;  %v14329_v38 = vadd.f32 %v14314_v62, %v19246_v28  ;;  %vm2173_vm2 = vcmp.lt.s32.totalorder %v14221_v2, 18  ;;  %vm2102_vm3 = vcmp.ge.s32.totalorder %v8662_v55, 2 }
 0x2c0   : > { %19238 = vst [vmem:[#allocation194_spill] sm:$0xff] %v14292_v25  ;;  %19243 = vst [vmem:[#allocation196_spill] sm:$0xff] %v14317_v61  ;;  %vm2172_vm5 = vcmp.lt.s32.totalorder %v8661_v15, 18  ;;  %8267 = vperm.xlu0 %7424, %v8266_v46   ;;  %v14336_v41 = vadd.f32 %v14317_v61, %v19247_v54  ;;  %v14344_v43 = vadd.f32 %v14320_v11, %v13165_v22  ;;  %v2209_v62 = vsel %vm2173_vm2, 0.0, %v18899_v32 }
 0x2c1   : > { %19244 = vst [vmem:[#allocation197_spill] sm:$0xff] %v14320_v11  ;;  %19245 = vst [vmem:[#allocation198_spill] sm:$0xff] %v14323_v30  ;;  %v14340_v23 = vadd.f32 %v14323_v30, %v19241_v26  ;;  %v2138_v15 = vsel %vm2102_vm3, 0.0, %v18899_v32  ;;  %v2208_v46 = vsel %vm2172_vm5, 0.0, %v18899_v32  ;;  %v14352_v61 = vunpack.i.h.bf16 %v14122_v18 }
 0x2c2   : > { %v8276_v53 = vpack.i.bf16 %v2138_v15, %v2208_v46  ;;  %v14361_v2 = vunpack.i.l.bf16 %v14122_v18  ;;  %v14368_v48 = vunpack.i.h.bf16 %v14133_v5  ;;  %v14371_v30 = vunpack.i.l.bf16 %v14133_v5  ;;  %v8023_v15 = vpop.permute.xlu1 %8022 }
 0x2c3   : > { %19248 = vst [vmem:[#allocation164_spill] sm:$0xff] %v14352_v61  ;;  %4585 = vperm.xlu1 %7435, %v2209_v62   ;;  %v14365_v25 = vadd.f32 %v14352_v61, %v13269_v45  ;;  %vm2174_vm6 = vcmp.lt.s32.totalorder %v8662_v55, 18  ;;  %v14374_v4 = vunpack.i.h.bf16 %v14170_v0  ;;  %v14377_v62 = vunpack.i.l.bf16 %v14170_v0  ;;  %v14396_v0 = vpop.permute.xlu0 %8017 }
 0x2c4   : > { %19249 = vst [vmem:[#allocation163_spill] sm:$0xff] %v14361_v2  ;;  %19250 = vst [vmem:[#allocation199_spill] sm:$0xff] %v14368_v48  ;;  %8277 = vperm.xlu0 %7424, %v8276_v53   ;;  %v14380_v18 = vunpack.i.h.bf16 %v14182_v33  ;;  %v14384_v46 = vadd.f32 %v14361_v2, %v13267_v21  ;;  %v14390_v53 = vadd.f32 %v14371_v30, %v13329_v12  ;;  %v2210_v27 = vsel %vm2174_vm6, 0.0, %v18899_v32 }
 0x2c5   : > { %19251 = vst [vmem:[#allocation200_spill] sm:$0xff] %v14371_v30  ;;  %19252 = vst [vmem:[#allocation201_spill] sm:$0xff] %v14374_v4  ;;  %v14394_v55 = vadd.f32 %v14368_v48, %v13336_v7  ;;  %v14401_v61 = vadd.f32 %v14377_v62, %v13434_v42  ;;  %v14405_v2 = vadd.f32 %v14374_v4, %v13436_v49  ;;  %v14408_v5 = vunpack.i.l.bf16 %v14182_v33 }
 0x2c6   : > { %19253 = vst [vmem:[#allocation202_spill] sm:$0xff] %v14377_v62  ;;  %19254 = vst [vmem:[#allocation203_spill] sm:$0xff] %v14380_v18  ;;  %v14418_v62 = vadd.f32 %v14380_v18, %v13500_v44  ;;  %v17974_v48 = vunpack.i.h.bf16 %v14216_v63  ;;  %v17978_v20 = vunpack.i.l.bf16 %v14216_v63  ;;  %v14433_v18 = vunpack.i.h.bf16 %v14225_v34  ;;  %v8033_v3 = vpop.permute.xlu1 %8032 }
 0x2c7   : > { %19255 = vst [vmem:[#allocation204_spill] sm:$0xff] %v14401_v61  ;;  %19256 = vst [vmem:[#allocation205_spill] sm:$0xff] %v14405_v2  ;;  %v14426_v30 = vadd.f32 %v14408_v5, %v13498_v1  ;;  %v19265_v61 = vunpack.i.l.bf16 %v14271_v39 }
 0x2c8   : > { %19257 = vst [vmem:[#allocation206_spill] sm:$0xff] %v14408_v5  ;;  %19258 = vst [vmem:[#allocation207_spill] sm:$0xff] %v14418_v62  ;;  %4590 = vperm.xlu0 %7424, %v2210_v27   ;;  %v14436_v27 = vunpack.i.l.bf16 %v14225_v34  ;;  %v14443_v4 = vadd.f32 %v17974_v48, %v13629_v10  ;;  %v14449_v32 = vadd.f32 %v17978_v20, %v13627_v52  ;;  %v8028_v48 = vpop.permute.xlu0 %8027  ;;  %v19267_v5 = vunpack.i.h.bf16 %v14283_v51 }
 0x2c9   : > { %19259 = vst [vmem:[#allocation208_spill] sm:$0xff] %v14426_v30  ;;  %19260 = vst [vmem:[#allocation209_spill] sm:$0xff] %v14433_v18  ;;  %v14457_v33 = vadd.f32 %v14433_v18, %v13677_v50  ;;  %v14465_v63 = vadd.f32 %v19265_v61, %v13772_v9  ;;  %v8740_v20 = vadd.high.f32.bf16 %v13774_v36, %v14271_v39  ;;  %v19269_v39 = vld [vmem:[#allocation187_spill] sm:$0xff]  ;;  %v14499_v61 = vunpack.i.l.bf16 %v8023_v15 }
 0x2ca   : > { %19261 = vst [vmem:[#allocation210_spill] sm:$0xff] %v14436_v27  ;;  %19262 = vst [vmem:[#allocation211_spill] sm:$0xff] %v14443_v4  ;;  %v14453_v34 = vadd.f32 %v14436_v27, %v13671_v40  ;;  %v17990_v27 = vunpack.i.l.bf16 %v14283_v51  ;;  %v14479_v4 = vadd.f32 %v19267_v5, %v13841_v35  ;;  %v19272_v5 = vld [vmem:[#allocation182_spill] sm:$0xff]  ;;  %v8744_v2 = vadd.high.f32.bf16 %v19269_v39, %v14332_v14 }
 0x2cb   : > { %19263 = vst [vmem:[#allocation212_spill] sm:$0xff] %v14449_v32  ;;  %19264 = vst [vmem:[#allocation213_spill] sm:$0xff] %v14457_v33  ;;  %v14484_v62 = vmax.f32 %v19269_v39, %v8740_v20  ;;  %v8741_v32 = vadd.high.f32.bf16 %v19272_v5, %v14325_v59  ;;  %v14497_v33 = vunpack.i.h.bf16 %v8023_v15  ;;  %v8043_v20 = vpop.permute.xlu1 %8042 }
 0x2cc   : > { %19266 = vst [vmem:[#allocation214_spill] sm:$0xff] %v14465_v63  ;;  %19268 = vst [vmem:[#allocation215_spill] sm:$0xff] %v14479_v4  ;;  %v14489_v18 = vadd.f32 %v17990_v27, %v13839_v6  ;;  %v8743_v27 = vadd.low.f32.bf16 %v14008_v13, %v14332_v14  ;;  %v8038_v51 = vpop.permute.xlu0 %8037  ;;  %v4099_v4 = vadd.f32 %v14499_v61, %v19247_v54 }
 0x2cd   : > { %19270 = vst [vmem:[#allocation216_spill] sm:$0xff] %v14484_v62  ;;  %19273 = vst [vmem:[#allocation218_spill] sm:$0xff] %v14497_v33  ;;  %v19275_v62 = vld [vmem:[#allocation181_spill] sm:$0xff]  ;;  %v14508_v30 = vmax.f32 %v14152_v47, %v8741_v32  ;;  %v4100_v15 = vadd.f32 %v14497_v33, %v19246_v28  ;;  %v14521_v13 = vmax.f32 %v19272_v5, %v8744_v2  ;;  %v14538_v2 = vunpack.i.l.bf16 %v8033_v3 }
 0x2ce   : > { %19271 = vst [vmem:[#allocation217_spill] sm:$0xff] %v14489_v18  ;;  %19274 = vst [vmem:[#allocation219_spill] sm:$0xff] %v14499_v61  ;;  %v8742_v63 = vadd.low.f32.bf16 %v19275_v62, %v14325_v59  ;;  %v14518_v59 = vmax.f32 %v19275_v62, %v8743_v27  ;;  %v8745_v14 = vadd.high.f32.bf16 %v12821_v19, %v14396_v0  ;;  %v14542_v47 = vunpack.i.l.bf16 %v8028_v48  ;;  %v19307_v19 = vld [vmem:[#allocation130_spill] sm:$0xff] }
 0x2cf   : > { %19276 = vst [vmem:[#allocation220_spill] sm:$0xff] %v14508_v30  ;;  %19279 = vst [vmem:[#allocation223_spill] sm:$0xff] %v14521_v13  ;;  %v19280_v32 = vmax.f32 %v19241_v26, %v14287_v29  ;;  %v19281_v61 = vmax.f32 %v13165_v22, %v14278_v57  ;;  %v14540_v13 = vunpack.i.h.bf16 %v8028_v48  ;;  %v14549_v29 = vunpack.i.h.bf16 %v8043_v20 }
 0x2d0   : > { %v14515_v18 = vmax.f32 %v14150_v58, %v8742_v63  ;;  %19278 = vst [vmem:[#allocation222_spill] sm:$0xff] %v14518_v59  ;;  %v8746_v63 = vadd.low.f32.bf16 %v12816_v24, %v14396_v0  ;;  %v14536_v27 = vmax.f32 %v14194_v56, %v8745_v14  ;;  %19284 = vst [vmem:[#allocation226_spill] sm:$0xff] %v14538_v2  ;;  %v14551_v0 = vunpack.i.l.bf16 %v8043_v20 }
 0x2d1   : > { %v4135_v30 = vmax.f32 %v19280_v32, %v4099_v4  ;;  %v4136_v33 = vmax.f32 %v19281_v61, %v4100_v15  ;;  %19285 = vst [vmem:[#allocation227_spill] sm:$0xff] %v14540_v13  ;;  %19286 = vst [vmem:[#allocation228_spill] sm:$0xff] %v14542_v47  ;;  %v8053_v61 = vpop.permute.xlu1 %8052  ;;  %v4351_v56 = vadd.f32 %v14538_v2, %v19229_v8  ;;  %v14559_v15 = vunpack.i.h.bf16 %v8038_v51 }
 0x2d2   : > { %19277 = vst [vmem:[#allocation221_spill] sm:$0xff] %v14515_v18  ;;  %v14533_v18 = vunpack.i.h.bf16 %v8033_v3  ;;  %19283 = vst [vmem:[#allocation225_spill] sm:$0xff] %v14536_v27  ;;  %v14545_v4 = vmax.f32 %v14274_v60, %v8746_v63  ;;  %v4101_v3 = vadd.f32 %v14542_v47, %v13329_v12  ;;  %v4102_v48 = vadd.f32 %v14540_v13, %v13336_v7  ;;  %v8048_v60 = vpop.permute.xlu0 %8047  ;;  %v19304_v27 = vld [vmem:[#allocation60_spill] sm:$0xff] }
 0x2d3   : > { %19288 = vst [vmem:[#allocation230_spill] sm:$0xff] %v14549_v29  ;;  %19289 = vst [vmem:[#allocation231_spill] sm:$0xff] %v14551_v0  ;;  %v4603_v32 = vadd.f32 %v14551_v0, %v13329_v12  ;;  %v4604_v20 = vadd.f32 %v14549_v29, %v13336_v7  ;;  %v14565_v63 = vunpack.i.l.bf16 %v8038_v51  ;;  %v19292_v2 = vmax.f32 %v19247_v54, %v14340_v23 }
 0x2d4   : > { %19282 = vst [vmem:[#allocation224_spill] sm:$0xff] %v14533_v18  ;;  %19287 = vst [vmem:[#allocation229_spill] sm:$0xff] %v14545_v4  ;;  %v4352_v57 = vadd.f32 %v14533_v18, %v19223_v17  ;;  %v4387_v18 = vmax.f32 %v4135_v30, %v4351_v56  ;;  %v19293_v58 = vmax.f32 %v19246_v28, %v14344_v43  ;;  %v14579_v29 = vunpack.i.h.bf16 %v8053_v61 }
 0x2d5   : > { %19290 = vst [vmem:[#allocation232_spill] sm:$0xff] %v14559_v15  ;;  %19291 = vst [vmem:[#allocation233_spill] sm:$0xff] %v14565_v63  ;;  %v4137_v59 = vmax.f32 %v19292_v2, %v4101_v3  ;;  %v4353_v0 = vadd.f32 %v14565_v63, %v19236_v31  ;;  %v14581_v51 = vunpack.i.l.bf16 %v8053_v61  ;;  %v14585_v2 = vunpack.i.h.bf16 %v8048_v60 }
 0x2d6   : > { %v4388_v14 = vmax.f32 %v4136_v33, %v4352_v57  ;;  %v4138_v5 = vmax.f32 %v19293_v58, %v4102_v48  ;;  %v4354_v33 = vadd.f32 %v14559_v15, %v19234_v16  ;;  %19295 = vst [vmem:[#allocation235_spill] sm:$0xff] %v14579_v29  ;;  %v14583_v30 = vmax.f32 %v4387_v18, %v4603_v32  ;;  %v8058_v32 = vpop.permute.xlu0 %8057 }
 0x2d7   : > { %19296 = vst [vmem:[#allocation236_spill] sm:$0xff] %v14581_v51  ;;  %19298 = vst [vmem:[#allocation238_spill] sm:$0xff] %v14585_v2  ;;  %v14587_v56 = vunpack.i.l.bf16 %v8048_v60  ;;  %v4389_v48 = vmax.f32 %v4137_v59, %v4353_v0  ;;  %v4103_v60 = vadd.f32 %v14581_v51, %v13267_v21  ;;  %v4606_v59 = vadd.f32 %v14585_v2, %v13269_v45 }
 0x2d8   : > { %v14575_v57 = vmax.f32 %v4388_v14, %v4604_v20  ;;  %19297 = vst [vmem:[#allocation237_spill] sm:$0xff] %v14583_v30  ;;  %v4390_v23 = vmax.f32 %v4138_v5, %v4354_v33  ;;  %v8063_v14 = vpop.permute.xlu1 %8062  ;;  %v18022_v20 = vrot.slane %v14583_v30, 7  ;;  %v18024_v18 = vrot.slane %v14583_v30, 6 }
 0x2d9   : > { %19299 = vst [vmem:[#allocation239_spill] sm:$0xff] %v14587_v56  ;;  %v4104_v33 = vadd.f32 %v14579_v29, %v13269_v45  ;;  %v4605_v43 = vadd.f32 %v14587_v56, %v13267_v21  ;;  %v14604_v0 = vunpack.i.h.bf16 %v8063_v14  ;;  %v14606_v61 = vunpack.i.l.bf16 %v8063_v14 }
 0x2da   : > { %19294 = vst [vmem:[#allocation234_spill] sm:$0xff] %v14575_v57  ;;  %v18023_v58 = vrot.slane %v14575_v57, 7  ;;  %v18025_v3 = vrot.slane %v14575_v57, 6  ;;  %v19302_v51 = vmax.f32 %v13329_v12, %v14336_v41  ;;  %v19303_v14 = vmax.f32 %v13336_v7, %v14329_v38 }
 0x2db   : > { %19300 = vst [vmem:[#allocation240_spill] sm:$0xff] %v14604_v0  ;;  %19301 = vst [vmem:[#allocation241_spill] sm:$0xff] %v14606_v61  ;;  %v14626_v39 = vmax.f32 %v4389_v48, %v4605_v43  ;;  %v14628_v4 = vmax.f32 %v4390_v23, %v4606_v59  ;;  %v14650_v16 = vunpack.i.h.bf16 %v8058_v32  ;;  %v19313_v48 = vld [vmem:[#allocation75_spill] sm:$0xff] }
 0x2dc   : > { %v4723_v5 = vsel %vm2253_vm12, %v18022_v20, %v18023_v58  ;;  %v4997_v29 = vsel %vm2975_vm8, %v18024_v18, %v18025_v3  ;;  %v4139_v15 = vmax.f32 %v19302_v51, %v4103_v60  ;;  %v4140_v62 = vmax.f32 %v19303_v14, %v4104_v33  ;;  %v19305_v3 = vld [vmem:[#allocation100_spill] sm:$0xff]  ;;  %v8073_v59 = vpop.permute.xlu1 %8072  ;;  %v8068_v14 = vpop.permute.xlu0 %8067 }
 0x2dd   : > { %v4355_v20 = vadd.f32 %v14606_v61, %v19241_v26  ;;  %v4356_v58 = vadd.f32 %v14604_v0, %v13165_v22  ;;  %v4744_v18 = vadd.f32 %v19304_v27, %v4723_v5  ;;  %v5018_v63 = vadd.f32 %v19305_v3, %v4997_v29  ;;  %v8327_v61 = vld [vmem:[#allocation5 + $0xd0] sm:$0xff]   ;;  %19308 = vst [vmem:[#allocation242_spill] sm:$0xff] %v14650_v16 }
 0x2de   : > { %v4677_v41 = vrot.slane %v14626_v39, 7  ;;  %v4813_v38 = vrot.slane %v14626_v39, 1  ;;  %v4814_v43 = vrot.slane %v14628_v4, 1  ;;  %v4951_v23 = vrot.slane %v14626_v39, 6  ;;  %7232 = vmatprep.subr.bf16.mxu0 %v8327_v61 }
 0x2df   : > { %v4391_v60 = vmax.f32 %v4139_v15, %v4355_v20  ;;  %v4392_v33 = vmax.f32 %v4140_v62, %v4356_v58  ;;  %v4778_v5 = vmax.f32 %v14575_v57, %v4744_v18  ;;  %v19306_v29 = vrot.slane %v14575_v57, 1  ;;  %7233 = vmatpush3.bf16.msra.mxu0 %v8327_v61 }
 0x2e0   : > { %v18035_v51 = vrot.slane %v14575_v57, 2  ;;  %v5087_v27 = vrot.slane %v14626_v39, 2  ;;  %v14652_v15 = vunpack.i.l.bf16 %v8058_v32  ;;  %v5977_v62 = vpack.c.bf16 %v14575_v57, %v14583_v30 }
 0x2e1   : > { %v4860_v3 = vsel %vm2614_vm13, %v19306_v29, %v4813_v38  ;;  %v14660_v20 = vunpack.i.h.bf16 %v8073_v59  ;;  %v14662_v18 = vunpack.i.l.bf16 %v8073_v59  ;;  %v14664_v29 = vunpack.i.h.bf16 %v8068_v14 }
 0x2e2   : > { %v4881_v24 = vadd.f32 %v19307_v19, %v4860_v3  ;;  %19309 = vst [vmem:[#allocation243_spill] sm:$0xff] %v14652_v15  ;;  %v5134_v58 = vsel %vm3336_vm14, %v18035_v51, %v5087_v27  ;;  %v4105_v32 = vadd.f32 %v14652_v15, %v13498_v1  ;;  %v4106_v30 = vadd.f32 %v14650_v16, %v13500_v44 }
 0x2e3   : > { %19310 = vst [vmem:[#allocation244_spill] sm:$0xff] %v14660_v20  ;;  %19311 = vst [vmem:[#allocation245_spill] sm:$0xff] %v14662_v18  ;;  %v5155_v19 = vadd.f32 %v19313_v48, %v5134_v58  ;;  %7148 = vmatprep.mubr.bf16.mxu1 %v5977_v62  ;;  %v4607_v51 = vadd.f32 %v14662_v18, %v13498_v1  ;;  %v4608_v59 = vadd.f32 %v14660_v20, %v13500_v44 }
 0x2e4   : > { %19312 = vst [vmem:[#allocation246_spill] sm:$0xff] %v14664_v29  ;;  %v4915_v3 = vmax.f32 %v4778_v5, %v4881_v24  ;;  %v14675_v31 = vunpack.i.l.bf16 %v8068_v14  ;;  %v14679_v24 = vadd.f32 %v14664_v29, %v19246_v28  ;;  %v19315_v58 = vmax.f32 %v13267_v21, %v14390_v53 }
 0x2e5   : > { %v19316_v62 = vmax.f32 %v13269_v45, %v14394_v55  ;;  %v19317_v15 = vrot.slane %v14628_v4, 7  ;;  %v14695_v20 = vmax.f32 %v4391_v60, %v4607_v51  ;;  %v14697_v18 = vmax.f32 %v4392_v33, %v4608_v59  ;;  %v19321_v51 = vld [vmem:[#allocation38_spill] sm:$0xff]  ;;  %v19323_v33 = vld [vmem:[#allocation128_spill] sm:$0xff] }
 0x2e6   : > { %19314 = vst [vmem:[#allocation247_spill] sm:$0xff] %v14675_v31  ;;  %v5052_v5 = vmax.f32 %v4915_v3, %v5018_v63  ;;  %v14684_v48 = vmax.f32 %v19315_v58, %v4105_v32  ;;  %v14701_v63 = vadd.f32 %v14675_v31, %v19247_v54  ;;  %v19318_v53 = vrot.slane %v14575_v57, 7  ;;  %v19320_v3 = vld [vmem:[#allocation40_spill] sm:$0xff] }
 0x2e7   : > { %v14689_v16 = vmax.f32 %v19316_v62, %v4106_v30  ;;  %v4721_v14 = vsel %vm2253_vm12, %v4677_v41, %v19317_v15  ;;  %v18047_v59 = vrot.slane %v14695_v20, 1  ;;  %v8083_v62 = vpop.permute.xlu1 %8082  ;;  %v4859_v58 = vsel %vm2614_vm13, %v4813_v38, %v4814_v43 }
 0x2e8   : > { %v4722_v55 = vsel %vm2253_vm12, %v19318_v53, %v4677_v41  ;;  %v14707_v30 = vmax.f32 %v5052_v5, %v5155_v19  ;;  %v4746_v60 = vadd.f32 %v19321_v51, %v4721_v14  ;;  %v4393_v5 = vmax.f32 %v14684_v48, %v14701_v63  ;;  %v19328_v51 = vld [vmem:[#allocation24_spill] sm:$0xff] }
 0x2e9   : > { %v4394_v61 = vmax.f32 %v14689_v16, %v14679_v24  ;;  %v4745_v15 = vadd.f32 %v19320_v3, %v4722_v55  ;;  %v4858_v55 = vsel %vm2614_vm13, %v4814_v43, %v18047_v59  ;;  %v19324_v41 = vrot.slane %v14628_v4, 6 }
 0x2ea   : > { %19319 = vst [vmem:[#allocation248_spill] sm:$0xff] %v14707_v30  ;;  %v14719_v19 = vadd.f32 %v14320_v11, %v14707_v30  ;;  %v14723_v16 = vadd.f32 %v14604_v0, %v14707_v30  ;;  %v4780_v53 = vmax.f32 %v14628_v4, %v4746_v60  ;;  %v4883_v32 = vadd.f32 %v19323_v33, %v4858_v55  ;;  %v19326_v60 = vld [vmem:[#allocation129_spill] sm:$0xff]  ;;  %v19327_v11 = vld [vmem:[#allocation35_spill] sm:$0xff] }
 0x2eb   : > { %v4779_v14 = vmax.f32 %v14626_v39, %v4745_v15  ;;  %v4995_v24 = vsel %vm2975_vm8, %v4951_v23, %v19324_v41  ;;  %v19325_v48 = vrot.slane %v14575_v57, 6  ;;  %v8078_v15 = vpop.permute.xlu0 %8077  ;;  %v4882_v0 = vadd.f32 %v19326_v60, %v4859_v58  ;;  %v19355_v60 = vld [vmem:[#allocation135_spill] sm:$0xff] }
 0x2ec   : > { %19322 = vst [vmem:[#allocation249_spill] sm:$0xff] %v14723_v16  ;;  %v5020_v3 = vadd.f32 %v19328_v51, %v4995_v24  ;;  %v5088_v38 = vrot.slane %v14628_v4, 2  ;;  %v4917_v43 = vmax.f32 %v4780_v53, %v4883_v32  ;;  %v18050_v55 = vrot.slane %v14695_v20, 2  ;;  %v8318_v16 = vld [vmem:[#allocation5 + $0x8] sm:$0xff]   ;;  %v8093_v24 = vpop.permute.xlu1 %8092  ;;  %v19333_v51 = vld [vmem:[#allocation105_spill] sm:$0xff] }
 0x2ed   : > { %v4996_v63 = vsel %vm2975_vm8, %v19325_v48, %v4951_v23  ;;  %v5978_v41 = vpack.c.bf16 %v14628_v4, %v14626_v39  ;;  %v14753_v33 = vunpack.i.h.bf16 %v8083_v62  ;;  %v4916_v57 = vmax.f32 %v4779_v14, %v4882_v0  ;;  %v19332_v53 = vld [vmem:[#allocation107_spill] sm:$0xff] }
 0x2ee   : > { %v5019_v59 = vadd.f32 %v19327_v11, %v4996_v63  ;;  %v5133_v23 = vsel %vm3336_vm14, %v5087_v27, %v5088_v38  ;;  %v14757_v58 = vunpack.i.l.bf16 %v8083_v62  ;;  %v14759_v48 = vunpack.i.h.bf16 %v8078_v15 }
 0x2ef   : > { %19329 = vst [vmem:[#allocation250_spill] sm:$0xff] %v14753_v33  ;;  %v5054_v63 = vmax.f32 %v4917_v43, %v5020_v3  ;;  %v5132_v32 = vsel %vm3336_vm14, %v5088_v38, %v18050_v55  ;;  %v5156_v39 = vadd.f32 %v19332_v53, %v5133_v23  ;;  %7149 = vmatmul.mubr.bf16.vlgmr.msra.gmra.mrb[0].mxu1 %v5978_v41  ;;  %v14771_v11 = vunpack.i.l.bf16 %v8078_v15  ;;  %v19335_v3 = vld [vmem:[#allocation184_spill] sm:$0xff] }
 0x2f0   : > { %19330 = vst [vmem:[#allocation251_spill] sm:$0xff] %v14757_v58  ;;  %19331 = vst [vmem:[#allocation252_spill] sm:$0xff] %v14759_v48  ;;  %v4108_v0 = vadd.f32 %v14753_v33, %v13436_v49  ;;  %v5053_v14 = vmax.f32 %v4916_v57, %v5019_v59  ;;  %v5157_v27 = vadd.f32 %v19333_v51, %v5132_v32  ;;  %7165 = vmatpush3.bf16.msra.mxu1 %v19335_v3  ;;  %v8319_v59 = vld [vmem:[#allocation5 + $0x10] sm:$0xff]   ;;  %v19352_v51 = vld [vmem:[#allocation57_spill] sm:$0xff] }
 0x2f1   : > { %v4107_v62 = vadd.f32 %v14757_v58, %v13434_v42  ;;  %19334 = vst [vmem:[#allocation253_spill] sm:$0xff] %v14771_v11  ;;  %v19336_v43 = vmax.f32 %v13500_v44, %v14365_v25  ;;  %v4610_v41 = vadd.f32 %v14759_v48, %v13436_v49  ;;  %v14781_v23 = vunpack.i.h.bf16 %v8093_v24  ;;  %7166 = vmatprep.subr.bf16.mxu1 %v8318_v16  ;;  %v8103_v58 = vpop.permute.xlu1 %8102 }
 0x2f2   : > { %v14783_v57 = vunpack.i.l.bf16 %v8093_v24  ;;  %v14785_v32 = vmax.f32 %v5053_v14, %v5156_v39  ;;  %v14787_v15 = vmax.f32 %v5054_v63, %v5157_v27  ;;  %v19340_v3 = vmax.f32 %v13498_v1, %v14384_v46 }
 0x2f3   : > { %v14777_v38 = vmax.f32 %v19336_v43, %v4108_v0  ;;  %19337 = vst [vmem:[#allocation184_spill] sm:$0xff] %v14781_v23  ;;  %v4609_v25 = vadd.f32 %v14771_v11, %v13434_v42  ;;  %v14796_v0 = vmax.f32 %v4394_v61, %v4610_v41  ;;  %v14804_v39 = vadd.f32 %v14781_v23, %v13336_v7 }
 0x2f4   : > { %19338 = vst [vmem:[#allocation254_spill] sm:$0xff] %v14783_v57  ;;  %19339 = vst [vmem:[#allocation255_spill] sm:$0xff] %v14785_v32  ;;  %v14792_v55 = vmax.f32 %v19340_v3, %v4107_v62  ;;  %v14800_v24 = vadd.f32 %v14783_v57, %v13329_v12  ;;  %v19341_v63 = vrot.slane %v14697_v18, 7  ;;  %v19342_v14 = vrot.slane %v14695_v20, 7  ;;  %7167 = vmatpush3.bf16.msra.mxu1 %v8318_v16  ;;  %v19347_v3 = vld [vmem:[#allocation51_spill] sm:$0xff] }
 0x2f5   : > { %v14816_v61 = vadd.f32 %v14675_v31, %v14785_v32  ;;  %v14820_v12 = vadd.f32 %v14664_v29, %v14787_v15  ;;  %v14822_v7 = vmax.f32 %v4393_v5, %v4609_v25  ;;  %7168 = vmatprep.subr.bf16.mxu1 %v8319_v59  ;;  %v4396_v16 = vmax.f32 %v14777_v38, %v14804_v39  ;;  %v8088_v5 = vpop.permute.xlu0 %8087  ;;  %v19367_v32 = vld [vmem:[#allocation207_spill] sm:$0xff] }
 0x2f6   : > { %v4719_v46 = vsel %vm2253_vm12, %v19342_v14, %v19341_v63  ;;  %v8320_v63 = vld [vmem:[#allocation5 + $0x18] sm:$0xff]   ;;  %v19345_v25 = vmov %v19342_v14  ;;  %v19346_v43 = vrot.slane %v14628_v4, 7  ;;  %v19348_v31 = vrot.slane %v14697_v18, 1 }
 0x2f7   : > { %19343 = vst [vmem:[#allocation256_spill] sm:$0xff] %v14816_v61  ;;  %19344 = vst [vmem:[#allocation257_spill] sm:$0xff] %v14820_v12  ;;  %v4748_v62 = vadd.f32 %v19347_v3, %v4719_v46  ;;  %v19349_v14 = vrot.slane %v14695_v20, 1  ;;  %v19350_v27 = vrot.slane %v14697_v18, 6  ;;  %v19351_v38 = vrot.slane %v14695_v20, 6  ;;  %v19360_v61 = vld [vmem:[#allocation106_spill] sm:$0xff] }
 0x2f8   : > { %v4720_v41 = vsel %vm2253_vm12, %v19346_v43, %v19345_v25  ;;  %v19353_v43 = vrot.slane %v14822_v7, 1  ;;  %v19354_v46 = vmov %v19348_v31  ;;  %7169 = vmatpush3.bf16.msra.mxu1 %v8319_v59  ;;  %v14876_v59 = vunpack.i.l.bf16 %v8088_v5 }
 0x2f9   : > { %v4857_v29 = vsel %vm2614_vm13, %v19349_v14, %v19348_v31  ;;  %v4993_v39 = vsel %vm2975_vm8, %v19351_v38, %v19350_v27  ;;  %v4747_v53 = vadd.f32 %v19352_v51, %v4720_v41  ;;  %v19356_v31 = vmov %v19351_v38  ;;  %v19358_v41 = vld [vmem:[#allocation134_spill] sm:$0xff]  ;;  %v19359_v51 = vld [vmem:[#allocation29_spill] sm:$0xff]  ;;  %7170 = vmatprep.subr.bf16.mxu1 %v8320_v63 }
 0x2fa   : > { %v4856_v25 = vsel %vm2614_vm13, %v19354_v46, %v19353_v43  ;;  %v4884_v3 = vadd.f32 %v19355_v60, %v4857_v29  ;;  %v19357_v14 = vrot.slane %v14628_v4, 6  ;;  %v4782_v27 = vmax.f32 %v14697_v18, %v4748_v62  ;;  %19362 = vst [vmem:[#allocation259_spill] sm:$0xff] %v14876_v59 }
 0x2fb   : > { %v4885_v38 = vadd.f32 %v19358_v41, %v4856_v25  ;;  %v5022_v48 = vadd.f32 %v19360_v61, %v4993_v39  ;;  %v4781_v29 = vmax.f32 %v14695_v20, %v4747_v53  ;;  %v5090_v43 = vrot.slane %v14697_v18, 2  ;;  %v19365_v41 = vld [vmem:[#allocation167_spill] sm:$0xff] }
 0x2fc   : > { %v4994_v33 = vsel %vm2975_vm8, %v19357_v14, %v19356_v31  ;;  %v18061_v4 = vrot.slane %v14822_v7, 2  ;;  %v14874_v46 = vunpack.i.h.bf16 %v8088_v5  ;;  %v8322_v31 = vld [vmem:[#allocation5 + $0x20] sm:$0xff]   ;;  %v5979_v62 = vpack.c.bf16 %v14697_v18, %v14695_v20  ;;  %7171 = vmatpush3.bf16.msra.mxu1 %v8320_v63  ;;  %v19371_v63 = vld [vmem:[#allocation208_spill] sm:$0xff] }
 0x2fd   : > { %v5021_v12 = vadd.f32 %v19359_v51, %v4994_v33  ;;  %v4919_v14 = vmax.f32 %v4782_v27, %v4885_v38  ;;  %v14880_v25 = vunpack.i.h.bf16 %v8103_v58  ;;  %v4918_v33 = vmax.f32 %v4781_v29, %v4884_v3  ;;  %v8098_v27 = vpop.permute.xlu0 %8097  ;;  %v8331_v38 = vld [vmem:[#allocation5 + $0xd8] sm:$0xff]   ;;  %v19366_v3 = vld [vmem:[#allocation166_spill] sm:$0xff]  ;;  %7172 = vmatprep.subr.bf16.mxu1 %v8322_v31 }
 0x2fe   : > { %19361 = vst [vmem:[#allocation258_spill] sm:$0xff] %v14874_v46  ;;  %v5130_v53 = vsel %vm3336_vm14, %v5090_v43, %v18061_v4  ;;  %v19364_v39 = vrot.slane %v14695_v20, 2  ;;  %v4110_v5 = vadd.f32 %v14874_v46, %v13677_v50  ;;  %v4109_v11 = vadd.f32 %v14876_v59, %v13671_v40  ;;  %7152 = vmatprep.mubr.bf16.mxu1 %v5979_v62  ;;  %v8323_v4 = vld [vmem:[#allocation5 + $0x28] sm:$0xff]  }
 0x2ff   : > { %19363 = vst [vmem:[#allocation260_spill] sm:$0xff] %v14880_v25  ;;  %v5056_v51 = vmax.f32 %v4919_v14, %v5022_v48  ;;  %v5159_v29 = vadd.f32 %v19366_v3, %v5130_v53  ;;  %v5055_v20 = vmax.f32 %v4918_v33, %v5021_v12  ;;  %v14901_v46 = vunpack.i.l.bf16 %v8103_v58  ;;  %7234 = vmatprep.subr.bf16.mxu0 %v8331_v38 }
 0x300   : > { %v5131_v61 = vsel %vm3336_vm14, %v19364_v39, %v5090_v43  ;;  %v19368_v43 = vmax.f32 %v13436_v49, %v19367_v32  ;;  %v4612_v48 = vadd.f32 %v14880_v25, %v13677_v50  ;;  %v19372_v14 = vmax.f32 %v13434_v42, %v19371_v63  ;;  %7235 = vmatpush3.bf16.msra.mxu0 %v8331_v38 }
 0x301   : > { %v5158_v60 = vadd.f32 %v19365_v41, %v5131_v61  ;;  %19369 = vst [vmem:[#allocation207_spill] sm:$0xff] %v14901_v46  ;;  %v14905_v61 = vmax.f32 %v5056_v51, %v5159_v29  ;;  %v14912_v12 = vunpack.i.h.bf16 %v8098_v27  ;;  %v14914_v33 = vunpack.i.l.bf16 %v8098_v27  ;;  %7173 = vmatpush3.bf16.msra.mxu1 %v8322_v31  ;;  %v8324_v29 = vld [vmem:[#allocation5 + $0x30] sm:$0xff]   ;;  %v19398_v41 = vld [vmem:[#allocation102_spill] sm:$0xff] }
 0x302   : > { %v14899_v39 = vmax.f32 %v19368_v43, %v4110_v5  ;;  %v14910_v62 = vmax.f32 %v19372_v14, %v4109_v11  ;;  %v4611_v58 = vadd.f32 %v14901_v46, %v13671_v40  ;;  %v14920_v53 = vmax.f32 %v4396_v16, %v4612_v48  ;;  %7174 = vmatprep.subr.bf16.mxu1 %v8323_v4 }
 0x303   : > { %19370 = vst [vmem:[#allocation261_spill] sm:$0xff] %v14905_v61  ;;  %19373 = vst [vmem:[#allocation208_spill] sm:$0xff] %v14912_v12  ;;  %v14916_v32 = vmax.f32 %v5055_v20, %v5158_v60  ;;  %v19376_v51 = vrot.slane %v14796_v0, 7  ;;  %v19377_v5 = vrot.slane %v14822_v7, 7  ;;  %v5273_v27 = vadd.f32 %v14540_v13, %v14905_v61  ;;  %v19393_v13 = vld [vmem:[#allocation133_spill] sm:$0xff] }
 0x304   : > { %19374 = vst [vmem:[#allocation262_spill] sm:$0xff] %v14914_v33  ;;  %v14932_v60 = vadd.f32 %v14781_v23, %v14905_v61  ;;  %v14936_v38 = vadd.f32 %v14914_v33, %v13267_v21  ;;  %v14940_v16 = vadd.f32 %v14912_v12, %v13269_v45  ;;  %v19381_v43 = vmax.f32 %v14792_v55, %v14800_v24  ;;  %v8113_v23 = vpop.permute.xlu1 %8112  ;;  %v19391_v21 = vld [vmem:[#allocation53_spill] sm:$0xff] }
 0x305   : > { %19375 = vst [vmem:[#allocation263_spill] sm:$0xff] %v14916_v32  ;;  %v4717_v11 = vsel %vm2253_vm12, %v19377_v5, %v19376_v51  ;;  %v14944_v31 = vadd.f32 %v14542_v47, %v14916_v32  ;;  %v14948_v20 = vadd.f32 %v14783_v57, %v14916_v32  ;;  %v19382_v45 = vmax.f32 %v14787_v15, %v14719_v19  ;;  %v8108_v19 = vpop.permute.xlu0 %8107  ;;  %v8326_v57 = vld [vmem:[#allocation5 + $0x38] sm:$0xff]  }
 0x306   : > { %19378 = vst [vmem:[#allocation264_spill] sm:$0xff] %v14932_v60  ;;  %v14953_v48 = vmax.f32 %v19381_v43, %v4611_v58  ;;  %v4397_v5 = vmax.f32 %v14910_v62, %v14936_v38  ;;  %v4398_v58 = vmax.f32 %v14899_v39, %v14940_v16  ;;  %7175 = vmatpush3.bf16.msra.mxu1 %v8323_v4  ;;  %v19385_v43 = vrot.slane %v14697_v18, 7  ;;  %v19386_v62 = vld [vmem:[#allocation52_spill] sm:$0xff]  ;;  %v19521_v32 = vld [vmem:[#allocation157_spill] sm:$0xff] }
 0x307   : > { %19379 = vst [vmem:[#allocation265_spill] sm:$0xff] %v14944_v31  ;;  %19380 = vst [vmem:[#allocation266_spill] sm:$0xff] %v14948_v20  ;;  %v14959_v63 = vmax.f32 %v19382_v45, %v5273_v27  ;;  %v19384_v27 = vrot.slane %v14822_v7, 7  ;;  %v4750_v38 = vadd.f32 %v19386_v62, %v4717_v11  ;;  %v19387_v51 = vrot.slane %v14796_v0, 1  ;;  %7176 = vmatprep.subr.bf16.mxu1 %v8324_v29  ;;  %v19396_v62 = vld [vmem:[#allocation132_spill] sm:$0xff]  ;;  %v19506_v31 = vld [vmem:[#allocation43_spill] sm:$0xff] }
 0x308   : > { %v18072_v55 = vrot.slane %v14953_v48, 1  ;;  %v19388_v14 = vrot.slane %v14822_v7, 1  ;;  %v19389_v39 = vrot.slane %v14796_v0, 6  ;;  %v19390_v4 = vrot.slane %v14822_v7, 6 }
 0x309   : > { %19383 = vst [vmem:[#allocation267_spill] sm:$0xff] %v14959_v63  ;;  %v4718_v45 = vsel %vm2253_vm12, %v19385_v43, %v19384_v27  ;;  %v19392_v11 = vmov %v19387_v51  ;;  %v19395_v47 = vrot.slane %v14697_v18, 6  ;;  %v5980_v18 = vpack.c.bf16 %v14796_v0, %v14822_v7 }
 0x30a   : > { %v4855_v24 = vsel %vm2614_vm13, %v19388_v14, %v19387_v51  ;;  %v4991_v16 = vsel %vm2975_vm8, %v19390_v4, %v19389_v39  ;;  %v4749_v27 = vadd.f32 %v19391_v21, %v4718_v45  ;;  %v4854_v43 = vsel %vm2614_vm13, %v19392_v11, %v18072_v55  ;;  %v19397_v21 = vld [vmem:[#allocation101_spill] sm:$0xff]  ;;  %7177 = vmatpush3.bf16.msra.mxu1 %v8324_v29 }
 0x30b   : > { %v4886_v14 = vadd.f32 %v19393_v13, %v4855_v24  ;;  %v19394_v51 = vmov %v19390_v4  ;;  %v4784_v4 = vmax.f32 %v14796_v0, %v4750_v38  ;;  %v4887_v45 = vadd.f32 %v19396_v62, %v4854_v43  ;;  %7178 = vmatprep.subr.bf16.mxu1 %v8326_v57  ;;  %7153 = vmatmul.mubr.bf16.gmra.mrb[4].mxu1 %v5980_v18  ;;  %v19405_v13 = vld [vmem:[#allocation44_spill] sm:$0xff] }
 0x30c   : > { %v4992_v39 = vsel %vm2975_vm8, %v19395_v47, %v19394_v51  ;;  %v5024_v59 = vadd.f32 %v19398_v41, %v4991_v16  ;;  %v4783_v60 = vmax.f32 %v14822_v7, %v4749_v27  ;;  %v5092_v11 = vrot.slane %v14796_v0, 2  ;;  %v8123_v51 = vpop.permute.xlu1 %8122  ;;  %v15018_v16 = vld [vmem:[#allocation5 + $0x80] sm:$0xff]  }
 0x30d   : > { %v5023_v3 = vadd.f32 %v19397_v21, %v4992_v39  ;;  %v18075_v24 = vrot.slane %v14953_v48, 2  ;;  %v4921_v55 = vmax.f32 %v4784_v4, %v4887_v45  ;;  %v15012_v47 = vunpack.i.h.bf16 %v8113_v23  ;;  %v8118_v4 = vpop.permute.xlu0 %8117  ;;  %v19404_v21 = vld [vmem:[#allocation45_spill] sm:$0xff] }
 0x30e   : > { %v15014_v38 = vunpack.i.l.bf16 %v8113_v23  ;;  %v15016_v43 = vunpack.i.h.bf16 %v8108_v19  ;;  %v4920_v27 = vmax.f32 %v4783_v60, %v4886_v14  ;;  %v19402_v41 = vrot.slane %v14822_v7, 2  ;;  %7179 = vmatpush3.bf16.msra.mxu1 %v8326_v57 }
 0x30f   : > { %19399 = vst [vmem:[#allocation268_spill] sm:$0xff] %v15012_v47  ;;  %v5128_v39 = vsel %vm3336_vm14, %v5092_v11, %v18075_v24  ;;  %v15028_v23 = vunpack.i.l.bf16 %v8108_v19  ;;  %v5058_v45 = vmax.f32 %v4921_v55, %v5024_v59  ;;  %v4112_v24 = vadd.f32 %v15012_v47, %v13629_v10  ;;  %v19407_v59 = vld [vmem:[#allocation204_spill] sm:$0xff]  ;;  %7196 = vmatprep.subr.bf16.mxu1 %v15018_v16 }
 0x310   : > { %19400 = vst [vmem:[#allocation269_spill] sm:$0xff] %v15014_v38  ;;  %19401 = vst [vmem:[#allocation270_spill] sm:$0xff] %v15016_v43  ;;  %v5129_v29 = vsel %vm3336_vm14, %v19402_v41, %v5092_v11  ;;  %v5161_v25 = vadd.f32 %v19405_v13, %v5128_v39  ;;  %v4111_v60 = vadd.f32 %v15014_v38, %v13627_v52  ;;  %v15047_v18 = vunpack.i.h.bf16 %v8123_v51  ;;  %v19412_v39 = vld [vmem:[#allocation205_spill] sm:$0xff] }
 0x311   : > { %19403 = vst [vmem:[#allocation271_spill] sm:$0xff] %v15028_v23  ;;  %v5160_v62 = vadd.f32 %v19404_v21, %v5129_v29  ;;  %v5057_v14 = vmax.f32 %v4920_v27, %v5023_v3  ;;  %v4613_v7 = vadd.f32 %v15028_v23, %v13627_v52  ;;  %v4614_v41 = vadd.f32 %v15016_v43, %v13629_v10  ;;  %v19442_v23 = vld [vmem:[#allocation169_spill] sm:$0xff] }
 0x312   : > { %v15040_v19 = vmax.f32 %v5058_v45, %v5161_v25  ;;  %v19408_v55 = vmax.f32 %v13671_v40, %v19407_v59  ;;  %19409 = vst [vmem:[#allocation204_spill] sm:$0xff] %v15047_v18  ;;  %v15049_v3 = vunpack.i.l.bf16 %v8123_v51  ;;  %v19413_v29 = vmax.f32 %v13677_v50, %v19412_v39 }
 0x313   : > { %v15052_v27 = vmax.f32 %v5057_v14, %v5160_v62  ;;  %v15059_v57 = vmax.f32 %v4397_v5, %v4613_v7  ;;  %v15061_v25 = vmax.f32 %v4398_v58, %v4614_v41  ;;  %v8128_v41 = vpop.permute.xlu0 %8127  ;;  %v19422_v59 = vrot.slane %v14796_v0, 7 }
 0x314   : > { %19406 = vst [vmem:[#allocation272_spill] sm:$0xff] %v15040_v19  ;;  %v15045_v11 = vmax.f32 %v19408_v55, %v4111_v60  ;;  %19410 = vst [vmem:[#allocation273_spill] sm:$0xff] %v15049_v3  ;;  %v15057_v13 = vmax.f32 %v19413_v29, %v4112_v24  ;;  %v15065_v45 = vadd.f32 %v14912_v12, %v15040_v19  ;;  %v8133_v60 = vpop.permute.xlu1 %8132  ;;  %v19419_v12 = vrot.slane %v14920_v53, 7  ;;  %v19423_v55 = vld [vmem:[#allocation119_spill] sm:$0xff] }
 0x315   : > { %19411 = vst [vmem:[#allocation274_spill] sm:$0xff] %v15052_v27  ;;  %19414 = vst [vmem:[#allocation205_spill] sm:$0xff] %v15061_v25  ;;  %v15069_v51 = vadd.f32 %v14585_v2, %v15040_v19  ;;  %v15073_v62 = vadd.f32 %v15049_v3, %v13498_v1  ;;  %v4364_v24 = vadd.f32 %v15047_v18, %v13500_v44  ;;  %v4685_v14 = vrot.slane %v15059_v57, 7 }
 0x316   : > { %19415 = vst [vmem:[#allocation275_spill] sm:$0xff] %v15065_v45  ;;  %v15079_v5 = vadd.f32 %v14914_v33, %v15052_v27  ;;  %v15083_v58 = vadd.f32 %v14587_v56, %v15052_v27  ;;  %v19420_v33 = vrot.slane %v14953_v48, 7  ;;  %v19424_v56 = vld [vmem:[#allocation116_spill] sm:$0xff]  ;;  %v19429_v45 = vld [vmem:[#allocation137_spill] sm:$0xff]  ;;  %v5094_v38 = vrot.slane %v14920_v53, 2 }
 0x317   : > { %19416 = vst [vmem:[#allocation276_spill] sm:$0xff] %v15069_v51  ;;  %v4399_v39 = vmax.f32 %v15045_v11, %v15073_v62  ;;  %v4400_v29 = vmax.f32 %v15057_v13, %v4364_v24  ;;  %v19425_v13 = vrot.slane %v15059_v57, 1  ;;  %v19426_v62 = vrot.slane %v14920_v53, 1  ;;  %v15146_v43 = vpop.permute.xlu0 %8137 }
 0x318   : > { %19417 = vst [vmem:[#allocation277_spill] sm:$0xff] %v15079_v5  ;;  %19418 = vst [vmem:[#allocation278_spill] sm:$0xff] %v15083_v58  ;;  %v4715_v7 = vsel %vm2253_vm12, %v19420_v33, %v19419_v12  ;;  %v19421_v1 = vmov %v19420_v33  ;;  %v19428_v33 = vrot.slane %v14953_v48, 1  ;;  %v15138_v47 = vpop.permute.xlu1 %8142 }
 0x319   : > { %v4716_v44 = vsel %vm2253_vm12, %v19422_v59, %v19421_v1  ;;  %v4752_v11 = vadd.f32 %v19424_v56, %v4715_v7  ;;  %v4852_v24 = vsel %vm2614_vm13, %v19426_v62, %v19425_v13  ;;  %v19427_v12 = vmov %v19426_v62  ;;  %v19430_v59 = vld [vmem:[#allocation136_spill] sm:$0xff] }
 0x31a   : > { %v4751_v2 = vadd.f32 %v19423_v55, %v4716_v44  ;;  %v4853_v21 = vsel %vm2614_vm13, %v19428_v33, %v19427_v12  ;;  %v4889_v44 = vadd.f32 %v19430_v59, %v4852_v24  ;;  %v19431_v7 = vrot.slane %v14920_v53, 6  ;;  %v19435_v33 = vld [vmem:[#allocation108_spill] sm:$0xff]  ;;  %v19436_v59 = vld [vmem:[#allocation25_spill] sm:$0xff] }
 0x31b   : > { %v4888_v1 = vadd.f32 %v19429_v45, %v4853_v21  ;;  %v19432_v56 = vrot.slane %v14953_v48, 6  ;;  %v19434_v62 = vrot.slane %v14796_v0, 6  ;;  %v4786_v21 = vmax.f32 %v14920_v53, %v4752_v11 }
 0x31c   : > { %v4785_v12 = vmax.f32 %v14953_v48, %v4751_v2  ;;  %v15144_v0 = vunpack.i.l.bf16 %v8118_v4  ;;  %v5981_v11 = vpack.c.bf16 %v14920_v53, %v14953_v48 }
 0x31d   : > { %v4989_v55 = vsel %vm2975_vm8, %v19432_v56, %v19431_v7  ;;  %v19433_v13 = vmov %v19432_v56  ;;  %v18088_v56 = vrot.slane %v15059_v57, 2  ;;  %v15142_v7 = vunpack.i.h.bf16 %v8118_v4 }
 0x31e   : > { %v4990_v5 = vsel %vm2975_vm8, %v19434_v62, %v19433_v13  ;;  %v5026_v45 = vadd.f32 %v19436_v59, %v4989_v55  ;;  %19438 = vst [vmem:[#allocation280_spill] sm:$0xff] %v15144_v0  ;;  %v4922_v13 = vmax.f32 %v4785_v12, %v4888_v1  ;;  %v4923_v2 = vmax.f32 %v4786_v21, %v4889_v44  ;;  %v19441_v21 = vld [vmem:[#allocation170_spill] sm:$0xff] }
 0x31f   : > { %v5025_v24 = vadd.f32 %v19435_v33, %v4990_v5  ;;  %19437 = vst [vmem:[#allocation279_spill] sm:$0xff] %v15142_v7  ;;  %v15150_v5 = vunpack.i.h.bf16 %v8133_v60  ;;  %v5126_v55 = vsel %vm3336_vm14, %v5094_v38, %v18088_v56  ;;  %v19440_v62 = vrot.slane %v14953_v48, 2  ;;  %7156 = vmatprep.mubr.bf16.mxu1 %v5981_v11 }
 0x320   : > { %v4113_v59 = vadd.f32 %v15144_v0, %v13839_v6  ;;  %v4114_v1 = vadd.f32 %v15142_v7, %v13841_v35  ;;  %v5060_v12 = vmax.f32 %v4923_v2, %v5026_v45  ;;  %v5163_v20 = vadd.f32 %v19442_v23, %v5126_v55 }
 0x321   : > { %19439 = vst [vmem:[#allocation281_spill] sm:$0xff] %v15150_v5  ;;  %v5127_v4 = vsel %vm3336_vm14, %v19440_v62, %v5094_v38  ;;  %v5059_v44 = vmax.f32 %v4922_v13, %v5025_v24  ;;  %v19443_v56 = vmax.f32 %v13627_v52, %v14453_v34  ;;  %v19444_v38 = vld [vmem:[#allocation213_spill] sm:$0xff]  ;;  %v15176_v0 = vunpack.i.l.bf16 %v8133_v60  ;;  %v15188_v34 = vpop.permute.xlu1 %8152 }
 0x322   : > { %v5162_v33 = vadd.f32 %v19441_v21, %v5127_v4  ;;  %v19445_v62 = vmax.f32 %v13629_v10, %v19444_v38  ;;  %v4616_v45 = vadd.f32 %v15150_v5, %v13841_v35  ;;  %v15182_v13 = vmax.f32 %v5060_v12, %v5163_v20  ;;  %v15202_v4 = vpop.permute.xlu0 %8147  ;;  %v19460_v38 = vld [vmem:[#allocation33_spill] sm:$0xff] }
 0x323   : > { %v15169_v48 = vmax.f32 %v19443_v56, %v4113_v59  ;;  %19446 = vst [vmem:[#allocation213_spill] sm:$0xff] %v15176_v0  ;;  %v15184_v2 = vunpack.i.h.bf16 %v8128_v41  ;;  %v15186_v11 = vunpack.i.l.bf16 %v8128_v41  ;;  %v4615_v59 = vadd.f32 %v15176_v0, %v13839_v6 }
 0x324   : > { %v15174_v46 = vmax.f32 %v19445_v62, %v4114_v1  ;;  %v15180_v24 = vmax.f32 %v5059_v44, %v5162_v33  ;;  %19448 = vst [vmem:[#allocation283_spill] sm:$0xff] %v15182_v13  ;;  %v15192_v56 = vmax.f32 %v4400_v29, %v4616_v45  ;;  %v19451_v60 = vrot.slane %v15061_v25, 7  ;;  %v19456_v62 = vld [vmem:[#allocation115_spill] sm:$0xff] }
 0x325   : > { %19449 = vst [vmem:[#allocation284_spill] sm:$0xff] %v15184_v2  ;;  %19450 = vst [vmem:[#allocation285_spill] sm:$0xff] %v15186_v11  ;;  %v19452_v33 = vrot.slane %v14920_v53, 7  ;;  %v15210_v29 = vadd.f32 %v15047_v18, %v15182_v13  ;;  %v4365_v1 = vadd.f32 %v15186_v11, %v13434_v42  ;;  %v4366_v44 = vadd.f32 %v15184_v2, %v13436_v49 }
 0x326   : > { %19447 = vst [vmem:[#allocation282_spill] sm:$0xff] %v15180_v24  ;;  %v4713_v55 = vsel %vm2253_vm12, %v4685_v14, %v19451_v60  ;;  %v15206_v41 = vadd.f32 %v15049_v3, %v15180_v24  ;;  %v15216_v12 = vmax.f32 %v4399_v39, %v4615_v59  ;;  %v8334_v60 = vld [vmem:[#allocation5 + $0xe0] sm:$0xff]   ;;  %v19458_v42 = vrot.slane %v15061_v25, 1  ;;  %v19505_v24 = vld [vmem:[#allocation71_spill] sm:$0xff] }
 0x327   : > { %v4714_v20 = vsel %vm2253_vm12, %v19452_v33, %v4685_v14  ;;  %19454 = vst [vmem:[#allocation287_spill] sm:$0xff] %v15210_v29  ;;  %v4401_v33 = vmax.f32 %v15169_v48, %v4365_v1  ;;  %v4402_v18 = vmax.f32 %v15174_v46, %v4366_v44  ;;  %v19457_v3 = vld [vmem:[#allocation114_spill] sm:$0xff]  ;;  %v19459_v21 = vrot.slane %v15059_v57, 1  ;;  %7236 = vmatprep.subr.bf16.mxu0 %v8334_v60 }
 0x328   : > { %19453 = vst [vmem:[#allocation286_spill] sm:$0xff] %v15206_v41  ;;  %19455 = vst [vmem:[#allocation288_spill] sm:$0xff] %v15216_v12  ;;  %v4753_v45 = vadd.f32 %v19456_v62, %v4714_v20  ;;  %v4754_v23 = vadd.f32 %v19457_v3, %v4713_v55  ;;  %v18097_v59 = vrot.slane %v15216_v12, 1  ;;  %v19461_v48 = vrot.slane %v15061_v25, 6  ;;  %7237 = vmatpush3.bf16.msra.mxu0 %v8334_v60  ;;  %v19468_v3 = vld [vmem:[#allocation27_spill] sm:$0xff]  ;;  %v15258_v62 = vpop.permute.xlu0 %8157 }
 0x329   : > { %v4851_v49 = vsel %vm2614_vm13, %v19459_v21, %v19458_v42  ;;  %v19462_v55 = vrot.slane %v15059_v57, 6  ;;  %v19464_v44 = vrot.slane %v14920_v53, 6  ;;  %19469 = vst [vmem:[#allocation290_spill] sm:$0xff] %v15258_v62  ;;  %v18098_v7 = vrot.slane %v15216_v12, 2 }
 0x32a   : > { %v4787_v20 = vmax.f32 %v15059_v57, %v4753_v45  ;;  %v4890_v14 = vadd.f32 %v19460_v38, %v4851_v49  ;;  %v4788_v46 = vmax.f32 %v15061_v25, %v4754_v23  ;;  %v5096_v45 = vrot.slane %v15061_v25, 2  ;;  %v15248_v49 = vpop.permute.xlu1 %8162 }
 0x32b   : > { %v4987_v1 = vsel %vm2975_vm8, %v19462_v55, %v19461_v48  ;;  %v19463_v21 = vmov %v19462_v55  ;;  %19465 = vst [vmem:[#allocation289_spill] sm:$0xff] %v15248_v49  ;;  %v19466_v23 = vrot.slane %v15061_v25, 1  ;;  %v19467_v55 = vld [vmem:[#allocation30_spill] sm:$0xff]  ;;  %v19471_v60 = vrot.slane %v15059_v57, 2 }
 0x32c   : > { %v4988_v42 = vsel %vm2975_vm8, %v19464_v44, %v19463_v21  ;;  %v4924_v48 = vmax.f32 %v4787_v20, %v4890_v14  ;;  %v5028_v53 = vadd.f32 %v19468_v3, %v4987_v1  ;;  %v19470_v21 = vld [vmem:[#allocation34_spill] sm:$0xff]  ;;  %v5982_v41 = vpack.c.bf16 %v15061_v25, %v15059_v57  ;;  %v19472_v14 = vld [vmem:[#allocation168_spill] sm:$0xff]  ;;  %v19475_v3 = vld [vmem:[#allocation19_spill] sm:$0xff] }
 0x32d   : > { %v4850_v39 = vsel %vm2614_vm13, %v19466_v23, %v18097_v59  ;;  %v5027_v38 = vadd.f32 %v19467_v55, %v4988_v42  ;;  %v5125_v29 = vsel %vm3336_vm14, %v19471_v60, %v5096_v45  ;;  %v18099_v42 = vunpack.i.h.bf16 %v15138_v47 }
 0x32e   : > { %v4891_v44 = vadd.f32 %v19470_v21, %v4850_v39  ;;  %v5164_v20 = vadd.f32 %v19472_v14, %v5125_v29  ;;  %v5124_v39 = vsel %vm3336_vm14, %v5096_v45, %v18098_v7  ;;  %7157 = vmatmul.mubr.bf16.gmra.mrb[8].mxu1 %v5982_v41  ;;  %v15275_v59 = vunpack.i.h.bf16 %v15146_v43  ;;  %v19479_v7 = vld [vmem:[#allocation104_spill] sm:$0xff] }
 0x32f   : > { %v5061_v23 = vmax.f32 %v4924_v48, %v5027_v38  ;;  %v15278_v60 = vunpack.i.l.bf16 %v15146_v43  ;;  %v5165_v57 = vadd.f32 %v19475_v3, %v5124_v39  ;;  %v8747_v29 = vadd.low.f32.bf16 %v19229_v8, %v15138_v47  ;;  %v19480_v3 = vld [vmem:[#allocation162_spill] sm:$0xff] }
 0x330   : > { %v4925_v1 = vmax.f32 %v4788_v46, %v4891_v44  ;;  %19473 = vst [vmem:[#allocation291_spill] sm:$0xff] %v15275_v59  ;;  %v4094_v46 = vadd.f32 %v18099_v42, %v19223_v17  ;;  %v4618_v45 = vadd.f32 %v15275_v59, %v13774_v36  ;;  %v8155_v43 = vunpack.i.h.bf16 %v15188_v34  ;;  %v8173_v44 = vpop.permute.xlu1 %8172 }
 0x331   : > { %19474 = vst [vmem:[#allocation292_spill] sm:$0xff] %v15278_v60  ;;  %v15281_v38 = vmax.f32 %v5061_v23, %v5164_v20  ;;  %v4617_v41 = vadd.f32 %v15278_v60, %v13772_v9  ;;  %v19478_v20 = vld [vmem:[#allocation42_spill] sm:$0xff]  ;;  %v19481_v14 = vmax.f32 %v19479_v7, %v19480_v3  ;;  %v19500_v58 = vunpack.i.h.bf16 %v15248_v49 }
 0x332   : > { %v5062_v48 = vmax.f32 %v4925_v1, %v5028_v53  ;;  %v4129_v39 = vmax.f32 %v19478_v20, %v8747_v29  ;;  %v18103_v53 = vunpack.i.l.bf16 %v15188_v34  ;;  %v15304_v1 = vpop.permute.xlu0 %8167  ;;  %v15310_v59 = vmax.f32 %v4402_v18, %v4618_v45  ;;  %v19487_v45 = vld [vmem:[#allocation194_spill] sm:$0xff] }
 0x333   : > { %19476 = vst [vmem:[#allocation293_spill] sm:$0xff] %v15281_v38  ;;  %v15295_v23 = vadd.f32 %v15186_v11, %v15281_v38  ;;  %v15301_v42 = vmax.f32 %v19481_v14, %v4094_v46  ;;  %v15308_v21 = vmax.f32 %v4401_v33, %v4617_v41  ;;  %v4098_v11 = vadd.f32 %v8155_v43, %v13165_v22  ;;  %v19486_v41 = vld [vmem:[#allocation159_spill] sm:$0xff]  ;;  %v19499_v38 = vld [vmem:[#allocation152_spill] sm:$0xff] }
 0x334   : > { %v15306_v55 = vmax.f32 %v5062_v48, %v5165_v57  ;;  %19484 = vst [vmem:[#allocation162_spill] sm:$0xff] %v15310_v59  ;;  %v4097_v29 = vadd.f32 %v18103_v53, %v19241_v26  ;;  %v15317_v3 = vadd.f32 %v8155_v43, %v14707_v30  ;;  %v18107_v46 = vunpack.i.l.bf16 %v15202_v4  ;;  %v19489_v43 = vld [vmem:[#allocation160_spill] sm:$0xff] }
 0x335   : > { %19477 = vst [vmem:[#allocation294_spill] sm:$0xff] %v15295_v23  ;;  %19483 = vst [vmem:[#allocation104_spill] sm:$0xff] %v15308_v21  ;;  %v19488_v20 = vmax.f32 %v19486_v41, %v19487_v45  ;;  %v19490_v23 = vld [vmem:[#allocation195_spill] sm:$0xff]  ;;  %v19492_v18 = vunpack.i.h.bf16 %v15202_v4  ;;  %v5983_v48 = vpack.c.bf16 %v15192_v56, %v15216_v12  ;;  %v4348_v13 = vadd.f32 %v19500_v58, %v19499_v38 }
 0x336   : > { %19482 = vst [vmem:[#allocation42_spill] sm:$0xff] %v15306_v55  ;;  %v15323_v57 = vadd.f32 %v15184_v2, %v15306_v55  ;;  %v19491_v14 = vmax.f32 %v19489_v43, %v19490_v23  ;;  %v4095_v2 = vadd.f32 %v18107_v46, %v19486_v41  ;;  %v15349_v23 = vpop.permute.xlu1 %8182  ;;  %v19496_v46 = vld [vmem:[#allocation123_spill] sm:$0xff]  ;;  %v15359_v55 = vpop.permute.xlu0 %8177  ;;  %v8748_v19 = vadd.low.f32.bf16 %v19505_v24, %v15258_v62 }
 0x337   : > { %v15331_v53 = vmax.f32 %v19488_v20, %v4097_v29  ;;  %v4096_v33 = vadd.f32 %v19492_v18, %v19489_v43  ;;  %v18124_v29 = vunpack.i.l.bf16 %v15248_v49  ;;  %19493 = vst [vmem:[#allocation159_spill] sm:$0xff] %v15349_v23  ;;  %v19497_v5 = vmax.f32 %v19223_v17, %v19496_v46  ;;  %7160 = vmatprep.mubr.bf16.mxu1 %v5983_v48  ;;  %v19498_v45 = vld [vmem:[#allocation103_spill] sm:$0xff]  ;;  %v19503_v46 = vld [vmem:[#allocation112_spill] sm:$0xff] }
 0x338   : > { %19485 = vst [vmem:[#allocation295_spill] sm:$0xff] %v15323_v57  ;;  %v15336_v60 = vmax.f32 %v19491_v14, %v4098_v11  ;;  %v19494_v11 = vld [vmem:[#allocation190_spill] sm:$0xff]  ;;  %v5984_v18 = vpack.c.bf16 %v15310_v59, %v15308_v21  ;;  %v18126_v48 = vunpack.i.h.bf16 %v15304_v1  ;;  %v18125_v58 = vunpack.i.l.bf16 %v15304_v1  ;;  %v8338_v38 = vld [vmem:[#allocation5 + $0xe8] sm:$0xff]  }
 0x339   : > { %v19495_v14 = vmax.f32 %v19229_v8, %v19494_v11  ;;  %v4132_v0 = vmax.f32 %v19497_v5, %v4096_v33  ;;  %v4347_v20 = vadd.f32 %v18124_v29, %v19498_v45  ;;  %v19501_v11 = vld [vmem:[#allocation18_spill] sm:$0xff]  ;;  %v19504_v5 = vld [vmem:[#allocation69_spill] sm:$0xff]  ;;  %v4381_v29 = vmax.f32 %v4129_v39, %v8748_v19  ;;  %7238 = vmatprep.subr.bf16.mxu0 %v8338_v38 }
 0x33a   : > { %v5953_v33 = vpack.c.bf16 %v19504_v5, %v19503_v46  ;;  %7161 = vmatmul.mubr.bf16.gmra.mrb[12].mxu1 %v5984_v18  ;;  %v15382_v24 = vadd.f32 %v18126_v48, %v19479_v7  ;;  %v18129_v19 = vunpack.i.h.bf16 %v15359_v55  ;;  %v15392_v39 = vpop.permute.xlu1 %8192  ;;  %v15400_v46 = vpop.permute.xlu0 %8187  ;;  %7239 = vmatpush3.bf16.msra.mxu0 %v8338_v38  ;;  %v19510_v38 = vld [vmem:[#allocation26_spill] sm:$0xff] }
 0x33b   : > { %v4131_v57 = vmax.f32 %v19495_v14, %v4095_v2  ;;  %v19502_v2 = vunpack.i.h.bf16 %v15258_v62  ;;  %v4384_v51 = vmax.f32 %v4132_v0, %v4348_v13  ;;  %v15387_v0 = vadd.f32 %v18125_v58, %v19506_v31 }
 0x33c   : > { %7180 = vmatprep.mubr.bf16.mxu1 %v5953_v33  ;;  %v8185_v13 = vunpack.i.h.bf16 %v15349_v23 }
 0x33d   : > { %v4346_v14 = vadd.f32 %v19502_v2, %v19501_v11  ;;  %v4383_v27 = vmax.f32 %v4131_v57, %v4347_v20  ;;  %v8749_v11 = vadd.low.f32.bf16 %v19506_v31, %v8173_v44  ;;  %v8750_v2 = vadd.high.f32.bf16 %v19479_v7, %v8173_v44  ;;  %v19507_v44 = vld [vmem:[#allocation20_spill] sm:$0xff] }
 0x33e   : > { %v19508_v20 = vld [vmem:[#allocation88_spill] sm:$0xff]  ;;  %v4600_v58 = vadd.f32 %v8185_v13, %v13165_v22 }
 0x33f   : > { %v4382_v45 = vmax.f32 %v15301_v42, %v4346_v14  ;;  %v18128_v42 = vunpack.i.l.bf16 %v15349_v23  ;;  %v15395_v57 = vmax.f32 %v19507_v44, %v8749_v11  ;;  %v4128_v18 = vmax.f32 %v19508_v20, %v8750_v2  ;;  %v19511_v20 = vld [vmem:[#allocation98_spill] sm:$0xff]  ;;  %v8329_v14 = vld [vmem:[#allocation5 + $0x88] sm:$0xff]  }
 0x340   : > { %v15409_v11 = vadd.f32 %v8185_v13, %v14707_v30  ;;  %v8751_v2 = vadd.low.f32.bf16 %v19486_v41, %v15359_v55  ;;  %v4598_v44 = vadd.f32 %v18129_v19, %v19489_v43  ;;  %v5955_v48 = vpack.c.bf16 %v19511_v20, %v19510_v38  ;;  %v19513_v41 = vld [vmem:[#allocation113_spill] sm:$0xff]  ;;  %v19515_v43 = vld [vmem:[#allocation95_spill] sm:$0xff] }
 0x341   : > { %v4599_v33 = vadd.f32 %v18128_v42, %v19241_v26  ;;  %v15420_v23 = vmax.f32 %v4384_v51, %v4600_v58  ;;  %v19512_v42 = vld [vmem:[#allocation68_spill] sm:$0xff]  ;;  %v8752_v19 = vadd.high.f32.bf16 %v19515_v43, %v15392_v39  ;;  %v19517_v38 = vld [vmem:[#allocation127_spill] sm:$0xff]  ;;  %v19523_v30 = vld [vmem:[#allocation89_spill] sm:$0xff] }
 0x342   : > { %19509 = vst [vmem:[#allocation194_spill] sm:$0xff] %v15409_v11  ;;  %v15423_v26 = vmax.f32 %v4381_v29, %v8751_v2  ;;  %v15425_v13 = vmax.f32 %v4382_v45, %v4598_v44  ;;  %v19514_v63 = vpack.c.bf16 %v19512_v42, %v19513_v41  ;;  %v8330_v2 = vld [vmem:[#allocation5 + $0x90] sm:$0xff]   ;;  %v19524_v52 = vunpack.i.h.bf16 %v19523_v30 }
 0x343   : > { %v15418_v5 = vmax.f32 %v4383_v27, %v4599_v33  ;;  %v18130_v51 = vrot.slane %v15420_v23, 7  ;;  %v18131_v29 = vrot.slane %v15420_v23, 1  ;;  %v19516_v41 = vld [vmem:[#allocation36_spill] sm:$0xff] }
 0x344   : > { %7181 = vmatmul.mubr.bf16.vlgmr.msra.gmra.mrb[0].mxu1 %v19514_v63  ;;  %v18136_v63 = vrot.slane %v15420_v23, 6  ;;  %v4670_v20 = vrot.slane %v15425_v13, 7  ;;  %v4944_v10 = vrot.slane %v15425_v13, 6  ;;  %v19531_v21 = vrot.slane %v15425_v13, 2 }
 0x345   : > { %v4671_v27 = vrot.slane %v15418_v5, 7  ;;  %v4807_v58 = vrot.slane %v15418_v5, 1  ;;  %7184 = vmatprep.mubr.bf16.mxu1 %v5955_v48  ;;  %7197 = vmatpush3.bf16.msra.mxu1 %v15018_v16  ;;  %v4945_v45 = vrot.slane %v15418_v5, 6  ;;  %v19519_v43 = vrot.slane %v15418_v5, 2  ;;  %v19520_v48 = vld [vmem:[#allocation48_spill] sm:$0xff] }
 0x346   : > { %7198 = vmatprep.subr.bf16.mxu1 %v8329_v14 }
 0x347   : > { %v4727_v44 = vsel %vm2253_vm12, %v4671_v27, %v18130_v51  ;;  %v4865_v16 = vsel %vm2614_vm13, %v4807_v58, %v18131_v29  ;;  %v5001_v33 = vsel %vm2975_vm8, %v4945_v45, %v18136_v63  ;;  %v19518_v51 = vrot.slane %v15420_v23, 2 }
 0x348   : > { %v15453_v22 = vadd.f32 %v19516_v41, %v4727_v44  ;;  %v4876_v42 = vadd.f32 %v19517_v38, %v4865_v16  ;;  %v15467_v61 = vadd.f32 %v19520_v48, %v5001_v33  ;;  %v4728_v16 = vsel %vm2253_vm12, %v4670_v20, %v4671_v27 }
 0x349   : > { %v5139_v29 = vsel %vm3336_vm14, %v19519_v43, %v19518_v51  ;;  %v19522_v38 = vrot.slane %v15423_v26, 7  ;;  %7199 = vmatpush3.bf16.msra.mxu1 %v8329_v14  ;;  %v19525_v51 = vld [vmem:[#allocation37_spill] sm:$0xff]  ;;  %v18145_v48 = vrot.slane %v15423_v26, 1  ;;  %v4806_v27 = vrot.slane %v15425_v13, 1 }
 0x34a   : > { %v5150_v44 = vadd.f32 %v19521_v32, %v5139_v29  ;;  %v4739_v33 = vadd.f32 %v19525_v51, %v4728_v16  ;;  %7200 = vmatprep.subr.bf16.mxu1 %v8330_v2  ;;  %v8332_v29 = vld [vmem:[#allocation5 + $0x98] sm:$0xff]   ;;  %v5002_v32 = vsel %vm2975_vm8, %v4944_v10, %v4945_v45  ;;  %v15497_v51 = vmax.f32 %v4128_v18, %v8752_v19  ;;  %v8333_v18 = vld [vmem:[#allocation5 + $0xa0] sm:$0xff]  }
 0x34b   : > { %v4729_v63 = vsel %vm2253_vm12, %v19522_v38, %v4670_v20  ;;  %v4867_v41 = vsel %vm2614_vm13, %v18145_v48, %v4806_v27  ;;  %v19532_v48 = vrot.slane %v15423_v26, 2  ;;  %v19533_v45 = vld [vmem:[#allocation70_spill] sm:$0xff]  ;;  %v19560_v25 = vmax.f32 %v15420_v23, %v15453_v22 }
 0x34c   : > { %v4738_v43 = vadd.f32 %v19524_v52, %v4729_v63  ;;  %v4773_v20 = vmax.f32 %v15418_v5, %v4739_v33  ;;  %v19526_v63 = vld [vmem:[#allocation139_spill] sm:$0xff]  ;;  %v19528_v33 = vld [vmem:[#allocation124_spill] sm:$0xff]  ;;  %v19534_v50 = vunpack.i.l.bf16 %v19533_v45 }
 0x34d   : > { %v8753_v16 = vadd.low.f32.bf16 %v19526_v63, %v15392_v39  ;;  %7201 = vmatpush3.bf16.msra.mxu1 %v8330_v2  ;;  %v19529_v52 = vunpack.i.l.bf16 %v19528_v33  ;;  %v19530_v63 = vld [vmem:[#allocation97_spill] sm:$0xff]  ;;  %v5141_v19 = vsel %vm3336_vm14, %v19532_v48, %v19531_v21  ;;  %v19537_v21 = vld [vmem:[#allocation234_spill] sm:$0xff] }
 0x34e   : > { %v4772_v38 = vmax.f32 %v15425_v13, %v4738_v43  ;;  %v19527_v43 = vunpack.i.l.bf16 %v15400_v46  ;;  %v4910_v39 = vmax.f32 %v4773_v20, %v4876_v42  ;;  %v5013_v62 = vadd.f32 %v19530_v63, %v5002_v32  ;;  %7202 = vmatprep.subr.bf16.mxu1 %v8332_v29 }
 0x34f   : > { %v15504_v59 = vadd.f32 %v19529_v52, %v4867_v41  ;;  %v15518_v2 = vmax.f32 %v15395_v57, %v8753_v16  ;;  %v19535_v42 = vunpack.i.h.bf16 %v15400_v46  ;;  %v19536_v41 = vmax.f32 %v15331_v53, %v15387_v0 }
 0x350   : > { %v4601_v14 = vadd.f32 %v19527_v43, %v19247_v54  ;;  %v15515_v54 = vadd.f32 %v19534_v50, %v5141_v19  ;;  %v5047_v52 = vmax.f32 %v4910_v39, %v5013_v62  ;;  %v19538_v48 = vrot.slane %v19537_v21, 1  ;;  %v19539_v43 = vld [vmem:[#allocation237_spill] sm:$0xff] }
 0x351   : > { %v4602_v32 = vadd.f32 %v19535_v42, %v19246_v28  ;;  %v19540_v63 = vrot.slane %v19539_v43, 1  ;;  %v4866_v57 = vsel %vm2614_vm13, %v4806_v27, %v4807_v58  ;;  %v19541_v16 = vrot.slane %v15423_v26, 6  ;;  %7203 = vmatpush3.bf16.msra.mxu1 %v8332_v29  ;;  %v19545_v58 = vld [vmem:[#allocation131_spill] sm:$0xff] }
 0x352   : > { %v15526_v20 = vmax.f32 %v19536_v41, %v4601_v14  ;;  %v19542_v53 = vmax.f32 %v15336_v60, %v15382_v24  ;;  %v19543_v39 = vunpack.i.h.bf16 %v19528_v33  ;;  %v19546_v41 = vld [vmem:[#allocation90_spill] sm:$0xff]  ;;  %7204 = vmatprep.subr.bf16.mxu1 %v8333_v18  ;;  %v8335_v60 = vld [vmem:[#allocation5 + $0xa8] sm:$0xff]   ;;  %v19549_v29 = vrot.slane %v15420_v23, 1 }
 0x353   : > { %v4861_v50 = vsel %vm2614_vm13, %v19540_v63, %v19538_v48  ;;  %v5003_v28 = vsel %vm2975_vm8, %v19541_v16, %v4944_v10  ;;  %v15547_v63 = vmax.f32 %v5047_v52, %v5150_v44  ;;  %v19547_v10 = vunpack.i.h.bf16 %v19546_v41  ;;  %v19550_v52 = vld [vmem:[#allocation49_spill] sm:$0xff] }
 0x354   : > { %v4638_v0 = vmax.f32 %v19542_v53, %v4602_v32  ;;  %v4673_v62 = vrot.slane %v15526_v20, 7  ;;  %v4809_v14 = vrot.slane %v15526_v20, 1  ;;  %v4875_v19 = vadd.f32 %v19543_v39, %v4866_v57  ;;  %v19553_v39 = vld [vmem:[#allocation126_spill] sm:$0xff] }
 0x355   : > { %19544 = vst [vmem:[#allocation160_spill] sm:$0xff] %v15547_v63  ;;  %v4880_v27 = vadd.f32 %v19545_v58, %v4861_v50  ;;  %v4947_v42 = vrot.slane %v15526_v20, 6  ;;  %v5012_v48 = vadd.f32 %v19547_v10, %v5003_v28  ;;  %v19548_v32 = vrot.slane %v15420_v23, 7  ;;  %v19552_v28 = vld [vmem:[#allocation32_spill] sm:$0xff]  ;;  %7205 = vmatpush3.bf16.msra.mxu1 %v8333_v18 }
 0x356   : > { %v4674_v24 = vrot.slane %v4638_v0, 7  ;;  %v4810_v33 = vrot.slane %v4638_v0, 1  ;;  %v4864_v44 = vsel %vm2614_vm13, %v19549_v29, %v4809_v14  ;;  %v19551_v50 = vunpack.i.l.bf16 %v19550_v52  ;;  %7206 = vmatprep.subr.bf16.mxu1 %v8335_v60 }
 0x357   : > { %v4726_v16 = vsel %vm2253_vm12, %v19548_v32, %v4673_v62  ;;  %v4877_v10 = vadd.f32 %v19553_v39, %v4864_v44  ;;  %v4909_v58 = vmax.f32 %v4772_v38, %v4875_v19  ;;  %v19554_v40 = vrot.slane %v19539_v43, 7  ;;  %v19557_v38 = vld [vmem:[#allocation61_spill] sm:$0xff] }
 0x358   : > { %v15564_v57 = vadd.f32 %v19551_v50, %v15547_v63  ;;  %v4741_v53 = vadd.f32 %v19552_v28, %v4726_v16  ;;  %v4725_v11 = vsel %vm2253_vm12, %v4673_v62, %v4674_v24  ;;  %v19555_v29 = vrot.slane %v19539_v43, 1  ;;  %v19556_v16 = vld [vmem:[#allocation31_spill] sm:$0xff]  ;;  %v19558_v28 = vld [vmem:[#allocation72_spill] sm:$0xff]  ;;  %v19559_v62 = vld [vmem:[#allocation73_spill] sm:$0xff] }
 0x359   : > { %v4724_v32 = vsel %vm2253_vm12, %v4674_v24, %v19554_v40  ;;  %v4863_v50 = vsel %vm2614_vm13, %v4809_v14, %v4810_v33  ;;  %v4742_v44 = vadd.f32 %v19556_v16, %v4725_v11  ;;  %v8336_v63 = vld [vmem:[#allocation5 + $0xb0] sm:$0xff]   ;;  %v4948_v12 = vrot.slane %v4638_v0, 6  ;;  %7207 = vmatpush3.bf16.msra.mxu1 %v8335_v60 }
 0x35a   : > { %v4862_v49 = vsel %vm2614_vm13, %v4810_v33, %v19555_v29  ;;  %v4743_v19 = vadd.f32 %v19557_v38, %v4724_v32  ;;  %v4775_v39 = vmax.f32 %v15526_v20, %v4741_v53  ;;  %v4878_v40 = vadd.f32 %v19558_v28, %v4863_v50  ;;  %v19562_v32 = vld [vmem:[#allocation94_spill] sm:$0xff]  ;;  %7208 = vmatprep.subr.bf16.mxu1 %v8336_v63 }
 0x35b   : > { %v4879_v24 = vadd.f32 %v19559_v62, %v4862_v49  ;;  %v4911_v29 = vmax.f32 %v19560_v25, %v4877_v10  ;;  %v19561_v14 = vrot.slane %v15420_v23, 6  ;;  %v4776_v18 = vmax.f32 %v4638_v0, %v4742_v44  ;;  %v19564_v44 = vld [vmem:[#allocation92_spill] sm:$0xff] }
 0x35c   : > { %v4777_v33 = vmax.f32 %v19539_v43, %v4743_v19  ;;  %v4912_v53 = vmax.f32 %v4775_v39, %v4878_v40  ;;  %v19563_v28 = vrot.slane %v19539_v43, 6  ;;  %v4999_v25 = vsel %vm2975_vm8, %v4947_v42, %v4948_v12  ;;  %v19565_v19 = vld [vmem:[#allocation99_spill] sm:$0xff]  ;;  %v8337_v40 = vld [vmem:[#allocation5 + $0xb8] sm:$0xff]  }
 0x35d   : > { %v5000_v11 = vsel %vm2975_vm8, %v19561_v14, %v4947_v42  ;;  %v5046_v22 = vmax.f32 %v4909_v58, %v5012_v48  ;;  %v5048_v10 = vmax.f32 %v4911_v29, %v15467_v61  ;;  %v4913_v62 = vmax.f32 %v4776_v18, %v4879_v24  ;;  %v19570_v24 = vld [vmem:[#allocation76_spill] sm:$0xff]  ;;  %7209 = vmatpush3.bf16.msra.mxu1 %v8336_v63 }
 0x35e   : > { %v5015_v50 = vadd.f32 %v19562_v32, %v5000_v11  ;;  %v4998_v49 = vsel %vm2975_vm8, %v4948_v12, %v19563_v28  ;;  %v4914_v14 = vmax.f32 %v4777_v33, %v4880_v27  ;;  %v5016_v38 = vadd.f32 %v19564_v44, %v4999_v25  ;;  %v19574_v33 = vld [vmem:[#allocation74_spill] sm:$0xff]  ;;  %7210 = vmatprep.subr.bf16.mxu1 %v8337_v40  ;;  %v19610_v44 = vld [vmem:[#allocation21_spill] sm:$0xff] }
 0x35f   : > { %v5017_v39 = vadd.f32 %v19565_v19, %v4998_v49  ;;  %v5083_v32 = vrot.slane %v15526_v20, 2  ;;  %v5084_v16 = vrot.slane %v4638_v0, 2  ;;  %v19566_v28 = vrot.slane %v19537_v21, 2  ;;  %v8203_v20 = vpop.permute.xlu1 %8202 }
 0x360   : > { %v5049_v11 = vmax.f32 %v4912_v53, %v5015_v50  ;;  %v19567_v12 = vrot.slane %v19539_v43, 2  ;;  %v5050_v58 = vmax.f32 %v4913_v62, %v5016_v38  ;;  %v19568_v27 = vrot.slane %v15418_v5, 2  ;;  %v19575_v50 = vld [vmem:[#allocation155_spill] sm:$0xff]  ;;  %v19576_v43 = vld [vmem:[#allocation154_spill] sm:$0xff] }
 0x361   : > { %v5051_v42 = vmax.f32 %v4914_v14, %v5017_v39  ;;  %v19569_v48 = vrot.slane %v15425_v13, 2  ;;  %v5137_v18 = vsel %vm3336_vm14, %v5083_v32, %v5084_v16  ;;  %v19572_v38 = vrot.slane %v15420_v23, 2  ;;  %v8198_v39 = vpop.permute.xlu0 %8197  ;;  %v19577_v23 = vld [vmem:[#allocation255_spill] sm:$0xff]  ;;  %7211 = vmatpush3.bf16.msra.mxu1 %v8337_v40 }
 0x362   : > { %v5135_v61 = vsel %vm3336_vm14, %v19567_v12, %v19566_v28  ;;  %v19571_v0 = vmov %v19567_v12  ;;  %v19573_v13 = vunpack.i.h.bf16 %v19533_v45  ;;  %v5152_v49 = vadd.f32 %v19575_v50, %v5137_v18 }
 0x363   : > { %v5140_v60 = vsel %vm3336_vm14, %v19569_v48, %v19568_v27  ;;  %v5154_v29 = vadd.f32 %v19570_v24, %v5135_v61  ;;  %v5136_v21 = vsel %vm3336_vm14, %v5084_v16, %v19571_v0  ;;  %v5138_v5 = vsel %vm3336_vm14, %v19572_v38, %v5083_v32  ;;  %v19584_v0 = vld [vmem:[#allocation50_spill] sm:$0xff] }
 0x364   : > { %v5149_v62 = vadd.f32 %v19573_v13, %v5140_v60  ;;  %v5151_v53 = vadd.f32 %v19574_v33, %v5138_v5  ;;  %v5153_v25 = vadd.f32 %v19576_v43, %v5136_v21  ;;  %v19578_v28 = vunpack.i.l.bf16 %v15400_v46  ;;  %v15670_v13 = vld [vmem:[#allocation5 + $0xc0] sm:$0xff]   ;;  %v8339_v43 = vld [vmem:[#allocation5 + $0xf0] sm:$0xff]  }
 0x365   : > { %v15632_v14 = vmax.f32 %v5051_v42, %v5154_v29  ;;  %v19580_v45 = vunpack.i.h.bf16 %v15400_v46  ;;  %v15646_v61 = vmax.f32 %v5049_v11, %v5152_v49  ;;  %v19581_v42 = vld [vmem:[#allocation183_spill] sm:$0xff]  ;;  %v19583_v60 = vunpack.i.h.bf16 %v15304_v1  ;;  %19588 = vst [vmem:[#allocation190_spill] sm:$0xff] %v15670_v13  ;;  %7260 = vmatprep.subr.bf16.mxu1 %v15670_v13  ;;  %v19591_v49 = vld [vmem:[#allocation225_spill] sm:$0xff]  ;;  %v19597_v24 = vld [vmem:[#allocation62_spill] sm:$0xff]  ;;  %7240 = vmatprep.subr.bf16.mxu0 %v8339_v43 }
 0x366   : > { %v15634_v16 = vmax.f32 %v5046_v22, %v5149_v62  ;;  %v15639_v32 = vadd.f32 %v19578_v28, %v19577_v23  ;;  %v15644_v12 = vmax.f32 %v5048_v10, %v5151_v53  ;;  %v15648_v27 = vmax.f32 %v5050_v58, %v5153_v25  ;;  %7241 = vmatpush3.bf16.msra.mxu0 %v8339_v43 }
 0x367   : > { %v5373_v63 = vadd.f32 %v19580_v45, %v14787_v15  ;;  %v19582_v48 = vunpack.i.h.bf16 %v19581_v42  ;;  %v8754_v21 = vadd.high.f32.bf16 %v19584_v0, %v8203_v20  ;;  %v19585_v46 = vunpack.i.h.bf16 %v19550_v52  ;;  %v19589_v52 = vld [vmem:[#allocation233_spill] sm:$0xff] }
 0x368   : > { %19579 = vst [vmem:[#allocation195_spill] sm:$0xff] %v15639_v32  ;;  %v5321_v29 = vadd.f32 %v19583_v60, %v15634_v16  ;;  %v5242_v11 = vmax.f32 %v15646_v61, %v15564_v57  ;;  %v19586_v58 = vunpack.i.l.bf16 %v15202_v4  ;;  %v19587_v38 = vunpack.i.h.bf16 %v15202_v4  ;;  %v19590_v57 = vld [vmem:[#allocation80_spill] sm:$0xff]  ;;  %v15687_v60 = vpop.permute.xlu1 %8212 }
 0x369   : > { %v5215_v22 = vadd.f32 %v19582_v48, %v15634_v16  ;;  %v5217_v10 = vadd.f32 %v19585_v46, %v15644_v12  ;;  %v15676_v62 = vadd.f32 %v19589_v52, %v15646_v61  ;;  %v8755_v53 = vadd.low.f32.bf16 %v19590_v57, %v8203_v20  ;;  %v19594_v20 = vld [vmem:[#allocation138_spill] sm:$0xff] }
 0x36a   : > { %v15665_v18 = vadd.f32 %v19586_v58, %v15646_v61  ;;  %v5267_v5 = vadd.f32 %v19587_v38, %v15648_v27  ;;  %v15680_v25 = vmax.f32 %v19591_v49, %v8754_v21  ;;  %v8756_v4 = vadd.high.f32.bf16 %v19223_v17, %v8198_v39  ;;  %v19593_v58 = vld [vmem:[#allocation229_spill] sm:$0xff]  ;;  %v19595_v52 = vld [vmem:[#allocation86_spill] sm:$0xff] }
 0x36b   : > { %v5241_v40 = vmax.f32 %v15644_v12, %v5215_v22  ;;  %v5243_v28 = vmax.f32 %v15648_v27, %v5217_v10  ;;  %v19592_v45 = vunpack.i.l.bf16 %v15188_v34  ;;  %v15689_v22 = vpop.permute.xlu0 %8207  ;;  %v4377_v38 = vmax.f32 %v19593_v58, %v8755_v53  ;;  %v19596_v49 = vld [vmem:[#allocation93_spill] sm:$0xff] }
 0x36c   : > { %v5956_v21 = vpack.c.bf16 %v19595_v52, %v19594_v20  ;;  %v5957_v10 = vpack.c.bf16 %v19597_v24, %v19596_v49  ;;  %v8757_v33 = vadd.low.f32.bf16 %v19229_v8, %v8198_v39  ;;  %v4632_v34 = vmax.f32 %v15497_v51, %v8756_v4 }
 0x36d   : > { %v5268_v48 = vadd.f32 %v19592_v45, %v15632_v14  ;;  %v15691_v46 = vmax.f32 %v5241_v40, %v5267_v5  ;;  %v5295_v17 = vmax.f32 %v5243_v28, %v15317_v3  ;;  %v18156_v5 = vunpack.i.h.bf16 %v15687_v60 }
 0x36e   : > { %7185 = vmatmul.mubr.bf16.gmra.mrb[4].mxu1 %v5956_v21  ;;  %v18157_v40 = vunpack.i.l.bf16 %v15687_v60  ;;  %v15706_v52 = vmax.f32 %v15518_v2, %v8757_v33  ;;  %v4668_v58 = vrot.slane %v4632_v34, 7  ;;  %v4804_v24 = vrot.slane %v4632_v34, 1 }
 0x36f   : > { %v15701_v45 = vmax.f32 %v5242_v11, %v5268_v48  ;;  %v5347_v53 = vmax.f32 %v5295_v17, %v5321_v29  ;;  %7188 = vmatprep.mubr.bf16.mxu1 %v5957_v10  ;;  %v4942_v3 = vrot.slane %v4632_v34, 6  ;;  %v5078_v8 = vrot.slane %v4632_v34, 2 }
 0x370   : > { %v4115_v51 = vadd.f32 %v18157_v40, %v13772_v9  ;;  %v4116_v39 = vadd.f32 %v18156_v5, %v13774_v36  ;;  %v4667_v2 = vrot.slane %v15706_v52, 7  ;;  %v19600_v33 = vrot.slane %v15423_v26, 7 }
 0x371   : > { %19598 = vst [vmem:[#allocation123_spill] sm:$0xff] %v15701_v45  ;;  %v15714_v11 = vmax.f32 %v5347_v53, %v5373_v63  ;;  %v4803_v28 = vrot.slane %v15706_v52, 1  ;;  %v19601_v4 = vunpack.i.l.bf16 %v19523_v30  ;;  %v19602_v20 = vrot.slane %v15423_v26, 1 }
 0x372   : > { %v4730_v29 = vsel %vm2253_vm12, %v4668_v58, %v19600_v33  ;;  %v4941_v43 = vrot.slane %v15706_v52, 6  ;;  %v19603_v63 = vrot.slane %v15423_v26, 6  ;;  %v4731_v33 = vsel %vm2253_vm12, %v4667_v2, %v4668_v58 }
 0x373   : > { %19599 = vst [vmem:[#allocation103_spill] sm:$0xff] %v15714_v11  ;;  %v4737_v48 = vadd.f32 %v19601_v4, %v4730_v29  ;;  %v4868_v21 = vsel %vm2614_vm13, %v4804_v24, %v19602_v20  ;;  %v4869_v4 = vsel %vm2614_vm13, %v4803_v28, %v4804_v24  ;;  %v19604_v20 = vld [vmem:[#allocation66_spill] sm:$0xff]  ;;  %v19609_v53 = vunpack.i.l.bf16 %v19546_v41 }
 0x374   : > { %v5004_v49 = vsel %vm2975_vm8, %v4942_v3, %v19603_v63  ;;  %v19605_v5 = vunpack.i.h.bf16 %v19604_v20  ;;  %v19606_v63 = vld [vmem:[#allocation96_spill] sm:$0xff]  ;;  %v19608_v17 = vunpack.i.l.bf16 %v19604_v20  ;;  %v5005_v30 = vsel %vm2975_vm8, %v4941_v43, %v4942_v3 }
 0x375   : > { %v4771_v29 = vmax.f32 %v15423_v26, %v4737_v48  ;;  %v19607_v50 = vunpack.i.h.bf16 %v19606_v63  ;;  %v5011_v58 = vadd.f32 %v19609_v53, %v5004_v49  ;;  %v19611_v11 = vunpack.i.h.bf16 %v19610_v44  ;;  %v19615_v3 = vld [vmem:[#allocation212_spill] sm:$0xff] }
 0x376   : > { %v4873_v40 = vadd.f32 %v19605_v5, %v4868_v21  ;;  %v4872_v19 = vadd.f32 %v19608_v17, %v4869_v4  ;;  %v5077_v32 = vrot.slane %v15706_v52, 2  ;;  %v19612_v5 = vrot.slane %v15423_v26, 2  ;;  %v19613_v17 = vld [vmem:[#allocation41_spill] sm:$0xff] }
 0x377   : > { %v4736_v10 = vadd.f32 %v19607_v50, %v4731_v33  ;;  %v4908_v48 = vmax.f32 %v4771_v29, %v15504_v59  ;;  %v5010_v24 = vadd.f32 %v19611_v11, %v5005_v30  ;;  %v19614_v33 = vunpack.i.h.bf16 %v19613_v17  ;;  %v19617_v59 = vld [vmem:[#allocation211_spill] sm:$0xff]  ;;  %v15772_v30 = vpop.permute.xlu1 %8222 }
 0x378   : > { %v5142_v50 = vsel %vm3336_vm14, %v5078_v8, %v19612_v5  ;;  %v19616_v41 = vmax.f32 %v13839_v6, %v19615_v3  ;;  %v19618_v53 = vmax.f32 %v13841_v35, %v19617_v59  ;;  %v5143_v29 = vsel %vm3336_vm14, %v5077_v32, %v5078_v8 }
 0x379   : > { %v4770_v21 = vmax.f32 %v4632_v34, %v4736_v10  ;;  %v5147_v4 = vadd.f32 %v19614_v33, %v5142_v50  ;;  %v5045_v26 = vmax.f32 %v4908_v48, %v5011_v58  ;;  %v8758_v34 = vadd.low.f32.bf16 %v19506_v31, %v15689_v22 }
 0x37a   : > { %v15765_v49 = vmax.f32 %v19616_v41, %v4115_v51  ;;  %v15770_v11 = vmax.f32 %v19618_v53, %v4116_v39  ;;  %v8759_v10 = vadd.high.f32.bf16 %v19479_v7, %v15689_v22  ;;  %v19619_v51 = vunpack.i.l.bf16 %v19613_v17  ;;  %v15793_v22 = vld [vmem:[#allocation5 + $0xf8] sm:$0xff]   ;;  %v19624_v17 = vld [vmem:[#allocation288_spill] sm:$0xff] }
 0x37b   : > { %v4907_v20 = vmax.f32 %v4770_v21, %v4873_v40  ;;  %v19620_v39 = vunpack.i.h.bf16 %v15138_v47  ;;  %v19621_v58 = vunpack.i.h.bf16 %v15359_v55  ;;  %v5182_v8 = vmax.f32 %v5045_v26, %v15515_v54  ;;  %19622 = vst [vmem:[#allocation152_spill] sm:$0xff] %v15793_v22  ;;  %v19627_v54 = vld [vmem:[#allocation205_spill] sm:$0xff]  ;;  %7242 = vmatprep.subr.bf16.mxu0 %v15793_v22 }
 0x37c   : > { %v5146_v5 = vadd.f32 %v19619_v51, %v5143_v29  ;;  %v4629_v33 = vmax.f32 %v4377_v38, %v8758_v34  ;;  %v4630_v31 = vmax.f32 %v15680_v25, %v8759_v10  ;;  %v19623_v47 = vrot.slane %v15192_v56, 7  ;;  %7243 = vmatpush3.bf16.msra.mxu0 %v15793_v22 }
 0x37d   : > { %v5265_v50 = vadd.f32 %v19620_v39, %v15644_v12  ;;  %v15788_v48 = vadd.f32 %v19621_v58, %v15648_v27  ;;  %v5044_v40 = vmax.f32 %v4907_v20, %v5010_v24  ;;  %v19625_v3 = vrot.slane %v19624_v17, 7  ;;  %v19632_v58 = vld [vmem:[#allocation160_spill] sm:$0xff] }
 0x37e   : > { %v19628_v38 = vrot.slane %v19627_v54, 7  ;;  %v19629_v59 = vunpack.i.l.bf16 %v19581_v42  ;;  %v19630_v24 = vunpack.i.l.bf16 %v15304_v1  ;;  %v4665_v29 = vrot.slane %v4629_v33, 7 }
 0x37f   : > { %v4711_v55 = vsel %vm2253_vm12, %v19625_v3, %v19623_v47  ;;  %v19626_v41 = vmov %v19625_v3  ;;  %v4666_v34 = vrot.slane %v4630_v31, 7  ;;  %v5181_v10 = vmax.f32 %v5044_v40, %v5147_v4  ;;  %v19633_v3 = vld [vmem:[#allocation185_spill] sm:$0xff] }
 0x380   : > { %v4712_v25 = vsel %vm2253_vm12, %v19628_v38, %v19626_v41  ;;  %v5214_v53 = vadd.f32 %v19629_v59, %v5182_v8  ;;  %v15812_v26 = vadd.f32 %v19630_v24, %v5182_v8  ;;  %v4802_v20 = vrot.slane %v4630_v31, 1  ;;  %v19635_v4 = vld [vmem:[#allocation289_spill] sm:$0xff]  ;;  %v19637_v59 = vld [vmem:[#allocation83_spill] sm:$0xff] }
 0x381   : > { %v4939_v51 = vrot.slane %v4629_v33, 6  ;;  %v4940_v39 = vrot.slane %v4630_v31, 6  ;;  %v4732_v1 = vsel %vm2253_vm12, %v4666_v34, %v4667_v2  ;;  %v4733_v8 = vsel %vm2253_vm12, %v4665_v29, %v4666_v34 }
 0x382   : > { %19631 = vst [vmem:[#allocation18_spill] sm:$0xff] %v15812_v26  ;;  %v5240_v47 = vmax.f32 %v19632_v58, %v5214_v53  ;;  %v19634_v41 = vunpack.i.h.bf16 %v19633_v3  ;;  %v19636_v40 = vunpack.i.h.bf16 %v19635_v4  ;;  %v19638_v24 = vunpack.i.h.bf16 %v19637_v59  ;;  %v19746_v26 = vld [vmem:[#allocation149_spill] sm:$0xff] }
 0x383   : > { %v19639_v53 = vunpack.i.l.bf16 %v19606_v63  ;;  %v4870_v42 = vsel %vm2614_vm13, %v4802_v20, %v4803_v28  ;;  %v5006_v2 = vsel %vm2975_vm8, %v4940_v39, %v4941_v43  ;;  %v5007_v29 = vsel %vm2975_vm8, %v4939_v51, %v4940_v39  ;;  %v19642_v63 = vld [vmem:[#allocation84_spill] sm:$0xff]  ;;  %v19645_v39 = vld [vmem:[#allocation194_spill] sm:$0xff] }
 0x384   : > { %v5213_v38 = vadd.f32 %v19634_v41, %v5181_v10  ;;  %v5319_v33 = vadd.f32 %v19636_v40, %v5181_v10  ;;  %v4734_v7 = vadd.f32 %v19638_v24, %v4733_v8  ;;  %v5076_v34 = vrot.slane %v4630_v31, 2  ;;  %v19640_v40 = vld [vmem:[#allocation118_spill] sm:$0xff] }
 0x385   : > { %v4735_v21 = vadd.f32 %v19639_v53, %v4732_v1  ;;  %v19641_v8 = vunpack.i.h.bf16 %v19640_v40  ;;  %v19643_v1 = vunpack.i.h.bf16 %v19642_v63  ;;  %v19644_v28 = vunpack.i.l.bf16 %v19610_v44 }
 0x386   : > { %v5345_v3 = vmax.f32 %v15691_v46, %v5319_v33  ;;  %v4768_v41 = vmax.f32 %v4630_v31, %v4734_v7  ;;  %v5144_v43 = vsel %vm3336_vm14, %v5076_v34, %v5077_v32  ;;  %v5239_v51 = vmax.f32 %v15634_v16, %v5213_v38  ;;  %v19652_v32 = vld [vmem:[#allocation175_spill] sm:$0xff] }
 0x387   : > { %v4769_v10 = vmax.f32 %v15706_v52, %v4735_v21  ;;  %v4871_v59 = vadd.f32 %v19641_v8, %v4870_v42  ;;  %v5008_v24 = vadd.f32 %v19643_v1, %v5007_v29  ;;  %v5009_v20 = vadd.f32 %v19644_v28, %v5006_v2  ;;  %v19647_v52 = vld [vmem:[#allocation143_spill] sm:$0xff]  ;;  %v19650_v29 = vld [vmem:[#allocation142_spill] sm:$0xff] }
 0x388   : > { %v15849_v53 = vmax.f32 %v5345_v3, %v19645_v39  ;;  %v19648_v7 = vunpack.i.h.bf16 %v19647_v52  ;;  %v5291_v42 = vmax.f32 %v5239_v51, %v5265_v50  ;;  %v15854_v33 = vmax.f32 %v5240_v47, %v15665_v18  ;;  %v19656_v47 = vld [vmem:[#allocation104_spill] sm:$0xff] }
 0x389   : > { %v4905_v46 = vmax.f32 %v4768_v41, %v4871_v59  ;;  %v4906_v31 = vmax.f32 %v4769_v10, %v4872_v19  ;;  %v19651_v44 = vunpack.i.l.bf16 %v15772_v30  ;;  %v19653_v16 = vunpack.i.h.bf16 %v15772_v30  ;;  %v19654_v19 = vld [vmem:[#allocation59_spill] sm:$0xff]  ;;  %v19662_v39 = vld [vmem:[#allocation144_spill] sm:$0xff] }
 0x38a   : > { %19646 = vst [vmem:[#allocation112_spill] sm:$0xff] %v15849_v53  ;;  %v5145_v21 = vadd.f32 %v19648_v7, %v5144_v43  ;;  %19649 = vst [vmem:[#allocation69_spill] sm:$0xff] %v15854_v33  ;;  %v4755_v41 = vadd.f32 %v19654_v19, %v4712_v25  ;;  %v19655_v10 = vld [vmem:[#allocation63_spill] sm:$0xff]  ;;  %v19657_v8 = vrot.slane %v19656_v47, 1  ;;  %v19658_v59 = vrot.slane %v15192_v56, 1  ;;  %v19661_v43 = vld [vmem:[#allocation145_spill] sm:$0xff] }
 0x38b   : > { %v15859_v2 = vadd.f32 %v19651_v44, %v19650_v29  ;;  %v15864_v38 = vadd.f32 %v19653_v16, %v19652_v32  ;;  %v5042_v34 = vmax.f32 %v4905_v46, %v5008_v24  ;;  %v5043_v3 = vmax.f32 %v4906_v31, %v5009_v20  ;;  %v19663_v7 = vld [vmem:[#allocation290_spill] sm:$0xff]  ;;  %v15898_v16 = vpop.permute.xlu0 %8217 }
 0x38c   : > { %v4756_v40 = vadd.f32 %v19655_v10, %v4711_v55  ;;  %v4848_v63 = vsel %vm2614_vm13, %v19658_v59, %v19657_v8  ;;  %v19659_v1 = vmov %v19658_v59  ;;  %v19660_v24 = vrot.slane %v19624_v17, 1  ;;  %v19705_v10 = vld [vmem:[#allocation67_spill] sm:$0xff] }
 0x38d   : > { %v4403_v18 = vmax.f32 %v15765_v49, %v15859_v2  ;;  %v5179_v25 = vmax.f32 %v5042_v34, %v5145_v21  ;;  %v5180_v28 = vmax.f32 %v5043_v3, %v5146_v5  ;;  %v4789_v49 = vmax.f32 %v19624_v17, %v4755_v41 }
 0x38e   : > { %v4849_v55 = vsel %vm2614_vm13, %v19660_v24, %v19659_v1  ;;  %v4790_v20 = vmax.f32 %v15192_v56, %v4756_v40  ;;  %v4893_v46 = vadd.f32 %v19662_v39, %v4848_v63  ;;  %v4961_v31 = vrot.slane %v19624_v17, 6  ;;  %v19668_v63 = vld [vmem:[#allocation23_spill] sm:$0xff]  ;;  %v19669_v24 = vld [vmem:[#allocation28_spill] sm:$0xff] }
 0x38f   : > { %v4892_v51 = vadd.f32 %v19661_v43, %v4849_v55  ;;  %v18164_v52 = vrot.slane %v15192_v56, 6  ;;  %v19664_v29 = vunpack.i.h.bf16 %v19663_v7  ;;  %v19665_v2 = vunpack.i.l.bf16 %v19635_v4  ;;  %v19672_v7 = vld [vmem:[#allocation172_spill] sm:$0xff] }
 0x390   : > { %v5098_v5 = vrot.slane %v15192_v56, 2  ;;  %v18162_v21 = vrot.slane %v19656_v47, 2  ;;  %v4927_v3 = vmax.f32 %v4790_v20, %v4893_v46  ;;  %v19667_v40 = vrot.slane %v19627_v54, 6  ;;  %v15922_v20 = vpop.permute.xlu1 %8232 }
 0x391   : > { %v5317_v44 = vadd.f32 %v19664_v29, %v5179_v25  ;;  %v15894_v32 = vadd.f32 %v19665_v2, %v5180_v28  ;;  %v4926_v34 = vmax.f32 %v4789_v49, %v4892_v51  ;;  %v4985_v41 = vsel %vm2975_vm8, %v4961_v31, %v18164_v52 }
 0x392   : > { %v4986_v4 = vsel %vm2975_vm8, %v19667_v40, %v4961_v31  ;;  %v5030_v55 = vadd.f32 %v19669_v24, %v4985_v41  ;;  %v5122_v25 = vsel %vm3336_vm14, %v5098_v5, %v18162_v21  ;;  %v19670_v28 = vrot.slane %v19624_v17, 2  ;;  %v19674_v41 = vld [vmem:[#allocation186_spill] sm:$0xff] }
 0x393   : > { %19666 = vst [vmem:[#allocation71_spill] sm:$0xff] %v15894_v32  ;;  %v5343_v8 = vmax.f32 %v5291_v42, %v5317_v44  ;;  %v5029_v1 = vadd.f32 %v19668_v63, %v4986_v4  ;;  %v18161_v49 = vunpack.i.h.bf16 %v15898_v16  ;;  %v18160_v42 = vunpack.i.l.bf16 %v15898_v16  ;;  %v19673_v44 = vld [vmem:[#allocation171_spill] sm:$0xff] }
 0x394   : > { %v5123_v54 = vsel %vm3336_vm14, %v19670_v28, %v5098_v5  ;;  %v5064_v31 = vmax.f32 %v4927_v3, %v5030_v55  ;;  %v5167_v2 = vadd.f32 %v19673_v44, %v5122_v25  ;;  %v19675_v5 = vld [vmem:[#allocation187_spill] sm:$0xff]  ;;  %v19677_v28 = vld [vmem:[#allocation54_spill] sm:$0xff]  ;;  %v18163_v55 = vunpack.i.h.bf16 %v15922_v20 }
 0x395   : > { %v15925_v51 = vmax.f32 %v5343_v8, %v15788_v48  ;;  %v5063_v46 = vmax.f32 %v4926_v34, %v5029_v1  ;;  %v5166_v29 = vadd.f32 %v19672_v7, %v5123_v54  ;;  %v4117_v17 = vadd.f32 %v18160_v42, %v19674_v41  ;;  %v19676_v4 = vld [vmem:[#allocation47_spill] sm:$0xff]  ;;  %v19679_v34 = vld [vmem:[#allocation64_spill] sm:$0xff]  ;;  %v19680_v3 = vld [vmem:[#allocation158_spill] sm:$0xff]  ;;  %v16004_v7 = vpop.permute.xlu1 %8242 }
 0x396   : > { %v4118_v40 = vadd.f32 %v18161_v49, %v19675_v5  ;;  %v5958_v59 = vpack.c.bf16 %v19677_v28, %v19676_v4  ;;  %v5959_v1 = vpack.c.bf16 %v19680_v3, %v19679_v34  ;;  %v15943_v25 = vmax.f32 %v5064_v31, %v5167_v2  ;;  %v19682_v54 = vld [vmem:[#allocation217_spill] sm:$0xff]  ;;  %v19684_v49 = vld [vmem:[#allocation215_spill] sm:$0xff]  ;;  %19698 = vst [vmem:[#allocation89_spill] sm:$0xff] %v16004_v7 }
 0x397   : > { %19671 = vst [vmem:[#allocation43_spill] sm:$0xff] %v15925_v51  ;;  %v15938_v8 = vmax.f32 %v5063_v46, %v5166_v29  ;;  %v19683_v42 = vmax.f32 %v13772_v9, %v19682_v54  ;;  %v19685_v21 = vmax.f32 %v13774_v36, %v19684_v49  ;;  %v18165_v46 = vunpack.i.l.bf16 %v15922_v20  ;;  %v19686_v29 = vld [vmem:[#allocation210_spill] sm:$0xff] }
 0x398   : > { %19681 = vst [vmem:[#allocation88_spill] sm:$0xff] %v15943_v25  ;;  %7189 = vmatmul.mubr.bf16.gmra.mrb[8].mxu1 %v5958_v59  ;;  %v19688_v31 = vunpack.i.l.bf16 %v15772_v30  ;;  %v19689_v49 = vld [vmem:[#allocation162_spill] sm:$0xff]  ;;  %v19691_v59 = vld [vmem:[#allocation209_spill] sm:$0xff]  ;;  %v19693_v34 = vunpack.i.h.bf16 %v15772_v30 }
 0x399   : > { %19678 = vst [vmem:[#allocation20_spill] sm:$0xff] %v15938_v8  ;;  %v15948_v50 = vmax.f32 %v19683_v42, %v4117_v17  ;;  %v15953_v4 = vmax.f32 %v19685_v21, %v4118_v40  ;;  %v15958_v28 = vadd.f32 %v19686_v29, %v15938_v8  ;;  %7192 = vmatprep.mubr.bf16.mxu1 %v5959_v1  ;;  %v4690_v21 = vrot.slane %v19689_v49, 7  ;;  %v15969_v17 = vpop.permute.xlu0 %8227  ;;  %v19695_v54 = vld [vmem:[#allocation174_spill] sm:$0xff]  ;;  %v19697_v29 = vld [vmem:[#allocation120_spill] sm:$0xff] }
 0x39a   : > { %v15963_v2 = vadd.f32 %v19688_v31, %v15938_v8  ;;  %v4619_v42 = vadd.f32 %v18163_v55, %v19674_v41  ;;  %19690 = vst [vmem:[#allocation98_spill] sm:$0xff] %v15969_v17  ;;  %v15973_v40 = vadd.f32 %v19691_v59, %v15943_v25  ;;  %v15978_v3 = vadd.f32 %v19693_v34, %v15943_v25  ;;  %v19699_v34 = vld [vmem:[#allocation111_spill] sm:$0xff] }
 0x39b   : > { %19687 = vst [vmem:[#allocation26_spill] sm:$0xff] %v15958_v28  ;;  %v15983_v1 = vadd.f32 %v18165_v46, %v19695_v54  ;;  %v4963_v31 = vrot.slane %v19656_v47, 6  ;;  %v19696_v55 = vrot.slane %v19656_v47, 7  ;;  %v4964_v59 = vrot.slane %v19689_v49, 6  ;;  %v19700_v54 = vld [vmem:[#allocation181_spill] sm:$0xff] }
 0x39c   : > { %19692 = vst [vmem:[#allocation68_spill] sm:$0xff] %v15973_v40  ;;  %19694 = vst [vmem:[#allocation113_spill] sm:$0xff] %v15978_v3  ;;  %v15986_v48 = vmax.f32 %v4403_v18, %v4619_v42  ;;  %v5100_v30 = vrot.slane %v19689_v49, 2  ;;  %v18166_v46 = vunpack.i.l.bf16 %v15969_v17  ;;  %v19701_v39 = vrot.slane %v19689_v49, 1  ;;  %v19707_v40 = vld [vmem:[#allocation58_spill] sm:$0xff] }
 0x39d   : > { %v4709_v52 = vsel %vm2253_vm12, %v19696_v55, %v4690_v21  ;;  %v4983_v55 = vsel %vm2975_vm8, %v4963_v31, %v4964_v59 }
 0x39e   : > { %v4758_v3 = vadd.f32 %v19697_v29, %v4709_v52  ;;  %v18167_v18 = vrot.slane %v15986_v48, 7  ;;  %v18170_v42 = vrot.slane %v15986_v48, 1  ;;  %v5032_v63 = vadd.f32 %v19699_v34, %v4983_v55  ;;  %v19703_v34 = vld [vmem:[#allocation173_spill] sm:$0xff] }
 0x39f   : > { %v4119_v29 = vadd.f32 %v18166_v46, %v19700_v54  ;;  %v19702_v55 = vrot.slane %v15986_v48, 6  ;;  %v19704_v46 = vunpack.i.h.bf16 %v15969_v17  ;;  %v19708_v51 = vrot.slane %v15986_v48, 2 }
 0x3a0   : > { %v4792_v24 = vmax.f32 %v19689_v49, %v4758_v3  ;;  %v4708_v44 = vsel %vm2253_vm12, %v4690_v21, %v18167_v18  ;;  %v4846_v3 = vsel %vm2614_vm13, %v19701_v39, %v18170_v42  ;;  %v19706_v21 = vld [vmem:[#allocation140_spill] sm:$0xff]  ;;  %v19709_v42 = vld [vmem:[#allocation77_spill] sm:$0xff] }
 0x3a1   : > { %v4982_v52 = vsel %vm2975_vm8, %v4964_v59, %v19702_v55  ;;  %v4369_v43 = vadd.f32 %v19704_v46, %v19703_v34  ;;  %v16030_v19 = vadd.f32 %v19705_v10, %v4708_v44  ;;  %v4895_v18 = vadd.f32 %v19706_v21, %v4846_v3  ;;  %v19710_v59 = vld [vmem:[#allocation214_spill] sm:$0xff]  ;;  %v19724_v21 = vld [vmem:[#allocation153_spill] sm:$0xff] }
 0x3a2   : > { %v16034_v28 = vadd.f32 %v19707_v40, %v4982_v52  ;;  %v5120_v39 = vsel %vm3336_vm14, %v5100_v30, %v19708_v51  ;;  %v19711_v55 = vmax.f32 %v19674_v41, %v19710_v59  ;;  %v19712_v44 = vrot.slane %v19656_v47, 7  ;;  %v19714_v51 = vld [vmem:[#allocation121_spill] sm:$0xff] }
 0x3a3   : > { %v5169_v32 = vadd.f32 %v19709_v42, %v5120_v39  ;;  %v4405_v46 = vmax.f32 %v15948_v50, %v4369_v43  ;;  %v19713_v34 = vrot.slane %v15192_v56, 7  ;;  %v4929_v40 = vmax.f32 %v4792_v24, %v4895_v18  ;;  %v16060_v43 = vpop.permute.xlu0 %8237 }
 0x3a4   : > { %v4155_v33 = vmax.f32 %v19711_v55, %v4119_v29  ;;  %v19715_v39 = vrot.slane %v19689_v49, 1  ;;  %v19716_v59 = vrot.slane %v19656_v47, 1  ;;  %v19717_v29 = vld [vmem:[#allocation141_spill] sm:$0xff]  ;;  %v19718_v42 = vrot.slane %v15192_v56, 6 }
 0x3a5   : > { %v4710_v52 = vsel %vm2253_vm12, %v19713_v34, %v19712_v44  ;;  %v19719_v24 = vrot.slane %v19656_v47, 2  ;;  %v18173_v49 = vunpack.i.h.bf16 %v16004_v7  ;;  %v16072_v34 = vpop.permute.xlu1 %8252  ;;  %v18174_v56 = vunpack.i.l.bf16 %v16004_v7 }
 0x3a6   : > { %v4757_v10 = vadd.f32 %v19714_v51, %v4710_v52  ;;  %v4847_v50 = vsel %vm2614_vm13, %v19716_v59, %v19715_v39  ;;  %v4984_v44 = vsel %vm2975_vm8, %v19718_v42, %v4963_v31  ;;  %19720 = vst [vmem:[#allocation124_spill] sm:$0xff] %v16072_v34  ;;  %v5066_v52 = vmax.f32 %v4929_v40, %v5032_v63  ;;  %v19721_v59 = vld [vmem:[#allocation110_spill] sm:$0xff]  ;;  %v19725_v51 = vld [vmem:[#allocation156_spill] sm:$0xff] }
 0x3a7   : > { %v4894_v55 = vadd.f32 %v19717_v29, %v4847_v50  ;;  %v5121_v18 = vsel %vm3336_vm14, %v19719_v24, %v5100_v30  ;;  %v5031_v3 = vadd.f32 %v19721_v59, %v4984_v44  ;;  %v19722_v50 = vld [vmem:[#allocation78_spill] sm:$0xff]  ;;  %v4621_v31 = vadd.f32 %v18173_v49, %v19700_v54  ;;  %v19727_v54 = vld [vmem:[#allocation91_spill] sm:$0xff] }
 0x3a8   : > { %v4791_v39 = vmax.f32 %v19656_v47, %v4757_v10  ;;  %v5168_v29 = vadd.f32 %v19722_v50, %v5121_v18  ;;  %v18175_v42 = vunpack.i.l.bf16 %v16060_v43  ;;  %v16082_v30 = vmax.f32 %v5066_v52, %v5169_v32  ;;  %v19726_v44 = vld [vmem:[#allocation182_spill] sm:$0xff]  ;;  %v19733_v10 = vld [vmem:[#allocation216_spill] sm:$0xff] }
 0x3a9   : > { %v5960_v63 = vpack.c.bf16 %v19725_v51, %v19724_v21  ;;  %v4371_v47 = vadd.f32 %v18174_v56, %v13839_v6  ;;  %v16090_v40 = vmax.f32 %v4405_v46, %v4621_v31  ;;  %v8760_v18 = vadd.high.f32.bf16 %v19726_v44, %v16060_v43  ;;  %v16107_v46 = vpop.permute.xlu0 %8247 }
 0x3aa   : > { %19723 = vst [vmem:[#allocation70_spill] sm:$0xff] %v16082_v30  ;;  %v4928_v24 = vmax.f32 %v4791_v39, %v4894_v55  ;;  %v4620_v32 = vadd.f32 %v18175_v42, %v19675_v5  ;;  %v19728_v55 = vunpack.i.h.bf16 %v19727_v54  ;;  %v19729_v21 = vunpack.i.l.bf16 %v15922_v20  ;;  %19731 = vst [vmem:[#allocation237_spill] sm:$0xff] %v16107_v46 }
 0x3ab   : > { %7193 = vmatmul.mubr.bf16.gmra.mrb[12].mxu1 %v5960_v63  ;;  %v4407_v39 = vmax.f32 %v4155_v33, %v4371_v47  ;;  %v18176_v31 = vrot.slane %v16090_v40, 7  ;;  %v4156_v50 = vmax.f32 %v19733_v10, %v8760_v18  ;;  %v19735_v33 = vld [vmem:[#allocation188_spill] sm:$0xff]  ;;  %v19736_v63 = vunpack.i.h.bf16 %v16072_v34 }
 0x3ac   : > { %v16100_v52 = vadd.f32 %v19728_v55, %v16082_v30  ;;  %v16105_v51 = vadd.f32 %v19729_v21, %v16082_v30  ;;  %v5065_v6 = vmax.f32 %v4928_v24, %v5031_v3  ;;  %v19734_v21 = vmax.f32 %v15770_v11, %v15864_v38  ;;  %v19754_v30 = vld [vmem:[#allocation179_spill] sm:$0xff] }
 0x3ad   : > { %v8761_v24 = vadd.low.f32.bf16 %v13841_v35, %v16072_v34  ;;  %v4623_v47 = vadd.f32 %v19736_v63, %v19735_v33  ;;  %v19738_v10 = vunpack.i.h.bf16 %v15969_v17  ;;  %v19742_v56 = vrot.slane %v15986_v48, 1  ;;  %v16182_v34 = vpop.permute.xlu0 %8257 }
 0x3ae   : > { %19730 = vst [vmem:[#allocation234_spill] sm:$0xff] %v16105_v51  ;;  %v16112_v42 = vmax.f32 %v5065_v6, %v5168_v29  ;;  %v4656_v3 = vmax.f32 %v19734_v21, %v4620_v32  ;;  %v19737_v29 = vunpack.i.l.bf16 %v19727_v54  ;;  %v19740_v54 = vrot.slane %v15986_v48, 7  ;;  %v19778_v51 = vld [vmem:[#allocation177_spill] sm:$0xff] }
 0x3af   : > { %v4408_v21 = vmax.f32 %v4156_v50, %v8761_v24  ;;  %v16135_v55 = vmax.f32 %v4407_v39, %v4623_v47  ;;  %v19743_v39 = vld [vmem:[#allocation125_spill] sm:$0xff]  ;;  %v19744_v47 = vld [vmem:[#allocation122_spill] sm:$0xff] }
 0x3b0   : > { %19732 = vst [vmem:[#allocation90_spill] sm:$0xff] %v16112_v42  ;;  %v16128_v6 = vadd.f32 %v19737_v29, %v16112_v42  ;;  %v16133_v18 = vadd.f32 %v19738_v10, %v16112_v42  ;;  %v4692_v11 = vrot.slane %v4656_v3, 7  ;;  %v4828_v38 = vrot.slane %v4656_v3, 1 }
 0x3b1   : > { %v4966_v32 = vrot.slane %v4656_v3, 6  ;;  %v5102_v35 = vrot.slane %v4656_v3, 2  ;;  %v19741_v10 = vrot.slane %v16090_v40, 1  ;;  %v4695_v8 = vrot.slane %v16135_v55, 7 }
 0x3b2   : > { %19739 = vst [vmem:[#allocation49_spill] sm:$0xff] %v16133_v18  ;;  %v4706_v63 = vsel %vm2253_vm12, %v4692_v11, %v18176_v31  ;;  %v4707_v29 = vsel %vm2253_vm12, %v19740_v54, %v4692_v11  ;;  %v4845_v50 = vsel %vm2614_vm13, %v19742_v56, %v4828_v38  ;;  %v19745_v31 = vld [vmem:[#allocation150_spill] sm:$0xff]  ;;  %v19747_v11 = vrot.slane %v16090_v40, 6 }
 0x3b3   : > { %v4844_v49 = vsel %vm2614_vm13, %v4828_v38, %v19741_v10  ;;  %v4760_v24 = vadd.f32 %v19743_v39, %v4707_v29  ;;  %v4761_v59 = vadd.f32 %v19744_v47, %v4706_v63  ;;  %v4896_v53 = vadd.f32 %v19745_v31, %v4845_v50 }
 0x3b4   : > { %v4897_v45 = vadd.f32 %v19746_v26, %v4844_v49  ;;  %v4980_v54 = vsel %vm2975_vm8, %v4966_v32, %v19747_v11  ;;  %v19748_v10 = vrot.slane %v15986_v48, 6  ;;  %v19749_v56 = vrot.slane %v16090_v40, 2  ;;  %v19752_v26 = vld [vmem:[#allocation151_spill] sm:$0xff] }
 0x3b5   : > { %v19750_v63 = vrot.slane %v15986_v48, 2  ;;  %v4794_v29 = vmax.f32 %v4656_v3, %v4760_v24  ;;  %v4795_v50 = vmax.f32 %v16090_v40, %v4761_v59  ;;  %v19751_v11 = vmax.f32 %v15986_v48, %v16030_v19 }
 0x3b6   : > { %v4981_v22 = vsel %vm2975_vm8, %v19748_v10, %v4966_v32  ;;  %v5118_v38 = vsel %vm3336_vm14, %v5102_v35, %v19749_v56  ;;  %v8263_v32 = vpop.permute.xlu1 %8262  ;;  %v19753_v10 = vld [vmem:[#allocation55_spill] sm:$0xff]  ;;  %v19755_v56 = vld [vmem:[#allocation178_spill] sm:$0xff]  ;;  %v8762_v19 = vadd.high.f32.bf16 %v19735_v33, %v16107_v46  ;;  %v19756_v48 = vunpack.i.l.bf16 %v16107_v46 }
 0x3b7   : > { %v5119_v49 = vsel %vm3336_vm14, %v19750_v63, %v5102_v35  ;;  %v4930_v47 = vmax.f32 %v19751_v11, %v4896_v53  ;;  %v5034_v31 = vadd.f32 %v19752_v26, %v4981_v22  ;;  %v5035_v39 = vadd.f32 %v19753_v10, %v4980_v54  ;;  %v19758_v63 = vld [vmem:[#allocation222_spill] sm:$0xff]  ;;  %v19761_v11 = vld [vmem:[#allocation193_spill] sm:$0xff] }
 0x3b8   : > { %v5170_v42 = vadd.f32 %v19754_v30, %v5119_v49  ;;  %v5171_v25 = vadd.f32 %v19755_v56, %v5118_v38  ;;  %v4931_v3 = vmax.f32 %v4794_v29, %v4897_v45  ;;  %v4831_v35 = vrot.slane %v16135_v55, 1  ;;  %v19771_v56 = vld [vmem:[#allocation147_spill] sm:$0xff]  ;;  %v19772_v26 = vld [vmem:[#allocation146_spill] sm:$0xff] }
 0x3b9   : > { %v5067_v59 = vmax.f32 %v4930_v47, %v16034_v28  ;;  %v4969_v53 = vrot.slane %v16135_v55, 6  ;;  %v5105_v22 = vrot.slane %v16135_v55, 2  ;;  %v4622_v24 = vadd.f32 %v19756_v48, %v19726_v44 }
 0x3ba   : > { %v5068_v54 = vmax.f32 %v4931_v3, %v5034_v31  ;;  %v4157_v45 = vmax.f32 %v19758_v63, %v8762_v19  ;;  %v19759_v28 = vmax.f32 %v15953_v4, %v15983_v1  ;;  %v8763_v49 = vadd.high.f32.bf16 %v19590_v57, %v8263_v32 }
 0x3bb   : > { %v16193_v38 = vmax.f32 %v5067_v59, %v5170_v42  ;;  %v19762_v33 = vunpack.i.l.bf16 %v19761_v11  ;;  %v19763_v42 = vld [vmem:[#allocation189_spill] sm:$0xff] }
 0x3bc   : > { %v4658_v47 = vmax.f32 %v19759_v28, %v4622_v24  ;;  %v16200_v29 = vmax.f32 %v5068_v54, %v5171_v25  ;;  %v8764_v31 = vadd.low.f32.bf16 %v19763_v42, %v8263_v32  ;;  %v19764_v25 = vunpack.i.h.bf16 %v19761_v11  ;;  %v19765_v24 = vld [vmem:[#allocation221_spill] sm:$0xff] }
 0x3bd   : > { %19757 = vst [vmem:[#allocation255_spill] sm:$0xff] %v16193_v38  ;;  %v16205_v10 = vadd.f32 %v19762_v33, %v16193_v38  ;;  %v5260_v44 = vmax.f32 %v16193_v38, %v16128_v6  ;;  %v16218_v54 = vmax.f32 %v19765_v24, %v8763_v49  ;;  %v19766_v32 = vrot.slane %v16090_v40, 7  ;;  %v19768_v49 = vld [vmem:[#allocation65_spill] sm:$0xff] }
 0x3be   : > { %19760 = vst [vmem:[#allocation183_spill] sm:$0xff] %v16200_v29  ;;  %v4694_v3 = vrot.slane %v4658_v47, 7  ;;  %v4830_v59 = vrot.slane %v4658_v47, 1  ;;  %v4968_v19 = vrot.slane %v4658_v47, 6  ;;  %v5104_v48 = vrot.slane %v4658_v47, 2 }
 0x3bf   : > { %v5261_v4 = vmax.f32 %v16200_v29, %v16100_v52  ;;  %v16215_v1 = vadd.f32 %v19764_v25, %v16200_v29  ;;  %v16220_v63 = vmax.f32 %v4408_v21, %v8764_v31  ;;  %v19767_v11 = vrot.slane %v16090_v40, 1  ;;  %v19769_v21 = vld [vmem:[#allocation39_spill] sm:$0xff] }
 0x3c0   : > { %v4704_v6 = vsel %vm2253_vm12, %v4694_v3, %v4695_v8  ;;  %v4705_v28 = vsel %vm2253_vm12, %v19766_v32, %v4694_v3  ;;  %v4842_v52 = vsel %vm2614_vm13, %v4830_v59, %v4831_v35  ;;  %v19770_v31 = vunpack.i.l.bf16 %v19769_v21 }
 0x3c1   : > { %v4843_v33 = vsel %vm2614_vm13, %v19767_v11, %v4830_v59  ;;  %v4762_v25 = vadd.f32 %v19768_v49, %v4705_v28  ;;  %v4899_v29 = vadd.f32 %v19772_v26, %v4842_v52  ;;  %v4978_v3 = vsel %vm2975_vm8, %v4968_v19, %v4969_v53  ;;  %v19776_v49 = vld [vmem:[#allocation46_spill] sm:$0xff] }
 0x3c2   : > { %v4763_v24 = vadd.f32 %v19770_v31, %v4704_v6  ;;  %v4898_v30 = vadd.f32 %v19771_v56, %v4843_v33  ;;  %v19773_v32 = vrot.slane %v16090_v40, 6  ;;  %v5116_v59 = vsel %vm3336_vm14, %v5104_v48, %v5105_v22  ;;  %v19775_v31 = vld [vmem:[#allocation56_spill] sm:$0xff] }
 0x3c3   : > { %v19774_v28 = vrot.slane %v16090_v40, 2  ;;  %v4796_v11 = vmax.f32 %v4658_v47, %v4762_v25  ;;  %v19777_v26 = vunpack.i.l.bf16 %v19776_v49  ;;  %v4696_v7 = vrot.slane %v16220_v63, 7 }
 0x3c4   : > { %v4979_v46 = vsel %vm2975_vm8, %v19773_v32, %v4968_v19  ;;  %v4797_v33 = vmax.f32 %v16135_v55, %v4763_v24  ;;  %v4932_v52 = vmax.f32 %v4795_v50, %v4898_v30  ;;  %v19779_v19 = vld [vmem:[#allocation176_spill] sm:$0xff]  ;;  %v4832_v13 = vrot.slane %v16220_v63, 1  ;;  %v19782_v24 = vld [vmem:[#allocation81_spill] sm:$0xff] }
 0x3c5   : > { %v5117_v6 = vsel %vm3336_vm14, %v19774_v28, %v5104_v48  ;;  %v5036_v56 = vadd.f32 %v19775_v31, %v4979_v46  ;;  %v5037_v17 = vadd.f32 %v19777_v26, %v4978_v3  ;;  %v5173_v32 = vadd.f32 %v19779_v19, %v5116_v59  ;;  %v19813_v19 = vld [vmem:[#allocation109_spill] sm:$0xff] }
 0x3c6   : > { %v5172_v18 = vadd.f32 %v19778_v51, %v5117_v6  ;;  %v4933_v38 = vmax.f32 %v4796_v11, %v4899_v29  ;;  %v5069_v40 = vmax.f32 %v4932_v52, %v5035_v39  ;;  %v4970_v47 = vrot.slane %v16220_v63, 6  ;;  %v19788_v52 = vld [vmem:[#allocation82_spill] sm:$0xff] }
 0x3c7   : > { %v4703_v30 = vsel %vm2253_vm12, %v4695_v8, %v4696_v7  ;;  %v5106_v46 = vrot.slane %v16220_v63, 2  ;;  %v8765_v26 = vadd.low.f32.bf16 %v19763_v42, %v16182_v34  ;;  %v8766_v55 = vadd.high.f32.bf16 %v13772_v9, %v16182_v34  ;;  %v19784_v9 = vld [vmem:[#allocation223_spill] sm:$0xff] }
 0x3c8   : > { %v5070_v50 = vmax.f32 %v4933_v38, %v5036_v56  ;;  %v16269_v29 = vmax.f32 %v5069_v40, %v5172_v18  ;;  %v19781_v39 = vunpack.i.h.bf16 %v19769_v21  ;;  %v4841_v25 = vsel %vm2614_vm13, %v4831_v35, %v4832_v13  ;;  %v16284_v18 = vpop.permute.xlu1 %8272 }
 0x3c9   : > { %v19783_v8 = vunpack.i.l.bf16 %v19782_v24  ;;  %v4977_v59 = vsel %vm2975_vm8, %v4969_v53, %v4970_v47  ;;  %v5115_v42 = vsel %vm3336_vm14, %v5105_v22, %v5106_v46  ;;  %v4158_v34 = vmax.f32 %v19784_v9, %v8765_v26  ;;  %v8268_v53 = vpop.permute.xlu0 %8267 }
 0x3ca   : > { %19780 = vst [vmem:[#allocation50_spill] sm:$0xff] %v16269_v29  ;;  %v16273_v48 = vadd.f32 %v19781_v39, %v4703_v30  ;;  %v16286_v56 = vmax.f32 %v5070_v50, %v5173_v32  ;;  %v19786_v35 = vunpack.i.l.bf16 %v15687_v60  ;;  %v19787_v22 = vunpack.i.h.bf16 %v19776_v49 }
 0x3cb   : > { %v4900_v3 = vadd.f32 %v19783_v8, %v4841_v25  ;;  %v19789_v40 = vunpack.i.l.bf16 %v19788_v52  ;;  %v4409_v30 = vmax.f32 %v4157_v45, %v8766_v55  ;;  %v19790_v50 = vunpack.i.h.bf16 %v15687_v60 }
 0x3cc   : > { %19785 = vst [vmem:[#allocation80_spill] sm:$0xff] %v16286_v56  ;;  %v5286_v21 = vadd.f32 %v19786_v35, %v16269_v29  ;;  %v4798_v28 = vmax.f32 %v16220_v63, %v16273_v48  ;;  %v16297_v11 = vadd.f32 %v19787_v22, %v4977_v59  ;;  %v8768_v55 = vadd.low.f32.bf16 %v19584_v0, %v16284_v18  ;;  %v19795_v35 = vld [vmem:[#allocation218_spill] sm:$0xff] }
 0x3cd   : > { %v4934_v6 = vmax.f32 %v4797_v33, %v4900_v3  ;;  %v5174_v32 = vadd.f32 %v19789_v40, %v5115_v42  ;;  %v5287_v39 = vadd.f32 %v19790_v50, %v16286_v56  ;;  %v19792_v3 = vld [vmem:[#allocation191_spill] sm:$0xff]  ;;  %v8769_v60 = vadd.low.f32.bf16 %v13774_v36, %v8268_v53  ;;  %v19799_v50 = vld [vmem:[#allocation248_spill] sm:$0xff] }
 0x3ce   : > { %v5312_v25 = vmax.f32 %v5260_v44, %v5286_v21  ;;  %v5218_v59 = vadd.f32 %v19792_v3, %v15646_v61  ;;  %v8770_v44 = vadd.high.f32.bf16 %v19590_v57, %v8268_v53  ;;  %v19794_v42 = vld [vmem:[#allocation219_spill] sm:$0xff]  ;;  %v5271_v61 = vadd.f32 %v19795_v35, %v14787_v15  ;;  %v19798_v53 = vld [vmem:[#allocation220_spill] sm:$0xff] }
 0x3cf   : > { %v5071_v8 = vmax.f32 %v4934_v6, %v5037_v17  ;;  %v16306_v48 = vmax.f32 %v5261_v4, %v5287_v39  ;;  %v19793_v17 = vld [vmem:[#allocation161_spill] sm:$0xff]  ;;  %v5270_v9 = vadd.f32 %v19794_v42, %v19577_v23  ;;  %v19796_v21 = vunpack.i.l.bf16 %v15898_v16 }
 0x3d0   : > { %v5364_v33 = vmax.f32 %v5312_v25, %v15963_v2  ;;  %v5219_v4 = vadd.f32 %v19793_v17, %v15648_v27  ;;  %v5244_v2 = vmax.f32 %v15632_v14, %v5218_v59  ;;  %v19797_v36 = vunpack.i.h.bf16 %v15922_v20  ;;  %v19803_v20 = vld [vmem:[#allocation263_spill] sm:$0xff] }
 0x3d1   : > { %19791 = vst [vmem:[#allocation225_spill] sm:$0xff] %v16306_v48  ;;  %v16313_v45 = vmax.f32 %v5071_v8, %v5174_v32  ;;  %v16335_v22 = vmax.f32 %v19798_v53, %v8768_v55  ;;  %v16337_v40 = vmax.f32 %v4158_v34, %v8769_v60  ;;  %v16339_v32 = vmax.f32 %v4409_v30, %v8770_v44  ;;  %v19800_v8 = vld [vmem:[#allocation226_spill] sm:$0xff]  ;;  %v19805_v55 = vld [vmem:[#allocation261_spill] sm:$0xff] }
 0x3d2   : > { %v5245_v39 = vmax.f32 %v19799_v50, %v5219_v4  ;;  %v5296_v25 = vmax.f32 %v5244_v2, %v5270_v9  ;;  %v5322_v59 = vadd.f32 %v19800_v8, %v19632_v58  ;;  %v19806_v53 = vld [vmem:[#allocation230_spill] sm:$0xff]  ;;  %v19814_v51 = vunpack.i.l.bf16 %v19813_v19 }
 0x3d3   : > { %v16329_v6 = vadd.f32 %v19796_v21, %v16313_v45  ;;  %v5390_v57 = vadd.f32 %v19797_v36, %v16313_v45  ;;  %v19802_v21 = vld [vmem:[#allocation224_spill] sm:$0xff]  ;;  %v19804_v36 = vld [vmem:[#allocation231_spill] sm:$0xff]  ;;  %v5375_v34 = vadd.f32 %v19806_v53, %v19805_v55  ;;  %v18200_v30 = vrot.slane %v16339_v32, 7  ;;  %v19807_v2 = vld [vmem:[#allocation198_spill] sm:$0xff] }
 0x3d4   : > { %v5323_v38 = vadd.f32 %v19802_v21, %v15644_v12  ;;  %v5374_v49 = vadd.f32 %v19804_v36, %v19803_v20  ;;  %v18201_v60 = vrot.slane %v16339_v32, 1  ;;  %v18202_v44 = vrot.slane %v16339_v32, 6  ;;  %v19808_v12 = vld [vmem:[#allocation232_spill] sm:$0xff] }
 0x3d5   : > { %v16344_v26 = vmax.f32 %v5364_v33, %v5390_v57  ;;  %v5297_v58 = vmax.f32 %v5245_v39, %v5271_v61  ;;  %v5348_v33 = vmax.f32 %v5296_v25, %v5322_v59  ;;  %v5220_v9 = vadd.f32 %v19807_v2, %v15632_v14  ;;  %v19810_v25 = vld [vmem:[#allocation22_spill] sm:$0xff] }
 0x3d6   : > { %v5325_v57 = vadd.f32 %v19808_v12, %v15648_v27  ;;  %v4702_v50 = vsel %vm2253_vm12, %v4696_v7, %v18200_v30  ;;  %v4840_v4 = vsel %vm2614_vm13, %v4832_v13, %v18201_v60  ;;  %v4976_v61 = vsel %vm2975_vm8, %v4970_v47, %v18202_v44 }
 0x3d7   : > { %19801 = vst [vmem:[#allocation229_spill] sm:$0xff] %v16344_v26  ;;  %v19809_v39 = vrot.slane %v16339_v32, 2  ;;  %v19811_v63 = vunpack.i.l.bf16 %v19810_v25  ;;  %v19812_v7 = vunpack.i.h.bf16 %v19782_v24  ;;  %v16386_v13 = vadd.f32 %v19814_v51, %v4976_v61  ;;  %v8278_v26 = vpop.permute.xlu0 %8277  ;;  %v19818_v51 = vld [vmem:[#allocation165_spill] sm:$0xff] }
 0x3d8   : > { %v19815_v60 = vunpack.i.h.bf16 %v19788_v52  ;;  %v5349_v47 = vmax.f32 %v5297_v58, %v5323_v38  ;;  %v16390_v44 = vmax.f32 %v5348_v33, %v5374_v49  ;;  %v5246_v48 = vmax.f32 %v19577_v23, %v5220_v9  ;;  %v19819_v38 = vld [vmem:[#allocation265_spill] sm:$0xff]  ;;  %v19821_v33 = vld [vmem:[#allocation274_spill] sm:$0xff]  ;;  %v19822_v9 = vld [vmem:[#allocation236_spill] sm:$0xff] }
 0x3d9   : > { %v5114_v27 = vsel %vm3336_vm14, %v5106_v46, %v19809_v39  ;;  %v16380_v59 = vadd.f32 %v19811_v63, %v4702_v50  ;;  %v4901_v30 = vadd.f32 %v19812_v7, %v4840_v4  ;;  %v19816_v46 = vld [vmem:[#allocation267_spill] sm:$0xff]  ;;  %v19817_v4 = vld [vmem:[#allocation196_spill] sm:$0xff]  ;;  %v5223_v61 = vadd.f32 %v19818_v51, %v14787_v15  ;;  %v4586_v15 = vpop.permute.xlu1 %4585 }
 0x3da   : > { %v5175_v31 = vadd.f32 %v19815_v60, %v5114_v27  ;;  %v5351_v39 = vmax.f32 %v19816_v46, %v5325_v57  ;;  %v5222_v63 = vadd.f32 %v19817_v4, %v19577_v23  ;;  %v16400_v52 = vmax.f32 %v5349_v47, %v5375_v34  ;;  %v19820_v60 = vld [vmem:[#allocation276_spill] sm:$0xff]  ;;  %v19824_v7 = vld [vmem:[#allocation235_spill] sm:$0xff]  ;;  %v19825_v47 = vld [vmem:[#allocation241_spill] sm:$0xff] }
 0x3db   : > { %v4935_v24 = vmax.f32 %v4798_v28, %v4901_v30  ;;  %v5298_v49 = vmax.f32 %v5246_v48, %v19819_v38  ;;  %v5274_v57 = vadd.f32 %v19822_v9, %v19821_v33  ;;  %v5249_v30 = vmax.f32 %v19805_v55, %v5223_v61  ;;  %v19823_v23 = vld [vmem:[#allocation272_spill] sm:$0xff]  ;;  %v19826_v38 = vld [vmem:[#allocation282_spill] sm:$0xff]  ;;  %v19828_v9 = vld [vmem:[#allocation283_spill] sm:$0xff]  ;;  %v4591_v53 = vpop.permute.xlu0 %4590 }
 0x3dc   : > { %v16404_v58 = vmax.f32 %v5351_v39, %v19820_v60  ;;  %v5248_v28 = vmax.f32 %v19803_v20, %v5222_v63  ;;  %v5275_v46 = vadd.f32 %v19824_v7, %v19823_v23  ;;  %v6291_v34 = vpack.c.bf16 %v16400_v52, %v16390_v44  ;;  %v19827_v60 = vld [vmem:[#allocation245_spill] sm:$0xff]  ;;  %v19829_v61 = vld [vmem:[#allocation244_spill] sm:$0xff]  ;;  %v19830_v7 = vld [vmem:[#allocation278_spill] sm:$0xff] }
 0x3dd   : > { %v5072_v27 = vmax.f32 %v4935_v24, %v16297_v11  ;;  %v5350_v48 = vmax.f32 %v5298_v49, %v15676_v62  ;;  %v5326_v39 = vadd.f32 %v19825_v47, %v15632_v14  ;;  %v5378_v50 = vadd.f32 %v19827_v60, %v19826_v38  ;;  %v19832_v49 = vld [vmem:[#allocation139_spill] sm:$0xff] }
 0x3de   : > { %v5300_v24 = vmax.f32 %v5248_v28, %v5274_v57  ;;  %v5301_v63 = vmax.f32 %v5249_v30, %v5275_v46  ;;  %v5379_v51 = vadd.f32 %v19829_v61, %v19828_v9  ;;  %7212 = vmatprep.mubr.bf16.mxu1 %v6291_v34  ;;  %v19831_v12 = vadd.high.f32.bf16 %v19674_v41, %v16284_v18  ;;  %v19836_v30 = vld [vmem:[#allocation249_spill] sm:$0xff] }
 0x3df   : > { %v5209_v11 = vmax.f32 %v5072_v27, %v5175_v31  ;;  %v16423_v4 = vmax.f32 %v5350_v48, %v19830_v7  ;;  %v4627_v47 = vadd.f32 %v4586_v15, %v19832_v49  ;;  %v19833_v60 = vunpack.i.h.bf16 %v15898_v16  ;;  %v19837_v16 = vld [vmem:[#allocation95_spill] sm:$0xff] }
 0x3e0   : > { %v4411_v62 = vmax.f32 %v16218_v54, %v19831_v12  ;;  %v19834_v57 = vunpack.i.l.bf16 %v16060_v43  ;;  %v5352_v28 = vmax.f32 %v5300_v24, %v5326_v39  ;;  %v5353_v46 = vmax.f32 %v5301_v63, %v19836_v30  ;;  %v19838_v43 = vld [vmem:[#allocation192_spill] sm:$0xff]  ;;  %v19840_v24 = vld [vmem:[#allocation190_spill] sm:$0xff]  ;;  %v19844_v30 = vld [vmem:[#allocation89_spill] sm:$0xff] }
 0x3e1   : > { %v5289_v31 = vadd.f32 %v19833_v60, %v5209_v11  ;;  %v6292_v7 = vpack.c.bf16 %v16404_v58, %v16423_v4  ;;  %v8771_v41 = vadd.high.f32.bf16 %v19675_v5, %v8278_v26  ;;  %v4628_v12 = vadd.f32 %v4591_v53, %v19837_v16  ;;  %v19848_v16 = vld [vmem:[#allocation243_spill] sm:$0xff] }
 0x3e2   : > { %v16434_v27 = vadd.f32 %v19834_v57, %v5209_v11  ;;  %v16439_v34 = vmax.f32 %v4411_v62, %v4627_v47  ;;  %v16442_v54 = vmax.f32 %v5352_v28, %v5378_v50  ;;  %v16444_v18 = vmax.f32 %v5353_v46, %v5379_v51  ;;  %v8664_v57 = vld [vmem:[#allocation5 + $0xc8] sm:$0xff]  }
 0x3e3   : > { %v19839_v15 = vunpack.i.l.bf16 %v19838_v43  ;;  %7213 = vmatmul.mubr.bf16.vlgmr.msra.gmra.mrb[0].mxu1 %v6292_v7  ;;  %v8772_v47 = vadd.low.f32.bf16 %v19584_v0, %v8278_v26  ;;  %v4412_v5 = vmax.f32 %v16335_v22, %v8771_v41  ;;  %v19841_v0 = vmax.f32 %v16269_v29, %v16205_v10  ;;  %v19843_v28 = vld [vmem:[#allocation255_spill] sm:$0xff] }
 0x3e4   : > { %19835 = vst [vmem:[#allocation138_spill] sm:$0xff] %v16434_v27  ;;  %v4699_v39 = vrot.slane %v16439_v34, 7  ;;  %v4973_v60 = vrot.slane %v16439_v34, 6  ;;  %v6293_v50 = vpack.c.bf16 %v16444_v18, %v16442_v54  ;;  %v4835_v51 = vrot.slane %v16439_v34, 1  ;;  %7268 = vmatpush3.bf16.msra.mxu1 %v19840_v24  ;;  %v19847_v10 = vld [vmem:[#allocation199_spill] sm:$0xff] }
 0x3e5   : > { %v16450_v48 = vadd.f32 %v19839_v15, %v16269_v29  ;;  %v5109_v53 = vrot.slane %v16439_v34, 2  ;;  %v4662_v63 = vmax.f32 %v16337_v40, %v8772_v47  ;;  %v4664_v62 = vmax.f32 %v4412_v5, %v4628_v12  ;;  %7261 = vmatprep.subr.bf16.mxu1 %v8664_v57  ;;  %v19846_v40 = vld [vmem:[#allocation200_spill] sm:$0xff] }
 0x3e6   : > { %v16468_v26 = vmax.f32 %v19841_v0, %v16329_v6  ;;  %v19842_v22 = vmax.f32 %v16286_v56, %v16215_v1  ;;  %7216 = vmatprep.mubr.bf16.mxu1 %v6293_v50  ;;  %v19845_v46 = vunpack.i.l.bf16 %v19844_v30  ;;  %v5224_v41 = vadd.f32 %v19846_v40, %v19803_v20  ;;  %v19849_v50 = vld [vmem:[#allocation49_spill] sm:$0xff]  ;;  %v19850_v0 = vld [vmem:[#allocation234_spill] sm:$0xff]  ;;  %v19859_v56 = vld [vmem:[#allocation79_spill] sm:$0xff] }
 0x3e7   : > { %v5225_v6 = vadd.f32 %v19847_v10, %v19805_v55  ;;  %v5276_v12 = vadd.f32 %v19848_v16, %v19826_v38  ;;  %v4698_v1 = vrot.slane %v4662_v63, 7  ;;  %v4972_v43 = vrot.slane %v4662_v63, 6  ;;  %v19856_v16 = vld [vmem:[#allocation148_spill] sm:$0xff] }
 0x3e8   : > { %v16473_v49 = vmax.f32 %v19842_v22, %v5289_v31  ;;  %v16478_v7 = vadd.f32 %v19845_v46, %v19843_v28  ;;  %v4834_v31 = vrot.slane %v4662_v63, 1  ;;  %v5108_v15 = vrot.slane %v4662_v63, 2  ;;  %7269 = vmatpush3.bf16.msra.mxu1 %v8664_v57 }
 0x3e9   : > { %v4836_v47 = vrot.slane %v4664_v62, 1  ;;  %v5110_v5 = vrot.slane %v4664_v62, 2  ;;  %v5366_v24 = vmax.f32 %v16468_v26, %v19849_v50  ;;  %v19851_v20 = vrot.slane %v16339_v32, 7  ;;  %v8665_v50 = vld [vmem:[#allocation5 + $0xd0] sm:$0xff]  }
 0x3ea   : > { %v19852_v46 = vrot.slane %v16339_v32, 1  ;;  %v19853_v27 = vrot.slane %v16339_v32, 6  ;;  %v19854_v26 = vrot.slane %v16339_v32, 2  ;;  %7262 = vmatprep.subr.bf16.mxu1 %v8665_v50  ;;  %v19855_v22 = vunpack.i.h.bf16 %v19810_v25 }
 0x3eb   : > { %v4701_v55 = vsel %vm2253_vm12, %v19851_v20, %v4698_v1  ;;  %v19857_v10 = vunpack.i.l.bf16 %v19856_v16  ;;  %v19860_v29 = vunpack.i.l.bf16 %v19859_v56  ;;  %v4838_v21 = vsel %vm2614_vm13, %v4834_v31, %v4835_v51 }
 0x3ec   : > { %v4839_v11 = vsel %vm2614_vm13, %v19852_v46, %v4834_v31  ;;  %v4975_v62 = vsel %vm2975_vm8, %v19853_v27, %v4972_v43  ;;  %v5113_v57 = vsel %vm3336_vm14, %v19854_v26, %v5108_v15  ;;  %v4766_v20 = vadd.f32 %v19855_v22, %v4701_v55  ;;  %7270 = vmatpush3.bf16.msra.mxu1 %v8665_v50  ;;  %v19870_v50 = vld [vmem:[#allocation180_spill] sm:$0xff] }
 0x3ed   : > { %v4902_v40 = vadd.f32 %v19857_v10, %v4839_v11  ;;  %v19858_v46 = vunpack.i.h.bf16 %v19813_v19  ;;  %v5176_v36 = vadd.f32 %v19860_v29, %v5113_v57  ;;  %v4700_v27 = vsel %vm2253_vm12, %v4698_v1, %v4699_v39  ;;  %v19862_v10 = vld [vmem:[#allocation117_spill] sm:$0xff] }
 0x3ee   : > { %v4837_v26 = vsel %vm2614_vm13, %v4835_v51, %v4836_v47  ;;  %v4974_v25 = vsel %vm2975_vm8, %v4972_v43, %v4973_v60  ;;  %v4800_v22 = vmax.f32 %v4662_v63, %v4766_v20  ;;  %v19861_v19 = vmax.f32 %v16339_v32, %v16380_v59  ;;  %v19865_v1 = vld [vmem:[#allocation85_spill] sm:$0xff] }
 0x3ef   : > { %v5040_v61 = vadd.f32 %v19858_v46, %v4975_v62  ;;  %v19863_v55 = vunpack.i.l.bf16 %v19862_v10  ;;  %v19864_v62 = vunpack.i.h.bf16 %v19856_v16  ;;  %v19866_v47 = vunpack.i.l.bf16 %v19865_v1  ;;  %v19867_v46 = vld [vmem:[#allocation87_spill] sm:$0xff]  ;;  %v8666_v59 = vld [vmem:[#allocation5 + $0xd8] sm:$0xff]   ;;  %v8667_v1 = vld [vmem:[#allocation5 + $0xe0] sm:$0xff]  }
 0x3f0   : > { %v4936_v11 = vmax.f32 %v19861_v19, %v4902_v40  ;;  %v19868_v51 = vunpack.i.l.bf16 %v19867_v46  ;;  %v5111_v60 = vsel %vm3336_vm14, %v5109_v53, %v5110_v5  ;;  %v5112_v32 = vsel %vm3336_vm14, %v5108_v15, %v5109_v53  ;;  %7263 = vmatprep.subr.bf16.mxu1 %v8666_v59  ;;  %v19878_v46 = vld [vmem:[#allocation98_spill] sm:$0xff] }
 0x3f1   : > { %v4767_v29 = vadd.f32 %v19863_v55, %v4700_v27  ;;  %v4903_v39 = vadd.f32 %v19864_v62, %v4838_v21  ;;  %v4904_v57 = vadd.f32 %v19866_v47, %v4837_v26  ;;  %v19869_v16 = vunpack.i.h.bf16 %v19859_v56  ;;  %7271 = vmatpush3.bf16.msra.mxu1 %v8666_v59 }
 0x3f2   : > { %v5041_v31 = vadd.f32 %v19868_v51, %v4974_v25  ;;  %v5073_v21 = vmax.f32 %v4936_v11, %v16386_v13  ;;  %v19871_v20 = vunpack.i.l.bf16 %v19870_v50  ;;  %v5250_v26 = vmax.f32 %v19821_v33, %v5224_v41  ;;  %v19872_v25 = vld [vmem:[#allocation242_spill] sm:$0xff]  ;;  %7264 = vmatprep.subr.bf16.mxu1 %v8667_v1 }
 0x3f3   : > { %v4801_v63 = vmax.f32 %v16439_v34, %v4767_v29  ;;  %v4937_v40 = vmax.f32 %v4800_v22, %v4903_v39  ;;  %v5177_v43 = vadd.f32 %v19869_v16, %v5112_v32  ;;  %v5251_v5 = vmax.f32 %v19823_v23, %v5225_v6  ;;  %v19873_v34 = vld [vmem:[#allocation293_spill] sm:$0xff]  ;;  %v19875_v11 = vld [vmem:[#allocation42_spill] sm:$0xff]  ;;  %v19876_v29 = vld [vmem:[#allocation252_spill] sm:$0xff] }
 0x3f4   : > { %v5178_v27 = vadd.f32 %v19871_v20, %v5111_v60  ;;  %v5277_v53 = vadd.f32 %v19872_v25, %v19828_v9  ;;  %v5210_v10 = vmax.f32 %v5073_v21, %v5176_v36  ;;  %v19874_v22 = vld [vmem:[#allocation253_spill] sm:$0xff]  ;;  %v5302_v13 = vmax.f32 %v5250_v26, %v5276_v12  ;;  %v19877_v39 = vld [vmem:[#allocation163_spill] sm:$0xff]  ;;  %v19881_v60 = vld [vmem:[#allocation256_spill] sm:$0xff] }
 0x3f5   : > { %v4938_v15 = vmax.f32 %v4801_v63, %v4904_v57  ;;  %v5074_v19 = vmax.f32 %v4937_v40, %v5040_v61  ;;  %v5380_v55 = vadd.f32 %v19874_v22, %v19873_v34  ;;  %v5381_v62 = vadd.f32 %v19876_v29, %v19875_v11  ;;  %v19882_v12 = vld [vmem:[#allocation257_spill] sm:$0xff]  ;;  %v19883_v63 = vld [vmem:[#allocation164_spill] sm:$0xff]  ;;  %7272 = vmatpush3.bf16.msra.mxu1 %v8667_v1  ;;  %v19959_v25 = vld [vmem:[#allocation131_spill] sm:$0xff] }
 0x3f6   : > { %v5303_v56 = vmax.f32 %v5251_v5, %v5277_v53  ;;  %v5226_v41 = vadd.f32 %v19877_v39, %v19821_v33  ;;  %v19879_v57 = vunpack.i.l.bf16 %v19878_v46  ;;  %v19880_v36 = vunpack.i.h.bf16 %v19844_v30 }
 0x3f7   : > { %v5075_v6 = vmax.f32 %v4938_v15, %v5041_v31  ;;  %v5211_v47 = vmax.f32 %v5074_v19, %v5177_v43  ;;  %v5354_v32 = vmax.f32 %v5302_v13, %v19881_v60  ;;  %v5227_v40 = vadd.f32 %v19883_v63, %v19823_v23  ;;  %v19885_v43 = vld [vmem:[#allocation237_spill] sm:$0xff]  ;;  %v19888_v23 = vld [vmem:[#allocation251_spill] sm:$0xff]  ;;  %v19899_v60 = vld [vmem:[#allocation260_spill] sm:$0xff] }
 0x3f8   : > { %v5290_v61 = vadd.f32 %v19879_v57, %v5210_v10  ;;  %v5392_v51 = vadd.f32 %v19880_v36, %v5210_v10  ;;  %v5355_v59 = vmax.f32 %v5303_v56, %v19882_v12  ;;  %v5252_v21 = vmax.f32 %v19826_v38, %v5226_v41  ;;  %v19895_v57 = vld [vmem:[#allocation20_spill] sm:$0xff]  ;;  %v19900_v12 = vld [vmem:[#allocation206_spill] sm:$0xff]  ;;  %v19951_v63 = vld [vmem:[#allocation57_spill] sm:$0xff] }
 0x3f9   : > { %v5212_v33 = vmax.f32 %v5075_v6, %v5178_v27  ;;  %v19884_v31 = vmax.f32 %v16313_v45, %v16450_v48  ;;  %v19886_v50 = vunpack.i.l.bf16 %v19885_v43  ;;  %v16569_v30 = vmax.f32 %v5354_v32, %v5380_v55  ;;  %v8668_v27 = vld [vmem:[#allocation5 + $0xe8] sm:$0xff]   ;;  %v19889_v48 = vld [vmem:[#allocation124_spill] sm:$0xff]  ;;  %v19893_v55 = vld [vmem:[#allocation250_spill] sm:$0xff] }
 0x3fa   : > { %v16567_v26 = vmax.f32 %v5366_v24, %v5392_v51  ;;  %v16571_v5 = vmax.f32 %v5355_v59, %v5381_v62  ;;  %v5253_v53 = vmax.f32 %v19828_v9, %v5227_v40  ;;  %v5278_v15 = vadd.f32 %v19888_v23, %v19873_v34  ;;  %7265 = vmatprep.subr.bf16.mxu1 %v8668_v27  ;;  %v19898_v51 = vld [vmem:[#allocation88_spill] sm:$0xff]  ;;  %v19901_v40 = vld [vmem:[#allocation203_spill] sm:$0xff] }
 0x3fb   : > { %v5316_v16 = vmax.f32 %v19884_v31, %v5290_v61  ;;  %v5393_v20 = vadd.f32 %v19886_v50, %v5211_v47  ;;  %v19890_v19 = vunpack.i.h.bf16 %v19889_v48  ;;  %v19891_v24 = vmax.f32 %v16473_v49, %v19850_v0  ;;  %v19896_v49 = vld [vmem:[#allocation207_spill] sm:$0xff]  ;;  %7273 = vmatpush3.bf16.msra.mxu1 %v8668_v27  ;;  %v19897_v61 = vld [vmem:[#allocation266_spill] sm:$0xff]  ;;  %v19913_v31 = vld [vmem:[#allocation152_spill] sm:$0xff] }
 0x3fc   : > { %19887 = vst [vmem:[#allocation86_spill] sm:$0xff] %v16567_v26  ;;  %v5279_v56 = vadd.f32 %v19893_v55, %v19875_v11  ;;  %v6294_v1 = vpack.c.bf16 %v16571_v5, %v16569_v30  ;;  %v5304_v6 = vmax.f32 %v5252_v21, %v5278_v15  ;;  %v5382_v0 = vadd.f32 %v19896_v49, %v19895_v57  ;;  %v19903_v50 = vld [vmem:[#allocation259_spill] sm:$0xff]  ;;  %v19950_v55 = vld [vmem:[#allocation38_spill] sm:$0xff] }
 0x3fd   : > { %v5368_v45 = vmax.f32 %v5316_v16, %v16478_v7  ;;  %v5394_v10 = vadd.f32 %v19890_v19, %v5212_v33  ;;  %v16582_v13 = vmax.f32 %v19891_v24, %v5393_v20  ;;  %v5383_v32 = vadd.f32 %v19899_v60, %v19898_v51  ;;  %v19902_v16 = vld [vmem:[#allocation264_spill] sm:$0xff]  ;;  %v19907_v24 = vld [vmem:[#allocation271_spill] sm:$0xff] }
 0x3fe   : > { %v5305_v46 = vmax.f32 %v5253_v53, %v5279_v56  ;;  %7217 = vmatmul.mubr.bf16.gmra.mrb[4].mxu1 %v6294_v1  ;;  %v5356_v36 = vmax.f32 %v5304_v6, %v19897_v61  ;;  %v5228_v59 = vadd.f32 %v19900_v12, %v19826_v38  ;;  %v5229_v21 = vadd.f32 %v19901_v40, %v19828_v9  ;;  %v8669_v53 = vld [vmem:[#allocation5 + $0xf0] sm:$0xff]   ;;  %v19908_v1 = vld [vmem:[#allocation70_spill] sm:$0xff] }
 0x3ff   : > { %19892 = vst [vmem:[#allocation93_spill] sm:$0xff] %v16582_v13  ;;  %v16590_v7 = vmax.f32 %v5368_v45, %v5394_v10  ;;  %v18206_v47 = vrot.slane %v16582_v13, 1  ;;  %v5280_v20 = vadd.f32 %v19903_v50, %v19895_v57  ;;  %7266 = vmatprep.subr.bf16.mxu1 %v8669_v53  ;;  %v19904_v45 = vld [vmem:[#allocation258_spill] sm:$0xff]  ;;  %v19922_v13 = vld [vmem:[#allocation159_spill] sm:$0xff]  ;;  %v19948_v12 = vld [vmem:[#allocation60_spill] sm:$0xff] }
 0x400   : > { %v5357_v43 = vmax.f32 %v5305_v46, %v19902_v16  ;;  %v16607_v15 = vmax.f32 %v5356_v36, %v5382_v0  ;;  %v5254_v27 = vmax.f32 %v19873_v34, %v5228_v59  ;;  %v5255_v38 = vmax.f32 %v19875_v11, %v5229_v21  ;;  %v19906_v10 = vld [vmem:[#allocation90_spill] sm:$0xff]  ;;  %7274 = vmatpush3.bf16.msra.mxu1 %v8669_v53  ;;  %v19916_v53 = vld [vmem:[#allocation268_spill] sm:$0xff] }
 0x401   : > { %19894 = vst [vmem:[#allocation62_spill] sm:$0xff] %v16590_v7  ;;  %v5542_v33 = vrot.slane %v16590_v7, 1  ;;  %v5281_v9 = vadd.f32 %v19904_v45, %v19898_v51  ;;  %v5384_v56 = vadd.f32 %v19907_v24, %v19906_v10  ;;  %v19909_v6 = vld [vmem:[#allocation270_spill] sm:$0xff]  ;;  %7267 = vmatprep.subr.bf16.mxu1 %v19913_v31  ;;  %v19919_v31 = vld [vmem:[#allocation213_spill] sm:$0xff]  ;;  %v19920_v7 = vld [vmem:[#allocation183_spill] sm:$0xff] }
 0x402   : > { %v16617_v19 = vmax.f32 %v5357_v43, %v5383_v32  ;;  %v5385_v46 = vadd.f32 %v19909_v6, %v19908_v1  ;;  %v19910_v0 = vld [vmem:[#allocation146_spill] sm:$0xff]  ;;  %v5306_v36 = vmax.f32 %v5254_v27, %v5280_v20  ;;  %v19918_v27 = vld [vmem:[#allocation275_spill] sm:$0xff]  ;;  %v19945_v24 = vld [vmem:[#allocation37_spill] sm:$0xff] }
 0x403   : > { %v5543_v48 = vsel %vm2614_vm13, %v18206_v47, %v5542_v33  ;;  %v5307_v59 = vmax.f32 %v5255_v38, %v5281_v9  ;;  %v19912_v21 = vld [vmem:[#allocation202_spill] sm:$0xff]  ;;  %v19914_v33 = vld [vmem:[#allocation201_spill] sm:$0xff]  ;;  %v5386_v9 = vadd.f32 %v19919_v31, %v19843_v28  ;;  %v19932_v6 = vld [vmem:[#allocation71_spill] sm:$0xff] }
 0x404   : > { %19905 = vst [vmem:[#allocation66_spill] sm:$0xff] %v16617_v19  ;;  %v16624_v61 = vadd.f32 %v19910_v0, %v5543_v48  ;;  %v5230_v16 = vadd.f32 %v19912_v21, %v19873_v34  ;;  %v6295_v32 = vpack.c.bf16 %v16617_v19, %v16607_v15  ;;  %v5231_v43 = vadd.f32 %v19914_v33, %v19875_v11  ;;  %v19915_v47 = vld [vmem:[#allocation269_spill] sm:$0xff]  ;;  %v19925_v21 = vld [vmem:[#allocation123_spill] sm:$0xff]  ;;  %v19949_v60 = vld [vmem:[#allocation40_spill] sm:$0xff] }
 0x405   : > { %v5282_v62 = vadd.f32 %v19915_v47, %v19906_v10  ;;  %v5283_v48 = vadd.f32 %v19916_v53, %v19908_v1  ;;  %v19917_v0 = vld [vmem:[#allocation277_spill] sm:$0xff]  ;;  %v5359_v38 = vmax.f32 %v5307_v59, %v19918_v27  ;;  %v19923_v47 = vunpack.i.l.bf16 %v19922_v13  ;;  %v19924_v53 = vld [vmem:[#allocation195_spill] sm:$0xff]  ;;  %v19930_v27 = vld [vmem:[#allocation112_spill] sm:$0xff] }
 0x406   : > { %19911 = vst [vmem:[#allocation96_spill] sm:$0xff] %v16624_v61  ;;  %v5358_v20 = vmax.f32 %v5306_v36, %v19917_v0  ;;  %v5256_v34 = vmax.f32 %v19895_v57, %v5230_v16  ;;  %7220 = vmatprep.mubr.bf16.mxu1 %v6295_v32  ;;  %v5257_v41 = vmax.f32 %v19898_v51, %v5231_v43  ;;  %v19921_v11 = vld [vmem:[#allocation281_spill] sm:$0xff]  ;;  %v19926_v36 = vld [vmem:[#allocation18_spill] sm:$0xff]  ;;  %v5423_v51 = vrot.slane %v19930_v27, 7  ;;  %v19946_v45 = vld [vmem:[#allocation31_spill] sm:$0xff] }
 0x407   : > { %v5387_v61 = vadd.f32 %v19921_v11, %v19920_v7  ;;  %v5370_v33 = vadd.f32 %v19923_v47, %v15632_v14  ;;  %v19927_v0 = vmax.f32 %v19925_v21, %v19926_v36  ;;  %v16656_v16 = vmax.f32 %v5359_v38, %v5385_v46  ;;  %v8670_v43 = vld [vmem:[#allocation5 + $0xf8] sm:$0xff]   ;;  %v19934_v46 = vld [vmem:[#allocation286_spill] sm:$0xff]  ;;  %v19935_v38 = vld [vmem:[#allocation287_spill] sm:$0xff] }
 0x408   : > { %v16654_v57 = vmax.f32 %v5358_v20, %v5384_v56  ;;  %v5308_v32 = vmax.f32 %v5256_v34, %v5282_v62  ;;  %7275 = vmatpush3.bf16.msra.mxu1 %v8670_v43  ;;  %v5309_v11 = vmax.f32 %v5257_v41, %v5283_v48  ;;  %v19931_v31 = vld [vmem:[#allocation69_spill] sm:$0xff]  ;;  %v5426_v21 = vrot.slane %v16390_v44, 7  ;;  %v19964_v28 = vld [vmem:[#allocation134_spill] sm:$0xff] }
 0x409   : > { %v16652_v59 = vmax.f32 %v19927_v0, %v19924_v53  ;;  %19929 = vst [vmem:[#allocation41_spill] sm:$0xff] %v16656_v16  ;;  %v19933_v13 = vmax.f32 %v19931_v31, %v19932_v6  ;;  %v5427_v62 = vrot.slane %v16400_v52, 7  ;;  %v5428_v20 = vrot.slane %v16423_v4, 7 }
 0x40a   : > { %19928 = vst [vmem:[#allocation21_spill] sm:$0xff] %v16654_v57  ;;  %v6296_v56 = vpack.c.bf16 %v16656_v16, %v16654_v57  ;;  %v5360_v53 = vmax.f32 %v5308_v32, %v19934_v46  ;;  %v5361_v41 = vmax.f32 %v5309_v11, %v19935_v38  ;;  %v5429_v6 = vrot.slane %v16404_v58, 7  ;;  %v19961_v57 = vld [vmem:[#allocation129_spill] sm:$0xff] }
 0x40b   : > { %v16662_v14 = vmax.f32 %v19933_v13, %v5370_v33  ;;  %v5424_v47 = vrot.slane %v16652_v59, 7  ;;  %v5430_v33 = vrot.slane %v16442_v54, 7  ;;  %v18210_v31 = vrot.slane %v16444_v18, 7  ;;  %v19938_v13 = vld [vmem:[#allocation103_spill] sm:$0xff] }
 0x40c   : > { %7221 = vmatmul.mubr.bf16.gmra.mrb[8].mxu1 %v6296_v56  ;;  %v16675_v34 = vmax.f32 %v5360_v53, %v5386_v9  ;;  %v5463_v36 = vsel %vm2253_vm12, %v5427_v62, %v5428_v20  ;;  %v5464_v0 = vsel %vm2253_vm12, %v5426_v21, %v5427_v62  ;;  %v16682_v32 = vmax.f32 %v5361_v41, %v5387_v61 }
 0x40d   : > { %v5422_v48 = vrot.slane %v16662_v14, 7  ;;  %v5461_v11 = vsel %vm2253_vm12, %v5429_v6, %v5430_v33  ;;  %v5462_v43 = vsel %vm2253_vm12, %v5428_v20, %v5429_v6  ;;  %v19939_v56 = vrot.slane %v19938_v13, 7 }
 0x40e   : > { %19936 = vst [vmem:[#allocation212_spill] sm:$0xff] %v16675_v34  ;;  %19937 = vst [vmem:[#allocation211_spill] sm:$0xff] %v16682_v32  ;;  %v5460_v46 = vsel %vm2253_vm12, %v5430_v33, %v18210_v31  ;;  %v5467_v62 = vsel %vm2253_vm12, %v5423_v51, %v5424_v47  ;;  %v6297_v38 = vpack.c.bf16 %v16682_v32, %v16675_v34  ;;  %v19943_v33 = vld [vmem:[#allocation36_spill] sm:$0xff]  ;;  %v19958_v32 = vld [vmem:[#allocation126_spill] sm:$0xff] }
 0x40f   : > { %v5465_v9 = vsel %vm2253_vm12, %v19939_v56, %v5426_v21  ;;  %v19940_v53 = vmov %v19939_v56  ;;  %v5468_v20 = vsel %vm2253_vm12, %v5422_v48, %v5423_v51  ;;  %v19941_v21 = vld [vmem:[#allocation43_spill] sm:$0xff]  ;;  %v19944_v31 = vld [vmem:[#allocation32_spill] sm:$0xff]  ;;  %v5475_v51 = vadd.f32 %v19948_v12, %v5464_v0 }
 0x410   : > { %v5466_v61 = vsel %vm2253_vm12, %v5424_v47, %v19940_v53  ;;  %v19942_v41 = vrot.slane %v19941_v21, 7  ;;  %v5471_v56 = vadd.f32 %v19943_v33, %v5468_v20  ;;  %v5472_v26 = vadd.f32 %v19944_v31, %v5467_v62  ;;  %v19947_v47 = vld [vmem:[#allocation61_spill] sm:$0xff]  ;;  %7224 = vmatprep.mubr.bf16.mxu1 %v6297_v38 }
 0x411   : > { %v5473_v50 = vadd.f32 %v19946_v45, %v5466_v61  ;;  %v5474_v40 = vadd.f32 %v19947_v47, %v5465_v9  ;;  %v5476_v49 = vadd.f32 %v19949_v60, %v5463_v36  ;;  %v5477_v23 = vadd.f32 %v19950_v55, %v5462_v43 }
 0x412   : > { %v5469_v6 = vsel %vm2253_vm12, %v19942_v41, %v5422_v48  ;;  %v5478_v39 = vadd.f32 %v19951_v63, %v5461_v11  ;;  %v19952_v48 = vld [vmem:[#allocation51_spill] sm:$0xff]  ;;  %v5495_v31 = vmax.f32 %v19930_v27, %v5471_v56  ;;  %v5499_v12 = vmax.f32 %v16400_v52, %v5475_v51 }
 0x413   : > { %v5470_v53 = vadd.f32 %v19945_v24, %v5469_v6  ;;  %v5479_v41 = vadd.f32 %v19952_v48, %v5460_v46  ;;  %v5496_v24 = vmax.f32 %v16652_v59, %v5472_v26  ;;  %v5497_v45 = vmax.f32 %v19938_v13, %v5473_v50 }
 0x414   : > { %v5498_v9 = vmax.f32 %v16390_v44, %v5474_v40  ;;  %v5500_v60 = vmax.f32 %v16423_v4, %v5476_v49  ;;  %v5501_v55 = vmax.f32 %v16404_v58, %v5477_v23  ;;  %v5502_v63 = vmax.f32 %v16442_v54, %v5478_v39 }
 0x415   : > { %v5494_v20 = vmax.f32 %v16662_v14, %v5470_v53  ;;  %v5503_v36 = vmax.f32 %v16444_v18, %v5479_v41  ;;  %v5518_v0 = vrot.slane %v16662_v14, 1  ;;  %v5519_v11 = vrot.slane %v19930_v27, 1 }
 0x416   : > { %v5520_v26 = vrot.slane %v16652_v59, 1  ;;  %v5522_v50 = vrot.slane %v16390_v44, 1  ;;  %v5523_v40 = vrot.slane %v16400_v52, 1  ;;  %v5524_v43 = vrot.slane %v16423_v4, 1 }
 0x417   : > { %v5525_v49 = vrot.slane %v16404_v58, 1  ;;  %v5526_v23 = vrot.slane %v16442_v54, 1  ;;  %v5527_v39 = vrot.slane %v16444_v18, 1  ;;  %v18212_v46 = vrot.slane %v16569_v30, 1 }
 0x418   : > { %v5561_v61 = vsel %vm2614_vm13, %v5523_v40, %v5524_v43  ;;  %v5562_v62 = vsel %vm2614_vm13, %v5522_v50, %v5523_v40  ;;  %v19953_v38 = vrot.slane %v19938_v13, 1  ;;  %v5565_v41 = vsel %vm2614_vm13, %v5519_v11, %v5520_v26  ;;  %v19955_v40 = vld [vmem:[#allocation72_spill] sm:$0xff] }
 0x419   : > { %v5557_v53 = vsel %vm2614_vm13, %v5527_v39, %v18212_v46  ;;  %v5558_v47 = vsel %vm2614_vm13, %v5526_v23, %v5527_v39  ;;  %v5559_v51 = vsel %vm2614_vm13, %v5525_v49, %v5526_v23  ;;  %v5560_v48 = vsel %vm2614_vm13, %v5524_v43, %v5525_v49  ;;  %v19957_v46 = vld [vmem:[#allocation127_spill] sm:$0xff]  ;;  %v19960_v23 = vld [vmem:[#allocation130_spill] sm:$0xff]  ;;  %v19962_v49 = vld [vmem:[#allocation128_spill] sm:$0xff] }
 0x41a   : > { %v5563_v6 = vsel %vm2614_vm13, %v19953_v38, %v5522_v50  ;;  %v19954_v33 = vmov %v19953_v38  ;;  %v5566_v50 = vsel %vm2614_vm13, %v5518_v0, %v5519_v11  ;;  %v5568_v39 = vadd.f32 %v19958_v32, %v5565_v41 }
 0x41b   : > { %v5564_v56 = vsel %vm2614_vm13, %v5520_v26, %v19954_v33  ;;  %v19956_v33 = vld [vmem:[#allocation73_spill] sm:$0xff]  ;;  %v5567_v22 = vadd.f32 %v19957_v46, %v5566_v50  ;;  %v5571_v34 = vadd.f32 %v19959_v25, %v5562_v62  ;;  %v5572_v16 = vadd.f32 %v19960_v23, %v5561_v61  ;;  %v19963_v26 = vld [vmem:[#allocation135_spill] sm:$0xff]  ;;  %v19967_v50 = vld [vmem:[#allocation94_spill] sm:$0xff] }
 0x41c   : > { %v5569_v38 = vadd.f32 %v19955_v40, %v5564_v56  ;;  %v5570_v29 = vadd.f32 %v19956_v33, %v5563_v6  ;;  %v5573_v43 = vadd.f32 %v19961_v57, %v5560_v48  ;;  %v5574_v19 = vadd.f32 %v19962_v49, %v5559_v51 }
 0x41d   : > { %v5575_v7 = vadd.f32 %v19963_v26, %v5558_v47  ;;  %v5576_v0 = vadd.f32 %v19964_v28, %v5557_v53  ;;  %v16776_v11 = vmax.f32 %v5494_v20, %v5567_v22  ;;  %v16778_v56 = vmax.f32 %v5495_v31, %v5568_v39  ;;  %v19969_v39 = vld [vmem:[#allocation97_spill] sm:$0xff]  ;;  %v19971_v26 = vld [vmem:[#allocation99_spill] sm:$0xff] }
 0x41e   : > { %v16780_v6 = vmax.f32 %v5496_v24, %v5569_v38  ;;  %v16782_v46 = vmax.f32 %v5497_v45, %v5570_v29  ;;  %v16784_v32 = vmax.f32 %v5498_v9, %v5571_v34  ;;  %v16786_v25 = vmax.f32 %v5499_v12, %v5572_v16  ;;  %v19968_v38 = vld [vmem:[#allocation92_spill] sm:$0xff] }
 0x41f   : > { %v16788_v61 = vmax.f32 %v5500_v60, %v5573_v43  ;;  %v16790_v57 = vmax.f32 %v5501_v55, %v5574_v19  ;;  %v16792_v62 = vmax.f32 %v5502_v63, %v5575_v7  ;;  %v16794_v47 = vmax.f32 %v5503_v36, %v5576_v0  ;;  %v19970_v43 = vld [vmem:[#allocation48_spill] sm:$0xff] }
 0x420   : > { %v5615_v28 = vrot.slane %v19941_v21, 6  ;;  %v5616_v22 = vrot.slane %v16662_v14, 6  ;;  %v5617_v20 = vrot.slane %v19930_v27, 6  ;;  %v5618_v29 = vrot.slane %v16652_v59, 6 }
 0x421   : > { %v5620_v34 = vrot.slane %v16390_v44, 6  ;;  %v5621_v16 = vrot.slane %v16400_v52, 6  ;;  %v5622_v31 = vrot.slane %v16423_v4, 6  ;;  %v5623_v19 = vrot.slane %v16404_v58, 6 }
 0x422   : > { %v5624_v7 = vrot.slane %v16442_v54, 6  ;;  %v5625_v24 = vrot.slane %v16444_v18, 6  ;;  %v19965_v45 = vrot.slane %v19938_v13, 6  ;;  %v5661_v55 = vsel %vm2975_vm8, %v5617_v20, %v5618_v29 }
 0x423   : > { %v5658_v21 = vsel %vm2975_vm8, %v5620_v34, %v5621_v16  ;;  %v5656_v53 = vsel %vm2975_vm8, %v5622_v31, %v5623_v19  ;;  %v5657_v51 = vsel %vm2975_vm8, %v5621_v16, %v5622_v31  ;;  %v5662_v48 = vsel %vm2975_vm8, %v5616_v22, %v5617_v20  ;;  %v19974_v31 = vld [vmem:[#allocation24_spill] sm:$0xff]  ;;  %v19975_v20 = vld [vmem:[#allocation29_spill] sm:$0xff] }
 0x424   : > { %v5659_v9 = vsel %vm2975_vm8, %v19965_v45, %v5620_v34  ;;  %v19966_v12 = vmov %v19965_v45  ;;  %v5654_v63 = vsel %vm2975_vm8, %v5624_v7, %v5625_v24  ;;  %v5655_v36 = vsel %vm2975_vm8, %v5623_v19, %v5624_v7  ;;  %v19973_v19 = vld [vmem:[#allocation35_spill] sm:$0xff] }
 0x425   : > { %v5660_v60 = vsel %vm2975_vm8, %v5618_v29, %v19966_v12  ;;  %v5663_v41 = vsel %vm2975_vm8, %v5615_v28, %v5616_v22  ;;  %v5666_v40 = vadd.f32 %v19967_v50, %v5661_v55  ;;  %v5665_v49 = vadd.f32 %v19970_v43, %v5662_v48  ;;  %v19972_v29 = vld [vmem:[#allocation100_spill] sm:$0xff]  ;;  %v19976_v12 = vld [vmem:[#allocation106_spill] sm:$0xff]  ;;  %v19981_v43 = vld [vmem:[#allocation157_spill] sm:$0xff] }
 0x426   : > { %v5667_v33 = vadd.f32 %v19968_v38, %v5660_v60  ;;  %v5664_v23 = vadd.f32 %v19969_v39, %v5663_v41  ;;  %v5668_v0 = vadd.f32 %v19971_v26, %v5659_v9  ;;  %v5669_v34 = vadd.f32 %v19972_v29, %v5658_v21  ;;  %v19979_v38 = vld [vmem:[#allocation155_spill] sm:$0xff]  ;;  %v19980_v39 = vld [vmem:[#allocation154_spill] sm:$0xff]  ;;  %v19983_v29 = vld [vmem:[#allocation76_spill] sm:$0xff] }
 0x427   : > { %v5670_v16 = vadd.f32 %v19973_v19, %v5657_v51  ;;  %v5671_v7 = vadd.f32 %v19974_v31, %v5656_v53  ;;  %v5672_v45 = vadd.f32 %v19975_v20, %v5655_v36  ;;  %v5673_v28 = vadd.f32 %v19976_v12, %v5654_v63  ;;  %v19982_v26 = vld [vmem:[#allocation74_spill] sm:$0xff]  ;;  %v19984_v19 = vld [vmem:[#allocation75_spill] sm:$0xff]  ;;  %v19986_v20 = vld [vmem:[#allocation105_spill] sm:$0xff] }
 0x428   : > { %v5688_v22 = vmax.f32 %v16776_v11, %v5664_v23  ;;  %v5689_v60 = vmax.f32 %v16778_v56, %v5665_v49  ;;  %v5690_v55 = vmax.f32 %v16780_v6, %v5666_v40  ;;  %v5691_v48 = vmax.f32 %v16782_v46, %v5667_v33  ;;  %v19985_v31 = vld [vmem:[#allocation107_spill] sm:$0xff] }
 0x429   : > { %v5692_v9 = vmax.f32 %v16784_v32, %v5668_v0  ;;  %v5693_v21 = vmax.f32 %v16786_v25, %v5669_v34  ;;  %v5694_v51 = vmax.f32 %v16788_v61, %v5670_v16  ;;  %v5695_v53 = vmax.f32 %v16790_v57, %v5671_v7  ;;  %v19987_v12 = vld [vmem:[#allocation167_spill] sm:$0xff] }
 0x42a   : > { %v5696_v36 = vmax.f32 %v16792_v62, %v5672_v45  ;;  %v5697_v63 = vmax.f32 %v16794_v47, %v5673_v28  ;;  %v5712_v11 = vrot.slane %v16662_v14, 2  ;;  %v5713_v56 = vrot.slane %v19930_v27, 2 }
 0x42b   : > { %v5714_v6 = vrot.slane %v16652_v59, 2  ;;  %v5716_v46 = vrot.slane %v16390_v44, 2  ;;  %v5717_v32 = vrot.slane %v16400_v52, 2  ;;  %v5718_v25 = vrot.slane %v16423_v4, 2 }
 0x42c   : > { %v5719_v61 = vrot.slane %v16404_v58, 2  ;;  %v5720_v57 = vrot.slane %v16442_v54, 2  ;;  %v5721_v62 = vrot.slane %v16444_v18, 2  ;;  %v5722_v47 = vrot.slane %v16569_v30, 2 }
 0x42d   : > { %v5755_v14 = vsel %vm3336_vm14, %v5717_v32, %v5718_v25  ;;  %v5756_v59 = vsel %vm3336_vm14, %v5716_v46, %v5717_v32  ;;  %v19977_v44 = vrot.slane %v19938_v13, 2  ;;  %v5759_v13 = vsel %vm3336_vm14, %v5713_v56, %v5714_v6 }
 0x42e   : > { %v5751_v54 = vsel %vm3336_vm14, %v5721_v62, %v5722_v47  ;;  %v5752_v27 = vsel %vm3336_vm14, %v5720_v57, %v5721_v62  ;;  %v5753_v41 = vsel %vm3336_vm14, %v5719_v61, %v5720_v57  ;;  %v5754_v50 = vsel %vm3336_vm14, %v5718_v25, %v5719_v61 }
 0x42f   : > { %v5757_v52 = vsel %vm3336_vm14, %v19977_v44, %v5716_v46  ;;  %v19978_v4 = vmov %v19977_v44  ;;  %v5760_v40 = vsel %vm3336_vm14, %v5712_v11, %v5713_v56  ;;  %v5762_v0 = vadd.f32 %v19982_v26, %v5759_v13 }
 0x430   : > { %v5758_v58 = vsel %vm3336_vm14, %v5714_v6, %v19978_v4  ;;  %v5764_v23 = vadd.f32 %v19980_v39, %v5757_v52  ;;  %v5761_v49 = vadd.f32 %v19981_v43, %v5760_v40  ;;  %v5765_v34 = vadd.f32 %v19983_v29, %v5756_v59  ;;  %v19988_v6 = vld [vmem:[#allocation166_spill] sm:$0xff]  ;;  %v19997_v40 = vld [vmem:[#allocation53_spill] sm:$0xff] }
 0x431   : > { %v5763_v33 = vadd.f32 %v19979_v38, %v5758_v58  ;;  %v5766_v16 = vadd.f32 %v19984_v19, %v5755_v14  ;;  %v5767_v7 = vadd.f32 %v19985_v31, %v5754_v50  ;;  %v5768_v45 = vadd.f32 %v19986_v20, %v5753_v41 }
 0x432   : > { %v5769_v28 = vadd.f32 %v19987_v12, %v5752_v27  ;;  %v5770_v11 = vadd.f32 %v19988_v6, %v5751_v54  ;;  %v5785_v56 = vmax.f32 %v5688_v22, %v5761_v49  ;;  %v5786_v46 = vmax.f32 %v5689_v60, %v5762_v0  ;;  %v19989_v60 = vld [vmem:[#allocation197_spill] sm:$0xff] }
 0x433   : > { %v5787_v32 = vmax.f32 %v5690_v55, %v5763_v33  ;;  %v5788_v25 = vmax.f32 %v5691_v48, %v5764_v23  ;;  %v16898_v61 = vmax.f32 %v5692_v9, %v5765_v34  ;;  %v16900_v57 = vmax.f32 %v5693_v21, %v5766_v16  ;;  %v19998_v33 = vld [vmem:[#allocation52_spill] sm:$0xff]  ;;  %v20000_v6 = vld [vmem:[#allocation133_spill] sm:$0xff] }
 0x434   : > { %v16902_v62 = vmax.f32 %v5694_v51, %v5767_v7  ;;  %v16904_v59 = vmax.f32 %v5695_v53, %v5768_v45  ;;  %v16906_v14 = vmax.f32 %v5696_v36, %v5769_v28  ;;  %v16908_v44 = vmax.f32 %v5697_v63, %v5770_v11  ;;  %v19990_v53 = vld [vmem:[#allocation224_spill] sm:$0xff]  ;;  %v19991_v36 = vld [vmem:[#allocation231_spill] sm:$0xff]  ;;  %v19992_v63 = vld [vmem:[#allocation230_spill] sm:$0xff] }
 0x435   : > { %v5809_v52 = vadd.f32 %v19792_v3, %v5787_v32  ;;  %v5810_v4 = vadd.f32 %v19793_v17, %v5788_v25  ;;  %v5811_v22 = vadd.f32 %v19807_v2, %v16898_v61  ;;  %v5812_v55 = vadd.f32 %v19989_v60, %v16900_v57  ;;  %v20003_v60 = vld [vmem:[#allocation102_spill] sm:$0xff] }
 0x436   : > { %v5841_v48 = vadd.f32 %v19794_v42, %v16902_v62  ;;  %v5842_v9 = vadd.f32 %v19795_v35, %v16904_v59  ;;  %v5873_v3 = vadd.f32 %v19800_v8, %v5785_v56  ;;  %v5874_v17 = vadd.f32 %v19990_v53, %v5786_v46  ;;  %v20001_v56 = vld [vmem:[#allocation132_spill] sm:$0xff] }
 0x437   : > { %v5825_v21 = vmax.f32 %v16898_v61, %v5809_v52  ;;  %v5826_v51 = vmax.f32 %v16900_v57, %v5810_v4  ;;  %v5905_v2 = vadd.f32 %v19991_v36, %v16906_v14  ;;  %v5906_v58 = vadd.f32 %v19992_v63, %v16908_v44  ;;  %v20002_v52 = vld [vmem:[#allocation101_spill] sm:$0xff] }
 0x438   : > { %v19993_v54 = vrot.slane %v16571_v5, 7  ;;  %v19994_v42 = vrot.slane %v16569_v30, 7  ;;  %v19996_v41 = vrot.slane %v16444_v18, 7  ;;  %v5529_v23 = vrot.slane %v16571_v5, 1 }
 0x439   : > { %v5857_v50 = vmax.f32 %v5825_v21, %v5841_v48  ;;  %v5858_v13 = vmax.f32 %v5826_v51, %v5842_v9  ;;  %v5530_v43 = vrot.slane %v16607_v15, 1  ;;  %v5626_v49 = vrot.slane %v16569_v30, 6 }
 0x43a   : > { %v5458_v35 = vsel %vm2253_vm12, %v19994_v42, %v19993_v54  ;;  %v19995_v27 = vmov %v19994_v42  ;;  %v5627_v26 = vrot.slane %v16571_v5, 6  ;;  %v19999_v31 = vrot.slane %v16569_v30, 1  ;;  %v20005_v42 = vld [vmem:[#allocation45_spill] sm:$0xff] }
 0x43b   : > { %v5459_v8 = vsel %vm2253_vm12, %v19996_v41, %v19995_v27  ;;  %v5481_v39 = vadd.f32 %v19998_v33, %v5458_v35  ;;  %v5889_v0 = vmax.f32 %v5857_v50, %v5873_v3  ;;  %v5890_v29 = vmax.f32 %v5858_v13, %v5874_v17  ;;  %v20006_v35 = vld [vmem:[#allocation44_spill] sm:$0xff]  ;;  %v20007_v41 = vld [vmem:[#allocation227_spill] sm:$0xff]  ;;  %v20010_v33 = vld [vmem:[#allocation26_spill] sm:$0xff] }
 0x43c   : > { %v5480_v38 = vadd.f32 %v19997_v40, %v5459_v8  ;;  %v5555_v16 = vsel %vm2614_vm13, %v5529_v23, %v5530_v43  ;;  %v5556_v7 = vsel %vm2614_vm13, %v19999_v31, %v5529_v23  ;;  %v5652_v20 = vsel %vm2975_vm8, %v5626_v49, %v5627_v26  ;;  %v20009_v40 = vld [vmem:[#allocation232_spill] sm:$0xff]  ;;  %v20014_v31 = vld [vmem:[#allocation183_spill] sm:$0xff] }
 0x43d   : > { %v5505_v19 = vmax.f32 %v16571_v5, %v5481_v39  ;;  %v5653_v45 = vsel %vm2975_vm8, %v5625_v24, %v5626_v49  ;;  %v5921_v12 = vmax.f32 %v5889_v0, %v5905_v2  ;;  %v5922_v28 = vmax.f32 %v5890_v29, %v5906_v58  ;;  %v20004_v2 = vld [vmem:[#allocation228_spill] sm:$0xff] }
 0x43e   : > { %v5504_v34 = vmax.f32 %v16569_v30, %v5480_v38  ;;  %v5577_v11 = vadd.f32 %v20000_v6, %v5556_v7  ;;  %v5578_v46 = vadd.f32 %v20001_v56, %v5555_v16  ;;  %v5674_v4 = vadd.f32 %v20002_v52, %v5653_v45  ;;  %v20008_v30 = vld [vmem:[#allocation233_spill] sm:$0xff]  ;;  %v20011_v23 = vld [vmem:[#allocation68_spill] sm:$0xff]  ;;  %v20015_v7 = vld [vmem:[#allocation279_spill] sm:$0xff] }
 0x43f   : > { %v5675_v48 = vadd.f32 %v20003_v60, %v5652_v20  ;;  %v5723_v9 = vrot.slane %v16571_v5, 2  ;;  %v5724_v21 = vrot.slane %v16607_v15, 2  ;;  %v6476_v51 = vpack.c.bf16 %v5922_v28, %v5921_v12  ;;  %v20017_v45 = vld [vmem:[#allocation238_spill] sm:$0xff]  ;;  %v20019_v6 = vld [vmem:[#allocation292_spill] sm:$0xff]  ;;  %v20021_v56 = vld [vmem:[#allocation291_spill] sm:$0xff] }
 0x440   : > { %v5601_v3 = vmax.f32 %v5504_v34, %v5577_v11  ;;  %v5602_v18 = vmax.f32 %v5505_v19, %v5578_v46  ;;  %v5827_v53 = vmax.f32 %v16902_v62, %v5811_v22  ;;  %v5828_v36 = vmax.f32 %v16904_v59, %v5812_v55  ;;  %v20012_v34 = vld [vmem:[#allocation255_spill] sm:$0xff]  ;;  %v20013_v19 = vld [vmem:[#allocation280_spill] sm:$0xff]  ;;  %v20018_v28 = vld [vmem:[#allocation50_spill] sm:$0xff] }
 0x441   : > { %v5749_v24 = vsel %vm3336_vm14, %v5723_v9, %v5724_v21  ;;  %v5750_v17 = vsel %vm3336_vm14, %v5722_v47, %v5723_v9  ;;  %v5843_v63 = vadd.f32 %v20004_v2, %v16906_v14  ;;  %7244 = vmatprep.mubr.bf16.mxu0 %v6476_v51  ;;  %v5844_v8 = vadd.f32 %v20007_v41, %v16908_v44  ;;  %v20020_v11 = vld [vmem:[#allocation80_spill] sm:$0xff]  ;;  %v20022_v9 = vld [vmem:[#allocation66_spill] sm:$0xff]  ;;  %v20025_v2 = vld [vmem:[#allocation295_spill] sm:$0xff] }
 0x442   : > { %v5698_v58 = vmax.f32 %v5601_v3, %v5674_v4  ;;  %v5699_v54 = vmax.f32 %v5602_v18, %v5675_v48  ;;  %v5771_v22 = vadd.f32 %v20005_v42, %v5750_v17  ;;  %v5772_v27 = vadd.f32 %v20006_v35, %v5749_v24  ;;  %v20023_v18 = vld [vmem:[#allocation21_spill] sm:$0xff]  ;;  %v20024_v17 = vld [vmem:[#allocation294_spill] sm:$0xff] }
 0x443   : > { %v5859_v50 = vmax.f32 %v5827_v53, %v5843_v63  ;;  %v5875_v13 = vadd.f32 %v20008_v30, %v5787_v32  ;;  %v5876_v47 = vadd.f32 %v20009_v40, %v5788_v25  ;;  %v5258_v39 = vmax.f32 %v19906_v10, %v20010_v33  ;;  %v20016_v25 = vld [vmem:[#allocation239_spill] sm:$0xff]  ;;  %v20029_v33 = vld [vmem:[#allocation137_spill] sm:$0xff] }
 0x444   : > { %v16988_v38 = vmax.f32 %v5698_v58, %v5771_v22  ;;  %v16990_v55 = vmax.f32 %v5699_v54, %v5772_v27  ;;  %v5259_v49 = vmax.f32 %v19908_v1, %v20011_v23  ;;  %v5860_v0 = vmax.f32 %v5828_v36, %v5844_v8  ;;  %v20027_v22 = vld [vmem:[#allocation119_spill] sm:$0xff]  ;;  %v20030_v23 = vld [vmem:[#allocation136_spill] sm:$0xff] }
 0x445   : > { %v5891_v29 = vmax.f32 %v5859_v50, %v5875_v13  ;;  %v5284_v16 = vadd.f32 %v20013_v19, %v20012_v34  ;;  %v5285_v32 = vadd.f32 %v20015_v7, %v20014_v31  ;;  %v5388_v10 = vadd.f32 %v20019_v6, %v20018_v28  ;;  %v20028_v13 = vld [vmem:[#allocation116_spill] sm:$0xff] }
 0x446   : > { %v5907_v20 = vadd.f32 %v20016_v25, %v16988_v38  ;;  %v5908_v12 = vadd.f32 %v20017_v45, %v16990_v55  ;;  %v5389_v1 = vadd.f32 %v20021_v56, %v20020_v11  ;;  %v5892_v46 = vmax.f32 %v5860_v0, %v5876_v47 }
 0x447   : > { %v5310_v52 = vmax.f32 %v5258_v39, %v5284_v16  ;;  %v5311_v4 = vmax.f32 %v5259_v49, %v5285_v32  ;;  %v5434_v60 = vrot.slane %v16607_v15, 7  ;;  %v5435_v51 = vrot.slane %v20022_v9, 7 }
 0x448   : > { %v5923_v48 = vmax.f32 %v5891_v29, %v5907_v20  ;;  %v5531_v3 = vrot.slane %v20022_v9, 1  ;;  %v5532_v53 = vrot.slane %v20023_v18, 1  ;;  %v5924_v24 = vmax.f32 %v5892_v46, %v5908_v12  ;;  %v20031_v20 = vld [vmem:[#allocation196_spill] sm:$0xff] }
 0x449   : > { %v5362_v36 = vmax.f32 %v5310_v52, %v20024_v17  ;;  %v5363_v63 = vmax.f32 %v5311_v4, %v20025_v2  ;;  %v20026_v58 = vrot.slane %v16571_v5, 7  ;;  %v5456_v42 = vsel %vm2253_vm12, %v5434_v60, %v5435_v51  ;;  %v20034_v52 = vld [vmem:[#allocation170_spill] sm:$0xff] }
 0x44a   : > { %v5553_v27 = vsel %vm2614_vm13, %v5531_v3, %v5532_v53  ;;  %v5554_v41 = vsel %vm2614_vm13, %v5530_v43, %v5531_v3  ;;  %v6477_v8 = vpack.c.bf16 %v5924_v24, %v5923_v48  ;;  %v5483_v40 = vadd.f32 %v20028_v13, %v5456_v42  ;;  %v20036_v3 = vld [vmem:[#allocation169_spill] sm:$0xff] }
 0x44b   : > { %v5457_v54 = vsel %vm2253_vm12, %v20026_v58, %v5434_v60  ;;  %v17029_v50 = vmax.f32 %v5362_v36, %v5388_v10  ;;  %v17031_v30 = vmax.f32 %v5363_v63, %v5389_v1  ;;  %v5579_v39 = vadd.f32 %v20029_v33, %v5554_v41  ;;  %v20032_v10 = vld [vmem:[#allocation108_spill] sm:$0xff]  ;;  %v20033_v1 = vld [vmem:[#allocation25_spill] sm:$0xff]  ;;  %v20038_v63 = vld [vmem:[#allocation235_spill] sm:$0xff] }
 0x44c   : > { %v5482_v35 = vadd.f32 %v20027_v22, %v5457_v54  ;;  %v5580_v49 = vadd.f32 %v20030_v23, %v5553_v27  ;;  %v5628_v0 = vrot.slane %v16607_v15, 6  ;;  %7245 = vmatmul.mubr.bf16.vlgmr.msra.gmra.mrb[40].mxu0 %v6477_v8  ;;  %v5507_v43 = vmax.f32 %v20022_v9, %v5483_v40  ;;  %v20035_v60 = vld [vmem:[#allocation165_spill] sm:$0xff]  ;;  %v20040_v27 = vld [vmem:[#allocation240_spill] sm:$0xff] }
 0x44d   : > { %v6298_v29 = vpack.c.bf16 %v17031_v30, %v17029_v50  ;;  %v5629_v34 = vrot.slane %v20022_v9, 6  ;;  %v5725_v16 = vrot.slane %v20022_v9, 2  ;;  %v5726_v25 = vrot.slane %v20023_v18, 2  ;;  %v20039_v54 = vld [vmem:[#allocation241_spill] sm:$0xff] }
 0x44e   : > { %v5506_v47 = vmax.f32 %v16607_v15, %v5482_v35  ;;  %v5651_v32 = vsel %vm2975_vm8, %v5627_v26, %v5628_v0  ;;  %v5813_v45 = vadd.f32 %v20031_v20, %v16902_v62  ;;  %v5604_v12 = vmax.f32 %v5507_v43, %v5580_v49  ;;  %v20037_v15 = vld [vmem:[#allocation236_spill] sm:$0xff]  ;;  %v20042_v49 = vld [vmem:[#allocation245_spill] sm:$0xff]  ;;  %v20045_v20 = vld [vmem:[#allocation115_spill] sm:$0xff] }
 0x44f   : > { %7225 = vmatmul.mubr.bf16.gmra.mrb[12].mxu1 %v6298_v29  ;;  %v5650_v28 = vsel %vm2975_vm8, %v5628_v0, %v5629_v34  ;;  %v5676_v11 = vadd.f32 %v20032_v10, %v5651_v32  ;;  %v5748_v5 = vsel %vm3336_vm14, %v5724_v21, %v5725_v16  ;;  %v5747_v26 = vsel %vm3336_vm14, %v5725_v16, %v5726_v25  ;;  %v20043_v29 = vld [vmem:[#allocation212_spill] sm:$0xff] }
 0x450   : > { %v5603_v31 = vmax.f32 %v5506_v47, %v5579_v39  ;;  %v5677_v46 = vadd.f32 %v20033_v1, %v5650_v28  ;;  %v5773_v4 = vadd.f32 %v20034_v52, %v5748_v5  ;;  %v5814_v48 = vadd.f32 %v20035_v60, %v16904_v59  ;;  %v20041_v47 = vld [vmem:[#allocation41_spill] sm:$0xff]  ;;  %v20046_v28 = vld [vmem:[#allocation114_spill] sm:$0xff] }
 0x451   : > { %v5774_v24 = vadd.f32 %v20036_v3, %v5747_v26  ;;  %v5829_v17 = vmax.f32 %v16906_v14, %v5813_v45  ;;  %v5845_v36 = vadd.f32 %v20037_v15, %v16988_v38  ;;  %v5846_v58 = vadd.f32 %v20038_v63, %v16990_v55  ;;  %v20048_v52 = vld [vmem:[#allocation34_spill] sm:$0xff] }
 0x452   : > { %v5700_v9 = vmax.f32 %v5603_v31, %v5676_v11  ;;  %v5701_v2 = vmax.f32 %v5604_v12, %v5677_v46  ;;  %v5830_v21 = vmax.f32 %v16908_v44, %v5814_v48  ;;  %v5877_v42 = vadd.f32 %v20039_v54, %v16898_v61  ;;  %v20047_v46 = vld [vmem:[#allocation33_spill] sm:$0xff] }
 0x453   : > { %v5861_v35 = vmax.f32 %v5829_v17, %v5845_v36  ;;  %v5878_v41 = vadd.f32 %v20040_v27, %v16900_v57  ;;  %v5436_v8 = vrot.slane %v20023_v18, 7  ;;  %v5437_v33 = vrot.slane %v20041_v47, 7  ;;  %v20044_v57 = vld [vmem:[#allocation244_spill] sm:$0xff] }
 0x454   : > { %v17072_v22 = vmax.f32 %v5700_v9, %v5773_v4  ;;  %v17077_v13 = vmax.f32 %v5701_v2, %v5774_v24  ;;  %v5862_v40 = vmax.f32 %v5830_v21, %v5846_v58  ;;  %v5533_v39 = vrot.slane %v20041_v47, 1  ;;  %v20050_v58 = vld [vmem:[#allocation30_spill] sm:$0xff] }
 0x455   : > { %v5893_v23 = vmax.f32 %v5861_v35, %v5877_v42  ;;  %v5455_v61 = vsel %vm2253_vm12, %v5435_v51, %v5436_v8  ;;  %v5534_v43 = vrot.slane %v20043_v29, 1  ;;  %v5454_v32 = vsel %vm2253_vm12, %v5436_v8, %v5437_v33  ;;  %v20051_v42 = vld [vmem:[#allocation27_spill] sm:$0xff] }
 0x456   : > { %v5909_v0 = vadd.f32 %v20042_v49, %v17072_v22  ;;  %v5894_v16 = vmax.f32 %v5862_v40, %v5878_v41  ;;  %v5910_v31 = vadd.f32 %v20044_v57, %v17077_v13  ;;  %v5484_v45 = vadd.f32 %v20045_v20, %v5455_v61  ;;  %v20052_v41 = vld [vmem:[#allocation168_spill] sm:$0xff]  ;;  %v20053_v40 = vld [vmem:[#allocation19_spill] sm:$0xff] }
 0x457   : > { %v5485_v10 = vadd.f32 %v20046_v28, %v5454_v32  ;;  %v5551_v11 = vsel %vm2614_vm13, %v5533_v39, %v5534_v43  ;;  %v5552_v51 = vsel %vm2614_vm13, %v5532_v53, %v5533_v39  ;;  %v5630_v48 = vrot.slane %v20023_v18, 6  ;;  %v20049_v53 = vld [vmem:[#allocation200_spill] sm:$0xff]  ;;  %v20054_v39 = vld [vmem:[#allocation199_spill] sm:$0xff] }
 0x458   : > { %v5925_v12 = vmax.f32 %v5893_v23, %v5909_v0  ;;  %v5926_v5 = vmax.f32 %v5894_v16, %v5910_v31  ;;  %v5508_v1 = vmax.f32 %v20023_v18, %v5484_v45  ;;  %v5581_v26 = vadd.f32 %v20047_v46, %v5552_v51  ;;  %v20055_v49 = vld [vmem:[#allocation243_spill] sm:$0xff]  ;;  %v20056_v16 = vld [vmem:[#allocation242_spill] sm:$0xff] }
 0x459   : > { %v5582_v4 = vadd.f32 %v20048_v52, %v5551_v11  ;;  %v5509_v60 = vmax.f32 %v20041_v47, %v5485_v10  ;;  %v5631_v9 = vrot.slane %v20041_v47, 6  ;;  %v5727_v3 = vrot.slane %v20041_v47, 2  ;;  %v20057_v31 = vld [vmem:[#allocation247_spill] sm:$0xff] }
 0x45a   : > { %v6478_v24 = vpack.c.bf16 %v5926_v5, %v5925_v12  ;;  %v5605_v17 = vmax.f32 %v5508_v1, %v5581_v26  ;;  %v5728_v15 = vrot.slane %v20043_v29, 2  ;;  %v5815_v36 = vadd.f32 %v20049_v53, %v16906_v14  ;;  %v20058_v12 = vld [vmem:[#allocation246_spill] sm:$0xff]  ;;  %v20059_v5 = vld [vmem:[#allocation211_spill] sm:$0xff] }
 0x45b   : > { %v5606_v2 = vmax.f32 %v5509_v60, %v5582_v4  ;;  %v5648_v21 = vsel %vm2975_vm8, %v5630_v48, %v5631_v9  ;;  %v5649_v63 = vsel %vm2975_vm8, %v5629_v34, %v5630_v48  ;;  %v5746_v18 = vsel %vm3336_vm14, %v5726_v25, %v5727_v3  ;;  %v20060_v60 = vld [vmem:[#allocation253_spill] sm:$0xff]  ;;  %v20061_v48 = vld [vmem:[#allocation252_spill] sm:$0xff] }
 0x45c   : > { %7248 = vmatprep.mubr.bf16.mxu0 %v6478_v24  ;;  %v5678_v54 = vadd.f32 %v20050_v58, %v5649_v63  ;;  %v5679_v35 = vadd.f32 %v20051_v42, %v5648_v21  ;;  %v5745_v27 = vsel %vm3336_vm14, %v5727_v3, %v5728_v15  ;;  %v5775_v8 = vadd.f32 %v20052_v41, %v5746_v18 }
 0x45d   : > { %v5776_v47 = vadd.f32 %v20053_v40, %v5745_v27  ;;  %v5816_v23 = vadd.f32 %v20054_v39, %v16908_v44  ;;  %v5831_v34 = vmax.f32 %v16988_v38, %v5815_v36  ;;  %v5847_v25 = vadd.f32 %v20055_v49, %v17072_v22 }
 0x45e   : > { %v5702_v0 = vmax.f32 %v5605_v17, %v5678_v54  ;;  %v5703_v61 = vmax.f32 %v5606_v2, %v5679_v35  ;;  %v5848_v57 = vadd.f32 %v20056_v16, %v17077_v13  ;;  %v5879_v32 = vadd.f32 %v20057_v31, %v16902_v62  ;;  %v20062_v17 = vld [vmem:[#allocation59_spill] sm:$0xff]  ;;  %v20064_v54 = vld [vmem:[#allocation145_spill] sm:$0xff]  ;;  %v20065_v35 = vld [vmem:[#allocation144_spill] sm:$0xff] }
 0x45f   : > { %v5832_v20 = vmax.f32 %v16990_v55, %v5816_v23  ;;  %v5863_v45 = vmax.f32 %v5831_v34, %v5847_v25  ;;  %v5880_v28 = vadd.f32 %v20058_v12, %v16904_v59  ;;  %v5438_v10 = vrot.slane %v20043_v29, 7  ;;  %v20063_v2 = vld [vmem:[#allocation63_spill] sm:$0xff]  ;;  %v20068_v31 = vld [vmem:[#allocation28_spill] sm:$0xff] }
 0x460   : > { %v17133_v11 = vmax.f32 %v5702_v0, %v5775_v8  ;;  %v17135_v51 = vmax.f32 %v5703_v61, %v5776_v47  ;;  %v5439_v1 = vrot.slane %v20059_v5, 7  ;;  %v5535_v46 = vrot.slane %v20059_v5, 1  ;;  %v20069_v12 = vld [vmem:[#allocation172_spill] sm:$0xff] }
 0x461   : > { %v5864_v26 = vmax.f32 %v5832_v20, %v5848_v57  ;;  %v5895_v52 = vmax.f32 %v5863_v45, %v5879_v32  ;;  %v5453_v62 = vsel %vm2253_vm12, %v5437_v33, %v5438_v10  ;;  %v5536_v4 = vrot.slane %v17029_v50, 1  ;;  %v20067_v57 = vld [vmem:[#allocation23_spill] sm:$0xff] }
 0x462   : > { %v5911_v59 = vadd.f32 %v20060_v60, %v17133_v11  ;;  %v5912_v3 = vadd.f32 %v20061_v48, %v17135_v51  ;;  %v5452_v24 = vsel %vm2253_vm12, %v5438_v10, %v5439_v1  ;;  %v5486_v53 = vadd.f32 %v20062_v17, %v5453_v62  ;;  %v20070_v10 = vld [vmem:[#allocation171_spill] sm:$0xff]  ;;  %v20073_v48 = vld [vmem:[#allocation250_spill] sm:$0xff] }
 0x463   : > { %v5896_v36 = vmax.f32 %v5864_v26, %v5880_v28  ;;  %v5487_v21 = vadd.f32 %v20063_v2, %v5452_v24  ;;  %v5549_v63 = vsel %vm2614_vm13, %v5535_v46, %v5536_v4  ;;  %v5550_v33 = vsel %vm2614_vm13, %v5534_v43, %v5535_v46  ;;  %v20066_v43 = vld [vmem:[#allocation163_spill] sm:$0xff]  ;;  %v20071_v46 = vld [vmem:[#allocation164_spill] sm:$0xff]  ;;  %v20074_v24 = vld [vmem:[#allocation254_spill] sm:$0xff] }
 0x464   : > { %v5927_v18 = vmax.f32 %v5895_v52, %v5911_v59  ;;  %v5510_v58 = vmax.f32 %v20043_v29, %v5486_v53  ;;  %v5583_v42 = vadd.f32 %v20064_v54, %v5550_v33  ;;  %v5584_v27 = vadd.f32 %v20065_v35, %v5549_v63  ;;  %v20072_v60 = vld [vmem:[#allocation251_spill] sm:$0xff]  ;;  %v20075_v53 = vld [vmem:[#allocation184_spill] sm:$0xff]  ;;  %v20076_v35 = vld [vmem:[#allocation229_spill] sm:$0xff] }
 0x465   : > { %v5928_v41 = vmax.f32 %v5896_v36, %v5912_v3  ;;  %v5511_v8 = vmax.f32 %v20059_v5, %v5487_v21  ;;  %v5632_v40 = vrot.slane %v20043_v29, 6  ;;  %v5633_v47 = vrot.slane %v20059_v5, 6 }
 0x466   : > { %v5607_v39 = vmax.f32 %v5510_v58, %v5583_v42  ;;  %v5729_v23 = vrot.slane %v20059_v5, 2  ;;  %v5730_v34 = vrot.slane %v17029_v50, 2  ;;  %v5817_v49 = vadd.f32 %v20066_v43, %v16988_v38  ;;  %v20079_v43 = vld [vmem:[#allocation121_spill] sm:$0xff] }
 0x467   : > { %v6479_v25 = vpack.c.bf16 %v5928_v41, %v5927_v18  ;;  %v5608_v0 = vmax.f32 %v5511_v8, %v5584_v27  ;;  %v5646_v61 = vsel %vm2975_vm8, %v5632_v40, %v5633_v47  ;;  %v5647_v16 = vsel %vm2975_vm8, %v5631_v9, %v5632_v40  ;;  %v20078_v8 = vld [vmem:[#allocation260_spill] sm:$0xff] }
 0x468   : > { %v5680_v29 = vadd.f32 %v20067_v57, %v5647_v16  ;;  %v5681_v32 = vadd.f32 %v20068_v31, %v5646_v61  ;;  %v5743_v20 = vsel %vm3336_vm14, %v5729_v23, %v5730_v34  ;;  %v5744_v45 = vsel %vm3336_vm14, %v5728_v15, %v5729_v23  ;;  %v20081_v57 = vld [vmem:[#allocation140_spill] sm:$0xff] }
 0x469   : > { %7249 = vmatmul.mubr.bf16.gmra.mrb[44].mxu0 %v6479_v25  ;;  %v5777_v28 = vadd.f32 %v20069_v12, %v5744_v45  ;;  %v5778_v5 = vadd.f32 %v20070_v10, %v5743_v20  ;;  %v5818_v26 = vadd.f32 %v20071_v46, %v16990_v55  ;;  %v5833_v9 = vmax.f32 %v17072_v22, %v5817_v49  ;;  %v20080_v25 = vld [vmem:[#allocation120_spill] sm:$0xff]  ;;  %v20082_v12 = vld [vmem:[#allocation141_spill] sm:$0xff] }
 0x46a   : > { %v5704_v52 = vmax.f32 %v5607_v39, %v5680_v29  ;;  %v5705_v62 = vmax.f32 %v5608_v0, %v5681_v32  ;;  %v5849_v59 = vadd.f32 %v20072_v60, %v17133_v11  ;;  %v5850_v3 = vadd.f32 %v20073_v48, %v17135_v51 }
 0x46b   : > { %v5834_v15 = vmax.f32 %v17077_v13, %v5818_v26  ;;  %v5881_v17 = vadd.f32 %v20074_v24, %v16906_v14  ;;  %v5882_v36 = vadd.f32 %v20075_v53, %v16908_v44  ;;  %v5440_v2 = vrot.slane %v17029_v50, 7  ;;  %v20077_v44 = vld [vmem:[#allocation207_spill] sm:$0xff] }
 0x46c   : > { %v17189_v21 = vmax.f32 %v5704_v52, %v5777_v28  ;;  %v17191_v63 = vmax.f32 %v5705_v62, %v5778_v5  ;;  %v5865_v33 = vmax.f32 %v5833_v9, %v5849_v59  ;;  %v5441_v18 = vrot.slane %v17031_v30, 7  ;;  %v20083_v62 = vld [vmem:[#allocation110_spill] sm:$0xff] }
 0x46d   : > { %v5866_v58 = vmax.f32 %v5834_v15, %v5850_v3  ;;  %v5451_v54 = vsel %vm2253_vm12, %v5439_v1, %v5440_v2  ;;  %v5537_v42 = vrot.slane %v17031_v30, 1  ;;  %v5538_v14 = vrot.slane %v20076_v35, 1 }
 0x46e   : > { %v5897_v27 = vmax.f32 %v5865_v33, %v5881_v17  ;;  %v5913_v41 = vadd.f32 %v20077_v44, %v17189_v21  ;;  %v5914_v40 = vadd.f32 %v20078_v8, %v17191_v63  ;;  %v5450_v39 = vsel %vm2253_vm12, %v5440_v2, %v5441_v18  ;;  %v20086_v17 = vld [vmem:[#allocation78_spill] sm:$0xff]  ;;  %v20088_v33 = vld [vmem:[#allocation203_spill] sm:$0xff] }
 0x46f   : > { %v5898_v23 = vmax.f32 %v5866_v58, %v5882_v36  ;;  %v5488_v49 = vadd.f32 %v20079_v43, %v5451_v54  ;;  %v5489_v0 = vadd.f32 %v20080_v25, %v5450_v39  ;;  %v5547_v1 = vsel %vm2614_vm13, %v5537_v42, %v5538_v14  ;;  %v20087_v36 = vld [vmem:[#allocation77_spill] sm:$0xff] }
 0x470   : > { %v5929_v61 = vmax.f32 %v5897_v27, %v5913_v41  ;;  %v5548_v16 = vsel %vm2614_vm13, %v5536_v4, %v5537_v42  ;;  %v5586_v29 = vadd.f32 %v20081_v57, %v5547_v1  ;;  %v5634_v31 = vrot.slane %v17029_v50, 6  ;;  %v20089_v42 = vld [vmem:[#allocation259_spill] sm:$0xff]  ;;  %v20094_v1 = vld [vmem:[#allocation225_spill] sm:$0xff] }
 0x471   : > { %v5930_v32 = vmax.f32 %v5898_v23, %v5914_v40  ;;  %v5512_v20 = vmax.f32 %v17029_v50, %v5488_v49  ;;  %v5513_v45 = vmax.f32 %v17031_v30, %v5489_v0  ;;  %v5585_v28 = vadd.f32 %v20082_v12, %v5548_v16  ;;  %v20091_v40 = vld [vmem:[#allocation262_spill] sm:$0xff]  ;;  %v20092_v23 = vld [vmem:[#allocation208_spill] sm:$0xff]  ;;  %v20093_v0 = vld [vmem:[#allocation113_spill] sm:$0xff] }
 0x472   : > { %v5635_v10 = vrot.slane %v17031_v30, 6  ;;  %v5645_v5 = vsel %vm2975_vm8, %v5633_v47, %v5634_v31  ;;  %v5731_v46 = vrot.slane %v17031_v30, 2  ;;  %v5732_v4 = vrot.slane %v20076_v35, 2  ;;  %v20084_v47 = vld [vmem:[#allocation206_spill] sm:$0xff]  ;;  %v20085_v30 = vld [vmem:[#allocation111_spill] sm:$0xff] }
 0x473   : > { %v6480_v26 = vpack.c.bf16 %v5930_v32, %v5929_v61  ;;  %v5609_v9 = vmax.f32 %v5512_v20, %v5585_v28  ;;  %v5610_v52 = vmax.f32 %v5513_v45, %v5586_v29  ;;  %v5682_v60 = vadd.f32 %v20083_v62, %v5645_v5  ;;  %v20095_v29 = vld [vmem:[#allocation271_spill] sm:$0xff]  ;;  %v20096_v32 = vld [vmem:[#allocation86_spill] sm:$0xff] }
 0x474   : > { %v5644_v50 = vsel %vm2975_vm8, %v5634_v31, %v5635_v10  ;;  %v5741_v59 = vsel %vm3336_vm14, %v5731_v46, %v5732_v4  ;;  %v5742_v48 = vsel %vm3336_vm14, %v5730_v34, %v5731_v46  ;;  %v5819_v3 = vadd.f32 %v20084_v47, %v17072_v22  ;;  %v20090_v34 = vld [vmem:[#allocation258_spill] sm:$0xff] }
 0x475   : > { %7252 = vmatprep.mubr.bf16.mxu0 %v6480_v26  ;;  %v5683_v15 = vadd.f32 %v20085_v30, %v5644_v50  ;;  %v5706_v24 = vmax.f32 %v5609_v9, %v5682_v60  ;;  %v5779_v53 = vadd.f32 %v20086_v17, %v5742_v48  ;;  %v5780_v2 = vadd.f32 %v20087_v36, %v5741_v59  ;;  %v20098_v46 = vld [vmem:[#allocation270_spill] sm:$0xff]  ;;  %v20099_v9 = vld [vmem:[#allocation67_spill] sm:$0xff] }
 0x476   : > { %v5820_v58 = vadd.f32 %v20088_v33, %v17077_v13  ;;  %v5835_v54 = vmax.f32 %v17133_v11, %v5819_v3  ;;  %v5851_v27 = vadd.f32 %v20089_v42, %v17189_v21  ;;  %v5852_v44 = vadd.f32 %v20090_v34, %v17191_v63  ;;  %v20100_v30 = vld [vmem:[#allocation58_spill] sm:$0xff]  ;;  %v20103_v42 = vld [vmem:[#allocation149_spill] sm:$0xff] }
 0x477   : > { %v5707_v41 = vmax.f32 %v5610_v52, %v5683_v15  ;;  %v17241_v8 = vmax.f32 %v5706_v24, %v5779_v53  ;;  %v5883_v39 = vadd.f32 %v20091_v40, %v16988_v38  ;;  %v5884_v43 = vadd.f32 %v20092_v23, %v16990_v55  ;;  %v20097_v55 = vld [vmem:[#allocation138_spill] sm:$0xff] }
 0x478   : > { %v5836_v49 = vmax.f32 %v17135_v51, %v5820_v58  ;;  %v5867_v25 = vmax.f32 %v5835_v54, %v5851_v27  ;;  %v5365_v61 = vmax.f32 %v20094_v1, %v20093_v0  ;;  %v5442_v16 = vrot.slane %v20076_v35, 7  ;;  %v20102_v58 = vld [vmem:[#allocation150_spill] sm:$0xff] }
 0x479   : > { %v17251_v57 = vmax.f32 %v5707_v41, %v5780_v2  ;;  %v5915_v31 = vadd.f32 %v20095_v29, %v17241_v8  ;;  %v5540_v20 = vrot.slane %v20096_v32, 1  ;;  %v5636_v38 = vrot.slane %v20076_v35, 6  ;;  %v20101_v2 = vld [vmem:[#allocation125_spill] sm:$0xff]  ;;  %v20104_v41 = vld [vmem:[#allocation151_spill] sm:$0xff]  ;;  %v20107_v1 = vld [vmem:[#allocation202_spill] sm:$0xff] }
 0x47a   : > { %v5868_v45 = vmax.f32 %v5836_v49, %v5852_v44  ;;  %v5899_v12 = vmax.f32 %v5867_v25, %v5883_v39  ;;  %v17258_v28 = vmax.f32 %v5365_v61, %v20097_v55  ;;  %v5449_v5 = vsel %vm2253_vm12, %v5441_v18, %v5442_v16  ;;  %v20106_v25 = vld [vmem:[#allocation178_spill] sm:$0xff] }
 0x47b   : > { %v5916_v26 = vadd.f32 %v20098_v46, %v17251_v57  ;;  %v5490_v52 = vadd.f32 %v20099_v9, %v5449_v5  ;;  %v5643_v62 = vsel %vm2975_vm8, %v5635_v10, %v5636_v38  ;;  %v5734_v60 = vrot.slane %v20096_v32, 2  ;;  %v20112_v46 = vld [vmem:[#allocation268_spill] sm:$0xff] }
 0x47c   : > { %v5900_v50 = vmax.f32 %v5868_v45, %v5884_v43  ;;  %v5931_v59 = vmax.f32 %v5899_v12, %v5915_v31  ;;  %v5443_v48 = vrot.slane %v17258_v28, 7  ;;  %v5539_v47 = vrot.slane %v17258_v28, 1  ;;  %v20105_v43 = vld [vmem:[#allocation179_spill] sm:$0xff]  ;;  %v20109_v31 = vld [vmem:[#allocation210_spill] sm:$0xff]  ;;  %v20110_v45 = vld [vmem:[#allocation209_spill] sm:$0xff] }
 0x47d   : > { %v5514_v3 = vmax.f32 %v20076_v35, %v5490_v52  ;;  %v5637_v18 = vrot.slane %v17258_v28, 6  ;;  %v5684_v15 = vadd.f32 %v20100_v30, %v5643_v62  ;;  %v5733_v24 = vrot.slane %v17258_v28, 2 }
 0x47e   : > { %v5932_v17 = vmax.f32 %v5900_v50, %v5916_v26  ;;  %v5448_v10 = vsel %vm2253_vm12, %v5442_v16, %v5443_v48  ;;  %v5545_v53 = vsel %vm2614_vm13, %v5539_v47, %v5540_v20  ;;  %v5546_v36 = vsel %vm2614_vm13, %v5538_v14, %v5539_v47  ;;  %v20108_v16 = vld [vmem:[#allocation201_spill] sm:$0xff] }
 0x47f   : > { %v5491_v33 = vadd.f32 %v20101_v2, %v5448_v10  ;;  %v5587_v54 = vadd.f32 %v20102_v58, %v5546_v36  ;;  %v5588_v27 = vadd.f32 %v20103_v42, %v5545_v53  ;;  %v5642_v34 = vsel %vm2975_vm8, %v5636_v38, %v5637_v18  ;;  %v20115_v36 = vld [vmem:[#allocation93_spill] sm:$0xff] }
 0x480   : > { %v6481_v44 = vpack.c.bf16 %v5932_v17, %v5931_v59  ;;  %v5685_v40 = vadd.f32 %v20104_v41, %v5642_v34  ;;  %v5739_v35 = vsel %vm3336_vm14, %v5733_v24, %v5734_v60  ;;  %v5740_v14 = vsel %vm3336_vm14, %v5732_v4, %v5733_v24  ;;  %v20119_v41 = vld [vmem:[#allocation122_spill] sm:$0xff] }
 0x481   : > { %v5515_v39 = vmax.f32 %v17258_v28, %v5491_v33  ;;  %v5611_v23 = vmax.f32 %v5514_v3, %v5587_v54  ;;  %v5781_v49 = vadd.f32 %v20105_v43, %v5740_v14  ;;  %v5782_v0 = vadd.f32 %v20106_v25, %v5739_v35  ;;  %v20111_v28 = vld [vmem:[#allocation269_spill] sm:$0xff] }
 0x482   : > { %7253 = vmatmul.mubr.bf16.gmra.mrb[48].mxu0 %v6481_v44  ;;  %v5821_v61 = vadd.f32 %v20107_v1, %v17133_v11  ;;  %v5822_v29 = vadd.f32 %v20108_v16, %v17135_v51  ;;  %v5823_v38 = vadd.f32 %v20109_v31, %v17189_v21  ;;  %v5824_v4 = vadd.f32 %v20110_v45, %v17191_v63  ;;  %v20113_v3 = vld [vmem:[#allocation273_spill] sm:$0xff] }
 0x483   : > { %v5612_v12 = vmax.f32 %v5515_v39, %v5588_v27  ;;  %v5708_v55 = vmax.f32 %v5611_v23, %v5684_v15  ;;  %v5853_v5 = vadd.f32 %v20111_v28, %v17241_v8  ;;  %v5854_v26 = vadd.f32 %v20112_v46, %v17251_v57  ;;  %v20114_v15 = vld [vmem:[#allocation204_spill] sm:$0xff]  ;;  %v20118_v44 = vld [vmem:[#allocation281_spill] sm:$0xff]  ;;  %v20121_v23 = vld [vmem:[#allocation147_spill] sm:$0xff] }
 0x484   : > { %v5837_v9 = vmax.f32 %v17189_v21, %v5821_v61  ;;  %v5838_v52 = vmax.f32 %v17191_v63, %v5822_v29  ;;  %v5839_v62 = vmax.f32 %v17241_v8, %v5823_v38  ;;  %v5840_v50 = vmax.f32 %v17251_v57, %v5824_v4  ;;  %v20116_v8 = vld [vmem:[#allocation213_spill] sm:$0xff]  ;;  %v20122_v38 = vld [vmem:[#allocation55_spill] sm:$0xff]  ;;  %v20123_v4 = vld [vmem:[#allocation96_spill] sm:$0xff] }
 0x485   : > { %v5709_v59 = vmax.f32 %v5612_v12, %v5685_v40  ;;  %v5805_v47 = vmax.f32 %v5708_v55, %v5781_v49  ;;  %v5885_v30 = vadd.f32 %v20113_v3, %v17072_v22  ;;  %v5886_v24 = vadd.f32 %v20114_v15, %v17077_v13  ;;  %v20120_v14 = vld [vmem:[#allocation65_spill] sm:$0xff]  ;;  %v20124_v55 = vld [vmem:[#allocation56_spill] sm:$0xff] }
 0x486   : > { %v5869_v17 = vmax.f32 %v5837_v9, %v5853_v5  ;;  %v5870_v10 = vmax.f32 %v5838_v52, %v5854_v26  ;;  %v5444_v53 = vrot.slane %v20096_v32, 7  ;;  %v5445_v21 = vrot.slane %v20115_v36, 7  ;;  %v20125_v5 = vld [vmem:[#allocation62_spill] sm:$0xff]  ;;  %v20127_v52 = vld [vmem:[#allocation177_spill] sm:$0xff]  ;;  %v20129_v3 = vld [vmem:[#allocation284_spill] sm:$0xff] }
 0x487   : > { %v5806_v2 = vmax.f32 %v5709_v59, %v5782_v0  ;;  %v5855_v63 = vadd.f32 %v20013_v19, %v5805_v47  ;;  %v5917_v33 = vadd.f32 %v20116_v8, %v5805_v47  ;;  %v20117_v57 = vrot.slane %v20115_v36, 1  ;;  %v20128_v59 = vld [vmem:[#allocation176_spill] sm:$0xff] }
 0x488   : > { %v5901_v22 = vmax.f32 %v5869_v17, %v5885_v30  ;;  %v5902_v54 = vmax.f32 %v5870_v10, %v5886_v24  ;;  %v5446_v13 = vsel %vm2253_vm12, %v5444_v53, %v5445_v21  ;;  %v5447_v42 = vsel %vm2253_vm12, %v5443_v48, %v5444_v53  ;;  %v20130_v24 = vld [vmem:[#allocation285_spill] sm:$0xff] }
 0x489   : > { %v5544_v58 = vsel %vm2614_vm13, %v5540_v20, %v20117_v57  ;;  %v5856_v27 = vadd.f32 %v20015_v7, %v5806_v2  ;;  %v5871_v34 = vmax.f32 %v5839_v62, %v5855_v63  ;;  %v5918_v19 = vadd.f32 %v20118_v44, %v5806_v2 }
 0x48a   : > { %v5492_v40 = vadd.f32 %v20119_v41, %v5447_v42  ;;  %v5933_v35 = vmax.f32 %v5901_v22, %v5917_v33  ;;  %v5493_v39 = vadd.f32 %v20120_v14, %v5446_v13  ;;  %v5589_v20 = vadd.f32 %v20121_v23, %v5544_v58 }
 0x48b   : > { %v5638_v43 = vrot.slane %v20096_v32, 6  ;;  %v5872_v49 = vmax.f32 %v5840_v50, %v5856_v27  ;;  %v5934_v25 = vmax.f32 %v5902_v54, %v5918_v19  ;;  %v5639_v48 = vrot.slane %v20115_v36, 6  ;;  %v17373_v27 = vld [vmem:[%s17500_s4] ss:$0 sm:$0xff] }
 0x48c   : > { %v5516_v0 = vmax.f32 %v20096_v32, %v5492_v40  ;;  %v5517_v7 = vmax.f32 %v20115_v36, %v5493_v39  ;;  %v5735_v61 = vrot.slane %v20115_v36, 2  ;;  %v20126_v46 = vrot.slane %v20125_v5, 2 }
 0x48d   : > { %v5641_v1 = vsel %vm2975_vm8, %v5637_v18, %v5638_v43  ;;  %v6482_v16 = vpack.c.bf16 %v5934_v25, %v5933_v35  ;;  %v5640_v31 = vsel %vm2975_vm8, %v5638_v43, %v5639_v48  ;;  %v5888_v30 = vadd.f32 %v20129_v3, %v17135_v51 }
 0x48e   : > { %v5613_v29 = vmax.f32 %v5516_v0, %v5589_v20  ;;  %v5686_v45 = vadd.f32 %v20122_v38, %v5641_v1  ;;  %v5614_v12 = vmax.f32 %v5517_v7, %v20123_v4  ;;  %v5687_v28 = vadd.f32 %v20124_v55, %v5640_v31 }
 0x48f   : > { %v5737_v26 = vsel %vm3336_vm14, %v5735_v61, %v20126_v46  ;;  %v5738_v18 = vsel %vm3336_vm14, %v5734_v60, %v5735_v61  ;;  %7256 = vmatprep.mubr.bf16.mxu1 %v6482_v16  ;;  %v5887_v17 = vadd.f32 %v20130_v24, %v17133_v11  ;;  %v5904_v53 = vmax.f32 %v5872_v49, %v5888_v30 }
 0x490   : > { %v5710_v9 = vmax.f32 %v5613_v29, %v5686_v45  ;;  %v5783_v62 = vadd.f32 %v20127_v52, %v5738_v18  ;;  %v5711_v50 = vmax.f32 %v5614_v12, %v5687_v28  ;;  %v5784_v47 = vadd.f32 %v20128_v59, %v5737_v26 }
 0x491   : > { %v5903_v32 = vmax.f32 %v5871_v34, %v5887_v17 }
 0x492   : > { %v5807_v15 = vmax.f32 %v5710_v9, %v5783_v62  ;;  %v5808_v10 = vmax.f32 %v5711_v50, %v5784_v47 }
 0x494   : > { %v5919_v37 = vadd.f32 %v20019_v6, %v5807_v15  ;;  %v5920_v60 = vadd.f32 %v20021_v56, %v5808_v10 }
 0x496   : > { %v5935_v36 = vmax.f32 %v5903_v32, %v5919_v37  ;;  %v5936_v21 = vmax.f32 %v5904_v53, %v5920_v60 }
 0x498   : > { %v6483_v2 = vpack.c.bf16 %v5936_v21, %v5935_v36 }
 0x49a   : > { %7257 = vmatmul.mubr.bf16.vlgmr.msra.gmra.mrb[12].mxu1 %v6483_v2 }
 0x4b6   : > { %v7214_v63 = vpop.f32.mrb[0].mxu1 }
 0x4b7   : > { %v6381_v8 = vpop.f32.mrb[1].mxu1 }
 0x4b8   : > { %v7215_v33 = vpop.f32.mrb[2].mxu1 }
 0x4b9   : > { %v6384_v57 = vpop.f32.mrb[3].mxu1 }
 0x4d1   : > { %v7218_v51 = vpop.f32.mrb[4].mxu1 }
 0x4d2   : > { %v6397_v58 = vpop.f32.mrb[5].mxu1 }
 0x4d3   : > { %v7219_v22 = vpop.f32.mrb[6].mxu1 }
 0x4d4   : > { %v6400_v54 = vpop.f32.mrb[7].mxu1 }
 0x4df   : > { %v17362_v11 = vpop.f32.mrb[8].mxu1 }
 0x4e0   : > { %v17364_v13 = vpop.f32.mrb[9].mxu1 }
 0x4e1   : > { %v17366_v42 = vpop.f32.mrb[10].mxu1 }
 0x4e2   : > { %v17368_v6 = vpop.f32.mrb[11].mxu1 }
 0x51f   : > { %v7246_v56 = vpop.f32.mrb[40].mxu0 }
 0x520   : > { %v7276_v34 = vadd.f32 %v7246_v56, %v7214_v63  ;;  %v6566_v44 = vpop.f32.mrb[41].mxu0 }
 0x521   : > { %v7277_v19 = vadd.f32 %v6566_v44, %v6381_v8  ;;  %v7247_v41 = vpop.f32.mrb[42].mxu0 }
 0x522   : > { %v6654_v40 = vadd.f32 %v7276_v34, %v17373_v27  ;;  %v7278_v35 = vadd.f32 %v7247_v41, %v7215_v33  ;;  %v6569_v14 = vpop.f32.mrb[43].mxu0 }
 0x523   : > { %v6652_v39 = vadd.f32 %v7277_v19, %v17373_v27  ;;  %v7279_v23 = vadd.f32 %v6569_v14, %v6384_v57 }
 0x524   : > { %v6670_v20 = vsub.f32 0.0, %v6654_v40  ;;  %v6655_v43 = vadd.f32 %v7278_v35, %v17373_v27 }
 0x525   : > { %v6668_v49 = vsub.f32 0.0, %v6652_v39  ;;  %v6653_v25 = vadd.f32 %v7279_v23, %v17373_v27 }
 0x526   : > { %v6688_v0 = vmul.f32 1.442695, %v6670_v20  ;;  %v6671_v48 = vsub.f32 0.0, %v6655_v43 }
 0x527   : > { %v6684_v7 = vmul.f32 1.442695, %v6668_v49  ;;  %v6669_v1 = vsub.f32 0.0, %v6653_v25 }
 0x528   : > { %8501 = vpow2.f32 %v6688_v0  ;;  %v6690_v61 = vmul.f32 1.442695, %v6671_v48 }
 0x529   : > { %8503 = vpow2.f32 %v6684_v7  ;;  %v6686_v16 = vmul.f32 1.442695, %v6669_v1 }
 0x52a   : > { %8505 = vpow2.f32 %v6690_v61 }
 0x52b   : > { %8507 = vpow2.f32 %v6686_v16 }
 0x532   : > { %v8502_v29 = vpop.eup %8501 }
 0x533   : > { %v8504_v31 = vpop.eup %8503  ;;  %v6718_v38 = vadd.f32 1.0, %v8502_v29 }
 0x534   : > { %v8506_v45 = vpop.eup %8505  ;;  %v6716_v4 = vadd.f32 1.0, %v8504_v31 }
 0x535   : > { %v8508_v12 = vpop.eup %8507  ;;  %8509 = vrcp.f32 %v6718_v38  ;;  %v6719_v55 = vadd.f32 1.0, %v8506_v45 }
 0x536   : > { %8511 = vrcp.f32 %v6716_v4  ;;  %v6717_v28 = vadd.f32 1.0, %v8508_v12 }
 0x537   : > { %8513 = vrcp.f32 %v6719_v55 }
 0x538   : > { %8515 = vrcp.f32 %v6717_v28 }
 0x53c   : > { %v7250_v5 = vpop.f32.mrb[44].mxu0 }
 0x53d   : > { %v7280_v46 = vadd.f32 %v7250_v5, %v7218_v51  ;;  %v6582_v26 = vpop.f32.mrb[45].mxu0 }
 0x53e   : > { %v7281_v18 = vadd.f32 %v6582_v26, %v6397_v58  ;;  %v7251_v9 = vpop.f32.mrb[46].mxu0 }
 0x53f   : > { %v6658_v52 = vadd.f32 %v7280_v46, %v17373_v27  ;;  %v7282_v62 = vadd.f32 %v7251_v9, %v7219_v22  ;;  %v6585_v50 = vpop.f32.mrb[47].mxu0  ;;  %v8510_v59 = vpop.eup %8509 }
 0x540   : > { %v6656_v47 = vadd.f32 %v7281_v18, %v17373_v27  ;;  %v7283_v3 = vadd.f32 %v6585_v50, %v6400_v54  ;;  %v8512_v30 = vpop.eup %8511  ;;  %v6750_v15 = vmul.f32 %v8510_v59, %v6654_v40 }
 0x541   : > { %v6674_v24 = vsub.f32 0.0, %v6658_v52  ;;  %v6659_v17 = vadd.f32 %v7282_v62, %v17373_v27  ;;  %v8514_v10 = vpop.eup %8513  ;;  %v6748_v53 = vmul.f32 %v8512_v30, %v6652_v39 }
 0x542   : > { %v6672_v32 = vsub.f32 0.0, %v6656_v47  ;;  %v6657_v37 = vadd.f32 %v7283_v3, %v17373_v27  ;;  %v8516_v60 = vpop.eup %8515  ;;  %6766 = vst [vmem:[%s17386_s9 + $0x10] sm:$0xff] %v6750_v15  ;;  %v6751_v36 = vmul.f32 %v8514_v10, %v6655_v43 }
 0x543   : > { %v6696_v21 = vmul.f32 1.442695, %v6674_v24  ;;  %v6675_v2 = vsub.f32 0.0, %v6659_v17  ;;  %6764 = vst [vmem:[%s17386_s9] sm:$0xff] %v6748_v53  ;;  %v6749_v63 = vmul.f32 %v8516_v60, %v6653_v25 }
 0x544   : > { %v6692_v8 = vmul.f32 1.442695, %v6672_v32  ;;  %v6673_v33 = vsub.f32 0.0, %v6657_v37  ;;  %6767 = vst [vmem:[%s17386_s9 + $0x18] sm:$0xff] %v6751_v36 }
 0x545   : > { %8517 = vpow2.f32 %v6696_v21  ;;  %v6698_v57 = vmul.f32 1.442695, %v6675_v2  ;;  %6765 = vst [vmem:[%s17386_s9 + $0x8] sm:$0xff] %v6749_v63 }
 0x546   : > { %8519 = vpow2.f32 %v6692_v8  ;;  %v6694_v51 = vmul.f32 1.442695, %v6673_v33 }
 0x547   : > { %8521 = vpow2.f32 %v6698_v57 }
 0x548   : > { %8523 = vpow2.f32 %v6694_v51 }
 0x54f   : > { %v8518_v58 = vpop.eup %8517 }
 0x550   : > { %v8520_v22 = vpop.eup %8519  ;;  %v6722_v54 = vadd.f32 1.0, %v8518_v58 }
 0x551   : > { %v8522_v56 = vpop.eup %8521  ;;  %v6720_v34 = vadd.f32 1.0, %v8520_v22 }
 0x552   : > { %v8524_v44 = vpop.eup %8523  ;;  %8525 = vrcp.f32 %v6722_v54  ;;  %v6723_v19 = vadd.f32 1.0, %v8522_v56 }
 0x553   : > { %8527 = vrcp.f32 %v6720_v34  ;;  %v6721_v41 = vadd.f32 1.0, %v8524_v44 }
 0x554   : > { %8529 = vrcp.f32 %v6723_v19 }
 0x555   : > { %8531 = vrcp.f32 %v6721_v41  ;;  %v7254_v40 = vpop.f32.mrb[48].mxu0 }
 0x556   : > { %v7284_v35 = vadd.f32 %v7254_v40, %v17362_v11  ;;  %v6598_v14 = vpop.f32.mrb[49].mxu0 }
 0x557   : > { %v7285_v39 = vadd.f32 %v6598_v14, %v17364_v13  ;;  %v7255_v23 = vpop.f32.mrb[50].mxu0 }
 0x558   : > { %v17395_v20 = vadd.f32 %v7284_v35, %v17373_v27  ;;  %v7286_v43 = vadd.f32 %v7255_v23, %v17366_v42  ;;  %v6601_v49 = vpop.f32.mrb[51].mxu0 }
 0x559   : > { %v17399_v25 = vadd.f32 %v7285_v39, %v17373_v27  ;;  %v7287_v0 = vadd.f32 %v6601_v49, %v17368_v6 }
 0x55a   : > { %v6678_v48 = vsub.f32 0.0, %v17395_v20  ;;  %v17404_v11 = vadd.f32 %v7286_v43, %v17373_v27 }
 0x55b   : > { %v6676_v13 = vsub.f32 0.0, %v17399_v25  ;;  %v17408_v7 = vadd.f32 %v7287_v0, %v17373_v27 }
 0x55c   : > { %v8526_v1 = vpop.eup %8525  ;;  %v6704_v42 = vmul.f32 1.442695, %v6678_v48  ;;  %v6679_v61 = vsub.f32 0.0, %v17404_v11 }
 0x55d   : > { %v8528_v16 = vpop.eup %8527  ;;  %v6754_v29 = vmul.f32 %v8526_v1, %v6658_v52  ;;  %v6700_v6 = vmul.f32 1.442695, %v6676_v13  ;;  %v6677_v31 = vsub.f32 0.0, %v17408_v7 }
 0x55e   : > { %v8530_v38 = vpop.eup %8529  ;;  %v6752_v45 = vmul.f32 %v8528_v16, %v6656_v47  ;;  %8533 = vpow2.f32 %v6704_v42  ;;  %v6706_v4 = vmul.f32 1.442695, %v6679_v61 }
 0x55f   : > { %v8532_v12 = vpop.eup %8531  ;;  %6770 = vst [vmem:[%s17386_s9 + $0x30] sm:$0xff] %v6754_v29  ;;  %v6755_v55 = vmul.f32 %v8530_v38, %v6659_v17  ;;  %8535 = vpow2.f32 %v6700_v6  ;;  %v6702_v28 = vmul.f32 1.442695, %v6677_v31 }
 0x560   : > { %6768 = vst [vmem:[%s17386_s9 + $0x20] sm:$0xff] %v6752_v45  ;;  %v6753_v5 = vmul.f32 %v8532_v12, %v6657_v37  ;;  %8537 = vpow2.f32 %v6706_v4 }
 0x561   : > { %6771 = vst [vmem:[%s17386_s9 + $0x38] sm:$0xff] %v6755_v55  ;;  %8539 = vpow2.f32 %v6702_v28 }
 0x562   : > { %6769 = vst [vmem:[%s17386_s9 + $0x28] sm:$0xff] %v6753_v5 }
 0x568   : > { %v8534_v46 = vpop.eup %8533 }
 0x569   : > { %v8536_v26 = vpop.eup %8535  ;;  %v6726_v18 = vadd.f32 1.0, %v8534_v46 }
 0x56a   : > { %v8538_v9 = vpop.eup %8537  ;;  %v6724_v52 = vadd.f32 1.0, %v8536_v26 }
 0x56b   : > { %v8540_v62 = vpop.eup %8539  ;;  %8541 = vrcp.f32 %v6726_v18  ;;  %v6727_v50 = vadd.f32 1.0, %v8538_v9 }
 0x56c   : > { %8543 = vrcp.f32 %v6724_v52  ;;  %v6725_v59 = vadd.f32 1.0, %v8540_v62 }
 0x56d   : > { %8545 = vrcp.f32 %v6727_v50  ;;  %v7258_v47 = vpop.f32.mrb[12].mxu1 }
 0x56e   : > { %8547 = vrcp.f32 %v6725_v59  ;;  %v6666_v3 = vadd.f32 %v7258_v47, %v17373_v27  ;;  %v6614_v30 = vpop.f32.mrb[13].mxu1 }
 0x56f   : > { %v6664_v15 = vadd.f32 %v17373_v27, %v6614_v30  ;;  %v7259_v24 = vpop.f32.mrb[14].mxu1 }
 0x570   : > { %v6682_v17 = vsub.f32 0.0, %v6666_v3  ;;  %v6667_v10 = vadd.f32 %v7259_v24, %v17373_v27  ;;  %v6617_v53 = vpop.f32.mrb[15].mxu1 }
 0x571   : > { %v6680_v32 = vsub.f32 0.0, %v6664_v15  ;;  %v6665_v37 = vadd.f32 %v17373_v27, %v6617_v53 }
 0x572   : > { %v6712_v60 = vmul.f32 1.442695, %v6682_v17  ;;  %v6683_v36 = vsub.f32 0.0, %v6667_v10 }
 0x573   : > { %v6708_v21 = vmul.f32 1.442695, %v6680_v32  ;;  %v6681_v2 = vsub.f32 0.0, %v6665_v37 }
 0x574   : > { %8549 = vpow2.f32 %v6712_v60  ;;  %v6714_v63 = vmul.f32 1.442695, %v6683_v36 }
 0x575   : > { %v8542_v8 = vpop.eup %8541  ;;  %8551 = vpow2.f32 %v6708_v21  ;;  %v6710_v33 = vmul.f32 1.442695, %v6681_v2 }
 0x576   : > { %v8544_v57 = vpop.eup %8543  ;;  %v6758_v51 = vmul.f32 %v8542_v8, %v17395_v20  ;;  %8553 = vpow2.f32 %v6714_v63 }
 0x577   : > { %v8546_v58 = vpop.eup %8545  ;;  %v6756_v27 = vmul.f32 %v8544_v57, %v17399_v25  ;;  %8555 = vpow2.f32 %v6710_v33 }
 0x578   : > { %v8548_v22 = vpop.eup %8547  ;;  %6774 = vst [vmem:[%s17386_s9 + $0x50] sm:$0xff] %v6758_v51  ;;  %v6759_v54 = vmul.f32 %v8546_v58, %v17404_v11 }
 0x579   : > { %6772 = vst [vmem:[%s17386_s9 + $0x40] sm:$0xff] %v6756_v27  ;;  %v6757_v56 = vmul.f32 %v8548_v22, %v17408_v7 }
 0x57a   : > { %6775 = vst [vmem:[%s17386_s9 + $0x58] sm:$0xff] %v6759_v54 }
 0x57b   : > { %6773 = vst [vmem:[%s17386_s9 + $0x48] sm:$0xff] %v6757_v56 }
 0x57e   : > { %v8550_v34 = vpop.eup %8549 }
 0x57f   : > { %v8552_v44 = vpop.eup %8551  ;;  %v6730_v19 = vadd.f32 1.0, %v8550_v34 }
 0x580   : > { %v8554_v41 = vpop.eup %8553  ;;  %v6728_v40 = vadd.f32 1.0, %v8552_v44 }
 0x581   : > { %v8556_v35 = vpop.eup %8555  ;;  %8557 = vrcp.f32 %v6730_v19  ;;  %v6731_v14 = vadd.f32 1.0, %v8554_v41 }
 0x582   : > { %8559 = vrcp.f32 %v6728_v40  ;;  %v6729_v39 = vadd.f32 1.0, %v8556_v35 }
 0x583   : > { %8561 = vrcp.f32 %v6731_v14 }
 0x584   : > { %8563 = vrcp.f32 %v6729_v39 }
 0x58b   : > { %v8558_v23 = vpop.eup %8557 }
 0x58c   : > { %v8560_v20 = vpop.eup %8559  ;;  %v6762_v43 = vmul.f32 %v8558_v23, %v6666_v3 }
 0x58d   : > { %v8562_v49 = vpop.eup %8561  ;;  %v6760_v25 = vmul.f32 %v8560_v20, %v6664_v15 }
 0x58e   : > { %v8564_v0 = vpop.eup %8563  ;;  %6778 = vst [vmem:[%s17386_s9 + $0x70] sm:$0xff] %v6762_v43  ;;  %v6763_v48 = vmul.f32 %v8562_v49, %v6667_v10 }
 0x58f   : > { %6776 = vst [vmem:[%s17386_s9 + $0x60] sm:$0xff] %v6760_v25  ;;  %v6761_v11 = vmul.f32 %v8564_v0, %v6665_v37 }
 0x590   : > { %6779 = vst [vmem:[%s17386_s9 + $0x78] sm:$0xff] %v6763_v48 }
 0x591   : > { %6777 = vst [vmem:[%s17386_s9 + $0x68] sm:$0xff] %v6761_v11 }
 0x592   : > { %8842 = shalt.err (!%p8839_p9)
}
 0x593   : > { %s8843_s26 = scalar_lea.hbm %s17435_s27, 2048  ;;  %s8847_s10 = scalar_lea.hbm %s17503_s7, 8192 }
 0x594   : > { %p8844_p11 = scmp.ne.s32.totalorder %s17435_s27, %s8843_s26  ;;  %p8848_p8 = scmp.lt.u32.totalorder %s17435_s27, %s17503_s7 }
 0x595   : > { %p8849_p0 = scmp.lt.u32.totalorder %s8847_s10, %s8843_s26  ;;  %p8851_p10 = scmp.lt.u32.totalorder %s8843_s26, %s17435_s27 }
 0x596   : > { %p8845_p13 = pnand %p8844_p11, %p20131_p12 }
 0x597   : > { %p8850_p2 = por %p8849_p0, %p8848_p8 }
 0x598   : > { %p8846_p3 = pneg %p8845_p13 }
 0x599   : > { %p8852_p1 = por %p8851_p10, %p8850_p2 }
 0x59b   : > { %p8853_p4 = pnand %p8852_p1, %p8846_p3 }
 0x59d   : > { %8856 = shalt.err (!%p8853_p4)
}
 0x59e   : > { %s8940_s20 = smov 128   ;;  %s8941_s14 = smov 8  }
 0x59f   : > { %7334 = dma.vmem_to_hbm [thread:$0]  (%p20131_p12), %s17437_s18, 2048, %s17435_s27, %s17444_s28, %s8940_s20, %s8940_s20, %s8941_s14  }
 0x5a0 PF: > { %s20132_s17 = sld [smem:[#allocation16_spill]]  ;;  %p7351_p5 = scmp.ge.s32.totalorder %s8931_s8, 2 }
 0x5a1   : > { %s6811_s29 = sand.u32 1, %s8903_s24  }
 0x5a2   : > { %s6812_s13 = scalar_lea.sflag [#allocation4], %s6811_s29 }
 0x5a6   : > { %p20133_p6 = scmp.ne.s32.totalorder %s20132_s17, 0 }
 0x5a8   : > { %p7344_p7 = pnand %p7351_p5, %p20133_p6 }
 0x5aa   : > { %8898 = dma.done.wait (!%p7344_p7), %s6812_s13, 2048  }
 0x5ab   : > { %8900 = vsyncadd (!%p7344_p7), %s6812_s13, 4294965248  ;;  %s22_s8 = sadd.s32 1, %s8931_s8   ;;  %s20134_s22 = sld [smem:[#allocation11_spill]] }
 0x5ac   : > { %p19_p9 = scmp.ge.s32.totalorder %s22_s8, 6   ;;  %s20135_s26 = sld [smem:[#allocation17_spill]] }
 0x5ad   : > { %s20136_s27 = sld [smem:[#allocation12_spill]]  ;;  %s20137_s28 = sld [smem:[#allocation13_spill]] }
 0x5ae   : > { %s20138_s29 = sld [smem:[#allocation14_spill]]  ;;  %s20139_s30 = sld [smem:[#allocation15_spill]] }
 0x5af   : > { %s20140_s24 = smov %s8907_s25  ;;  %21 = sbr.rel (!%p19_p9) target bundleno = 7 (0x7), region = 92 }
 0x5b1   : > { %s20141_s25 = smov %s20134_s22 }
 0x5b6   :  { %6817 = vsyncpa [#allocation3], 1 }
 0x5b7   :  { %6819 = vsyncpa [#allocation3 + $0x1], 1 }
 0x5b8   :  { %6820 = vsyncpa [#allocation6], 1 }
 0x5b9   :  { %6821 = vsyncpa [#allocation4], 1 }
 0x5ba   :  { %6823 = vsyncpa [#allocation4 + $0x1], 1 }

</bundles_post_ra>
